<compile_context>
chip_gen: v7x
topology: tpu7x:2x2x1
jax: 0.10.0
libtpu: 0.0.40
codegen_flags: <defaults>
</compile_context>

<pallas_src>
import jax
import jax.numpy as jnp
from jax.experimental import pallas as pl
from jax.experimental.pallas import tpu as pltpu


# --------------------------- Pallas kernel bodies --------------------------- #

def _conv1_relu_pool_kernel(p_ref, w_ref, b_ref, o_ref):
    """conv1 (im2col GEMM) + 2x2/2 max-pool + bias + ReLU in one MXU GEMM.

    p_ref: (4*M, K)  phase-grouped im2col patches, rows ordered (phase, b, i, j)
    w_ref: (K, Co)   conv weights as a GEMM matrix, rows ordered (ky, kx, ci)
    b_ref: (1, Co)
    o_ref: (M, Co)   pooled output rows, row order (b, i, j)
    """
    M = o_ref.shape[0]
    y = jnp.dot(p_ref[...], w_ref[...], preferred_element_type=jnp.float32)
    # Phase max over 4 sublane-aligned row blocks (M = B*144 is a multiple of 8).
    m = jnp.maximum(jnp.maximum(y[0 * M:1 * M], y[1 * M:2 * M]),
                    jnp.maximum(y[2 * M:3 * M], y[3 * M:4 * M]))
    # bias is constant across phases and ReLU is monotone -> exact hoist.
    o_ref[...] = jnp.maximum(m + b_ref[...], 0.0).astype(o_ref.dtype)


def _conv2_mlp_kernel(p_ref, w2_ref, b2_ref, wf1_ref, bf1_ref,
                      wf2_ref, bf2_ref, wf3_ref, bf3_ref, o_ref):
    """conv2+pool (block-diag GEMM -> lane-dense (B,256) rows) + fc1/fc2/fc3.

    p_ref:  (4*B, 2400) per-image phase rows, features ordered (i, j, ky, kx, ci)
    w2_ref: (2400, 256) = kron(I_16, W2_gemm)   b2_ref: (1, 256) (bias tiled 16x)
    wf1_ref:(256, 120)  rows ordered (i, j, c)  -- matches the 256-wide feature row
    o_ref:  (B, 10)
    """
    B = o_ref.shape[0]
    y = jnp.dot(p_ref[...], w2_ref[...], preferred_element_type=jnp.float32)
    m = jnp.maximum(jnp.maximum(y[0 * B:1 * B], y[1 * B:2 * B]),
                    jnp.maximum(y[2 * B:3 * B], y[3 * B:4 * B]))
    h = jnp.maximum(m + b2_ref[...], 0.0)                     # (B, 256) lane-dense
    h = jnp.maximum(jnp.dot(h, wf1_ref[...], preferred_element_type=jnp.float32)
                    + bf1_ref[...], 0.0)                      # (B, 120)
    h = jnp.maximum(jnp.dot(h, wf2_ref[...], preferred_element_type=jnp.float32)
                    + bf2_ref[...], 0.0)                      # (B, 84)
    o = jnp.dot(h, wf3_ref[...], preferred_element_type=jnp.float32) + bf3_ref[...]
    o_ref[...] = o.astype(o_ref.dtype)                        # (B, 10)


# ------------------------------ kernel wrappers ----------------------------- #

def conv1_relu_pool(p1, w, b):
    """p1: (4*M, K) phase-grouped patches -> pooled conv1 output (M, Co)."""
    M4, K = p1.shape
    M = M4 // 4
    Co = w.shape[1]
    cost = pl.CostEstimate(
        flops=2 * M4 * K * Co + 6 * M * Co, transcendentals=0,
        bytes_accessed=4 * (p1.size + w.size + b.size + M * Co))
    return pl.pallas_call(
        _conv1_relu_pool_kernel,
        out_shape=jax.ShapeDtypeStruct((M, Co), jnp.float32),
        cost_estimate=cost,
    )(p1, w, b)


def conv2_mlp(p2, w2, b2, wf1, bf1, wf2, bf2, wf3, bf3):
    """p2: (4*B, 2400) per-image phase rows -> logits (B, 10)."""
    B4, K = p2.shape
    B = B4 // 4
    n_out = wf3.shape[1]
    flops = 2 * (B4 * K * w2.shape[1]
                 + B * (wf1.shape[0] * wf1.shape[1]
                        + wf2.shape[0] * wf2.shape[1]
                        + wf3.shape[0] * wf3.shape[1]))
    nbytes = 4 * (p2.size + w2.size + b2.size + wf1.size + bf1.size
                  + wf2.size + bf2.size + wf3.size + bf3.size + B * n_out)
    return pl.pallas_call(
        _conv2_mlp_kernel,
        out_shape=jax.ShapeDtypeStruct((B, n_out), jnp.float32),
        cost_estimate=pl.CostEstimate(flops=flops, transcendentals=0,
                                      bytes_accessed=nbytes),
        # ~3 MiB resident (2.4 MiB block-diag weight + patches); explicit limit
        # just guarantees headroom across v5e / v6e / v7x defaults.
        compiler_params=pltpu.CompilerParams(vmem_limit_bytes=32 * 1024 * 1024),
    )(p2, w2, b2, wf1, bf1, wf2, bf2, wf3, bf3)


# ------------------------------- thin JAX glue ------------------------------ #

def _pool_phase_patches(x_nhwc, k):
    """im2col patches for a valid kxk conv, grouped by 2x2/stride-2 pool phase.

    Returns (4, B, Hp*Wp, k*k*C); phase s*2+t addresses conv output (2i+s, 2j+t);
    feature order (ky, kx, ci).  Fuses into a couple of tiny XLA copies under jit.
    """
    B, H, W, C = x_nhwc.shape
    Ho, Wo = H - k + 1, W - k + 1
    Hp, Wp = Ho // 2, Wo // 2
    taps = [x_nhwc[:, ky:ky + Ho, kx:kx + Wo, :]
            for ky in range(k) for kx in range(k)]
    p = jnp.stack(taps, axis=3)                      # (B, Ho, Wo, k*k, C)
    p = p.reshape(B, Hp, 2, Wp, 2, k * k * C)
    p = p.transpose(2, 4, 0, 1, 3, 5)                # (s, t, B, Hp, Wp, K)
    return p.reshape(4, B, Hp * Wp, k * k * C)


def prepare_params(p):
    """One-time weight re-layout so the jitted forward has no weight transposes."""
    w2m = p["w2"].transpose(2, 3, 1, 0).reshape(150, 16)        # rows (ky, kx, ci)
    w2big = jnp.kron(jnp.eye(16, dtype=jnp.float32), w2m)       # (2400, 256) blkdiag
    b2big = jnp.tile(p["b2"], 16).reshape(1, 256)               # feature order (pos, c)
    wf1 = p["wf1"].T.reshape(16, 4, 4, 120)                     # rows (c, i, j)
    wf1 = wf1.transpose(1, 2, 0, 3).reshape(256, 120)           # -> rows (i, j, c)
    return {
        "w1m": p["w1"].reshape(6, 25).T,                        # (25, 6), rows (ky,kx)
        "b1":  p["b1"].reshape(1, 6),
        "w2big": w2big, "b2big": b2big,
        "wf1m": wf1,          "bf1": p["bf1"].reshape(1, 120),
        "wf2m": p["wf2"].T,   "bf2": p["bf2"].reshape(1, 84),
        "wf3m": p["wf3"].T,   "bf3": p["bf3"].reshape(1, 10),
    }


# --------------------------------- network ---------------------------------- #

@jax.jit
def net_forward(x_nchw, pp):
    B = x_nchw.shape[0]
    x = jnp.transpose(x_nchw, (0, 2, 3, 1))                     # (B, 28, 28, 1)
    # TODO(synk): the pool-phase im2col regroup below is pure data movement left to
    # XLA glue; folding it into the kernels (a full single-pallas_call forward)
    # needs in-kernel strided windowing and only pays at much larger batch.
    p1 = _pool_phase_patches(x, 5).reshape(4 * B * 144, 25)     # (4*B*144, 25)
    h1 = conv1_relu_pool(p1, pp["w1m"], pp["b1"])               # (B*144, 6)
    h1 = h1.reshape(B, 12, 12, 6)
    p2 = _pool_phase_patches(h1, 5).reshape(4 * B, 16 * 150)    # (4*B, 2400)
    return conv2_mlp(p2, pp["w2big"], pp["b2big"],
                     pp["wf1m"], pp["bf1"], pp["wf2m"], pp["bf2"],
                     pp["wf3m"], pp["bf3"])                     # (B, 10)


def net_forward_ref(x_nchw, p):
    """Pure-JAX reference for validation (matches the PyTorch module)."""
    def conv(x, w, b):
        y = jax.lax.conv_general_dilated(
            x, w, (1, 1), "VALID", dimension_numbers=("NCHW", "OIHW", "NCHW"))
        return jax.nn.relu(y + b[None, :, None, None])

    def pool(x):
        return jax.lax.reduce_window(x, -jnp.inf, jax.lax.max,
                                     (1, 1, 2, 2), (1, 1, 2, 2), "VALID")

    x = pool(conv(x_nchw, p["w1"], p["b1"]))
    x = pool(conv(x, p["w2"], p["b2"]))
    x = x.reshape(x.shape[0], -1)
    x = jax.nn.relu(x @ p["wf1"].T + p["bf1"])
    x = jax.nn.relu(x @ p["wf2"].T + p["bf2"])
    return x @ p["wf3"].T + p["bf3"]


# ----------------------------------- main ------------------------------------ #

if __name__ == "__main__":
    key = jax.random.PRNGKey(0)
    ks = jax.random.split(key, 11)
    s = 0.1
    params = {
        "w1":  jax.random.normal(ks[0], (6, 1, 5, 5), jnp.float32) * s,
        "b1":  jax.random.normal(ks[1], (6,), jnp.float32) * s,
        "w2":  jax.random.normal(ks[2], (16, 6, 5, 5), jnp.float32) * s,
        "b2":  jax.random.normal(ks[3], (16,), jnp.float32) * s,
        "wf1": jax.random.normal(ks[4], (120, 256), jnp.float32) * s,
        "bf1": jax.random.normal(ks[5], (120,), jnp.float32) * s,
        "wf2": jax.random.normal(ks[6], (84, 120), jnp.float32) * s,
        "bf2": jax.random.normal(ks[7], (84,), jnp.float32) * s,
        "wf3": jax.random.normal(ks[8], (10, 84), jnp.float32) * s,
        "bf3": jax.random.normal(ks[9], (10,), jnp.float32) * s,
    }
    # Spatial size is fixed at 28x28 by the 16*4*4 flatten in the module; batch=8
    # keeps every in-kernel phase row-slice sublane-(8-)aligned.
    x = jax.random.normal(ks[10], (8, 1, 28, 28), jnp.float32)

    pp = prepare_params(params)          # one-time weight re-layout (setup cost)

    out = jax.block_until_ready(net_forward(x, pp))
    ref = net_forward_ref(x, params)

    assert out.shape == (8, 10), out.shape
    assert jnp.allclose(out, ref, atol=1e-3, rtol=1e-3), \
        float(jnp.max(jnp.abs(out - ref)))
    print("KERNEL_OK")
</pallas_src>

<mosaic_0001>
module attributes {stable_mosaic.version = 11 : i64} {
  func.func @_conv1_relu_pool_kernel(%arg0: memref<4608x25xf32, #tpu.memory_space<vmem>>, %arg1: memref<25x6xf32, #tpu.memory_space<vmem>>, %arg2: memref<1x6xf32, #tpu.memory_space<vmem>>, %arg3: memref<1152x6xf32, #tpu.memory_space<vmem>>) attributes {dimension_semantics = [], scalar_prefetch = 0 : i64, scratch_operands = 0 : i64, tpu.core_type = #tpu.core_type<tc>} {
    %c0 = arith.constant 0 : index
    %c0_0 = arith.constant 0 : index
    %0 = vector.load %arg0[%c0, %c0_0] : memref<4608x25xf32, #tpu.memory_space<vmem>>, vector<4608x25xf32>
    %c0_1 = arith.constant 0 : index
    %c0_2 = arith.constant 0 : index
    %1 = vector.load %arg1[%c0_1, %c0_2] : memref<25x6xf32, #tpu.memory_space<vmem>>, vector<25x6xf32>
    %cst = arith.constant dense<0.000000e+00> : vector<4608x6xf32>
    %2 = tpu.matmul %0, %1, %cst {dimension_numbers = #tpu.dot_dimension_numbers<[1], [0], [0], [1], [0, 0, 1, 1], [], []>} : vector<4608x25xf32>, vector<25x6xf32>, vector<4608x6xf32> -> vector<4608x6xf32>
    %3 = vector.extract_strided_slice %2 {offsets = [0, 0], sizes = [1152, 6], strides = [1, 1]} : vector<4608x6xf32> to vector<1152x6xf32>
    %4 = vector.extract_strided_slice %2 {offsets = [1152, 0], sizes = [1152, 6], strides = [1, 1]} : vector<4608x6xf32> to vector<1152x6xf32>
    %5 = arith.maximumf %3, %4 : vector<1152x6xf32>
    %6 = vector.extract_strided_slice %2 {offsets = [2304, 0], sizes = [1152, 6], strides = [1, 1]} : vector<4608x6xf32> to vector<1152x6xf32>
    %7 = vector.extract_strided_slice %2 {offsets = [3456, 0], sizes = [1152, 6], strides = [1, 1]} : vector<4608x6xf32> to vector<1152x6xf32>
    %8 = arith.maximumf %6, %7 : vector<1152x6xf32>
    %9 = arith.maximumf %5, %8 : vector<1152x6xf32>
    %c0_3 = arith.constant 0 : index
    %c0_4 = arith.constant 0 : index
    %10 = vector.load %arg2[%c0_3, %c0_4] : memref<1x6xf32, #tpu.memory_space<vmem>>, vector<1x6xf32>
    %11 = vector.broadcast %10 : vector<1x6xf32> to vector<1152x6xf32>
    %12 = arith.addf %9, %11 : vector<1152x6xf32>
    %cst_5 = arith.constant 0.000000e+00 : f32
    %13 = vector.broadcast %cst_5 : f32 to vector<1152x6xf32>
    %14 = arith.maximumf %12, %13 : vector<1152x6xf32>
    %c0_6 = arith.constant 0 : index
    %c0_7 = arith.constant 0 : index
    %15 = vector.load %arg3[%c0_6, %c0_7] : memref<1152x6xf32, #tpu.memory_space<vmem>>, vector<1152x6xf32>
    tpu.vector_store %arg3[%c0_6, %c0_7], %14 {strides = array<i32>} : memref<1152x6xf32, #tpu.memory_space<vmem>>, vector<1152x6xf32>,
    return
  }
}

module attributes {stable_mosaic.version = 11 : i64} {
  func.func @_conv2_mlp_kernel(%arg0: memref<32x2400xf32, #tpu.memory_space<vmem>>, %arg1: memref<2400x256xf32, #tpu.memory_space<vmem>>, %arg2: memref<1x256xf32, #tpu.memory_space<vmem>>, %arg3: memref<256x120xf32, #tpu.memory_space<vmem>>, %arg4: memref<1x120xf32, #tpu.memory_space<vmem>>, %arg5: memref<120x84xf32, #tpu.memory_space<vmem>>, %arg6: memref<1x84xf32, #tpu.memory_space<vmem>>, %arg7: memref<84x10xf32, #tpu.memory_space<vmem>>, %arg8: memref<1x10xf32, #tpu.memory_space<vmem>>, %arg9: memref<8x10xf32, #tpu.memory_space<vmem>>) attributes {dimension_semantics = [], scalar_prefetch = 0 : i64, scratch_operands = 0 : i64, tpu.core_type = #tpu.core_type<tc>} {
    %c0 = arith.constant 0 : index
    %c0_0 = arith.constant 0 : index
    %0 = vector.load %arg0[%c0, %c0_0] : memref<32x2400xf32, #tpu.memory_space<vmem>>, vector<32x2400xf32>
    %c0_1 = arith.constant 0 : index
    %c0_2 = arith.constant 0 : index
    %1 = vector.load %arg1[%c0_1, %c0_2] : memref<2400x256xf32, #tpu.memory_space<vmem>>, vector<2400x256xf32>
    %cst = arith.constant dense<0.000000e+00> : vector<32x256xf32>
    %2 = tpu.matmul %0, %1, %cst {dimension_numbers = #tpu.dot_dimension_numbers<[1], [0], [0], [1], [0, 0, 1, 1], [], []>} : vector<32x2400xf32>, vector<2400x256xf32>, vector<32x256xf32> -> vector<32x256xf32>
    %3 = vector.extract_strided_slice %2 {offsets = [0, 0], sizes = [8, 256], strides = [1, 1]} : vector<32x256xf32> to vector<8x256xf32>
    %4 = vector.extract_strided_slice %2 {offsets = [8, 0], sizes = [8, 256], strides = [1, 1]} : vector<32x256xf32> to vector<8x256xf32>
    %5 = arith.maximumf %3, %4 : vector<8x256xf32>
    %6 = vector.extract_strided_slice %2 {offsets = [16, 0], sizes = [8, 256], strides = [1, 1]} : vector<32x256xf32> to vector<8x256xf32>
    %7 = vector.extract_strided_slice %2 {offsets = [24, 0], sizes = [8, 256], strides = [1, 1]} : vector<32x256xf32> to vector<8x256xf32>
    %8 = arith.maximumf %6, %7 : vector<8x256xf32>
    %9 = arith.maximumf %5, %8 : vector<8x256xf32>
    %c0_3 = arith.constant 0 : index
    %c0_4 = arith.constant 0 : index
    %10 = vector.load %arg2[%c0_3, %c0_4] : memref<1x256xf32, #tpu.memory_space<vmem>>, vector<1x256xf32>
    %11 = vector.broadcast %10 : vector<1x256xf32> to vector<8x256xf32>
    %12 = arith.addf %9, %11 : vector<8x256xf32>
    %cst_5 = arith.constant 0.000000e+00 : f32
    %13 = vector.broadcast %cst_5 : f32 to vector<8x256xf32>
    %14 = arith.maximumf %12, %13 : vector<8x256xf32>
    %c0_6 = arith.constant 0 : index
    %c0_7 = arith.constant 0 : index
    %15 = vector.load %arg3[%c0_6, %c0_7] : memref<256x120xf32, #tpu.memory_space<vmem>>, vector<256x120xf32>
    %cst_8 = arith.constant dense<0.000000e+00> : vector<8x120xf32>
    %16 = tpu.matmul %14, %15, %cst_8 {dimension_numbers = #tpu.dot_dimension_numbers<[1], [0], [0], [1], [0, 0, 1, 1], [], []>} : vector<8x256xf32>, vector<256x120xf32>, vector<8x120xf32> -> vector<8x120xf32>
    %c0_9 = arith.constant 0 : index
    %c0_10 = arith.constant 0 : index
    %17 = vector.load %arg4[%c0_9, %c0_10] : memref<1x120xf32, #tpu.memory_space<vmem>>, vector<1x120xf32>
    %18 = vector.broadcast %17 : vector<1x120xf32> to vector<8x120xf32>
    %19 = arith.addf %16, %18 : vector<8x120xf32>
    %cst_11 = arith.constant 0.000000e+00 : f32
    %20 = vector.broadcast %cst_11 : f32 to vector<8x120xf32>
    %21 = arith.maximumf %19, %20 : vector<8x120xf32>
    %c0_12 = arith.constant 0 : index
    %c0_13 = arith.constant 0 : index
    %22 = vector.load %arg5[%c0_12, %c0_13] : memref<120x84xf32, #tpu.memory_space<vmem>>, vector<120x84xf32>
    %cst_14 = arith.constant dense<0.000000e+00> : vector<8x84xf32>
    %23 = tpu.matmul %21, %22, %cst_14 {dimension_numbers = #tpu.dot_dimension_numbers<[1], [0], [0], [1], [0, 0, 1, 1], [], []>} : vector<8x120xf32>, vector<120x84xf32>, vector<8x84xf32> -> vector<8x84xf32>
    %c0_15 = arith.constant 0 : index
    %c0_16 = arith.constant 0 : index
    %24 = vector.load %arg6[%c0_15, %c0_16] : memref<1x84xf32, #tpu.memory_space<vmem>>, vector<1x84xf32>
    %25 = vector.broadcast %24 : vector<1x84xf32> to vector<8x84xf32>
    %26 = arith.addf %23, %25 : vector<8x84xf32>
    %cst_17 = arith.constant 0.000000e+00 : f32
    %27 = vector.broadcast %cst_17 : f32 to vector<8x84xf32>
    %28 = arith.maximumf %26, %27 : vector<8x84xf32>
    %c0_18 = arith.constant 0 : index
    %c0_19 = arith.constant 0 : index
    %29 = vector.load %arg7[%c0_18, %c0_19] : memref<84x10xf32, #tpu.memory_space<vmem>>, vector<84x10xf32>
    %cst_20 = arith.constant dense<0.000000e+00> : vector<8x10xf32>
    %30 = tpu.matmul %28, %29, %cst_20 {dimension_numbers = #tpu.dot_dimension_numbers<[1], [0], [0], [1], [0, 0, 1, 1], [], []>} : vector<8x84xf32>, vector<84x10xf32>, vector<8x10xf32> -> vector<8x10xf32>
    %c0_21 = arith.constant 0 : index
    %c0_22 = arith.constant 0 : index
    %31 = vector.load %arg8[%c0_21, %c0_22] : memref<1x10xf32, #tpu.memory_space<vmem>>, vector<1x10xf32>
    %32 = vector.broadcast %31 : vector<1x10xf32> to vector<8x10xf32>
    %33 = arith.addf %30, %32 : vector<8x10xf32>
    %c0_23 = arith.constant 0 : index
    %c0_24 = arith.constant 0 : index
    %34 = vector.load %arg9[%c0_23, %c0_24] : memref<8x10xf32, #tpu.memory_space<vmem>>, vector<8x10xf32>
    tpu.vector_store %arg9[%c0_23, %c0_24], %33 {strides = array<i32>} : memref<8x10xf32, #tpu.memory_space<vmem>>, vector<8x10xf32>,
    return
  }
}

</mosaic_0001>

<bundles_post_ra>
// kernel: net_forward.2
= control target key start
LH: loop header
LB: loop body
LE: loop exit
PB: predicated region body
PF: predicated region fallthrough
CT: control target
= control target key end

     0   :  { %vm2323_vm0 = vcmask 1040384   ;;  %vm594_vm1 = vcmask 203776   ;;  %vm8195_vm2 = vmmov 1   ;;  %vm5999_vm4 = vcmask 48128   ;;  %s12131_s1 = inlined_call_operand.vmem [shape: f32[25,6], index: 1, kind: input, shape index: {}]   ;;  %s12132_s0 = inlined_call_operand.vmem [shape: f32[4608,25], index: 0, kind: input, shape index: {}]   ;;  %s12133_s2 = inlined_call_operand.vmem [shape: f32[1,6], index: 2, kind: input, shape index: {}]   ;;  %s12134_s3 = inlined_call_operand.vmem [shape: f32[1152,6], index: 3, kind: output, shape index: {}]  }
   0x1   :  { %v590_v0 = vld [vmem:[%s12131_s1] sm:$0xff]  ;;  %v591_v1 = vld [vmem:[%s12131_s1 + $0x8] sm:$0xff]  ;;  %v592_v2 = vld [vmem:[%s12131_s1 + $0x10] sm:$0xff] }
   0x2   :  { %v8178_v3 = vpack.c.bf16 %v591_v1, %v590_v0  ;;  %v593_v4 = vld [vmem:[%s12131_s1 + $0x18] sm:$0x1]  ;;  %v14_v5 = vld [vmem:[%s12132_s0] sm:$0xff]  ;;  %vm8183_vm3 = vmpackc.low %vm2323_vm0, %vm8195_vm2 }
   0x3   :  { %v8182_v6 = vpack.c.bf16 %v593_v4, %v592_v2  ;;  %7314 = vmatprep.mubr.msk.f32.mxu0 %vm594_vm1, %v14_v5  ;;  %v302_v7 = vld [vmem:[%s12132_s0 + $0x900] sm:$0xff]  ;;  %v15_v8 = vld [vmem:[%s12132_s0 + $0x8] sm:$0xff]  ;;  %v16_v10 = vld [vmem:[%s12132_s0 + $0x10] sm:$0xff] }
   0x4   :  { %8179 = vmatprep.subr.bf16.mxu0 %v8178_v3  ;;  %8188 = vmatprep.subr.bf16.mxu1 %v8178_v3  ;;  %v303_v9 = vld [vmem:[%s12132_s0 + $0x908] sm:$0xff]  ;;  %v304_v11 = vld [vmem:[%s12132_s0 + $0x910] sm:$0xff]  ;;  %v17_v12 = vld [vmem:[%s12132_s0 + $0x18] sm:$0xff] }
   0x5   :  { %8181 = vmatpush3.bf16.msra.mxu0 %v8178_v3  ;;  %8190 = vmatpush3.bf16.msra.mxu1 %v8178_v3  ;;  %v305_v13 = vld [vmem:[%s12132_s0 + $0x918] sm:$0xff]  ;;  %v18_v14 = vld [vmem:[%s12132_s0 + $0x20] sm:$0xff]  ;;  %v19_v16 = vld [vmem:[%s12132_s0 + $0x28] sm:$0xff] }
   0x6   :  { %8184 = vmatprep.subr.msk.bf16.mxu0 %vm8183_vm3, %v8182_v6  ;;  %8189 = vmatprep.subr.msk.bf16.mxu1 %vm8183_vm3, %v8182_v6  ;;  %v306_v15 = vld [vmem:[%s12132_s0 + $0x920] sm:$0xff]  ;;  %v307_v17 = vld [vmem:[%s12132_s0 + $0x928] sm:$0xff]  ;;  %v20_v18 = vld [vmem:[%s12132_s0 + $0x30] sm:$0xff] }
   0x7   :  { %7746 = vmatprep.mubr.msk.f32.mxu1 %vm594_vm1, %v302_v7  ;;  %v308_v19 = vld [vmem:[%s12132_s0 + $0x930] sm:$0xff]  ;;  %v21_v20 = vld [vmem:[%s12132_s0 + $0x38] sm:$0xff]  ;;  %v22_v22 = vld [vmem:[%s12132_s0 + $0x40] sm:$0xff] }
   0x8   :  { %v309_v21 = vld [vmem:[%s12132_s0 + $0x938] sm:$0xff]  ;;  %v310_v23 = vld [vmem:[%s12132_s0 + $0x940] sm:$0xff]  ;;  %v23_v24 = vld [vmem:[%s12132_s0 + $0x48] sm:$0xff] }
   0x9   :  { %8187 = vmatpush3.bf16.msk.msra.mxu0 %vm8183_vm3, %v8182_v6  ;;  %8191 = vmatpush3.bf16.msk.msra.mxu1 %vm8183_vm3, %v8182_v6  ;;  %v311_v25 = vld [vmem:[%s12132_s0 + $0x948] sm:$0xff]  ;;  %v24_v26 = vld [vmem:[%s12132_s0 + $0x50] sm:$0xff]  ;;  %v25_v28 = vld [vmem:[%s12132_s0 + $0x58] sm:$0xff] }
   0xa   :  { %v312_v27 = vld [vmem:[%s12132_s0 + $0x950] sm:$0xff]  ;;  %v313_v29 = vld [vmem:[%s12132_s0 + $0x958] sm:$0xff]  ;;  %v26_v30 = vld [vmem:[%s12132_s0 + $0x60] sm:$0xff] }
   0xb   :  { %v314_v31 = vld [vmem:[%s12132_s0 + $0x960] sm:$0xff]  ;;  %v27_v32 = vld [vmem:[%s12132_s0 + $0x68] sm:$0xff]  ;;  %v28_v34 = vld [vmem:[%s12132_s0 + $0x70] sm:$0xff] }
   0xc   :  { %7315 = vmatmul.mubr.msk.f32.vlgmr.msra.gmra.mrb[0].mxu0 %vm594_vm1, %v15_v8  ;;  %7747 = vmatmul.mubr.msk.f32.vlgmr.msra.gmra.mrb[0].mxu1 %vm594_vm1, %v303_v9  ;;  %v315_v33 = vld [vmem:[%s12132_s0 + $0x968] sm:$0xff]  ;;  %v316_v35 = vld [vmem:[%s12132_s0 + $0x970] sm:$0xff]  ;;  %v29_v36 = vld [vmem:[%s12132_s0 + $0x78] sm:$0xff] }
   0xd   :  { %7317 = vmatprep.mubr.msk.f32.mxu0 %vm594_vm1, %v16_v10  ;;  %7749 = vmatprep.mubr.msk.f32.mxu1 %vm594_vm1, %v304_v11  ;;  %v317_v37 = vld [vmem:[%s12132_s0 + $0x978] sm:$0xff]  ;;  %v30_v38 = vld [vmem:[%s12132_s0 + $0x80] sm:$0xff]  ;;  %v31_v40 = vld [vmem:[%s12132_s0 + $0x88] sm:$0xff] }
   0xe   :  { %v318_v39 = vld [vmem:[%s12132_s0 + $0x980] sm:$0xff]  ;;  %v319_v41 = vld [vmem:[%s12132_s0 + $0x988] sm:$0xff]  ;;  %v32_v42 = vld [vmem:[%s12132_s0 + $0x90] sm:$0xff] }
   0xf   :  { %v320_v43 = vld [vmem:[%s12132_s0 + $0x990] sm:$0xff]  ;;  %v33_v44 = vld [vmem:[%s12132_s0 + $0x98] sm:$0xff]  ;;  %v34_v46 = vld [vmem:[%s12132_s0 + $0xa0] sm:$0xff] }
  0x10   :  { %7318 = vmatmul.mubr.msk.f32.gmra.mrb[2].mxu0 %vm594_vm1, %v17_v12  ;;  %7750 = vmatmul.mubr.msk.f32.gmra.mrb[2].mxu1 %vm594_vm1, %v305_v13  ;;  %v321_v45 = vld [vmem:[%s12132_s0 + $0x998] sm:$0xff]  ;;  %v322_v47 = vld [vmem:[%s12132_s0 + $0x9a0] sm:$0xff]  ;;  %v35_v48 = vld [vmem:[%s12132_s0 + $0xa8] sm:$0xff] }
  0x11   :  { %7320 = vmatprep.mubr.msk.f32.mxu0 %vm594_vm1, %v18_v14  ;;  %7752 = vmatprep.mubr.msk.f32.mxu1 %vm594_vm1, %v306_v15  ;;  %v323_v49 = vld [vmem:[%s12132_s0 + $0x9a8] sm:$0xff]  ;;  %v36_v50 = vld [vmem:[%s12132_s0 + $0xb0] sm:$0xff]  ;;  %v37_v52 = vld [vmem:[%s12132_s0 + $0xb8] sm:$0xff] }
  0x12   :  { %v324_v51 = vld [vmem:[%s12132_s0 + $0x9b0] sm:$0xff]  ;;  %v325_v53 = vld [vmem:[%s12132_s0 + $0x9b8] sm:$0xff]  ;;  %v38_v54 = vld [vmem:[%s12132_s0 + $0xc0] sm:$0xff] }
  0x13   :  { %v326_v55 = vld [vmem:[%s12132_s0 + $0x9c0] sm:$0xff]  ;;  %v39_v56 = vld [vmem:[%s12132_s0 + $0xc8] sm:$0xff]  ;;  %v40_v58 = vld [vmem:[%s12132_s0 + $0xd0] sm:$0xff] }
  0x14   :  { %7321 = vmatmul.mubr.msk.f32.gmra.mrb[4].mxu0 %vm594_vm1, %v19_v16  ;;  %7753 = vmatmul.mubr.msk.f32.gmra.mrb[4].mxu1 %vm594_vm1, %v307_v17  ;;  %v327_v57 = vld [vmem:[%s12132_s0 + $0x9c8] sm:$0xff]  ;;  %v328_v59 = vld [vmem:[%s12132_s0 + $0x9d0] sm:$0xff]  ;;  %v41_v60 = vld [vmem:[%s12132_s0 + $0xd8] sm:$0xff] }
  0x15   :  { %7323 = vmatprep.mubr.msk.f32.mxu0 %vm594_vm1, %v20_v18  ;;  %7755 = vmatprep.mubr.msk.f32.mxu1 %vm594_vm1, %v308_v19  ;;  %v329_v61 = vld [vmem:[%s12132_s0 + $0x9d8] sm:$0xff]  ;;  %v42_v62 = vld [vmem:[%s12132_s0 + $0xe0] sm:$0xff]  ;;  %v43_v0 = vld [vmem:[%s12132_s0 + $0xe8] sm:$0xff] }
  0x16   :  { %v330_v63 = vld [vmem:[%s12132_s0 + $0x9e0] sm:$0xff]  ;;  %v331_v1 = vld [vmem:[%s12132_s0 + $0x9e8] sm:$0xff]  ;;  %v44_v2 = vld [vmem:[%s12132_s0 + $0xf0] sm:$0xff] }
  0x17   :  { %v332_v3 = vld [vmem:[%s12132_s0 + $0x9f0] sm:$0xff]  ;;  %v45_v4 = vld [vmem:[%s12132_s0 + $0xf8] sm:$0xff]  ;;  %v46_v6 = vld [vmem:[%s12132_s0 + $0x100] sm:$0xff] }
  0x18   :  { %7324 = vmatmul.mubr.msk.f32.gmra.mrb[6].mxu0 %vm594_vm1, %v21_v20  ;;  %7756 = vmatmul.mubr.msk.f32.gmra.mrb[6].mxu1 %vm594_vm1, %v309_v21  ;;  %v333_v5 = vld [vmem:[%s12132_s0 + $0x9f8] sm:$0xff]  ;;  %v334_v7 = vld [vmem:[%s12132_s0 + $0xa00] sm:$0xff]  ;;  %v47_v8 = vld [vmem:[%s12132_s0 + $0x108] sm:$0xff] }
  0x19   :  { %7326 = vmatprep.mubr.msk.f32.mxu0 %vm594_vm1, %v22_v22  ;;  %7758 = vmatprep.mubr.msk.f32.mxu1 %vm594_vm1, %v310_v23  ;;  %v335_v9 = vld [vmem:[%s12132_s0 + $0xa08] sm:$0xff]  ;;  %v48_v10 = vld [vmem:[%s12132_s0 + $0x110] sm:$0xff]  ;;  %v49_v12 = vld [vmem:[%s12132_s0 + $0x118] sm:$0xff] }
  0x1a   :  { %v336_v11 = vld [vmem:[%s12132_s0 + $0xa10] sm:$0xff]  ;;  %v337_v13 = vld [vmem:[%s12132_s0 + $0xa18] sm:$0xff]  ;;  %v50_v14 = vld [vmem:[%s12132_s0 + $0x120] sm:$0xff] }
  0x1b   :  { %v338_v15 = vld [vmem:[%s12132_s0 + $0xa20] sm:$0xff]  ;;  %v51_v16 = vld [vmem:[%s12132_s0 + $0x128] sm:$0xff]  ;;  %v52_v18 = vld [vmem:[%s12132_s0 + $0x130] sm:$0xff] }
  0x1c   :  { %7327 = vmatmul.mubr.msk.f32.gmra.mrb[8].mxu0 %vm594_vm1, %v23_v24  ;;  %7759 = vmatmul.mubr.msk.f32.gmra.mrb[8].mxu1 %vm594_vm1, %v311_v25  ;;  %v339_v17 = vld [vmem:[%s12132_s0 + $0xa28] sm:$0xff]  ;;  %v340_v19 = vld [vmem:[%s12132_s0 + $0xa30] sm:$0xff]  ;;  %v53_v20 = vld [vmem:[%s12132_s0 + $0x138] sm:$0xff] }
  0x1d   :  { %7329 = vmatprep.mubr.msk.f32.mxu0 %vm594_vm1, %v24_v26  ;;  %7761 = vmatprep.mubr.msk.f32.mxu1 %vm594_vm1, %v312_v27  ;;  %v341_v21 = vld [vmem:[%s12132_s0 + $0xa38] sm:$0xff]  ;;  %v54_v22 = vld [vmem:[%s12132_s0 + $0x140] sm:$0xff]  ;;  %v55_v24 = vld [vmem:[%s12132_s0 + $0x148] sm:$0xff] }
  0x1e   :  { %v342_v23 = vld [vmem:[%s12132_s0 + $0xa40] sm:$0xff]  ;;  %v343_v25 = vld [vmem:[%s12132_s0 + $0xa48] sm:$0xff]  ;;  %v56_v26 = vld [vmem:[%s12132_s0 + $0x150] sm:$0xff] }
  0x1f   :  { %v344_v27 = vld [vmem:[%s12132_s0 + $0xa50] sm:$0xff] }
  0x20   :  { %7330 = vmatmul.mubr.msk.f32.gmra.mrb[10].mxu0 %vm594_vm1, %v25_v28  ;;  %7762 = vmatmul.mubr.msk.f32.gmra.mrb[10].mxu1 %vm594_vm1, %v313_v29  ;;  %v57_v28 = vld [vmem:[%s12132_s0 + $0x158] sm:$0xff] }
  0x21   :  { %7332 = vmatprep.mubr.msk.f32.mxu0 %vm594_vm1, %v26_v30  ;;  %7764 = vmatprep.mubr.msk.f32.mxu1 %vm594_vm1, %v314_v31  ;;  %v345_v29 = vld [vmem:[%s12132_s0 + $0xa58] sm:$0xff]  ;;  %v58_v30 = vld [vmem:[%s12132_s0 + $0x160] sm:$0xff] }
  0x22   :  { %v346_v31 = vld [vmem:[%s12132_s0 + $0xa60] sm:$0xff] }
  0x24   :  { %7333 = vmatmul.mubr.msk.f32.gmra.mrb[12].mxu0 %vm594_vm1, %v27_v32  ;;  %7765 = vmatmul.mubr.msk.f32.gmra.mrb[12].mxu1 %vm594_vm1, %v315_v33  ;;  %v59_v32 = vld [vmem:[%s12132_s0 + $0x168] sm:$0xff] }
  0x25   :  { %7335 = vmatprep.mubr.msk.f32.mxu0 %vm594_vm1, %v28_v34  ;;  %7767 = vmatprep.mubr.msk.f32.mxu1 %vm594_vm1, %v316_v35  ;;  %v347_v33 = vld [vmem:[%s12132_s0 + $0xa68] sm:$0xff]  ;;  %v60_v34 = vld [vmem:[%s12132_s0 + $0x170] sm:$0xff] }
  0x26   :  { %v348_v35 = vld [vmem:[%s12132_s0 + $0xa70] sm:$0xff] }
  0x28   :  { %7336 = vmatmul.mubr.msk.f32.gmra.mrb[14].mxu0 %vm594_vm1, %v29_v36  ;;  %7768 = vmatmul.mubr.msk.f32.gmra.mrb[14].mxu1 %vm594_vm1, %v317_v37  ;;  %v61_v36 = vld [vmem:[%s12132_s0 + $0x178] sm:$0xff] }
  0x29   :  { %7338 = vmatprep.mubr.msk.f32.mxu0 %vm594_vm1, %v30_v38  ;;  %7770 = vmatprep.mubr.msk.f32.mxu1 %vm594_vm1, %v318_v39  ;;  %v349_v37 = vld [vmem:[%s12132_s0 + $0xa78] sm:$0xff]  ;;  %v62_v38 = vld [vmem:[%s12132_s0 + $0x180] sm:$0xff] }
  0x2a   :  { %v350_v39 = vld [vmem:[%s12132_s0 + $0xa80] sm:$0xff] }
  0x2c   :  { %7339 = vmatmul.mubr.msk.f32.gmra.mrb[16].mxu0 %vm594_vm1, %v31_v40  ;;  %7771 = vmatmul.mubr.msk.f32.gmra.mrb[16].mxu1 %vm594_vm1, %v319_v41  ;;  %v63_v40 = vld [vmem:[%s12132_s0 + $0x188] sm:$0xff] }
  0x2d   :  { %7341 = vmatprep.mubr.msk.f32.mxu0 %vm594_vm1, %v32_v42  ;;  %7773 = vmatprep.mubr.msk.f32.mxu1 %vm594_vm1, %v320_v43  ;;  %v351_v41 = vld [vmem:[%s12132_s0 + $0xa88] sm:$0xff]  ;;  %v64_v42 = vld [vmem:[%s12132_s0 + $0x190] sm:$0xff] }
  0x2e   :  { %v352_v43 = vld [vmem:[%s12132_s0 + $0xa90] sm:$0xff] }
  0x30   :  { %7342 = vmatmul.mubr.msk.f32.gmra.mrb[18].mxu0 %vm594_vm1, %v33_v44  ;;  %7774 = vmatmul.mubr.msk.f32.gmra.mrb[18].mxu1 %vm594_vm1, %v321_v45  ;;  %v65_v44 = vld [vmem:[%s12132_s0 + $0x198] sm:$0xff] }
  0x31   :  { %7344 = vmatprep.mubr.msk.f32.mxu0 %vm594_vm1, %v34_v46  ;;  %7776 = vmatprep.mubr.msk.f32.mxu1 %vm594_vm1, %v322_v47  ;;  %v353_v45 = vld [vmem:[%s12132_s0 + $0xa98] sm:$0xff]  ;;  %v66_v46 = vld [vmem:[%s12132_s0 + $0x1a0] sm:$0xff] }
  0x32   :  { %v354_v47 = vld [vmem:[%s12132_s0 + $0xaa0] sm:$0xff] }
  0x34   :  { %7345 = vmatmul.mubr.msk.f32.gmra.mrb[20].mxu0 %vm594_vm1, %v35_v48  ;;  %7777 = vmatmul.mubr.msk.f32.gmra.mrb[20].mxu1 %vm594_vm1, %v323_v49  ;;  %v67_v48 = vld [vmem:[%s12132_s0 + $0x1a8] sm:$0xff] }
  0x35   :  { %7347 = vmatprep.mubr.msk.f32.mxu0 %vm594_vm1, %v36_v50  ;;  %7779 = vmatprep.mubr.msk.f32.mxu1 %vm594_vm1, %v324_v51  ;;  %v355_v49 = vld [vmem:[%s12132_s0 + $0xaa8] sm:$0xff]  ;;  %v68_v50 = vld [vmem:[%s12132_s0 + $0x1b0] sm:$0xff] }
  0x36   :  { %v356_v51 = vld [vmem:[%s12132_s0 + $0xab0] sm:$0xff] }
  0x38   :  { %7348 = vmatmul.mubr.msk.f32.gmra.mrb[22].mxu0 %vm594_vm1, %v37_v52  ;;  %7780 = vmatmul.mubr.msk.f32.gmra.mrb[22].mxu1 %vm594_vm1, %v325_v53  ;;  %v69_v52 = vld [vmem:[%s12132_s0 + $0x1b8] sm:$0xff] }
  0x39   :  { %7350 = vmatprep.mubr.msk.f32.mxu0 %vm594_vm1, %v38_v54  ;;  %7782 = vmatprep.mubr.msk.f32.mxu1 %vm594_vm1, %v326_v55  ;;  %v357_v53 = vld [vmem:[%s12132_s0 + $0xab8] sm:$0xff]  ;;  %v70_v54 = vld [vmem:[%s12132_s0 + $0x1c0] sm:$0xff] }
  0x3a   :  { %v358_v55 = vld [vmem:[%s12132_s0 + $0xac0] sm:$0xff] }
  0x3c   :  { %7351 = vmatmul.mubr.msk.f32.gmra.mrb[24].mxu0 %vm594_vm1, %v39_v56  ;;  %7783 = vmatmul.mubr.msk.f32.gmra.mrb[24].mxu1 %vm594_vm1, %v327_v57  ;;  %v71_v56 = vld [vmem:[%s12132_s0 + $0x1c8] sm:$0xff] }
  0x3d   :  { %7353 = vmatprep.mubr.msk.f32.mxu0 %vm594_vm1, %v40_v58  ;;  %7785 = vmatprep.mubr.msk.f32.mxu1 %vm594_vm1, %v328_v59  ;;  %v359_v57 = vld [vmem:[%s12132_s0 + $0xac8] sm:$0xff]  ;;  %v72_v58 = vld [vmem:[%s12132_s0 + $0x1d0] sm:$0xff] }
  0x3e   :  { %v360_v59 = vld [vmem:[%s12132_s0 + $0xad0] sm:$0xff] }
  0x40   :  { %7354 = vmatmul.mubr.msk.f32.gmra.mrb[26].mxu0 %vm594_vm1, %v41_v60  ;;  %7786 = vmatmul.mubr.msk.f32.gmra.mrb[26].mxu1 %vm594_vm1, %v329_v61  ;;  %v73_v60 = vld [vmem:[%s12132_s0 + $0x1d8] sm:$0xff] }
  0x41   :  { %7356 = vmatprep.mubr.msk.f32.mxu0 %vm594_vm1, %v42_v62  ;;  %7788 = vmatprep.mubr.msk.f32.mxu1 %vm594_vm1, %v330_v63  ;;  %v361_v61 = vld [vmem:[%s12132_s0 + $0xad8] sm:$0xff]  ;;  %v74_v62 = vld [vmem:[%s12132_s0 + $0x1e0] sm:$0xff] }
  0x42   :  { %v362_v63 = vld [vmem:[%s12132_s0 + $0xae0] sm:$0xff] }
  0x44   :  { %7357 = vmatmul.mubr.msk.f32.gmra.mrb[28].mxu0 %vm594_vm1, %v43_v0  ;;  %7789 = vmatmul.mubr.msk.f32.gmra.mrb[28].mxu1 %vm594_vm1, %v331_v1  ;;  %v75_v0 = vld [vmem:[%s12132_s0 + $0x1e8] sm:$0xff] }
  0x45   :  { %7359 = vmatprep.mubr.msk.f32.mxu0 %vm594_vm1, %v44_v2  ;;  %7791 = vmatprep.mubr.msk.f32.mxu1 %vm594_vm1, %v332_v3  ;;  %v363_v1 = vld [vmem:[%s12132_s0 + $0xae8] sm:$0xff]  ;;  %v76_v2 = vld [vmem:[%s12132_s0 + $0x1f0] sm:$0xff] }
  0x46   :  { %v364_v3 = vld [vmem:[%s12132_s0 + $0xaf0] sm:$0xff] }
  0x48   :  { %7360 = vmatmul.mubr.msk.f32.gmra.mrb[30].mxu0 %vm594_vm1, %v45_v4  ;;  %7792 = vmatmul.mubr.msk.f32.gmra.mrb[30].mxu1 %vm594_vm1, %v333_v5  ;;  %v77_v4 = vld [vmem:[%s12132_s0 + $0x1f8] sm:$0xff] }
  0x49   :  { %7362 = vmatprep.mubr.msk.f32.mxu0 %vm594_vm1, %v46_v6  ;;  %7794 = vmatprep.mubr.msk.f32.mxu1 %vm594_vm1, %v334_v7  ;;  %v365_v5 = vld [vmem:[%s12132_s0 + $0xaf8] sm:$0xff]  ;;  %v78_v6 = vld [vmem:[%s12132_s0 + $0x200] sm:$0xff] }
  0x4a   :  { %v366_v7 = vld [vmem:[%s12132_s0 + $0xb00] sm:$0xff] }
  0x4c   :  { %7363 = vmatmul.mubr.msk.f32.gmra.mrb[32].mxu0 %vm594_vm1, %v47_v8  ;;  %7795 = vmatmul.mubr.msk.f32.gmra.mrb[32].mxu1 %vm594_vm1, %v335_v9  ;;  %v79_v8 = vld [vmem:[%s12132_s0 + $0x208] sm:$0xff] }
  0x4d   :  { %7365 = vmatprep.mubr.msk.f32.mxu0 %vm594_vm1, %v48_v10  ;;  %7797 = vmatprep.mubr.msk.f32.mxu1 %vm594_vm1, %v336_v11  ;;  %v367_v9 = vld [vmem:[%s12132_s0 + $0xb08] sm:$0xff]  ;;  %v80_v10 = vld [vmem:[%s12132_s0 + $0x210] sm:$0xff] }
  0x4e   :  { %v368_v11 = vld [vmem:[%s12132_s0 + $0xb10] sm:$0xff] }
  0x50   :  { %7366 = vmatmul.mubr.msk.f32.gmra.mrb[34].mxu0 %vm594_vm1, %v49_v12  ;;  %7798 = vmatmul.mubr.msk.f32.gmra.mrb[34].mxu1 %vm594_vm1, %v337_v13  ;;  %v81_v12 = vld [vmem:[%s12132_s0 + $0x218] sm:$0xff] }
  0x51   :  { %7368 = vmatprep.mubr.msk.f32.mxu0 %vm594_vm1, %v50_v14  ;;  %7800 = vmatprep.mubr.msk.f32.mxu1 %vm594_vm1, %v338_v15  ;;  %v369_v13 = vld [vmem:[%s12132_s0 + $0xb18] sm:$0xff]  ;;  %v82_v14 = vld [vmem:[%s12132_s0 + $0x220] sm:$0xff] }
  0x52   :  { %v370_v15 = vld [vmem:[%s12132_s0 + $0xb20] sm:$0xff] }
  0x54   :  { %7369 = vmatmul.mubr.msk.f32.gmra.mrb[36].mxu0 %vm594_vm1, %v51_v16  ;;  %7801 = vmatmul.mubr.msk.f32.gmra.mrb[36].mxu1 %vm594_vm1, %v339_v17  ;;  %v83_v16 = vld [vmem:[%s12132_s0 + $0x228] sm:$0xff] }
  0x55   :  { %7371 = vmatprep.mubr.msk.f32.mxu0 %vm594_vm1, %v52_v18  ;;  %7803 = vmatprep.mubr.msk.f32.mxu1 %vm594_vm1, %v340_v19  ;;  %v371_v17 = vld [vmem:[%s12132_s0 + $0xb28] sm:$0xff]  ;;  %v84_v18 = vld [vmem:[%s12132_s0 + $0x230] sm:$0xff] }
  0x56   :  { %v372_v19 = vld [vmem:[%s12132_s0 + $0xb30] sm:$0xff] }
  0x58   :  { %7372 = vmatmul.mubr.msk.f32.gmra.mrb[38].mxu0 %vm594_vm1, %v53_v20  ;;  %7804 = vmatmul.mubr.msk.f32.gmra.mrb[38].mxu1 %vm594_vm1, %v341_v21  ;;  %v85_v20 = vld [vmem:[%s12132_s0 + $0x238] sm:$0xff] }
  0x59   :  { %7374 = vmatprep.mubr.msk.f32.mxu0 %vm594_vm1, %v54_v22  ;;  %7806 = vmatprep.mubr.msk.f32.mxu1 %vm594_vm1, %v342_v23  ;;  %v373_v21 = vld [vmem:[%s12132_s0 + $0xb38] sm:$0xff]  ;;  %v86_v22 = vld [vmem:[%s12132_s0 + $0x240] sm:$0xff] }
  0x5a   :  { %v374_v23 = vld [vmem:[%s12132_s0 + $0xb40] sm:$0xff] }
  0x5c   :  { %7375 = vmatmul.mubr.msk.f32.gmra.mrb[40].mxu0 %vm594_vm1, %v55_v24  ;;  %7807 = vmatmul.mubr.msk.f32.gmra.mrb[40].mxu1 %vm594_vm1, %v343_v25  ;;  %v87_v24 = vld [vmem:[%s12132_s0 + $0x248] sm:$0xff] }
  0x5d   :  { %7377 = vmatprep.mubr.msk.f32.mxu0 %vm594_vm1, %v56_v26  ;;  %7809 = vmatprep.mubr.msk.f32.mxu1 %vm594_vm1, %v344_v27  ;;  %v375_v25 = vld [vmem:[%s12132_s0 + $0xb48] sm:$0xff]  ;;  %v88_v26 = vld [vmem:[%s12132_s0 + $0x250] sm:$0xff] }
  0x5e   :  { %v376_v27 = vld [vmem:[%s12132_s0 + $0xb50] sm:$0xff] }
  0x60   :  { %7378 = vmatmul.mubr.msk.f32.gmra.mrb[42].mxu0 %vm594_vm1, %v57_v28  ;;  %7810 = vmatmul.mubr.msk.f32.gmra.mrb[42].mxu1 %vm594_vm1, %v345_v29  ;;  %v89_v28 = vld [vmem:[%s12132_s0 + $0x258] sm:$0xff] }
  0x61   :  { %7380 = vmatprep.mubr.msk.f32.mxu0 %vm594_vm1, %v58_v30  ;;  %7812 = vmatprep.mubr.msk.f32.mxu1 %vm594_vm1, %v346_v31  ;;  %v377_v29 = vld [vmem:[%s12132_s0 + $0xb58] sm:$0xff]  ;;  %v90_v30 = vld [vmem:[%s12132_s0 + $0x260] sm:$0xff] }
  0x62   :  { %v378_v31 = vld [vmem:[%s12132_s0 + $0xb60] sm:$0xff] }
  0x64   :  { %7381 = vmatmul.mubr.msk.f32.gmra.mrb[44].mxu0 %vm594_vm1, %v59_v32  ;;  %7813 = vmatmul.mubr.msk.f32.gmra.mrb[44].mxu1 %vm594_vm1, %v347_v33  ;;  %v91_v32 = vld [vmem:[%s12132_s0 + $0x268] sm:$0xff] }
  0x65   :  { %7383 = vmatprep.mubr.msk.f32.mxu0 %vm594_vm1, %v60_v34  ;;  %7815 = vmatprep.mubr.msk.f32.mxu1 %vm594_vm1, %v348_v35  ;;  %v379_v33 = vld [vmem:[%s12132_s0 + $0xb68] sm:$0xff]  ;;  %v92_v34 = vld [vmem:[%s12132_s0 + $0x270] sm:$0xff] }
  0x66   :  { %v380_v35 = vld [vmem:[%s12132_s0 + $0xb70] sm:$0xff] }
  0x68   :  { %7384 = vmatmul.mubr.msk.f32.gmra.mrb[46].mxu0 %vm594_vm1, %v61_v36  ;;  %7816 = vmatmul.mubr.msk.f32.gmra.mrb[46].mxu1 %vm594_vm1, %v349_v37  ;;  %v93_v36 = vld [vmem:[%s12132_s0 + $0x278] sm:$0xff] }
  0x69   :  { %7386 = vmatprep.mubr.msk.f32.mxu0 %vm594_vm1, %v62_v38  ;;  %7818 = vmatprep.mubr.msk.f32.mxu1 %vm594_vm1, %v350_v39  ;;  %v381_v37 = vld [vmem:[%s12132_s0 + $0xb78] sm:$0xff]  ;;  %v94_v38 = vld [vmem:[%s12132_s0 + $0x280] sm:$0xff] }
  0x6a   :  { %v382_v39 = vld [vmem:[%s12132_s0 + $0xb80] sm:$0xff] }
  0x6c   :  { %7387 = vmatmul.mubr.msk.f32.gmra.mrb[48].mxu0 %vm594_vm1, %v63_v40  ;;  %7819 = vmatmul.mubr.msk.f32.gmra.mrb[48].mxu1 %vm594_vm1, %v351_v41  ;;  %v95_v40 = vld [vmem:[%s12132_s0 + $0x288] sm:$0xff] }
  0x6d   :  { %7389 = vmatprep.mubr.msk.f32.mxu0 %vm594_vm1, %v64_v42  ;;  %7821 = vmatprep.mubr.msk.f32.mxu1 %vm594_vm1, %v352_v43  ;;  %v383_v41 = vld [vmem:[%s12132_s0 + $0xb88] sm:$0xff]  ;;  %v96_v42 = vld [vmem:[%s12132_s0 + $0x290] sm:$0xff] }
  0x6e   :  { %v384_v43 = vld [vmem:[%s12132_s0 + $0xb90] sm:$0xff] }
  0x70   :  { %7390 = vmatmul.mubr.msk.f32.gmra.mrb[50].mxu0 %vm594_vm1, %v65_v44  ;;  %7822 = vmatmul.mubr.msk.f32.gmra.mrb[50].mxu1 %vm594_vm1, %v353_v45  ;;  %v97_v44 = vld [vmem:[%s12132_s0 + $0x298] sm:$0xff] }
  0x71   :  { %7392 = vmatprep.mubr.msk.f32.mxu0 %vm594_vm1, %v66_v46  ;;  %7824 = vmatprep.mubr.msk.f32.mxu1 %vm594_vm1, %v354_v47  ;;  %v385_v45 = vld [vmem:[%s12132_s0 + $0xb98] sm:$0xff]  ;;  %v98_v46 = vld [vmem:[%s12132_s0 + $0x2a0] sm:$0xff] }
  0x72   :  { %v386_v47 = vld [vmem:[%s12132_s0 + $0xba0] sm:$0xff] }
  0x74   :  { %7393 = vmatmul.mubr.msk.f32.gmra.mrb[52].mxu0 %vm594_vm1, %v67_v48  ;;  %7825 = vmatmul.mubr.msk.f32.gmra.mrb[52].mxu1 %vm594_vm1, %v355_v49  ;;  %v99_v48 = vld [vmem:[%s12132_s0 + $0x2a8] sm:$0xff] }
  0x75   :  { %7395 = vmatprep.mubr.msk.f32.mxu0 %vm594_vm1, %v68_v50  ;;  %7827 = vmatprep.mubr.msk.f32.mxu1 %vm594_vm1, %v356_v51  ;;  %v387_v49 = vld [vmem:[%s12132_s0 + $0xba8] sm:$0xff]  ;;  %v100_v50 = vld [vmem:[%s12132_s0 + $0x2b0] sm:$0xff] }
  0x76   :  { %v388_v51 = vld [vmem:[%s12132_s0 + $0xbb0] sm:$0xff] }
  0x78   :  { %7396 = vmatmul.mubr.msk.f32.gmra.mrb[54].mxu0 %vm594_vm1, %v69_v52  ;;  %7828 = vmatmul.mubr.msk.f32.gmra.mrb[54].mxu1 %vm594_vm1, %v357_v53  ;;  %v101_v52 = vld [vmem:[%s12132_s0 + $0x2b8] sm:$0xff] }
  0x79   :  { %7398 = vmatprep.mubr.msk.f32.mxu0 %vm594_vm1, %v70_v54  ;;  %7830 = vmatprep.mubr.msk.f32.mxu1 %vm594_vm1, %v358_v55  ;;  %v389_v53 = vld [vmem:[%s12132_s0 + $0xbb8] sm:$0xff]  ;;  %v102_v54 = vld [vmem:[%s12132_s0 + $0x2c0] sm:$0xff] }
  0x7a   :  { %v390_v55 = vld [vmem:[%s12132_s0 + $0xbc0] sm:$0xff] }
  0x7c   :  { %7399 = vmatmul.mubr.msk.f32.gmra.mrb[56].mxu0 %vm594_vm1, %v71_v56  ;;  %7831 = vmatmul.mubr.msk.f32.gmra.mrb[56].mxu1 %vm594_vm1, %v359_v57  ;;  %v103_v56 = vld [vmem:[%s12132_s0 + $0x2c8] sm:$0xff] }
  0x7d   :  { %7401 = vmatprep.mubr.msk.f32.mxu0 %vm594_vm1, %v72_v58  ;;  %7833 = vmatprep.mubr.msk.f32.mxu1 %vm594_vm1, %v360_v59  ;;  %v391_v57 = vld [vmem:[%s12132_s0 + $0xbc8] sm:$0xff]  ;;  %v104_v58 = vld [vmem:[%s12132_s0 + $0x2d0] sm:$0xff] }
  0x7e   :  { %v392_v59 = vld [vmem:[%s12132_s0 + $0xbd0] sm:$0xff] }
  0x80   :  { %7402 = vmatmul.mubr.msk.f32.gmra.mrb[58].mxu0 %vm594_vm1, %v73_v60  ;;  %7834 = vmatmul.mubr.msk.f32.gmra.mrb[58].mxu1 %vm594_vm1, %v361_v61  ;;  %v105_v60 = vld [vmem:[%s12132_s0 + $0x2d8] sm:$0xff] }
  0x81   :  { %7404 = vmatprep.mubr.msk.f32.mxu0 %vm594_vm1, %v74_v62  ;;  %7836 = vmatprep.mubr.msk.f32.mxu1 %vm594_vm1, %v362_v63  ;;  %v393_v61 = vld [vmem:[%s12132_s0 + $0xbd8] sm:$0xff]  ;;  %v106_v62 = vld [vmem:[%s12132_s0 + $0x2e0] sm:$0xff] }
  0x82   :  { %v394_v63 = vld [vmem:[%s12132_s0 + $0xbe0] sm:$0xff] }
  0x84   :  { %7405 = vmatmul.mubr.msk.f32.gmra.mrb[60].mxu0 %vm594_vm1, %v75_v0  ;;  %7837 = vmatmul.mubr.msk.f32.gmra.mrb[60].mxu1 %vm594_vm1, %v363_v1  ;;  %v107_v0 = vld [vmem:[%s12132_s0 + $0x2e8] sm:$0xff] }
  0x85   :  { %7407 = vmatprep.mubr.msk.f32.mxu0 %vm594_vm1, %v76_v2  ;;  %7839 = vmatprep.mubr.msk.f32.mxu1 %vm594_vm1, %v364_v3  ;;  %v395_v1 = vld [vmem:[%s12132_s0 + $0xbe8] sm:$0xff]  ;;  %v108_v2 = vld [vmem:[%s12132_s0 + $0x2f0] sm:$0xff] }
  0x86   :  { %v396_v3 = vld [vmem:[%s12132_s0 + $0xbf0] sm:$0xff] }
  0x88   :  { %7408 = vmatmul.mubr.msk.f32.gmra.mrb[62].mxu0 %vm594_vm1, %v77_v4  ;;  %7840 = vmatmul.mubr.msk.f32.gmra.mrb[62].mxu1 %vm594_vm1, %v365_v5  ;;  %v109_v4 = vld [vmem:[%s12132_s0 + $0x2f8] sm:$0xff] }
  0x89   :  { %7410 = vmatprep.mubr.msk.f32.mxu0 %vm594_vm1, %v78_v6  ;;  %7842 = vmatprep.mubr.msk.f32.mxu1 %vm594_vm1, %v366_v7  ;;  %v397_v5 = vld [vmem:[%s12132_s0 + $0xbf8] sm:$0xff]  ;;  %v110_v6 = vld [vmem:[%s12132_s0 + $0x300] sm:$0xff] }
  0x8a   :  { %v398_v7 = vld [vmem:[%s12132_s0 + $0xc00] sm:$0xff] }
  0x8c   :  { %7411 = vmatmul.mubr.msk.f32.gmra.mrb[64].mxu0 %vm594_vm1, %v79_v8  ;;  %7843 = vmatmul.mubr.msk.f32.gmra.mrb[64].mxu1 %vm594_vm1, %v367_v9  ;;  %v111_v8 = vld [vmem:[%s12132_s0 + $0x308] sm:$0xff] }
  0x8d   :  { %7413 = vmatprep.mubr.msk.f32.mxu0 %vm594_vm1, %v80_v10  ;;  %7845 = vmatprep.mubr.msk.f32.mxu1 %vm594_vm1, %v368_v11  ;;  %v399_v9 = vld [vmem:[%s12132_s0 + $0xc08] sm:$0xff]  ;;  %v112_v10 = vld [vmem:[%s12132_s0 + $0x310] sm:$0xff] }
  0x8e   :  { %v400_v11 = vld [vmem:[%s12132_s0 + $0xc10] sm:$0xff] }
  0x90   :  { %7414 = vmatmul.mubr.msk.f32.gmra.mrb[66].mxu0 %vm594_vm1, %v81_v12  ;;  %7846 = vmatmul.mubr.msk.f32.gmra.mrb[66].mxu1 %vm594_vm1, %v369_v13  ;;  %v113_v12 = vld [vmem:[%s12132_s0 + $0x318] sm:$0xff] }
  0x91   :  { %7416 = vmatprep.mubr.msk.f32.mxu0 %vm594_vm1, %v82_v14  ;;  %7848 = vmatprep.mubr.msk.f32.mxu1 %vm594_vm1, %v370_v15  ;;  %v401_v13 = vld [vmem:[%s12132_s0 + $0xc18] sm:$0xff]  ;;  %v114_v14 = vld [vmem:[%s12132_s0 + $0x320] sm:$0xff] }
  0x92   :  { %v402_v15 = vld [vmem:[%s12132_s0 + $0xc20] sm:$0xff] }
  0x94   :  { %7417 = vmatmul.mubr.msk.f32.gmra.mrb[68].mxu0 %vm594_vm1, %v83_v16  ;;  %7849 = vmatmul.mubr.msk.f32.gmra.mrb[68].mxu1 %vm594_vm1, %v371_v17  ;;  %v115_v16 = vld [vmem:[%s12132_s0 + $0x328] sm:$0xff] }
  0x95   :  { %7419 = vmatprep.mubr.msk.f32.mxu0 %vm594_vm1, %v84_v18  ;;  %7851 = vmatprep.mubr.msk.f32.mxu1 %vm594_vm1, %v372_v19  ;;  %v403_v17 = vld [vmem:[%s12132_s0 + $0xc28] sm:$0xff]  ;;  %v116_v18 = vld [vmem:[%s12132_s0 + $0x330] sm:$0xff] }
  0x96   :  { %v404_v19 = vld [vmem:[%s12132_s0 + $0xc30] sm:$0xff] }
  0x98   :  { %7420 = vmatmul.mubr.msk.f32.gmra.mrb[70].mxu0 %vm594_vm1, %v85_v20  ;;  %7852 = vmatmul.mubr.msk.f32.gmra.mrb[70].mxu1 %vm594_vm1, %v373_v21  ;;  %v117_v20 = vld [vmem:[%s12132_s0 + $0x338] sm:$0xff] }
  0x99   :  { %7422 = vmatprep.mubr.msk.f32.mxu0 %vm594_vm1, %v86_v22  ;;  %7854 = vmatprep.mubr.msk.f32.mxu1 %vm594_vm1, %v374_v23  ;;  %v405_v21 = vld [vmem:[%s12132_s0 + $0xc38] sm:$0xff]  ;;  %v118_v22 = vld [vmem:[%s12132_s0 + $0x340] sm:$0xff] }
  0x9a   :  { %v406_v23 = vld [vmem:[%s12132_s0 + $0xc40] sm:$0xff] }
  0x9c   :  { %7423 = vmatmul.mubr.msk.f32.gmra.mrb[72].mxu0 %vm594_vm1, %v87_v24  ;;  %7855 = vmatmul.mubr.msk.f32.gmra.mrb[72].mxu1 %vm594_vm1, %v375_v25  ;;  %v119_v24 = vld [vmem:[%s12132_s0 + $0x348] sm:$0xff] }
  0x9d   :  { %7425 = vmatprep.mubr.msk.f32.mxu0 %vm594_vm1, %v88_v26  ;;  %7857 = vmatprep.mubr.msk.f32.mxu1 %vm594_vm1, %v376_v27  ;;  %v407_v25 = vld [vmem:[%s12132_s0 + $0xc48] sm:$0xff]  ;;  %v120_v26 = vld [vmem:[%s12132_s0 + $0x350] sm:$0xff] }
  0x9e   :  { %v408_v27 = vld [vmem:[%s12132_s0 + $0xc50] sm:$0xff] }
  0xa0   :  { %7426 = vmatmul.mubr.msk.f32.gmra.mrb[74].mxu0 %vm594_vm1, %v89_v28  ;;  %7858 = vmatmul.mubr.msk.f32.gmra.mrb[74].mxu1 %vm594_vm1, %v377_v29  ;;  %v121_v28 = vld [vmem:[%s12132_s0 + $0x358] sm:$0xff] }
  0xa1   :  { %7428 = vmatprep.mubr.msk.f32.mxu0 %vm594_vm1, %v90_v30  ;;  %7860 = vmatprep.mubr.msk.f32.mxu1 %vm594_vm1, %v378_v31  ;;  %v409_v29 = vld [vmem:[%s12132_s0 + $0xc58] sm:$0xff]  ;;  %v122_v30 = vld [vmem:[%s12132_s0 + $0x360] sm:$0xff] }
  0xa2   :  { %v410_v31 = vld [vmem:[%s12132_s0 + $0xc60] sm:$0xff] }
  0xa4   :  { %7429 = vmatmul.mubr.msk.f32.gmra.mrb[76].mxu0 %vm594_vm1, %v91_v32  ;;  %7861 = vmatmul.mubr.msk.f32.gmra.mrb[76].mxu1 %vm594_vm1, %v379_v33 }
  0xa5   :  { %7431 = vmatprep.mubr.msk.f32.mxu0 %vm594_vm1, %v92_v34  ;;  %7863 = vmatprep.mubr.msk.f32.mxu1 %vm594_vm1, %v380_v35 }
  0xa8   :  { %7432 = vmatmul.mubr.msk.f32.gmra.mrb[78].mxu0 %vm594_vm1, %v93_v36  ;;  %7864 = vmatmul.mubr.msk.f32.gmra.mrb[78].mxu1 %vm594_vm1, %v381_v37  ;;  %v123_v36 = vld [vmem:[%s12132_s0 + $0x368] sm:$0xff] }
  0xa9   :  { %7434 = vmatprep.mubr.msk.f32.mxu0 %vm594_vm1, %v94_v38  ;;  %7866 = vmatprep.mubr.msk.f32.mxu1 %vm594_vm1, %v382_v39  ;;  %v411_v37 = vld [vmem:[%s12132_s0 + $0xc68] sm:$0xff]  ;;  %v124_v38 = vld [vmem:[%s12132_s0 + $0x370] sm:$0xff] }
  0xaa   :  { %v412_v39 = vld [vmem:[%s12132_s0 + $0xc70] sm:$0xff] }
  0xac   :  { %7435 = vmatmul.mubr.msk.f32.gmra.mrb[80].mxu0 %vm594_vm1, %v95_v40  ;;  %7867 = vmatmul.mubr.msk.f32.gmra.mrb[80].mxu1 %vm594_vm1, %v383_v41 }
  0xad   :  { %7437 = vmatprep.mubr.msk.f32.mxu0 %vm594_vm1, %v96_v42  ;;  %7869 = vmatprep.mubr.msk.f32.mxu1 %vm594_vm1, %v384_v43 }
  0xb0   :  { %7438 = vmatmul.mubr.msk.f32.gmra.mrb[82].mxu0 %vm594_vm1, %v97_v44  ;;  %7870 = vmatmul.mubr.msk.f32.gmra.mrb[82].mxu1 %vm594_vm1, %v385_v45  ;;  %v125_v44 = vld [vmem:[%s12132_s0 + $0x378] sm:$0xff] }
  0xb1   :  { %7440 = vmatprep.mubr.msk.f32.mxu0 %vm594_vm1, %v98_v46  ;;  %7872 = vmatprep.mubr.msk.f32.mxu1 %vm594_vm1, %v386_v47  ;;  %v413_v45 = vld [vmem:[%s12132_s0 + $0xc78] sm:$0xff]  ;;  %v126_v46 = vld [vmem:[%s12132_s0 + $0x380] sm:$0xff] }
  0xb2   :  { %v414_v47 = vld [vmem:[%s12132_s0 + $0xc80] sm:$0xff] }
  0xb4   :  { %7441 = vmatmul.mubr.msk.f32.gmra.mrb[84].mxu0 %vm594_vm1, %v99_v48  ;;  %7873 = vmatmul.mubr.msk.f32.gmra.mrb[84].mxu1 %vm594_vm1, %v387_v49 }
  0xb5   :  { %7443 = vmatprep.mubr.msk.f32.mxu0 %vm594_vm1, %v100_v50  ;;  %7875 = vmatprep.mubr.msk.f32.mxu1 %vm594_vm1, %v388_v51 }
  0xb8   :  { %7444 = vmatmul.mubr.msk.f32.gmra.mrb[86].mxu0 %vm594_vm1, %v101_v52  ;;  %7876 = vmatmul.mubr.msk.f32.gmra.mrb[86].mxu1 %vm594_vm1, %v389_v53  ;;  %v127_v52 = vld [vmem:[%s12132_s0 + $0x388] sm:$0xff] }
  0xb9   :  { %7446 = vmatprep.mubr.msk.f32.mxu0 %vm594_vm1, %v102_v54  ;;  %7878 = vmatprep.mubr.msk.f32.mxu1 %vm594_vm1, %v390_v55  ;;  %v415_v53 = vld [vmem:[%s12132_s0 + $0xc88] sm:$0xff]  ;;  %v128_v54 = vld [vmem:[%s12132_s0 + $0x390] sm:$0xff] }
  0xba   :  { %v416_v55 = vld [vmem:[%s12132_s0 + $0xc90] sm:$0xff] }
  0xbc   :  { %7447 = vmatmul.mubr.msk.f32.gmra.mrb[88].mxu0 %vm594_vm1, %v103_v56  ;;  %7879 = vmatmul.mubr.msk.f32.gmra.mrb[88].mxu1 %vm594_vm1, %v391_v57 }
  0xbd   :  { %7449 = vmatprep.mubr.msk.f32.mxu0 %vm594_vm1, %v104_v58  ;;  %7881 = vmatprep.mubr.msk.f32.mxu1 %vm594_vm1, %v392_v59 }
  0xc0   :  { %7450 = vmatmul.mubr.msk.f32.gmra.mrb[90].mxu0 %vm594_vm1, %v105_v60  ;;  %7882 = vmatmul.mubr.msk.f32.gmra.mrb[90].mxu1 %vm594_vm1, %v393_v61  ;;  %v129_v60 = vld [vmem:[%s12132_s0 + $0x398] sm:$0xff] }
  0xc1   :  { %7452 = vmatprep.mubr.msk.f32.mxu0 %vm594_vm1, %v106_v62  ;;  %7884 = vmatprep.mubr.msk.f32.mxu1 %vm594_vm1, %v394_v63  ;;  %v417_v61 = vld [vmem:[%s12132_s0 + $0xc98] sm:$0xff]  ;;  %v130_v62 = vld [vmem:[%s12132_s0 + $0x3a0] sm:$0xff] }
  0xc2   :  { %v418_v63 = vld [vmem:[%s12132_s0 + $0xca0] sm:$0xff] }
  0xc4   :  { %7453 = vmatmul.mubr.msk.f32.gmra.mrb[92].mxu0 %vm594_vm1, %v107_v0  ;;  %7885 = vmatmul.mubr.msk.f32.gmra.mrb[92].mxu1 %vm594_vm1, %v395_v1 }
  0xc5   :  { %7455 = vmatprep.mubr.msk.f32.mxu0 %vm594_vm1, %v108_v2  ;;  %7887 = vmatprep.mubr.msk.f32.mxu1 %vm594_vm1, %v396_v3 }
  0xc8   :  { %7456 = vmatmul.mubr.msk.f32.gmra.mrb[94].mxu0 %vm594_vm1, %v109_v4  ;;  %7888 = vmatmul.mubr.msk.f32.gmra.mrb[94].mxu1 %vm594_vm1, %v397_v5  ;;  %v131_v4 = vld [vmem:[%s12132_s0 + $0x3a8] sm:$0xff] }
  0xc9   :  { %7458 = vmatprep.mubr.msk.f32.mxu0 %vm594_vm1, %v110_v6  ;;  %7890 = vmatprep.mubr.msk.f32.mxu1 %vm594_vm1, %v398_v7  ;;  %v419_v5 = vld [vmem:[%s12132_s0 + $0xca8] sm:$0xff]  ;;  %v132_v6 = vld [vmem:[%s12132_s0 + $0x3b0] sm:$0xff] }
  0xca   :  { %v420_v7 = vld [vmem:[%s12132_s0 + $0xcb0] sm:$0xff] }
  0xcc   :  { %7459 = vmatmul.mubr.msk.f32.gmra.mrb[96].mxu0 %vm594_vm1, %v111_v8  ;;  %7891 = vmatmul.mubr.msk.f32.gmra.mrb[96].mxu1 %vm594_vm1, %v399_v9 }
  0xcd   :  { %7461 = vmatprep.mubr.msk.f32.mxu0 %vm594_vm1, %v112_v10  ;;  %7893 = vmatprep.mubr.msk.f32.mxu1 %vm594_vm1, %v400_v11 }
  0xd0   :  { %7462 = vmatmul.mubr.msk.f32.gmra.mrb[98].mxu0 %vm594_vm1, %v113_v12  ;;  %7894 = vmatmul.mubr.msk.f32.gmra.mrb[98].mxu1 %vm594_vm1, %v401_v13  ;;  %v133_v12 = vld [vmem:[%s12132_s0 + $0x3b8] sm:$0xff] }
  0xd1   :  { %7464 = vmatprep.mubr.msk.f32.mxu0 %vm594_vm1, %v114_v14  ;;  %7896 = vmatprep.mubr.msk.f32.mxu1 %vm594_vm1, %v402_v15  ;;  %v421_v13 = vld [vmem:[%s12132_s0 + $0xcb8] sm:$0xff]  ;;  %v134_v14 = vld [vmem:[%s12132_s0 + $0x3c0] sm:$0xff] }
  0xd2   :  { %v422_v15 = vld [vmem:[%s12132_s0 + $0xcc0] sm:$0xff] }
  0xd4   :  { %7465 = vmatmul.mubr.msk.f32.gmra.mrb[100].mxu0 %vm594_vm1, %v115_v16  ;;  %7897 = vmatmul.mubr.msk.f32.gmra.mrb[100].mxu1 %vm594_vm1, %v403_v17 }
  0xd5   :  { %7467 = vmatprep.mubr.msk.f32.mxu0 %vm594_vm1, %v116_v18  ;;  %7899 = vmatprep.mubr.msk.f32.mxu1 %vm594_vm1, %v404_v19 }
  0xd8   :  { %7468 = vmatmul.mubr.msk.f32.gmra.mrb[102].mxu0 %vm594_vm1, %v117_v20  ;;  %7900 = vmatmul.mubr.msk.f32.gmra.mrb[102].mxu1 %vm594_vm1, %v405_v21  ;;  %v135_v20 = vld [vmem:[%s12132_s0 + $0x3c8] sm:$0xff] }
  0xd9   :  { %7470 = vmatprep.mubr.msk.f32.mxu0 %vm594_vm1, %v118_v22  ;;  %7902 = vmatprep.mubr.msk.f32.mxu1 %vm594_vm1, %v406_v23  ;;  %v423_v21 = vld [vmem:[%s12132_s0 + $0xcc8] sm:$0xff]  ;;  %v136_v22 = vld [vmem:[%s12132_s0 + $0x3d0] sm:$0xff] }
  0xda   :  { %v424_v23 = vld [vmem:[%s12132_s0 + $0xcd0] sm:$0xff] }
  0xdc   :  { %7471 = vmatmul.mubr.msk.f32.gmra.mrb[104].mxu0 %vm594_vm1, %v119_v24  ;;  %7903 = vmatmul.mubr.msk.f32.gmra.mrb[104].mxu1 %vm594_vm1, %v407_v25 }
  0xdd   :  { %7473 = vmatprep.mubr.msk.f32.mxu0 %vm594_vm1, %v120_v26  ;;  %7905 = vmatprep.mubr.msk.f32.mxu1 %vm594_vm1, %v408_v27 }
  0xdf   :  { %v9096_v32 = vpop.f32.mrb[0].mxu0  ;;  %v9098_v33 = vpop.f32.mrb[0].mxu1 }
  0xe0   :  { %v9100_v34 = vpop.f32.mrb[1].mxu0  ;;  %7474 = vmatmul.mubr.msk.f32.gmra.mrb[106].mxu0 %vm594_vm1, %v121_v28  ;;  %v9103_v35 = vpop.f32.mrb[1].mxu1  ;;  %7906 = vmatmul.mubr.msk.f32.gmra.mrb[106].mxu1 %vm594_vm1, %v409_v29  ;;  %v137_v28 = vld [vmem:[%s12132_s0 + $0x3d8] sm:$0xff] }
  0xe1   :  { %7476 = vmatprep.mubr.msk.f32.mxu0 %vm594_vm1, %v122_v30  ;;  %7908 = vmatprep.mubr.msk.f32.mxu1 %vm594_vm1, %v410_v31  ;;  %v425_v29 = vld [vmem:[%s12132_s0 + $0xcd8] sm:$0xff]  ;;  %v138_v30 = vld [vmem:[%s12132_s0 + $0x3e0] sm:$0xff] }
  0xe2   :  { %v426_v31 = vld [vmem:[%s12132_s0 + $0xce0] sm:$0xff] }
  0xe3   :  { %v9120_v40 = vpop.f32.mrb[2].mxu0  ;;  %v9122_v41 = vpop.f32.mrb[2].mxu1 }
  0xe4   :  { %v9124_v42 = vpop.f32.mrb[3].mxu0  ;;  %7477 = vmatmul.mubr.msk.f32.gmra.mrb[108].mxu0 %vm594_vm1, %v123_v36  ;;  %v9127_v43 = vpop.f32.mrb[3].mxu1  ;;  %7909 = vmatmul.mubr.msk.f32.gmra.mrb[108].mxu1 %vm594_vm1, %v411_v37 }
  0xe5   :  { %7479 = vmatprep.mubr.msk.f32.mxu0 %vm594_vm1, %v124_v38  ;;  %7911 = vmatprep.mubr.msk.f32.mxu1 %vm594_vm1, %v412_v39 }
  0xe7   :  { %v9144_v48 = vpop.f32.mrb[4].mxu0  ;;  %v9146_v49 = vpop.f32.mrb[4].mxu1 }
  0xe8   :  { %v9148_v50 = vpop.f32.mrb[5].mxu0  ;;  %7480 = vmatmul.mubr.msk.f32.gmra.mrb[110].mxu0 %vm594_vm1, %v125_v44  ;;  %v9151_v51 = vpop.f32.mrb[5].mxu1  ;;  %7912 = vmatmul.mubr.msk.f32.gmra.mrb[110].mxu1 %vm594_vm1, %v413_v45  ;;  %v139_v44 = vld [vmem:[%s12132_s0 + $0x3e8] sm:$0xff] }
  0xe9   :  { %7482 = vmatprep.mubr.msk.f32.mxu0 %vm594_vm1, %v126_v46  ;;  %7914 = vmatprep.mubr.msk.f32.mxu1 %vm594_vm1, %v414_v47  ;;  %v427_v45 = vld [vmem:[%s12132_s0 + $0xce8] sm:$0xff]  ;;  %v140_v46 = vld [vmem:[%s12132_s0 + $0x3f0] sm:$0xff] }
  0xea   :  { %v428_v47 = vld [vmem:[%s12132_s0 + $0xcf0] sm:$0xff] }
  0xeb   :  { %v9168_v56 = vpop.f32.mrb[6].mxu0  ;;  %v9170_v57 = vpop.f32.mrb[6].mxu1 }
  0xec   :  { %v9172_v58 = vpop.f32.mrb[7].mxu0  ;;  %7483 = vmatmul.mubr.msk.f32.gmra.mrb[112].mxu0 %vm594_vm1, %v127_v52  ;;  %v9175_v59 = vpop.f32.mrb[7].mxu1  ;;  %7915 = vmatmul.mubr.msk.f32.gmra.mrb[112].mxu1 %vm594_vm1, %v415_v53 }
  0xed   :  { %7485 = vmatprep.mubr.msk.f32.mxu0 %vm594_vm1, %v128_v54  ;;  %7917 = vmatprep.mubr.msk.f32.mxu1 %vm594_vm1, %v416_v55 }
  0xef   :  { %v9192_v0 = vpop.f32.mrb[8].mxu0  ;;  %v9194_v1 = vpop.f32.mrb[8].mxu1 }
  0xf0   :  { %v9196_v2 = vpop.f32.mrb[9].mxu0  ;;  %7486 = vmatmul.mubr.msk.f32.gmra.mrb[114].mxu0 %vm594_vm1, %v129_v60  ;;  %v9199_v3 = vpop.f32.mrb[9].mxu1  ;;  %7918 = vmatmul.mubr.msk.f32.gmra.mrb[114].mxu1 %vm594_vm1, %v417_v61  ;;  %v141_v60 = vld [vmem:[%s12132_s0 + $0x3f8] sm:$0xff] }
  0xf1   :  { %7488 = vmatprep.mubr.msk.f32.mxu0 %vm594_vm1, %v130_v62  ;;  %7920 = vmatprep.mubr.msk.f32.mxu1 %vm594_vm1, %v418_v63  ;;  %v429_v61 = vld [vmem:[%s12132_s0 + $0xcf8] sm:$0xff]  ;;  %v142_v62 = vld [vmem:[%s12132_s0 + $0x400] sm:$0xff] }
  0xf2   :  { %v430_v63 = vld [vmem:[%s12132_s0 + $0xd00] sm:$0xff] }
  0xf3   :  { %v9216_v8 = vpop.f32.mrb[10].mxu0  ;;  %v9218_v9 = vpop.f32.mrb[10].mxu1 }
  0xf4   :  { %v9220_v10 = vpop.f32.mrb[11].mxu0  ;;  %7489 = vmatmul.mubr.msk.f32.gmra.mrb[116].mxu0 %vm594_vm1, %v131_v4  ;;  %v9223_v11 = vpop.f32.mrb[11].mxu1  ;;  %7921 = vmatmul.mubr.msk.f32.gmra.mrb[116].mxu1 %vm594_vm1, %v419_v5 }
  0xf5   :  { %7491 = vmatprep.mubr.msk.f32.mxu0 %vm594_vm1, %v132_v6  ;;  %7923 = vmatprep.mubr.msk.f32.mxu1 %vm594_vm1, %v420_v7 }
  0xf7   :  { %v9240_v16 = vpop.f32.mrb[12].mxu0  ;;  %v9242_v17 = vpop.f32.mrb[12].mxu1 }
  0xf8   :  { %v9244_v18 = vpop.f32.mrb[13].mxu0  ;;  %7492 = vmatmul.mubr.msk.f32.gmra.mrb[118].mxu0 %vm594_vm1, %v133_v12  ;;  %v9247_v19 = vpop.f32.mrb[13].mxu1  ;;  %7924 = vmatmul.mubr.msk.f32.gmra.mrb[118].mxu1 %vm594_vm1, %v421_v13  ;;  %v143_v12 = vld [vmem:[%s12132_s0 + $0x408] sm:$0xff] }
  0xf9   :  { %7494 = vmatprep.mubr.msk.f32.mxu0 %vm594_vm1, %v134_v14  ;;  %7926 = vmatprep.mubr.msk.f32.mxu1 %vm594_vm1, %v422_v15  ;;  %v431_v13 = vld [vmem:[%s12132_s0 + $0xd08] sm:$0xff]  ;;  %v144_v14 = vld [vmem:[%s12132_s0 + $0x410] sm:$0xff] }
  0xfa   :  { %v432_v15 = vld [vmem:[%s12132_s0 + $0xd10] sm:$0xff] }
  0xfb   :  { %v9264_v24 = vpop.f32.mrb[14].mxu0  ;;  %v9266_v25 = vpop.f32.mrb[14].mxu1 }
  0xfc   :  { %v9268_v26 = vpop.f32.mrb[15].mxu0  ;;  %7495 = vmatmul.mubr.msk.f32.gmra.mrb[120].mxu0 %vm594_vm1, %v135_v20  ;;  %v9271_v27 = vpop.f32.mrb[15].mxu1  ;;  %7927 = vmatmul.mubr.msk.f32.gmra.mrb[120].mxu1 %vm594_vm1, %v423_v21 }
  0xfd   :  { %7497 = vmatprep.mubr.msk.f32.mxu0 %vm594_vm1, %v136_v22  ;;  %7929 = vmatprep.mubr.msk.f32.mxu1 %vm594_vm1, %v424_v23 }
  0xff   :  { %v9288_v36 = vpop.f32.mrb[16].mxu0  ;;  %v9290_v37 = vpop.f32.mrb[16].mxu1 }
 0x100   :  { %v9292_v38 = vpop.f32.mrb[17].mxu0  ;;  %7498 = vmatmul.mubr.msk.f32.gmra.mrb[122].mxu0 %vm594_vm1, %v137_v28  ;;  %v9295_v39 = vpop.f32.mrb[17].mxu1  ;;  %7930 = vmatmul.mubr.msk.f32.gmra.mrb[122].mxu1 %vm594_vm1, %v425_v29  ;;  %v145_v28 = vld [vmem:[%s12132_s0 + $0x418] sm:$0xff] }
 0x101   :  { %7500 = vmatprep.mubr.msk.f32.mxu0 %vm594_vm1, %v138_v30  ;;  %7932 = vmatprep.mubr.msk.f32.mxu1 %vm594_vm1, %v426_v31  ;;  %v433_v29 = vld [vmem:[%s12132_s0 + $0xd18] sm:$0xff]  ;;  %v146_v30 = vld [vmem:[%s12132_s0 + $0x420] sm:$0xff] }
 0x102   :  { %v434_v31 = vld [vmem:[%s12132_s0 + $0xd20] sm:$0xff] }
 0x103   :  { %v9312_v52 = vpop.f32.mrb[18].mxu0  ;;  %v9314_v53 = vpop.f32.mrb[18].mxu1 }
 0x104   :  { %v9316_v54 = vpop.f32.mrb[19].mxu0  ;;  %7501 = vmatmul.mubr.msk.f32.gmra.mrb[124].mxu0 %vm594_vm1, %v139_v44  ;;  %v9319_v55 = vpop.f32.mrb[19].mxu1  ;;  %7933 = vmatmul.mubr.msk.f32.gmra.mrb[124].mxu1 %vm594_vm1, %v427_v45 }
 0x105   :  { %7503 = vmatprep.mubr.msk.f32.mxu0 %vm594_vm1, %v140_v46  ;;  %7935 = vmatprep.mubr.msk.f32.mxu1 %vm594_vm1, %v428_v47 }
 0x107   :  { %v9336_v4 = vpop.f32.mrb[20].mxu0  ;;  %v9338_v5 = vpop.f32.mrb[20].mxu1 }
 0x108   :  { %v9340_v6 = vpop.f32.mrb[21].mxu0  ;;  %7504 = vmatmul.mubr.msk.f32.gmra.mrb[126].mxu0 %vm594_vm1, %v141_v60  ;;  %v9343_v7 = vpop.f32.mrb[21].mxu1  ;;  %7936 = vmatmul.mubr.msk.f32.gmra.mrb[126].mxu1 %vm594_vm1, %v429_v61  ;;  %v147_v60 = vld [vmem:[%s12132_s0 + $0x428] sm:$0xff] }
 0x109   :  { %7506 = vmatprep.mubr.msk.f32.mxu0 %vm594_vm1, %v142_v62  ;;  %7938 = vmatprep.mubr.msk.f32.mxu1 %vm594_vm1, %v430_v63  ;;  %v435_v61 = vld [vmem:[%s12132_s0 + $0xd28] sm:$0xff]  ;;  %v148_v62 = vld [vmem:[%s12132_s0 + $0x430] sm:$0xff] }
 0x10a   :  { %v436_v63 = vld [vmem:[%s12132_s0 + $0xd30] sm:$0xff] }
 0x10b   :  { %v9360_v20 = vpop.f32.mrb[22].mxu0  ;;  %v9362_v21 = vpop.f32.mrb[22].mxu1 }
 0x10c   :  { %v9364_v22 = vpop.f32.mrb[23].mxu0  ;;  %7507 = vmatmul.mubr.msk.f32.gmra.mrb[128].mxu0 %vm594_vm1, %v143_v12  ;;  %v9367_v23 = vpop.f32.mrb[23].mxu1  ;;  %7939 = vmatmul.mubr.msk.f32.gmra.mrb[128].mxu1 %vm594_vm1, %v431_v13 }
 0x10d   :  { %7509 = vmatprep.mubr.msk.f32.mxu0 %vm594_vm1, %v144_v14  ;;  %7941 = vmatprep.mubr.msk.f32.mxu1 %vm594_vm1, %v432_v15 }
 0x10f   :  { %v9384_v44 = vpop.f32.mrb[24].mxu0  ;;  %v9386_v45 = vpop.f32.mrb[24].mxu1 }
 0x110   :  { %v9388_v46 = vpop.f32.mrb[25].mxu0  ;;  %7510 = vmatmul.mubr.msk.f32.gmra.mrb[130].mxu0 %vm594_vm1, %v145_v28  ;;  %v9391_v47 = vpop.f32.mrb[25].mxu1  ;;  %7942 = vmatmul.mubr.msk.f32.gmra.mrb[130].mxu1 %vm594_vm1, %v433_v29  ;;  %v149_v28 = vld [vmem:[%s12132_s0 + $0x438] sm:$0xff] }
 0x111   :  { %12135 = vst [vmem:[#allocation2_spill] sm:$0xff] %v9388_v46  ;;  %12136 = vst [vmem:[#allocation3_spill] sm:$0xff] %v9391_v47  ;;  %7512 = vmatprep.mubr.msk.f32.mxu0 %vm594_vm1, %v146_v30  ;;  %7944 = vmatprep.mubr.msk.f32.mxu1 %vm594_vm1, %v434_v31  ;;  %v437_v29 = vld [vmem:[%s12132_s0 + $0xd38] sm:$0xff]  ;;  %v150_v30 = vld [vmem:[%s12132_s0 + $0x440] sm:$0xff] }
 0x112   :  { %v438_v31 = vld [vmem:[%s12132_s0 + $0xd40] sm:$0xff] }
 0x113   :  { %v9408_v12 = vpop.f32.mrb[26].mxu0  ;;  %v9410_v13 = vpop.f32.mrb[26].mxu1 }
 0x114   :  { %12137 = vst [vmem:[#allocation4_spill] sm:$0xff] %v9408_v12  ;;  %12138 = vst [vmem:[#allocation5_spill] sm:$0xff] %v9410_v13  ;;  %v9412_v14 = vpop.f32.mrb[27].mxu0  ;;  %7513 = vmatmul.mubr.msk.f32.gmra.mrb[132].mxu0 %vm594_vm1, %v147_v60  ;;  %v9415_v15 = vpop.f32.mrb[27].mxu1  ;;  %7945 = vmatmul.mubr.msk.f32.gmra.mrb[132].mxu1 %vm594_vm1, %v435_v61  ;;  %v10831_v13 = vld [vmem:[%s12133_s2] ss:$0 sm:$0xff] }
 0x115   :  { %12139 = vst [vmem:[#allocation6_spill] sm:$0xff] %v9412_v14  ;;  %12140 = vst [vmem:[#allocation7_spill] sm:$0xff] %v9415_v15  ;;  %7515 = vmatprep.mubr.msk.f32.mxu0 %vm594_vm1, %v148_v62  ;;  %7947 = vmatprep.mubr.msk.f32.mxu1 %vm594_vm1, %v436_v63  ;;  %v151_v15 = vld [vmem:[%s12132_s0 + $0x448] sm:$0xff] }
 0x117   :  { %v9432_v60 = vpop.f32.mrb[28].mxu0  ;;  %v9434_v61 = vpop.f32.mrb[28].mxu1 }
 0x118   :  { %12141 = vst [vmem:[#allocation8_spill] sm:$0xff] %v9432_v60  ;;  %12142 = vst [vmem:[#allocation9_spill] sm:$0xff] %v9434_v61  ;;  %v9436_v62 = vpop.f32.mrb[29].mxu0  ;;  %7516 = vmatmul.mubr.msk.f32.gmra.mrb[134].mxu0 %vm594_vm1, %v149_v28  ;;  %v9439_v63 = vpop.f32.mrb[29].mxu1  ;;  %7948 = vmatmul.mubr.msk.f32.gmra.mrb[134].mxu1 %vm594_vm1, %v437_v29  ;;  %v439_v61 = vld [vmem:[%s12132_s0 + $0xd48] sm:$0xff]  ;;  %v152_v28 = vld [vmem:[%s12132_s0 + $0x450] sm:$0xff] }
 0x119   :  { %12143 = vst [vmem:[#allocation10_spill] sm:$0xff] %v9436_v62  ;;  %12144 = vst [vmem:[#allocation11_spill] sm:$0xff] %v9439_v63  ;;  %7518 = vmatprep.mubr.msk.f32.mxu0 %vm594_vm1, %v150_v30  ;;  %7950 = vmatprep.mubr.msk.f32.mxu1 %vm594_vm1, %v438_v31  ;;  %v440_v29 = vld [vmem:[%s12132_s0 + $0xd50] sm:$0xff]  ;;  %v153_v60 = vld [vmem:[%s12132_s0 + $0x458] sm:$0xff] }
 0x11b   :  { %v9456_v63 = vpop.f32.mrb[30].mxu0  ;;  %v9458_v30 = vpop.f32.mrb[30].mxu1 }
 0x11c   :  { %12145 = vst [vmem:[#allocation12_spill] sm:$0xff] %v9456_v63  ;;  %12146 = vst [vmem:[#allocation13_spill] sm:$0xff] %v9458_v30  ;;  %v9460_v31 = vpop.f32.mrb[31].mxu0  ;;  %7519 = vmatmul.mubr.msk.f32.gmra.mrb[136].mxu0 %vm594_vm1, %v151_v15  ;;  %v9463_v62 = vpop.f32.mrb[31].mxu1  ;;  %7951 = vmatmul.mubr.msk.f32.gmra.mrb[136].mxu1 %vm594_vm1, %v439_v61  ;;  %v441_v30 = vld [vmem:[%s12132_s0 + $0xd58] sm:$0xff]  ;;  %v154_v15 = vld [vmem:[%s12132_s0 + $0x460] sm:$0xff] }
 0x11d   :  { %12147 = vst [vmem:[#allocation14_spill] sm:$0xff] %v9460_v31  ;;  %12148 = vst [vmem:[#allocation15_spill] sm:$0xff] %v9463_v62  ;;  %7521 = vmatprep.mubr.msk.f32.mxu0 %vm594_vm1, %v152_v28  ;;  %7953 = vmatprep.mubr.msk.f32.mxu1 %vm594_vm1, %v440_v29  ;;  %v442_v61 = vld [vmem:[%s12132_s0 + $0xd60] sm:$0xff]  ;;  %v155_v63 = vld [vmem:[%s12132_s0 + $0x468] sm:$0xff] }
 0x11f   :  { %v9480_v62 = vpop.f32.mrb[32].mxu0  ;;  %v9482_v28 = vpop.f32.mrb[32].mxu1 }
 0x120   :  { %12149 = vst [vmem:[#allocation16_spill] sm:$0xff] %v9480_v62  ;;  %12150 = vst [vmem:[#allocation17_spill] sm:$0xff] %v9482_v28  ;;  %v9484_v29 = vpop.f32.mrb[33].mxu0  ;;  %7522 = vmatmul.mubr.msk.f32.gmra.mrb[138].mxu0 %vm594_vm1, %v153_v60  ;;  %v9487_v31 = vpop.f32.mrb[33].mxu1  ;;  %7954 = vmatmul.mubr.msk.f32.gmra.mrb[138].mxu1 %vm594_vm1, %v441_v30  ;;  %v443_v28 = vld [vmem:[%s12132_s0 + $0xd68] sm:$0xff]  ;;  %v156_v60 = vld [vmem:[%s12132_s0 + $0x470] sm:$0xff] }
 0x121   :  { %12151 = vst [vmem:[#allocation18_spill] sm:$0xff] %v9484_v29  ;;  %12152 = vst [vmem:[#allocation19_spill] sm:$0xff] %v9487_v31  ;;  %7524 = vmatprep.mubr.msk.f32.mxu0 %vm594_vm1, %v154_v15  ;;  %7956 = vmatprep.mubr.msk.f32.mxu1 %vm594_vm1, %v442_v61  ;;  %v444_v30 = vld [vmem:[%s12132_s0 + $0xd70] sm:$0xff]  ;;  %v157_v62 = vld [vmem:[%s12132_s0 + $0x478] sm:$0xff] }
 0x123   :  { %v9504_v31 = vpop.f32.mrb[34].mxu0  ;;  %v9506_v15 = vpop.f32.mrb[34].mxu1 }
 0x124   :  { %12153 = vst [vmem:[#allocation20_spill] sm:$0xff] %v9504_v31  ;;  %12154 = vst [vmem:[#allocation21_spill] sm:$0xff] %v9506_v15  ;;  %v9508_v61 = vpop.f32.mrb[35].mxu0  ;;  %7525 = vmatmul.mubr.msk.f32.gmra.mrb[140].mxu0 %vm594_vm1, %v155_v63  ;;  %v9511_v29 = vpop.f32.mrb[35].mxu1  ;;  %7957 = vmatmul.mubr.msk.f32.gmra.mrb[140].mxu1 %vm594_vm1, %v443_v28  ;;  %v445_v15 = vld [vmem:[%s12132_s0 + $0xd78] sm:$0xff]  ;;  %v158_v63 = vld [vmem:[%s12132_s0 + $0x480] sm:$0xff] }
 0x125   :  { %12155 = vst [vmem:[#allocation22_spill] sm:$0xff] %v9508_v61  ;;  %12156 = vst [vmem:[#allocation23_spill] sm:$0xff] %v9511_v29  ;;  %7527 = vmatprep.mubr.msk.f32.mxu0 %vm594_vm1, %v156_v60  ;;  %7959 = vmatprep.mubr.msk.f32.mxu1 %vm594_vm1, %v444_v30  ;;  %v446_v28 = vld [vmem:[%s12132_s0 + $0xd80] sm:$0xff]  ;;  %v159_v31 = vld [vmem:[%s12132_s0 + $0x488] sm:$0xff] }
 0x127   :  { %v9528_v29 = vpop.f32.mrb[36].mxu0  ;;  %v9530_v60 = vpop.f32.mrb[36].mxu1 }
 0x128   :  { %12157 = vst [vmem:[#allocation24_spill] sm:$0xff] %v9528_v29  ;;  %12158 = vst [vmem:[#allocation25_spill] sm:$0xff] %v9530_v60  ;;  %v9532_v30 = vpop.f32.mrb[37].mxu0  ;;  %7528 = vmatmul.mubr.msk.f32.gmra.mrb[142].mxu0 %vm594_vm1, %v157_v62  ;;  %v9535_v61 = vpop.f32.mrb[37].mxu1  ;;  %7960 = vmatmul.mubr.msk.f32.gmra.mrb[142].mxu1 %vm594_vm1, %v445_v15  ;;  %v447_v60 = vld [vmem:[%s12132_s0 + $0xd88] sm:$0xff]  ;;  %v160_v62 = vld [vmem:[%s12132_s0 + $0x490] sm:$0xff] }
 0x129   :  { %12159 = vst [vmem:[#allocation26_spill] sm:$0xff] %v9532_v30  ;;  %12160 = vst [vmem:[#allocation27_spill] sm:$0xff] %v9535_v61  ;;  %7530 = vmatprep.mubr.msk.f32.mxu0 %vm594_vm1, %v158_v63  ;;  %7962 = vmatprep.mubr.msk.f32.mxu1 %vm594_vm1, %v446_v28  ;;  %v448_v15 = vld [vmem:[%s12132_s0 + $0xd90] sm:$0xff]  ;;  %v161_v29 = vld [vmem:[%s12132_s0 + $0x498] sm:$0xff] }
 0x12b   :  { %v9552_v61 = vpop.f32.mrb[38].mxu0  ;;  %v9554_v63 = vpop.f32.mrb[38].mxu1 }
 0x12c   :  { %12161 = vst [vmem:[#allocation28_spill] sm:$0xff] %v9552_v61  ;;  %12162 = vst [vmem:[#allocation29_spill] sm:$0xff] %v9554_v63  ;;  %v9556_v28 = vpop.f32.mrb[39].mxu0  ;;  %7531 = vmatmul.mubr.msk.f32.gmra.mrb[144].mxu0 %vm594_vm1, %v159_v31  ;;  %v9559_v30 = vpop.f32.mrb[39].mxu1  ;;  %7963 = vmatmul.mubr.msk.f32.gmra.mrb[144].mxu1 %vm594_vm1, %v447_v60  ;;  %v449_v63 = vld [vmem:[%s12132_s0 + $0xd98] sm:$0xff]  ;;  %v162_v31 = vld [vmem:[%s12132_s0 + $0x4a0] sm:$0xff] }
 0x12d   :  { %12163 = vst [vmem:[#allocation30_spill] sm:$0xff] %v9556_v28  ;;  %12164 = vst [vmem:[#allocation31_spill] sm:$0xff] %v9559_v30  ;;  %7533 = vmatprep.mubr.msk.f32.mxu0 %vm594_vm1, %v160_v62  ;;  %7965 = vmatprep.mubr.msk.f32.mxu1 %vm594_vm1, %v448_v15  ;;  %v450_v60 = vld [vmem:[%s12132_s0 + $0xda0] sm:$0xff]  ;;  %v163_v61 = vld [vmem:[%s12132_s0 + $0x4a8] sm:$0xff] }
 0x12f   :  { %v9576_v30 = vpop.f32.mrb[40].mxu0  ;;  %v9578_v62 = vpop.f32.mrb[40].mxu1 }
 0x130   :  { %12165 = vst [vmem:[#allocation32_spill] sm:$0xff] %v9576_v30  ;;  %12166 = vst [vmem:[#allocation33_spill] sm:$0xff] %v9578_v62  ;;  %v9580_v15 = vpop.f32.mrb[41].mxu0  ;;  %7534 = vmatmul.mubr.msk.f32.gmra.mrb[146].mxu0 %vm594_vm1, %v161_v29  ;;  %v9583_v28 = vpop.f32.mrb[41].mxu1  ;;  %7966 = vmatmul.mubr.msk.f32.gmra.mrb[146].mxu1 %vm594_vm1, %v449_v63  ;;  %v451_v62 = vld [vmem:[%s12132_s0 + $0xda8] sm:$0xff]  ;;  %v164_v29 = vld [vmem:[%s12132_s0 + $0x4b0] sm:$0xff] }
 0x131   :  { %12167 = vst [vmem:[#allocation34_spill] sm:$0xff] %v9580_v15  ;;  %12168 = vst [vmem:[#allocation35_spill] sm:$0xff] %v9583_v28  ;;  %7536 = vmatprep.mubr.msk.f32.mxu0 %vm594_vm1, %v162_v31  ;;  %7968 = vmatprep.mubr.msk.f32.mxu1 %vm594_vm1, %v450_v60  ;;  %v452_v63 = vld [vmem:[%s12132_s0 + $0xdb0] sm:$0xff]  ;;  %v165_v30 = vld [vmem:[%s12132_s0 + $0x4b8] sm:$0xff] }
 0x133   :  { %v9600_v28 = vpop.f32.mrb[42].mxu0  ;;  %v9602_v31 = vpop.f32.mrb[42].mxu1 }
 0x134   :  { %12169 = vst [vmem:[#allocation36_spill] sm:$0xff] %v9600_v28  ;;  %12170 = vst [vmem:[#allocation37_spill] sm:$0xff] %v9602_v31  ;;  %v9604_v60 = vpop.f32.mrb[43].mxu0  ;;  %7537 = vmatmul.mubr.msk.f32.gmra.mrb[148].mxu0 %vm594_vm1, %v163_v61  ;;  %v9607_v15 = vpop.f32.mrb[43].mxu1  ;;  %7969 = vmatmul.mubr.msk.f32.gmra.mrb[148].mxu1 %vm594_vm1, %v451_v62  ;;  %v453_v31 = vld [vmem:[%s12132_s0 + $0xdb8] sm:$0xff]  ;;  %v166_v61 = vld [vmem:[%s12132_s0 + $0x4c0] sm:$0xff] }
 0x135   :  { %12171 = vst [vmem:[#allocation38_spill] sm:$0xff] %v9604_v60  ;;  %12172 = vst [vmem:[#allocation39_spill] sm:$0xff] %v9607_v15  ;;  %7539 = vmatprep.mubr.msk.f32.mxu0 %vm594_vm1, %v164_v29  ;;  %7971 = vmatprep.mubr.msk.f32.mxu1 %vm594_vm1, %v452_v63  ;;  %v454_v62 = vld [vmem:[%s12132_s0 + $0xdc0] sm:$0xff]  ;;  %v167_v28 = vld [vmem:[%s12132_s0 + $0x4c8] sm:$0xff] }
 0x137   :  { %v9624_v15 = vpop.f32.mrb[44].mxu0  ;;  %v9626_v29 = vpop.f32.mrb[44].mxu1 }
 0x138   :  { %12173 = vst [vmem:[#allocation40_spill] sm:$0xff] %v9624_v15  ;;  %12174 = vst [vmem:[#allocation41_spill] sm:$0xff] %v9626_v29  ;;  %v9628_v63 = vpop.f32.mrb[45].mxu0  ;;  %7540 = vmatmul.mubr.msk.f32.gmra.mrb[150].mxu0 %vm594_vm1, %v165_v30  ;;  %v9631_v60 = vpop.f32.mrb[45].mxu1  ;;  %7972 = vmatmul.mubr.msk.f32.gmra.mrb[150].mxu1 %vm594_vm1, %v453_v31  ;;  %v455_v29 = vld [vmem:[%s12132_s0 + $0xdc8] sm:$0xff]  ;;  %v168_v30 = vld [vmem:[%s12132_s0 + $0x4d0] sm:$0xff] }
 0x139   :  { %12175 = vst [vmem:[#allocation42_spill] sm:$0xff] %v9628_v63  ;;  %12176 = vst [vmem:[#allocation43_spill] sm:$0xff] %v9631_v60  ;;  %7542 = vmatprep.mubr.msk.f32.mxu0 %vm594_vm1, %v166_v61  ;;  %7974 = vmatprep.mubr.msk.f32.mxu1 %vm594_vm1, %v454_v62  ;;  %v456_v31 = vld [vmem:[%s12132_s0 + $0xdd0] sm:$0xff]  ;;  %v169_v15 = vld [vmem:[%s12132_s0 + $0x4d8] sm:$0xff] }
 0x13b   :  { %v9648_v60 = vpop.f32.mrb[46].mxu0  ;;  %v9650_v61 = vpop.f32.mrb[46].mxu1 }
 0x13c   :  { %12177 = vst [vmem:[#allocation44_spill] sm:$0xff] %v9648_v60  ;;  %12178 = vst [vmem:[#allocation45_spill] sm:$0xff] %v9650_v61  ;;  %v9652_v62 = vpop.f32.mrb[47].mxu0  ;;  %7543 = vmatmul.mubr.msk.f32.gmra.mrb[152].mxu0 %vm594_vm1, %v167_v28  ;;  %v9655_v63 = vpop.f32.mrb[47].mxu1  ;;  %7975 = vmatmul.mubr.msk.f32.gmra.mrb[152].mxu1 %vm594_vm1, %v455_v29  ;;  %v457_v61 = vld [vmem:[%s12132_s0 + $0xdd8] sm:$0xff]  ;;  %v170_v28 = vld [vmem:[%s12132_s0 + $0x4e0] sm:$0xff] }
 0x13d   :  { %12179 = vst [vmem:[#allocation46_spill] sm:$0xff] %v9652_v62  ;;  %12180 = vst [vmem:[#allocation47_spill] sm:$0xff] %v9655_v63  ;;  %7545 = vmatprep.mubr.msk.f32.mxu0 %vm594_vm1, %v168_v30  ;;  %7977 = vmatprep.mubr.msk.f32.mxu1 %vm594_vm1, %v456_v31  ;;  %v458_v29 = vld [vmem:[%s12132_s0 + $0xde0] sm:$0xff]  ;;  %v171_v60 = vld [vmem:[%s12132_s0 + $0x4e8] sm:$0xff] }
 0x13f   :  { %v9672_v63 = vpop.f32.mrb[48].mxu0  ;;  %v9674_v30 = vpop.f32.mrb[48].mxu1 }
 0x140   :  { %12181 = vst [vmem:[#allocation48_spill] sm:$0xff] %v9672_v63  ;;  %12182 = vst [vmem:[#allocation49_spill] sm:$0xff] %v9674_v30  ;;  %v9676_v31 = vpop.f32.mrb[49].mxu0  ;;  %7546 = vmatmul.mubr.msk.f32.gmra.mrb[154].mxu0 %vm594_vm1, %v169_v15  ;;  %v9679_v62 = vpop.f32.mrb[49].mxu1  ;;  %7978 = vmatmul.mubr.msk.f32.gmra.mrb[154].mxu1 %vm594_vm1, %v457_v61  ;;  %v459_v30 = vld [vmem:[%s12132_s0 + $0xde8] sm:$0xff]  ;;  %v172_v15 = vld [vmem:[%s12132_s0 + $0x4f0] sm:$0xff] }
 0x141   :  { %12183 = vst [vmem:[#allocation50_spill] sm:$0xff] %v9676_v31  ;;  %12184 = vst [vmem:[#allocation51_spill] sm:$0xff] %v9679_v62  ;;  %7548 = vmatprep.mubr.msk.f32.mxu0 %vm594_vm1, %v170_v28  ;;  %7980 = vmatprep.mubr.msk.f32.mxu1 %vm594_vm1, %v458_v29  ;;  %v460_v61 = vld [vmem:[%s12132_s0 + $0xdf0] sm:$0xff]  ;;  %v173_v63 = vld [vmem:[%s12132_s0 + $0x4f8] sm:$0xff] }
 0x143   :  { %v9696_v62 = vpop.f32.mrb[50].mxu0  ;;  %v9698_v28 = vpop.f32.mrb[50].mxu1 }
 0x144   :  { %12185 = vst [vmem:[#allocation52_spill] sm:$0xff] %v9696_v62  ;;  %12186 = vst [vmem:[#allocation53_spill] sm:$0xff] %v9698_v28  ;;  %v9700_v29 = vpop.f32.mrb[51].mxu0  ;;  %7549 = vmatmul.mubr.msk.f32.gmra.mrb[156].mxu0 %vm594_vm1, %v171_v60  ;;  %v9703_v31 = vpop.f32.mrb[51].mxu1  ;;  %7981 = vmatmul.mubr.msk.f32.gmra.mrb[156].mxu1 %vm594_vm1, %v459_v30  ;;  %v461_v28 = vld [vmem:[%s12132_s0 + $0xdf8] sm:$0xff]  ;;  %v174_v60 = vld [vmem:[%s12132_s0 + $0x500] sm:$0xff] }
 0x145   :  { %12187 = vst [vmem:[#allocation54_spill] sm:$0xff] %v9700_v29  ;;  %12188 = vst [vmem:[#allocation55_spill] sm:$0xff] %v9703_v31  ;;  %7551 = vmatprep.mubr.msk.f32.mxu0 %vm594_vm1, %v172_v15  ;;  %7983 = vmatprep.mubr.msk.f32.mxu1 %vm594_vm1, %v460_v61  ;;  %v462_v30 = vld [vmem:[%s12132_s0 + $0xe00] sm:$0xff]  ;;  %v175_v62 = vld [vmem:[%s12132_s0 + $0x508] sm:$0xff] }
 0x147   :  { %v9720_v31 = vpop.f32.mrb[52].mxu0  ;;  %v9722_v15 = vpop.f32.mrb[52].mxu1 }
 0x148   :  { %12189 = vst [vmem:[#allocation56_spill] sm:$0xff] %v9720_v31  ;;  %12190 = vst [vmem:[#allocation57_spill] sm:$0xff] %v9722_v15  ;;  %v9724_v61 = vpop.f32.mrb[53].mxu0  ;;  %7552 = vmatmul.mubr.msk.f32.gmra.mrb[158].mxu0 %vm594_vm1, %v173_v63  ;;  %v9727_v29 = vpop.f32.mrb[53].mxu1  ;;  %7984 = vmatmul.mubr.msk.f32.gmra.mrb[158].mxu1 %vm594_vm1, %v461_v28  ;;  %v463_v15 = vld [vmem:[%s12132_s0 + $0xe08] sm:$0xff]  ;;  %v176_v63 = vld [vmem:[%s12132_s0 + $0x510] sm:$0xff] }
 0x149   :  { %12191 = vst [vmem:[#allocation58_spill] sm:$0xff] %v9724_v61  ;;  %12192 = vst [vmem:[#allocation59_spill] sm:$0xff] %v9727_v29  ;;  %7554 = vmatprep.mubr.msk.f32.mxu0 %vm594_vm1, %v174_v60  ;;  %7986 = vmatprep.mubr.msk.f32.mxu1 %vm594_vm1, %v462_v30  ;;  %v464_v28 = vld [vmem:[%s12132_s0 + $0xe10] sm:$0xff]  ;;  %v177_v31 = vld [vmem:[%s12132_s0 + $0x518] sm:$0xff] }
 0x14b   :  { %v9744_v29 = vpop.f32.mrb[54].mxu0  ;;  %v9746_v60 = vpop.f32.mrb[54].mxu1 }
 0x14c   :  { %12193 = vst [vmem:[#allocation60_spill] sm:$0xff] %v9744_v29  ;;  %12194 = vst [vmem:[#allocation61_spill] sm:$0xff] %v9746_v60  ;;  %v9748_v30 = vpop.f32.mrb[55].mxu0  ;;  %7555 = vmatmul.mubr.msk.f32.gmra.mrb[160].mxu0 %vm594_vm1, %v175_v62  ;;  %v9751_v61 = vpop.f32.mrb[55].mxu1  ;;  %7987 = vmatmul.mubr.msk.f32.gmra.mrb[160].mxu1 %vm594_vm1, %v463_v15  ;;  %v465_v60 = vld [vmem:[%s12132_s0 + $0xe18] sm:$0xff]  ;;  %v178_v62 = vld [vmem:[%s12132_s0 + $0x520] sm:$0xff] }
 0x14d   :  { %12195 = vst [vmem:[#allocation62_spill] sm:$0xff] %v9748_v30  ;;  %12196 = vst [vmem:[#allocation63_spill] sm:$0xff] %v9751_v61  ;;  %7557 = vmatprep.mubr.msk.f32.mxu0 %vm594_vm1, %v176_v63  ;;  %7989 = vmatprep.mubr.msk.f32.mxu1 %vm594_vm1, %v464_v28  ;;  %v466_v15 = vld [vmem:[%s12132_s0 + $0xe20] sm:$0xff]  ;;  %v179_v29 = vld [vmem:[%s12132_s0 + $0x528] sm:$0xff] }
 0x14f   :  { %v9768_v61 = vpop.f32.mrb[56].mxu0  ;;  %v9770_v63 = vpop.f32.mrb[56].mxu1 }
 0x150   :  { %12197 = vst [vmem:[#allocation64_spill] sm:$0xff] %v9768_v61  ;;  %12198 = vst [vmem:[#allocation65_spill] sm:$0xff] %v9770_v63  ;;  %v9772_v28 = vpop.f32.mrb[57].mxu0  ;;  %7558 = vmatmul.mubr.msk.f32.gmra.mrb[162].mxu0 %vm594_vm1, %v177_v31  ;;  %v9775_v30 = vpop.f32.mrb[57].mxu1  ;;  %7990 = vmatmul.mubr.msk.f32.gmra.mrb[162].mxu1 %vm594_vm1, %v465_v60  ;;  %v467_v63 = vld [vmem:[%s12132_s0 + $0xe28] sm:$0xff]  ;;  %v180_v31 = vld [vmem:[%s12132_s0 + $0x530] sm:$0xff] }
 0x151   :  { %12199 = vst [vmem:[#allocation66_spill] sm:$0xff] %v9772_v28  ;;  %12200 = vst [vmem:[#allocation67_spill] sm:$0xff] %v9775_v30  ;;  %7560 = vmatprep.mubr.msk.f32.mxu0 %vm594_vm1, %v178_v62  ;;  %7992 = vmatprep.mubr.msk.f32.mxu1 %vm594_vm1, %v466_v15  ;;  %v468_v60 = vld [vmem:[%s12132_s0 + $0xe30] sm:$0xff]  ;;  %v181_v61 = vld [vmem:[%s12132_s0 + $0x538] sm:$0xff] }
 0x153   :  { %v9792_v30 = vpop.f32.mrb[58].mxu0  ;;  %v9794_v62 = vpop.f32.mrb[58].mxu1 }
 0x154   :  { %12201 = vst [vmem:[#allocation68_spill] sm:$0xff] %v9792_v30  ;;  %12202 = vst [vmem:[#allocation69_spill] sm:$0xff] %v9794_v62  ;;  %v9796_v15 = vpop.f32.mrb[59].mxu0  ;;  %7561 = vmatmul.mubr.msk.f32.gmra.mrb[164].mxu0 %vm594_vm1, %v179_v29  ;;  %v9799_v28 = vpop.f32.mrb[59].mxu1  ;;  %7993 = vmatmul.mubr.msk.f32.gmra.mrb[164].mxu1 %vm594_vm1, %v467_v63  ;;  %v469_v62 = vld [vmem:[%s12132_s0 + $0xe38] sm:$0xff]  ;;  %v182_v29 = vld [vmem:[%s12132_s0 + $0x540] sm:$0xff] }
 0x155   :  { %12203 = vst [vmem:[#allocation70_spill] sm:$0xff] %v9796_v15  ;;  %12204 = vst [vmem:[#allocation71_spill] sm:$0xff] %v9799_v28  ;;  %7563 = vmatprep.mubr.msk.f32.mxu0 %vm594_vm1, %v180_v31  ;;  %7995 = vmatprep.mubr.msk.f32.mxu1 %vm594_vm1, %v468_v60  ;;  %v470_v63 = vld [vmem:[%s12132_s0 + $0xe40] sm:$0xff]  ;;  %v183_v30 = vld [vmem:[%s12132_s0 + $0x548] sm:$0xff] }
 0x157   :  { %v9816_v28 = vpop.f32.mrb[60].mxu0  ;;  %v9818_v31 = vpop.f32.mrb[60].mxu1 }
 0x158   :  { %12205 = vst [vmem:[#allocation72_spill] sm:$0xff] %v9816_v28  ;;  %12206 = vst [vmem:[#allocation73_spill] sm:$0xff] %v9818_v31  ;;  %v9820_v60 = vpop.f32.mrb[61].mxu0  ;;  %7564 = vmatmul.mubr.msk.f32.gmra.mrb[166].mxu0 %vm594_vm1, %v181_v61  ;;  %v9823_v15 = vpop.f32.mrb[61].mxu1  ;;  %7996 = vmatmul.mubr.msk.f32.gmra.mrb[166].mxu1 %vm594_vm1, %v469_v62  ;;  %v471_v31 = vld [vmem:[%s12132_s0 + $0xe48] sm:$0xff]  ;;  %v184_v61 = vld [vmem:[%s12132_s0 + $0x550] sm:$0xff] }
 0x159   :  { %12207 = vst [vmem:[#allocation74_spill] sm:$0xff] %v9820_v60  ;;  %12208 = vst [vmem:[#allocation75_spill] sm:$0xff] %v9823_v15  ;;  %7566 = vmatprep.mubr.msk.f32.mxu0 %vm594_vm1, %v182_v29  ;;  %7998 = vmatprep.mubr.msk.f32.mxu1 %vm594_vm1, %v470_v63  ;;  %v472_v62 = vld [vmem:[%s12132_s0 + $0xe50] sm:$0xff]  ;;  %v185_v28 = vld [vmem:[%s12132_s0 + $0x558] sm:$0xff] }
 0x15b   :  { %v9840_v15 = vpop.f32.mrb[62].mxu0  ;;  %v9842_v29 = vpop.f32.mrb[62].mxu1 }
 0x15c   :  { %12209 = vst [vmem:[#allocation76_spill] sm:$0xff] %v9840_v15  ;;  %12210 = vst [vmem:[#allocation77_spill] sm:$0xff] %v9842_v29  ;;  %v9844_v63 = vpop.f32.mrb[63].mxu0  ;;  %7567 = vmatmul.mubr.msk.f32.gmra.mrb[168].mxu0 %vm594_vm1, %v183_v30  ;;  %v9847_v60 = vpop.f32.mrb[63].mxu1  ;;  %7999 = vmatmul.mubr.msk.f32.gmra.mrb[168].mxu1 %vm594_vm1, %v471_v31  ;;  %v473_v29 = vld [vmem:[%s12132_s0 + $0xe58] sm:$0xff]  ;;  %v186_v30 = vld [vmem:[%s12132_s0 + $0x560] sm:$0xff] }
 0x15d   :  { %12211 = vst [vmem:[#allocation78_spill] sm:$0xff] %v9844_v63  ;;  %12212 = vst [vmem:[#allocation79_spill] sm:$0xff] %v9847_v60  ;;  %7569 = vmatprep.mubr.msk.f32.mxu0 %vm594_vm1, %v184_v61  ;;  %8001 = vmatprep.mubr.msk.f32.mxu1 %vm594_vm1, %v472_v62  ;;  %v474_v31 = vld [vmem:[%s12132_s0 + $0xe60] sm:$0xff]  ;;  %v187_v15 = vld [vmem:[%s12132_s0 + $0x568] sm:$0xff] }
 0x15f   :  { %v9864_v60 = vpop.f32.mrb[64].mxu0  ;;  %v9866_v61 = vpop.f32.mrb[64].mxu1 }
 0x160   :  { %12213 = vst [vmem:[#allocation80_spill] sm:$0xff] %v9864_v60  ;;  %12214 = vst [vmem:[#allocation81_spill] sm:$0xff] %v9866_v61  ;;  %v9868_v62 = vpop.f32.mrb[65].mxu0  ;;  %7570 = vmatmul.mubr.msk.f32.gmra.mrb[170].mxu0 %vm594_vm1, %v185_v28  ;;  %v9871_v63 = vpop.f32.mrb[65].mxu1  ;;  %8002 = vmatmul.mubr.msk.f32.gmra.mrb[170].mxu1 %vm594_vm1, %v473_v29  ;;  %v475_v61 = vld [vmem:[%s12132_s0 + $0xe68] sm:$0xff]  ;;  %v188_v28 = vld [vmem:[%s12132_s0 + $0x570] sm:$0xff] }
 0x161   :  { %12215 = vst [vmem:[#allocation82_spill] sm:$0xff] %v9868_v62  ;;  %12216 = vst [vmem:[#allocation83_spill] sm:$0xff] %v9871_v63  ;;  %7572 = vmatprep.mubr.msk.f32.mxu0 %vm594_vm1, %v186_v30  ;;  %8004 = vmatprep.mubr.msk.f32.mxu1 %vm594_vm1, %v474_v31  ;;  %v476_v29 = vld [vmem:[%s12132_s0 + $0xe70] sm:$0xff]  ;;  %v189_v60 = vld [vmem:[%s12132_s0 + $0x578] sm:$0xff] }
 0x163   :  { %v9888_v63 = vpop.f32.mrb[66].mxu0  ;;  %v9890_v30 = vpop.f32.mrb[66].mxu1 }
 0x164   :  { %12217 = vst [vmem:[#allocation84_spill] sm:$0xff] %v9888_v63  ;;  %12218 = vst [vmem:[#allocation85_spill] sm:$0xff] %v9890_v30  ;;  %v9892_v31 = vpop.f32.mrb[67].mxu0  ;;  %7573 = vmatmul.mubr.msk.f32.gmra.mrb[172].mxu0 %vm594_vm1, %v187_v15  ;;  %v9895_v62 = vpop.f32.mrb[67].mxu1  ;;  %8005 = vmatmul.mubr.msk.f32.gmra.mrb[172].mxu1 %vm594_vm1, %v475_v61  ;;  %v477_v30 = vld [vmem:[%s12132_s0 + $0xe78] sm:$0xff]  ;;  %v190_v15 = vld [vmem:[%s12132_s0 + $0x580] sm:$0xff] }
 0x165   :  { %12219 = vst [vmem:[#allocation86_spill] sm:$0xff] %v9892_v31  ;;  %12220 = vst [vmem:[#allocation87_spill] sm:$0xff] %v9895_v62  ;;  %7575 = vmatprep.mubr.msk.f32.mxu0 %vm594_vm1, %v188_v28  ;;  %8007 = vmatprep.mubr.msk.f32.mxu1 %vm594_vm1, %v476_v29  ;;  %v478_v61 = vld [vmem:[%s12132_s0 + $0xe80] sm:$0xff]  ;;  %v191_v63 = vld [vmem:[%s12132_s0 + $0x588] sm:$0xff] }
 0x167   :  { %v9912_v62 = vpop.f32.mrb[68].mxu0  ;;  %v9914_v28 = vpop.f32.mrb[68].mxu1 }
 0x168   :  { %12221 = vst [vmem:[#allocation88_spill] sm:$0xff] %v9912_v62  ;;  %12222 = vst [vmem:[#allocation89_spill] sm:$0xff] %v9914_v28  ;;  %v9916_v29 = vpop.f32.mrb[69].mxu0  ;;  %7576 = vmatmul.mubr.msk.f32.gmra.mrb[174].mxu0 %vm594_vm1, %v189_v60  ;;  %v9919_v31 = vpop.f32.mrb[69].mxu1  ;;  %8008 = vmatmul.mubr.msk.f32.gmra.mrb[174].mxu1 %vm594_vm1, %v477_v30  ;;  %v479_v28 = vld [vmem:[%s12132_s0 + $0xe88] sm:$0xff]  ;;  %v192_v60 = vld [vmem:[%s12132_s0 + $0x590] sm:$0xff] }
 0x169   :  { %12223 = vst [vmem:[#allocation90_spill] sm:$0xff] %v9916_v29  ;;  %12224 = vst [vmem:[#allocation91_spill] sm:$0xff] %v9919_v31  ;;  %7578 = vmatprep.mubr.msk.f32.mxu0 %vm594_vm1, %v190_v15  ;;  %8010 = vmatprep.mubr.msk.f32.mxu1 %vm594_vm1, %v478_v61  ;;  %v480_v30 = vld [vmem:[%s12132_s0 + $0xe90] sm:$0xff]  ;;  %v193_v62 = vld [vmem:[%s12132_s0 + $0x598] sm:$0xff] }
 0x16b   :  { %v9936_v31 = vpop.f32.mrb[70].mxu0  ;;  %v9938_v15 = vpop.f32.mrb[70].mxu1 }
 0x16c   :  { %12225 = vst [vmem:[#allocation92_spill] sm:$0xff] %v9936_v31  ;;  %12226 = vst [vmem:[#allocation93_spill] sm:$0xff] %v9938_v15  ;;  %v9940_v61 = vpop.f32.mrb[71].mxu0  ;;  %7579 = vmatmul.mubr.msk.f32.gmra.mrb[176].mxu0 %vm594_vm1, %v191_v63  ;;  %v9943_v29 = vpop.f32.mrb[71].mxu1  ;;  %8011 = vmatmul.mubr.msk.f32.gmra.mrb[176].mxu1 %vm594_vm1, %v479_v28  ;;  %v481_v15 = vld [vmem:[%s12132_s0 + $0xe98] sm:$0xff]  ;;  %v194_v63 = vld [vmem:[%s12132_s0 + $0x5a0] sm:$0xff] }
 0x16d   :  { %12227 = vst [vmem:[#allocation94_spill] sm:$0xff] %v9940_v61  ;;  %12228 = vst [vmem:[#allocation95_spill] sm:$0xff] %v9943_v29  ;;  %7581 = vmatprep.mubr.msk.f32.mxu0 %vm594_vm1, %v192_v60  ;;  %8013 = vmatprep.mubr.msk.f32.mxu1 %vm594_vm1, %v480_v30  ;;  %v482_v28 = vld [vmem:[%s12132_s0 + $0xea0] sm:$0xff]  ;;  %v195_v31 = vld [vmem:[%s12132_s0 + $0x5a8] sm:$0xff] }
 0x16f   :  { %v9960_v29 = vpop.f32.mrb[72].mxu0  ;;  %v9962_v60 = vpop.f32.mrb[72].mxu1 }
 0x170   :  { %12229 = vst [vmem:[#allocation96_spill] sm:$0xff] %v9960_v29  ;;  %12230 = vst [vmem:[#allocation97_spill] sm:$0xff] %v9962_v60  ;;  %v9964_v30 = vpop.f32.mrb[73].mxu0  ;;  %7582 = vmatmul.mubr.msk.f32.gmra.mrb[178].mxu0 %vm594_vm1, %v193_v62  ;;  %v9967_v61 = vpop.f32.mrb[73].mxu1  ;;  %8014 = vmatmul.mubr.msk.f32.gmra.mrb[178].mxu1 %vm594_vm1, %v481_v15  ;;  %v483_v60 = vld [vmem:[%s12132_s0 + $0xea8] sm:$0xff]  ;;  %v196_v62 = vld [vmem:[%s12132_s0 + $0x5b0] sm:$0xff] }
 0x171   :  { %12231 = vst [vmem:[#allocation98_spill] sm:$0xff] %v9964_v30  ;;  %12232 = vst [vmem:[#allocation99_spill] sm:$0xff] %v9967_v61  ;;  %7584 = vmatprep.mubr.msk.f32.mxu0 %vm594_vm1, %v194_v63  ;;  %8016 = vmatprep.mubr.msk.f32.mxu1 %vm594_vm1, %v482_v28  ;;  %v484_v15 = vld [vmem:[%s12132_s0 + $0xeb0] sm:$0xff]  ;;  %v197_v29 = vld [vmem:[%s12132_s0 + $0x5b8] sm:$0xff] }
 0x173   :  { %v9984_v61 = vpop.f32.mrb[74].mxu0  ;;  %v9986_v63 = vpop.f32.mrb[74].mxu1 }
 0x174   :  { %12233 = vst [vmem:[#allocation100_spill] sm:$0xff] %v9984_v61  ;;  %12234 = vst [vmem:[#allocation101_spill] sm:$0xff] %v9986_v63  ;;  %v9988_v28 = vpop.f32.mrb[75].mxu0  ;;  %7585 = vmatmul.mubr.msk.f32.gmra.mrb[180].mxu0 %vm594_vm1, %v195_v31  ;;  %v9991_v30 = vpop.f32.mrb[75].mxu1  ;;  %8017 = vmatmul.mubr.msk.f32.gmra.mrb[180].mxu1 %vm594_vm1, %v483_v60  ;;  %v485_v63 = vld [vmem:[%s12132_s0 + $0xeb8] sm:$0xff]  ;;  %v198_v31 = vld [vmem:[%s12132_s0 + $0x5c0] sm:$0xff] }
 0x175   :  { %12235 = vst [vmem:[#allocation102_spill] sm:$0xff] %v9988_v28  ;;  %12236 = vst [vmem:[#allocation103_spill] sm:$0xff] %v9991_v30  ;;  %7587 = vmatprep.mubr.msk.f32.mxu0 %vm594_vm1, %v196_v62  ;;  %8019 = vmatprep.mubr.msk.f32.mxu1 %vm594_vm1, %v484_v15  ;;  %v486_v60 = vld [vmem:[%s12132_s0 + $0xec0] sm:$0xff]  ;;  %v199_v61 = vld [vmem:[%s12132_s0 + $0x5c8] sm:$0xff] }
 0x177   :  { %v10008_v30 = vpop.f32.mrb[76].mxu0  ;;  %v10010_v62 = vpop.f32.mrb[76].mxu1 }
 0x178   :  { %12237 = vst [vmem:[#allocation104_spill] sm:$0xff] %v10008_v30  ;;  %12238 = vst [vmem:[#allocation105_spill] sm:$0xff] %v10010_v62  ;;  %v10012_v15 = vpop.f32.mrb[77].mxu0  ;;  %7588 = vmatmul.mubr.msk.f32.gmra.mrb[182].mxu0 %vm594_vm1, %v197_v29  ;;  %v10015_v28 = vpop.f32.mrb[77].mxu1  ;;  %8020 = vmatmul.mubr.msk.f32.gmra.mrb[182].mxu1 %vm594_vm1, %v485_v63  ;;  %v487_v62 = vld [vmem:[%s12132_s0 + $0xec8] sm:$0xff]  ;;  %v200_v29 = vld [vmem:[%s12132_s0 + $0x5d0] sm:$0xff] }
 0x179   :  { %12239 = vst [vmem:[#allocation106_spill] sm:$0xff] %v10012_v15  ;;  %12240 = vst [vmem:[#allocation107_spill] sm:$0xff] %v10015_v28  ;;  %7590 = vmatprep.mubr.msk.f32.mxu0 %vm594_vm1, %v198_v31  ;;  %8022 = vmatprep.mubr.msk.f32.mxu1 %vm594_vm1, %v486_v60  ;;  %v488_v63 = vld [vmem:[%s12132_s0 + $0xed0] sm:$0xff]  ;;  %v201_v30 = vld [vmem:[%s12132_s0 + $0x5d8] sm:$0xff] }
 0x17b   :  { %v10032_v28 = vpop.f32.mrb[78].mxu0  ;;  %v10034_v31 = vpop.f32.mrb[78].mxu1 }
 0x17c   :  { %12241 = vst [vmem:[#allocation108_spill] sm:$0xff] %v10032_v28  ;;  %12242 = vst [vmem:[#allocation109_spill] sm:$0xff] %v10034_v31  ;;  %v10036_v60 = vpop.f32.mrb[79].mxu0  ;;  %7591 = vmatmul.mubr.msk.f32.gmra.mrb[184].mxu0 %vm594_vm1, %v199_v61  ;;  %v10039_v15 = vpop.f32.mrb[79].mxu1  ;;  %8023 = vmatmul.mubr.msk.f32.gmra.mrb[184].mxu1 %vm594_vm1, %v487_v62  ;;  %v489_v31 = vld [vmem:[%s12132_s0 + $0xed8] sm:$0xff]  ;;  %v202_v61 = vld [vmem:[%s12132_s0 + $0x5e0] sm:$0xff] }
 0x17d   :  { %12243 = vst [vmem:[#allocation110_spill] sm:$0xff] %v10036_v60  ;;  %12244 = vst [vmem:[#allocation111_spill] sm:$0xff] %v10039_v15  ;;  %7593 = vmatprep.mubr.msk.f32.mxu0 %vm594_vm1, %v200_v29  ;;  %8025 = vmatprep.mubr.msk.f32.mxu1 %vm594_vm1, %v488_v63  ;;  %v490_v62 = vld [vmem:[%s12132_s0 + $0xee0] sm:$0xff]  ;;  %v203_v28 = vld [vmem:[%s12132_s0 + $0x5e8] sm:$0xff] }
 0x17f   :  { %v10056_v15 = vpop.f32.mrb[80].mxu0  ;;  %v10058_v29 = vpop.f32.mrb[80].mxu1 }
 0x180   :  { %12245 = vst [vmem:[#allocation112_spill] sm:$0xff] %v10056_v15  ;;  %12246 = vst [vmem:[#allocation113_spill] sm:$0xff] %v10058_v29  ;;  %v10060_v63 = vpop.f32.mrb[81].mxu0  ;;  %7594 = vmatmul.mubr.msk.f32.gmra.mrb[186].mxu0 %vm594_vm1, %v201_v30  ;;  %v10063_v60 = vpop.f32.mrb[81].mxu1  ;;  %8026 = vmatmul.mubr.msk.f32.gmra.mrb[186].mxu1 %vm594_vm1, %v489_v31  ;;  %v491_v29 = vld [vmem:[%s12132_s0 + $0xee8] sm:$0xff]  ;;  %v204_v30 = vld [vmem:[%s12132_s0 + $0x5f0] sm:$0xff] }
 0x181   :  { %12247 = vst [vmem:[#allocation114_spill] sm:$0xff] %v10060_v63  ;;  %12248 = vst [vmem:[#allocation115_spill] sm:$0xff] %v10063_v60  ;;  %7596 = vmatprep.mubr.msk.f32.mxu0 %vm594_vm1, %v202_v61  ;;  %8028 = vmatprep.mubr.msk.f32.mxu1 %vm594_vm1, %v490_v62  ;;  %v492_v31 = vld [vmem:[%s12132_s0 + $0xef0] sm:$0xff]  ;;  %v205_v15 = vld [vmem:[%s12132_s0 + $0x5f8] sm:$0xff] }
 0x183   :  { %v10080_v60 = vpop.f32.mrb[82].mxu0  ;;  %v10082_v61 = vpop.f32.mrb[82].mxu1 }
 0x184   :  { %12249 = vst [vmem:[#allocation116_spill] sm:$0xff] %v10080_v60  ;;  %12250 = vst [vmem:[#allocation117_spill] sm:$0xff] %v10082_v61  ;;  %v10084_v62 = vpop.f32.mrb[83].mxu0  ;;  %7597 = vmatmul.mubr.msk.f32.gmra.mrb[188].mxu0 %vm594_vm1, %v203_v28  ;;  %v10087_v63 = vpop.f32.mrb[83].mxu1  ;;  %8029 = vmatmul.mubr.msk.f32.gmra.mrb[188].mxu1 %vm594_vm1, %v491_v29  ;;  %v493_v61 = vld [vmem:[%s12132_s0 + $0xef8] sm:$0xff]  ;;  %v206_v28 = vld [vmem:[%s12132_s0 + $0x600] sm:$0xff] }
 0x185   :  { %12251 = vst [vmem:[#allocation118_spill] sm:$0xff] %v10084_v62  ;;  %12252 = vst [vmem:[#allocation119_spill] sm:$0xff] %v10087_v63  ;;  %7599 = vmatprep.mubr.msk.f32.mxu0 %vm594_vm1, %v204_v30  ;;  %8031 = vmatprep.mubr.msk.f32.mxu1 %vm594_vm1, %v492_v31  ;;  %v494_v29 = vld [vmem:[%s12132_s0 + $0xf00] sm:$0xff]  ;;  %v207_v60 = vld [vmem:[%s12132_s0 + $0x608] sm:$0xff] }
 0x187   :  { %v10104_v63 = vpop.f32.mrb[84].mxu0  ;;  %v10106_v30 = vpop.f32.mrb[84].mxu1 }
 0x188   :  { %12253 = vst [vmem:[#allocation120_spill] sm:$0xff] %v10104_v63  ;;  %12254 = vst [vmem:[#allocation121_spill] sm:$0xff] %v10106_v30  ;;  %v10108_v31 = vpop.f32.mrb[85].mxu0  ;;  %7600 = vmatmul.mubr.msk.f32.gmra.mrb[190].mxu0 %vm594_vm1, %v205_v15  ;;  %v10111_v62 = vpop.f32.mrb[85].mxu1  ;;  %8032 = vmatmul.mubr.msk.f32.gmra.mrb[190].mxu1 %vm594_vm1, %v493_v61  ;;  %v495_v30 = vld [vmem:[%s12132_s0 + $0xf08] sm:$0xff]  ;;  %v208_v15 = vld [vmem:[%s12132_s0 + $0x610] sm:$0xff] }
 0x189   :  { %12255 = vst [vmem:[#allocation122_spill] sm:$0xff] %v10108_v31  ;;  %12256 = vst [vmem:[#allocation123_spill] sm:$0xff] %v10111_v62  ;;  %7602 = vmatprep.mubr.msk.f32.mxu0 %vm594_vm1, %v206_v28  ;;  %8034 = vmatprep.mubr.msk.f32.mxu1 %vm594_vm1, %v494_v29  ;;  %v496_v61 = vld [vmem:[%s12132_s0 + $0xf10] sm:$0xff]  ;;  %v209_v63 = vld [vmem:[%s12132_s0 + $0x618] sm:$0xff] }
 0x18b   :  { %v10128_v62 = vpop.f32.mrb[86].mxu0  ;;  %v10130_v28 = vpop.f32.mrb[86].mxu1 }
 0x18c   :  { %12257 = vst [vmem:[#allocation124_spill] sm:$0xff] %v10128_v62  ;;  %12258 = vst [vmem:[#allocation125_spill] sm:$0xff] %v10130_v28  ;;  %v10132_v29 = vpop.f32.mrb[87].mxu0  ;;  %7603 = vmatmul.mubr.msk.f32.gmra.mrb[192].mxu0 %vm594_vm1, %v207_v60  ;;  %v10135_v31 = vpop.f32.mrb[87].mxu1  ;;  %8035 = vmatmul.mubr.msk.f32.gmra.mrb[192].mxu1 %vm594_vm1, %v495_v30  ;;  %v497_v28 = vld [vmem:[%s12132_s0 + $0xf18] sm:$0xff]  ;;  %v210_v60 = vld [vmem:[%s12132_s0 + $0x620] sm:$0xff] }
 0x18d   :  { %12259 = vst [vmem:[#allocation126_spill] sm:$0xff] %v10132_v29  ;;  %12260 = vst [vmem:[#allocation127_spill] sm:$0xff] %v10135_v31  ;;  %7605 = vmatprep.mubr.msk.f32.mxu0 %vm594_vm1, %v208_v15  ;;  %8037 = vmatprep.mubr.msk.f32.mxu1 %vm594_vm1, %v496_v61  ;;  %v498_v30 = vld [vmem:[%s12132_s0 + $0xf20] sm:$0xff]  ;;  %v211_v62 = vld [vmem:[%s12132_s0 + $0x628] sm:$0xff] }
 0x18f   :  { %v10152_v31 = vpop.f32.mrb[88].mxu0  ;;  %v10154_v15 = vpop.f32.mrb[88].mxu1 }
 0x190   :  { %12261 = vst [vmem:[#allocation128_spill] sm:$0xff] %v10152_v31  ;;  %12262 = vst [vmem:[#allocation129_spill] sm:$0xff] %v10154_v15  ;;  %v10156_v61 = vpop.f32.mrb[89].mxu0  ;;  %7606 = vmatmul.mubr.msk.f32.gmra.mrb[194].mxu0 %vm594_vm1, %v209_v63  ;;  %v10159_v29 = vpop.f32.mrb[89].mxu1  ;;  %8038 = vmatmul.mubr.msk.f32.gmra.mrb[194].mxu1 %vm594_vm1, %v497_v28  ;;  %v499_v15 = vld [vmem:[%s12132_s0 + $0xf28] sm:$0xff]  ;;  %v212_v63 = vld [vmem:[%s12132_s0 + $0x630] sm:$0xff] }
 0x191   :  { %12263 = vst [vmem:[#allocation130_spill] sm:$0xff] %v10156_v61  ;;  %12264 = vst [vmem:[#allocation131_spill] sm:$0xff] %v10159_v29  ;;  %7608 = vmatprep.mubr.msk.f32.mxu0 %vm594_vm1, %v210_v60  ;;  %8040 = vmatprep.mubr.msk.f32.mxu1 %vm594_vm1, %v498_v30  ;;  %v500_v28 = vld [vmem:[%s12132_s0 + $0xf30] sm:$0xff]  ;;  %v213_v31 = vld [vmem:[%s12132_s0 + $0x638] sm:$0xff] }
 0x193   :  { %v10176_v29 = vpop.f32.mrb[90].mxu0  ;;  %v10178_v60 = vpop.f32.mrb[90].mxu1 }
 0x194   :  { %12265 = vst [vmem:[#allocation132_spill] sm:$0xff] %v10176_v29  ;;  %12266 = vst [vmem:[#allocation133_spill] sm:$0xff] %v10178_v60  ;;  %v10180_v30 = vpop.f32.mrb[91].mxu0  ;;  %7609 = vmatmul.mubr.msk.f32.gmra.mrb[196].mxu0 %vm594_vm1, %v211_v62  ;;  %v10183_v61 = vpop.f32.mrb[91].mxu1  ;;  %8041 = vmatmul.mubr.msk.f32.gmra.mrb[196].mxu1 %vm594_vm1, %v499_v15  ;;  %v501_v60 = vld [vmem:[%s12132_s0 + $0xf38] sm:$0xff]  ;;  %v214_v62 = vld [vmem:[%s12132_s0 + $0x640] sm:$0xff] }
 0x195   :  { %12267 = vst [vmem:[#allocation134_spill] sm:$0xff] %v10180_v30  ;;  %12268 = vst [vmem:[#allocation135_spill] sm:$0xff] %v10183_v61  ;;  %7611 = vmatprep.mubr.msk.f32.mxu0 %vm594_vm1, %v212_v63  ;;  %8043 = vmatprep.mubr.msk.f32.mxu1 %vm594_vm1, %v500_v28  ;;  %v502_v15 = vld [vmem:[%s12132_s0 + $0xf40] sm:$0xff]  ;;  %v215_v29 = vld [vmem:[%s12132_s0 + $0x648] sm:$0xff] }
 0x197   :  { %v10200_v61 = vpop.f32.mrb[92].mxu0  ;;  %v10202_v63 = vpop.f32.mrb[92].mxu1 }
 0x198   :  { %12269 = vst [vmem:[#allocation136_spill] sm:$0xff] %v10200_v61  ;;  %12270 = vst [vmem:[#allocation137_spill] sm:$0xff] %v10202_v63  ;;  %v10204_v28 = vpop.f32.mrb[93].mxu0  ;;  %7612 = vmatmul.mubr.msk.f32.gmra.mrb[198].mxu0 %vm594_vm1, %v213_v31  ;;  %v10207_v30 = vpop.f32.mrb[93].mxu1  ;;  %8044 = vmatmul.mubr.msk.f32.gmra.mrb[198].mxu1 %vm594_vm1, %v501_v60  ;;  %v503_v63 = vld [vmem:[%s12132_s0 + $0xf48] sm:$0xff]  ;;  %v216_v31 = vld [vmem:[%s12132_s0 + $0x650] sm:$0xff] }
 0x199   :  { %12271 = vst [vmem:[#allocation138_spill] sm:$0xff] %v10204_v28  ;;  %12272 = vst [vmem:[#allocation139_spill] sm:$0xff] %v10207_v30  ;;  %7614 = vmatprep.mubr.msk.f32.mxu0 %vm594_vm1, %v214_v62  ;;  %8046 = vmatprep.mubr.msk.f32.mxu1 %vm594_vm1, %v502_v15  ;;  %v504_v60 = vld [vmem:[%s12132_s0 + $0xf50] sm:$0xff]  ;;  %v217_v61 = vld [vmem:[%s12132_s0 + $0x658] sm:$0xff] }
 0x19b   :  { %v10224_v30 = vpop.f32.mrb[94].mxu0  ;;  %v10226_v62 = vpop.f32.mrb[94].mxu1 }
 0x19c   :  { %12273 = vst [vmem:[#allocation140_spill] sm:$0xff] %v10224_v30  ;;  %12274 = vst [vmem:[#allocation141_spill] sm:$0xff] %v10226_v62  ;;  %v10228_v15 = vpop.f32.mrb[95].mxu0  ;;  %7615 = vmatmul.mubr.msk.f32.gmra.mrb[200].mxu0 %vm594_vm1, %v215_v29  ;;  %v10231_v28 = vpop.f32.mrb[95].mxu1  ;;  %8047 = vmatmul.mubr.msk.f32.gmra.mrb[200].mxu1 %vm594_vm1, %v503_v63  ;;  %v505_v62 = vld [vmem:[%s12132_s0 + $0xf58] sm:$0xff]  ;;  %v218_v29 = vld [vmem:[%s12132_s0 + $0x660] sm:$0xff] }
 0x19d   :  { %12275 = vst [vmem:[#allocation142_spill] sm:$0xff] %v10228_v15  ;;  %12276 = vst [vmem:[#allocation143_spill] sm:$0xff] %v10231_v28  ;;  %7617 = vmatprep.mubr.msk.f32.mxu0 %vm594_vm1, %v216_v31  ;;  %8049 = vmatprep.mubr.msk.f32.mxu1 %vm594_vm1, %v504_v60  ;;  %v506_v63 = vld [vmem:[%s12132_s0 + $0xf60] sm:$0xff]  ;;  %v219_v30 = vld [vmem:[%s12132_s0 + $0x668] sm:$0xff] }
 0x19f   :  { %v10248_v28 = vpop.f32.mrb[96].mxu0  ;;  %v10250_v31 = vpop.f32.mrb[96].mxu1 }
 0x1a0   :  { %12277 = vst [vmem:[#allocation144_spill] sm:$0xff] %v10248_v28  ;;  %12278 = vst [vmem:[#allocation145_spill] sm:$0xff] %v10250_v31  ;;  %v10252_v60 = vpop.f32.mrb[97].mxu0  ;;  %7618 = vmatmul.mubr.msk.f32.gmra.mrb[202].mxu0 %vm594_vm1, %v217_v61  ;;  %v10255_v15 = vpop.f32.mrb[97].mxu1  ;;  %8050 = vmatmul.mubr.msk.f32.gmra.mrb[202].mxu1 %vm594_vm1, %v505_v62  ;;  %v507_v31 = vld [vmem:[%s12132_s0 + $0xf68] sm:$0xff]  ;;  %v220_v61 = vld [vmem:[%s12132_s0 + $0x670] sm:$0xff] }
 0x1a1   :  { %12279 = vst [vmem:[#allocation146_spill] sm:$0xff] %v10252_v60  ;;  %12280 = vst [vmem:[#allocation147_spill] sm:$0xff] %v10255_v15  ;;  %7620 = vmatprep.mubr.msk.f32.mxu0 %vm594_vm1, %v218_v29  ;;  %8052 = vmatprep.mubr.msk.f32.mxu1 %vm594_vm1, %v506_v63  ;;  %v508_v62 = vld [vmem:[%s12132_s0 + $0xf70] sm:$0xff]  ;;  %v221_v28 = vld [vmem:[%s12132_s0 + $0x678] sm:$0xff] }
 0x1a3   :  { %v10272_v15 = vpop.f32.mrb[98].mxu0  ;;  %v10274_v29 = vpop.f32.mrb[98].mxu1 }
 0x1a4   :  { %12281 = vst [vmem:[#allocation148_spill] sm:$0xff] %v10272_v15  ;;  %12282 = vst [vmem:[#allocation149_spill] sm:$0xff] %v10274_v29  ;;  %v10276_v63 = vpop.f32.mrb[99].mxu0  ;;  %7621 = vmatmul.mubr.msk.f32.gmra.mrb[204].mxu0 %vm594_vm1, %v219_v30  ;;  %v10279_v60 = vpop.f32.mrb[99].mxu1  ;;  %8053 = vmatmul.mubr.msk.f32.gmra.mrb[204].mxu1 %vm594_vm1, %v507_v31  ;;  %v509_v29 = vld [vmem:[%s12132_s0 + $0xf78] sm:$0xff]  ;;  %v222_v30 = vld [vmem:[%s12132_s0 + $0x680] sm:$0xff] }
 0x1a5   :  { %12283 = vst [vmem:[#allocation150_spill] sm:$0xff] %v10276_v63  ;;  %12284 = vst [vmem:[#allocation151_spill] sm:$0xff] %v10279_v60  ;;  %7623 = vmatprep.mubr.msk.f32.mxu0 %vm594_vm1, %v220_v61  ;;  %8055 = vmatprep.mubr.msk.f32.mxu1 %vm594_vm1, %v508_v62  ;;  %v510_v31 = vld [vmem:[%s12132_s0 + $0xf80] sm:$0xff]  ;;  %v223_v15 = vld [vmem:[%s12132_s0 + $0x688] sm:$0xff] }
 0x1a7   :  { %v10296_v60 = vpop.f32.mrb[100].mxu0  ;;  %v10298_v61 = vpop.f32.mrb[100].mxu1 }
 0x1a8   :  { %12285 = vst [vmem:[#allocation152_spill] sm:$0xff] %v10296_v60  ;;  %12286 = vst [vmem:[#allocation153_spill] sm:$0xff] %v10298_v61  ;;  %v10300_v62 = vpop.f32.mrb[101].mxu0  ;;  %7624 = vmatmul.mubr.msk.f32.gmra.mrb[206].mxu0 %vm594_vm1, %v221_v28  ;;  %v10303_v63 = vpop.f32.mrb[101].mxu1  ;;  %8056 = vmatmul.mubr.msk.f32.gmra.mrb[206].mxu1 %vm594_vm1, %v509_v29  ;;  %v511_v61 = vld [vmem:[%s12132_s0 + $0xf88] sm:$0xff]  ;;  %v224_v28 = vld [vmem:[%s12132_s0 + $0x690] sm:$0xff] }
 0x1a9   :  { %12287 = vst [vmem:[#allocation154_spill] sm:$0xff] %v10300_v62  ;;  %12288 = vst [vmem:[#allocation155_spill] sm:$0xff] %v10303_v63  ;;  %7626 = vmatprep.mubr.msk.f32.mxu0 %vm594_vm1, %v222_v30  ;;  %8058 = vmatprep.mubr.msk.f32.mxu1 %vm594_vm1, %v510_v31  ;;  %v512_v29 = vld [vmem:[%s12132_s0 + $0xf90] sm:$0xff]  ;;  %v225_v60 = vld [vmem:[%s12132_s0 + $0x698] sm:$0xff] }
 0x1ab   :  { %v10320_v63 = vpop.f32.mrb[102].mxu0  ;;  %v10322_v30 = vpop.f32.mrb[102].mxu1 }
 0x1ac   :  { %12289 = vst [vmem:[#allocation156_spill] sm:$0xff] %v10320_v63  ;;  %12290 = vst [vmem:[#allocation157_spill] sm:$0xff] %v10322_v30  ;;  %v10324_v31 = vpop.f32.mrb[103].mxu0  ;;  %7627 = vmatmul.mubr.msk.f32.gmra.mrb[208].mxu0 %vm594_vm1, %v223_v15  ;;  %v10327_v62 = vpop.f32.mrb[103].mxu1  ;;  %8059 = vmatmul.mubr.msk.f32.gmra.mrb[208].mxu1 %vm594_vm1, %v511_v61  ;;  %v513_v30 = vld [vmem:[%s12132_s0 + $0xf98] sm:$0xff]  ;;  %v226_v15 = vld [vmem:[%s12132_s0 + $0x6a0] sm:$0xff] }
 0x1ad   :  { %12291 = vst [vmem:[#allocation158_spill] sm:$0xff] %v10324_v31  ;;  %12292 = vst [vmem:[#allocation159_spill] sm:$0xff] %v10327_v62  ;;  %7629 = vmatprep.mubr.msk.f32.mxu0 %vm594_vm1, %v224_v28  ;;  %8061 = vmatprep.mubr.msk.f32.mxu1 %vm594_vm1, %v512_v29  ;;  %v514_v61 = vld [vmem:[%s12132_s0 + $0xfa0] sm:$0xff]  ;;  %v227_v63 = vld [vmem:[%s12132_s0 + $0x6a8] sm:$0xff] }
 0x1af   :  { %v10344_v62 = vpop.f32.mrb[104].mxu0  ;;  %v10346_v28 = vpop.f32.mrb[104].mxu1 }
 0x1b0   :  { %12293 = vst [vmem:[#allocation160_spill] sm:$0xff] %v10344_v62  ;;  %12294 = vst [vmem:[#allocation161_spill] sm:$0xff] %v10346_v28  ;;  %v10348_v29 = vpop.f32.mrb[105].mxu0  ;;  %7630 = vmatmul.mubr.msk.f32.gmra.mrb[210].mxu0 %vm594_vm1, %v225_v60  ;;  %v10351_v31 = vpop.f32.mrb[105].mxu1  ;;  %8062 = vmatmul.mubr.msk.f32.gmra.mrb[210].mxu1 %vm594_vm1, %v513_v30  ;;  %v515_v28 = vld [vmem:[%s12132_s0 + $0xfa8] sm:$0xff]  ;;  %v228_v60 = vld [vmem:[%s12132_s0 + $0x6b0] sm:$0xff] }
 0x1b1   :  { %12295 = vst [vmem:[#allocation162_spill] sm:$0xff] %v10348_v29  ;;  %12296 = vst [vmem:[#allocation163_spill] sm:$0xff] %v10351_v31  ;;  %7632 = vmatprep.mubr.msk.f32.mxu0 %vm594_vm1, %v226_v15  ;;  %8064 = vmatprep.mubr.msk.f32.mxu1 %vm594_vm1, %v514_v61  ;;  %v516_v30 = vld [vmem:[%s12132_s0 + $0xfb0] sm:$0xff]  ;;  %v229_v62 = vld [vmem:[%s12132_s0 + $0x6b8] sm:$0xff] }
 0x1b3   :  { %v10368_v31 = vpop.f32.mrb[106].mxu0  ;;  %v10370_v15 = vpop.f32.mrb[106].mxu1 }
 0x1b4   :  { %12297 = vst [vmem:[#allocation164_spill] sm:$0xff] %v10368_v31  ;;  %12298 = vst [vmem:[#allocation165_spill] sm:$0xff] %v10370_v15  ;;  %v10372_v61 = vpop.f32.mrb[107].mxu0  ;;  %7633 = vmatmul.mubr.msk.f32.gmra.mrb[212].mxu0 %vm594_vm1, %v227_v63  ;;  %v10375_v29 = vpop.f32.mrb[107].mxu1  ;;  %8065 = vmatmul.mubr.msk.f32.gmra.mrb[212].mxu1 %vm594_vm1, %v515_v28  ;;  %v517_v15 = vld [vmem:[%s12132_s0 + $0xfb8] sm:$0xff]  ;;  %v230_v63 = vld [vmem:[%s12132_s0 + $0x6c0] sm:$0xff] }
 0x1b5   :  { %12299 = vst [vmem:[#allocation166_spill] sm:$0xff] %v10372_v61  ;;  %12300 = vst [vmem:[#allocation167_spill] sm:$0xff] %v10375_v29  ;;  %7635 = vmatprep.mubr.msk.f32.mxu0 %vm594_vm1, %v228_v60  ;;  %8067 = vmatprep.mubr.msk.f32.mxu1 %vm594_vm1, %v516_v30  ;;  %v518_v28 = vld [vmem:[%s12132_s0 + $0xfc0] sm:$0xff]  ;;  %v231_v31 = vld [vmem:[%s12132_s0 + $0x6c8] sm:$0xff] }
 0x1b7   :  { %v10392_v29 = vpop.f32.mrb[108].mxu0  ;;  %v10394_v60 = vpop.f32.mrb[108].mxu1 }
 0x1b8   :  { %12301 = vst [vmem:[#allocation168_spill] sm:$0xff] %v10392_v29  ;;  %12302 = vst [vmem:[#allocation169_spill] sm:$0xff] %v10394_v60  ;;  %v10396_v30 = vpop.f32.mrb[109].mxu0  ;;  %7636 = vmatmul.mubr.msk.f32.gmra.mrb[214].mxu0 %vm594_vm1, %v229_v62  ;;  %v10399_v61 = vpop.f32.mrb[109].mxu1  ;;  %8068 = vmatmul.mubr.msk.f32.gmra.mrb[214].mxu1 %vm594_vm1, %v517_v15  ;;  %v519_v60 = vld [vmem:[%s12132_s0 + $0xfc8] sm:$0xff]  ;;  %v232_v62 = vld [vmem:[%s12132_s0 + $0x6d0] sm:$0xff] }
 0x1b9   :  { %12303 = vst [vmem:[#allocation170_spill] sm:$0xff] %v10396_v30  ;;  %12304 = vst [vmem:[#allocation171_spill] sm:$0xff] %v10399_v61  ;;  %7638 = vmatprep.mubr.msk.f32.mxu0 %vm594_vm1, %v230_v63  ;;  %8070 = vmatprep.mubr.msk.f32.mxu1 %vm594_vm1, %v518_v28  ;;  %v520_v15 = vld [vmem:[%s12132_s0 + $0xfd0] sm:$0xff]  ;;  %v233_v29 = vld [vmem:[%s12132_s0 + $0x6d8] sm:$0xff] }
 0x1bb   :  { %v10416_v61 = vpop.f32.mrb[110].mxu0  ;;  %v10418_v63 = vpop.f32.mrb[110].mxu1 }
 0x1bc   :  { %12305 = vst [vmem:[#allocation172_spill] sm:$0xff] %v10416_v61  ;;  %12306 = vst [vmem:[#allocation173_spill] sm:$0xff] %v10418_v63  ;;  %v10420_v28 = vpop.f32.mrb[111].mxu0  ;;  %7639 = vmatmul.mubr.msk.f32.gmra.mrb[216].mxu0 %vm594_vm1, %v231_v31  ;;  %v10423_v30 = vpop.f32.mrb[111].mxu1  ;;  %8071 = vmatmul.mubr.msk.f32.gmra.mrb[216].mxu1 %vm594_vm1, %v519_v60  ;;  %v521_v63 = vld [vmem:[%s12132_s0 + $0xfd8] sm:$0xff]  ;;  %v234_v31 = vld [vmem:[%s12132_s0 + $0x6e0] sm:$0xff] }
 0x1bd   :  { %12307 = vst [vmem:[#allocation174_spill] sm:$0xff] %v10420_v28  ;;  %12308 = vst [vmem:[#allocation175_spill] sm:$0xff] %v10423_v30  ;;  %7641 = vmatprep.mubr.msk.f32.mxu0 %vm594_vm1, %v232_v62  ;;  %8073 = vmatprep.mubr.msk.f32.mxu1 %vm594_vm1, %v520_v15  ;;  %v522_v60 = vld [vmem:[%s12132_s0 + $0xfe0] sm:$0xff]  ;;  %v235_v61 = vld [vmem:[%s12132_s0 + $0x6e8] sm:$0xff] }
 0x1bf   :  { %v10440_v30 = vpop.f32.mrb[112].mxu0  ;;  %v10442_v62 = vpop.f32.mrb[112].mxu1 }
 0x1c0   :  { %12309 = vst [vmem:[#allocation176_spill] sm:$0xff] %v10440_v30  ;;  %12310 = vst [vmem:[#allocation177_spill] sm:$0xff] %v10442_v62  ;;  %v10444_v15 = vpop.f32.mrb[113].mxu0  ;;  %7642 = vmatmul.mubr.msk.f32.gmra.mrb[218].mxu0 %vm594_vm1, %v233_v29  ;;  %v10447_v28 = vpop.f32.mrb[113].mxu1  ;;  %8074 = vmatmul.mubr.msk.f32.gmra.mrb[218].mxu1 %vm594_vm1, %v521_v63  ;;  %v523_v62 = vld [vmem:[%s12132_s0 + $0xfe8] sm:$0xff]  ;;  %v236_v29 = vld [vmem:[%s12132_s0 + $0x6f0] sm:$0xff] }
 0x1c1   :  { %12311 = vst [vmem:[#allocation178_spill] sm:$0xff] %v10444_v15  ;;  %12312 = vst [vmem:[#allocation179_spill] sm:$0xff] %v10447_v28  ;;  %7644 = vmatprep.mubr.msk.f32.mxu0 %vm594_vm1, %v234_v31  ;;  %8076 = vmatprep.mubr.msk.f32.mxu1 %vm594_vm1, %v522_v60  ;;  %v524_v63 = vld [vmem:[%s12132_s0 + $0xff0] sm:$0xff]  ;;  %v237_v30 = vld [vmem:[%s12132_s0 + $0x6f8] sm:$0xff] }
 0x1c3   :  { %v10464_v28 = vpop.f32.mrb[114].mxu0  ;;  %v10466_v31 = vpop.f32.mrb[114].mxu1 }
 0x1c4   :  { %12313 = vst [vmem:[#allocation180_spill] sm:$0xff] %v10464_v28  ;;  %12314 = vst [vmem:[#allocation181_spill] sm:$0xff] %v10466_v31  ;;  %v10468_v60 = vpop.f32.mrb[115].mxu0  ;;  %7645 = vmatmul.mubr.msk.f32.gmra.mrb[220].mxu0 %vm594_vm1, %v235_v61  ;;  %v10471_v15 = vpop.f32.mrb[115].mxu1  ;;  %8077 = vmatmul.mubr.msk.f32.gmra.mrb[220].mxu1 %vm594_vm1, %v523_v62  ;;  %v525_v31 = vld [vmem:[%s12132_s0 + $0xff8] sm:$0xff]  ;;  %v238_v61 = vld [vmem:[%s12132_s0 + $0x700] sm:$0xff] }
 0x1c5   :  { %12315 = vst [vmem:[#allocation182_spill] sm:$0xff] %v10468_v60  ;;  %12316 = vst [vmem:[#allocation183_spill] sm:$0xff] %v10471_v15  ;;  %7647 = vmatprep.mubr.msk.f32.mxu0 %vm594_vm1, %v236_v29  ;;  %8079 = vmatprep.mubr.msk.f32.mxu1 %vm594_vm1, %v524_v63  ;;  %v526_v62 = vld [vmem:[%s12132_s0 + $0x1000] sm:$0xff]  ;;  %v239_v28 = vld [vmem:[%s12132_s0 + $0x708] sm:$0xff] }
 0x1c7   :  { %v10488_v15 = vpop.f32.mrb[116].mxu0  ;;  %v10490_v29 = vpop.f32.mrb[116].mxu1 }
 0x1c8   :  { %12317 = vst [vmem:[#allocation184_spill] sm:$0xff] %v10488_v15  ;;  %12318 = vst [vmem:[#allocation185_spill] sm:$0xff] %v10490_v29  ;;  %v10492_v63 = vpop.f32.mrb[117].mxu0  ;;  %7648 = vmatmul.mubr.msk.f32.gmra.mrb[222].mxu0 %vm594_vm1, %v237_v30  ;;  %v10495_v60 = vpop.f32.mrb[117].mxu1  ;;  %8080 = vmatmul.mubr.msk.f32.gmra.mrb[222].mxu1 %vm594_vm1, %v525_v31  ;;  %v527_v29 = vld [vmem:[%s12132_s0 + $0x1008] sm:$0xff]  ;;  %v240_v30 = vld [vmem:[%s12132_s0 + $0x710] sm:$0xff] }
 0x1c9   :  { %12319 = vst [vmem:[#allocation186_spill] sm:$0xff] %v10492_v63  ;;  %12320 = vst [vmem:[#allocation187_spill] sm:$0xff] %v10495_v60  ;;  %7650 = vmatprep.mubr.msk.f32.mxu0 %vm594_vm1, %v238_v61  ;;  %8082 = vmatprep.mubr.msk.f32.mxu1 %vm594_vm1, %v526_v62  ;;  %v528_v31 = vld [vmem:[%s12132_s0 + $0x1010] sm:$0xff]  ;;  %v241_v15 = vld [vmem:[%s12132_s0 + $0x718] sm:$0xff] }
 0x1cb   :  { %v10512_v60 = vpop.f32.mrb[118].mxu0  ;;  %v10514_v61 = vpop.f32.mrb[118].mxu1 }
 0x1cc   :  { %12321 = vst [vmem:[#allocation188_spill] sm:$0xff] %v10512_v60  ;;  %12322 = vst [vmem:[#allocation189_spill] sm:$0xff] %v10514_v61  ;;  %v10516_v62 = vpop.f32.mrb[119].mxu0  ;;  %7651 = vmatmul.mubr.msk.f32.gmra.mrb[224].mxu0 %vm594_vm1, %v239_v28  ;;  %v10519_v63 = vpop.f32.mrb[119].mxu1  ;;  %8083 = vmatmul.mubr.msk.f32.gmra.mrb[224].mxu1 %vm594_vm1, %v527_v29  ;;  %v529_v61 = vld [vmem:[%s12132_s0 + $0x1018] sm:$0xff]  ;;  %v242_v28 = vld [vmem:[%s12132_s0 + $0x720] sm:$0xff] }
 0x1cd   :  { %12323 = vst [vmem:[#allocation190_spill] sm:$0xff] %v10516_v62  ;;  %12324 = vst [vmem:[#allocation191_spill] sm:$0xff] %v10519_v63  ;;  %7653 = vmatprep.mubr.msk.f32.mxu0 %vm594_vm1, %v240_v30  ;;  %8085 = vmatprep.mubr.msk.f32.mxu1 %vm594_vm1, %v528_v31  ;;  %v530_v29 = vld [vmem:[%s12132_s0 + $0x1020] sm:$0xff]  ;;  %v243_v60 = vld [vmem:[%s12132_s0 + $0x728] sm:$0xff] }
 0x1cf   :  { %v10536_v63 = vpop.f32.mrb[120].mxu0  ;;  %v10538_v30 = vpop.f32.mrb[120].mxu1 }
 0x1d0   :  { %12325 = vst [vmem:[#allocation192_spill] sm:$0xff] %v10536_v63  ;;  %12326 = vst [vmem:[#allocation193_spill] sm:$0xff] %v10538_v30  ;;  %v10540_v31 = vpop.f32.mrb[121].mxu0  ;;  %7654 = vmatmul.mubr.msk.f32.gmra.mrb[226].mxu0 %vm594_vm1, %v241_v15  ;;  %v10543_v62 = vpop.f32.mrb[121].mxu1  ;;  %8086 = vmatmul.mubr.msk.f32.gmra.mrb[226].mxu1 %vm594_vm1, %v529_v61  ;;  %v531_v30 = vld [vmem:[%s12132_s0 + $0x1028] sm:$0xff]  ;;  %v244_v15 = vld [vmem:[%s12132_s0 + $0x730] sm:$0xff] }
 0x1d1   :  { %12327 = vst [vmem:[#allocation194_spill] sm:$0xff] %v10540_v31  ;;  %12328 = vst [vmem:[#allocation195_spill] sm:$0xff] %v10543_v62  ;;  %7656 = vmatprep.mubr.msk.f32.mxu0 %vm594_vm1, %v242_v28  ;;  %8088 = vmatprep.mubr.msk.f32.mxu1 %vm594_vm1, %v530_v29  ;;  %v532_v61 = vld [vmem:[%s12132_s0 + $0x1030] sm:$0xff]  ;;  %v245_v63 = vld [vmem:[%s12132_s0 + $0x738] sm:$0xff] }
 0x1d3   :  { %v10560_v62 = vpop.f32.mrb[122].mxu0  ;;  %v10562_v28 = vpop.f32.mrb[122].mxu1 }
 0x1d4   :  { %12329 = vst [vmem:[#allocation196_spill] sm:$0xff] %v10560_v62  ;;  %12330 = vst [vmem:[#allocation197_spill] sm:$0xff] %v10562_v28  ;;  %v10564_v29 = vpop.f32.mrb[123].mxu0  ;;  %7657 = vmatmul.mubr.msk.f32.gmra.mrb[228].mxu0 %vm594_vm1, %v243_v60  ;;  %v10567_v31 = vpop.f32.mrb[123].mxu1  ;;  %8089 = vmatmul.mubr.msk.f32.gmra.mrb[228].mxu1 %vm594_vm1, %v531_v30  ;;  %v533_v28 = vld [vmem:[%s12132_s0 + $0x1038] sm:$0xff]  ;;  %v246_v60 = vld [vmem:[%s12132_s0 + $0x740] sm:$0xff] }
 0x1d5   :  { %12331 = vst [vmem:[#allocation198_spill] sm:$0xff] %v10564_v29  ;;  %12332 = vst [vmem:[#allocation199_spill] sm:$0xff] %v10567_v31  ;;  %7659 = vmatprep.mubr.msk.f32.mxu0 %vm594_vm1, %v244_v15  ;;  %8091 = vmatprep.mubr.msk.f32.mxu1 %vm594_vm1, %v532_v61  ;;  %v534_v30 = vld [vmem:[%s12132_s0 + $0x1040] sm:$0xff]  ;;  %v247_v62 = vld [vmem:[%s12132_s0 + $0x748] sm:$0xff] }
 0x1d7   :  { %v10584_v31 = vpop.f32.mrb[124].mxu0  ;;  %v10586_v15 = vpop.f32.mrb[124].mxu1 }
 0x1d8   :  { %12333 = vst [vmem:[#allocation200_spill] sm:$0xff] %v10584_v31  ;;  %12334 = vst [vmem:[#allocation201_spill] sm:$0xff] %v10586_v15  ;;  %v10588_v61 = vpop.f32.mrb[125].mxu0  ;;  %7660 = vmatmul.mubr.msk.f32.gmra.mrb[230].mxu0 %vm594_vm1, %v245_v63  ;;  %v10591_v29 = vpop.f32.mrb[125].mxu1  ;;  %8092 = vmatmul.mubr.msk.f32.gmra.mrb[230].mxu1 %vm594_vm1, %v533_v28  ;;  %v535_v15 = vld [vmem:[%s12132_s0 + $0x1048] sm:$0xff]  ;;  %v248_v63 = vld [vmem:[%s12132_s0 + $0x750] sm:$0xff] }
 0x1d9   :  { %12335 = vst [vmem:[#allocation202_spill] sm:$0xff] %v10588_v61  ;;  %12336 = vst [vmem:[#allocation203_spill] sm:$0xff] %v10591_v29  ;;  %7662 = vmatprep.mubr.msk.f32.mxu0 %vm594_vm1, %v246_v60  ;;  %8094 = vmatprep.mubr.msk.f32.mxu1 %vm594_vm1, %v534_v30  ;;  %v536_v28 = vld [vmem:[%s12132_s0 + $0x1050] sm:$0xff]  ;;  %v249_v31 = vld [vmem:[%s12132_s0 + $0x758] sm:$0xff] }
 0x1db   :  { %v10608_v29 = vpop.f32.mrb[126].mxu0  ;;  %v10610_v60 = vpop.f32.mrb[126].mxu1 }
 0x1dc   :  { %12337 = vst [vmem:[#allocation204_spill] sm:$0xff] %v10608_v29  ;;  %12338 = vst [vmem:[#allocation205_spill] sm:$0xff] %v10610_v60  ;;  %v10612_v30 = vpop.f32.mrb[127].mxu0  ;;  %7663 = vmatmul.mubr.msk.f32.gmra.mrb[232].mxu0 %vm594_vm1, %v247_v62  ;;  %v10615_v61 = vpop.f32.mrb[127].mxu1  ;;  %8095 = vmatmul.mubr.msk.f32.gmra.mrb[232].mxu1 %vm594_vm1, %v535_v15  ;;  %v537_v60 = vld [vmem:[%s12132_s0 + $0x1058] sm:$0xff]  ;;  %v250_v62 = vld [vmem:[%s12132_s0 + $0x760] sm:$0xff] }
 0x1dd   :  { %12339 = vst [vmem:[#allocation206_spill] sm:$0xff] %v10612_v30  ;;  %12340 = vst [vmem:[#allocation207_spill] sm:$0xff] %v10615_v61  ;;  %7665 = vmatprep.mubr.msk.f32.mxu0 %vm594_vm1, %v248_v63  ;;  %8097 = vmatprep.mubr.msk.f32.mxu1 %vm594_vm1, %v536_v28  ;;  %v538_v15 = vld [vmem:[%s12132_s0 + $0x1060] sm:$0xff]  ;;  %v251_v29 = vld [vmem:[%s12132_s0 + $0x768] sm:$0xff] }
 0x1df   :  { %v10632_v61 = vpop.f32.mrb[128].mxu0  ;;  %v10634_v63 = vpop.f32.mrb[128].mxu1 }
 0x1e0   :  { %12341 = vst [vmem:[#allocation208_spill] sm:$0xff] %v10632_v61  ;;  %12342 = vst [vmem:[#allocation209_spill] sm:$0xff] %v10634_v63  ;;  %v10636_v28 = vpop.f32.mrb[129].mxu0  ;;  %7666 = vmatmul.mubr.msk.f32.gmra.mrb[234].mxu0 %vm594_vm1, %v249_v31  ;;  %v10639_v30 = vpop.f32.mrb[129].mxu1  ;;  %8098 = vmatmul.mubr.msk.f32.gmra.mrb[234].mxu1 %vm594_vm1, %v537_v60  ;;  %v539_v63 = vld [vmem:[%s12132_s0 + $0x1068] sm:$0xff]  ;;  %v252_v31 = vld [vmem:[%s12132_s0 + $0x770] sm:$0xff] }
 0x1e1   :  { %12343 = vst [vmem:[#allocation210_spill] sm:$0xff] %v10636_v28  ;;  %12344 = vst [vmem:[#allocation211_spill] sm:$0xff] %v10639_v30  ;;  %7668 = vmatprep.mubr.msk.f32.mxu0 %vm594_vm1, %v250_v62  ;;  %8100 = vmatprep.mubr.msk.f32.mxu1 %vm594_vm1, %v538_v15  ;;  %v540_v60 = vld [vmem:[%s12132_s0 + $0x1070] sm:$0xff]  ;;  %v253_v61 = vld [vmem:[%s12132_s0 + $0x778] sm:$0xff] }
 0x1e3   :  { %v10656_v30 = vpop.f32.mrb[130].mxu0  ;;  %v10658_v62 = vpop.f32.mrb[130].mxu1 }
 0x1e4   :  { %12345 = vst [vmem:[#allocation212_spill] sm:$0xff] %v10656_v30  ;;  %12346 = vst [vmem:[#allocation213_spill] sm:$0xff] %v10658_v62  ;;  %v10660_v15 = vpop.f32.mrb[131].mxu0  ;;  %7669 = vmatmul.mubr.msk.f32.gmra.mrb[236].mxu0 %vm594_vm1, %v251_v29  ;;  %v10663_v28 = vpop.f32.mrb[131].mxu1  ;;  %8101 = vmatmul.mubr.msk.f32.gmra.mrb[236].mxu1 %vm594_vm1, %v539_v63  ;;  %v541_v62 = vld [vmem:[%s12132_s0 + $0x1078] sm:$0xff]  ;;  %v254_v29 = vld [vmem:[%s12132_s0 + $0x780] sm:$0xff] }
 0x1e5   :  { %12347 = vst [vmem:[#allocation214_spill] sm:$0xff] %v10660_v15  ;;  %12348 = vst [vmem:[#allocation215_spill] sm:$0xff] %v10663_v28  ;;  %7671 = vmatprep.mubr.msk.f32.mxu0 %vm594_vm1, %v252_v31  ;;  %8103 = vmatprep.mubr.msk.f32.mxu1 %vm594_vm1, %v540_v60  ;;  %v542_v63 = vld [vmem:[%s12132_s0 + $0x1080] sm:$0xff]  ;;  %v255_v30 = vld [vmem:[%s12132_s0 + $0x788] sm:$0xff] }
 0x1e7   :  { %v10680_v28 = vpop.f32.mrb[132].mxu0  ;;  %v10682_v31 = vpop.f32.mrb[132].mxu1 }
 0x1e8   :  { %12349 = vst [vmem:[#allocation216_spill] sm:$0xff] %v10680_v28  ;;  %12350 = vst [vmem:[#allocation217_spill] sm:$0xff] %v10682_v31  ;;  %v10684_v60 = vpop.f32.mrb[133].mxu0  ;;  %7672 = vmatmul.mubr.msk.f32.gmra.mrb[238].mxu0 %vm594_vm1, %v253_v61  ;;  %v10687_v15 = vpop.f32.mrb[133].mxu1  ;;  %8104 = vmatmul.mubr.msk.f32.gmra.mrb[238].mxu1 %vm594_vm1, %v541_v62  ;;  %v543_v31 = vld [vmem:[%s12132_s0 + $0x1088] sm:$0xff]  ;;  %v256_v61 = vld [vmem:[%s12132_s0 + $0x790] sm:$0xff] }
 0x1e9   :  { %12351 = vst [vmem:[#allocation218_spill] sm:$0xff] %v10684_v60  ;;  %12352 = vst [vmem:[#allocation219_spill] sm:$0xff] %v10687_v15  ;;  %7674 = vmatprep.mubr.msk.f32.mxu0 %vm594_vm1, %v254_v29  ;;  %8106 = vmatprep.mubr.msk.f32.mxu1 %vm594_vm1, %v542_v63  ;;  %v544_v62 = vld [vmem:[%s12132_s0 + $0x1090] sm:$0xff]  ;;  %v257_v28 = vld [vmem:[%s12132_s0 + $0x798] sm:$0xff] }
 0x1eb   :  { %v10704_v15 = vpop.f32.mrb[134].mxu0  ;;  %v10706_v29 = vpop.f32.mrb[134].mxu1 }
 0x1ec   :  { %12353 = vst [vmem:[#allocation220_spill] sm:$0xff] %v10704_v15  ;;  %12354 = vst [vmem:[#allocation221_spill] sm:$0xff] %v10706_v29  ;;  %v10708_v63 = vpop.f32.mrb[135].mxu0  ;;  %7675 = vmatmul.mubr.msk.f32.gmra.mrb[240].mxu0 %vm594_vm1, %v255_v30  ;;  %v10711_v60 = vpop.f32.mrb[135].mxu1  ;;  %8107 = vmatmul.mubr.msk.f32.gmra.mrb[240].mxu1 %vm594_vm1, %v543_v31  ;;  %v545_v29 = vld [vmem:[%s12132_s0 + $0x1098] sm:$0xff]  ;;  %v258_v30 = vld [vmem:[%s12132_s0 + $0x7a0] sm:$0xff] }
 0x1ed   :  { %12355 = vst [vmem:[#allocation222_spill] sm:$0xff] %v10708_v63  ;;  %12356 = vst [vmem:[#allocation223_spill] sm:$0xff] %v10711_v60  ;;  %7677 = vmatprep.mubr.msk.f32.mxu0 %vm594_vm1, %v256_v61  ;;  %8109 = vmatprep.mubr.msk.f32.mxu1 %vm594_vm1, %v544_v62  ;;  %v546_v31 = vld [vmem:[%s12132_s0 + $0x10a0] sm:$0xff]  ;;  %v259_v15 = vld [vmem:[%s12132_s0 + $0x7a8] sm:$0xff] }
 0x1ef   :  { %v10728_v60 = vpop.f32.mrb[136].mxu0  ;;  %v10730_v61 = vpop.f32.mrb[136].mxu1 }
 0x1f0   :  { %12357 = vst [vmem:[#allocation224_spill] sm:$0xff] %v10728_v60  ;;  %12358 = vst [vmem:[#allocation225_spill] sm:$0xff] %v10730_v61  ;;  %v10732_v62 = vpop.f32.mrb[137].mxu0  ;;  %7678 = vmatmul.mubr.msk.f32.gmra.mrb[242].mxu0 %vm594_vm1, %v257_v28  ;;  %v10735_v63 = vpop.f32.mrb[137].mxu1  ;;  %8110 = vmatmul.mubr.msk.f32.gmra.mrb[242].mxu1 %vm594_vm1, %v545_v29  ;;  %v547_v61 = vld [vmem:[%s12132_s0 + $0x10a8] sm:$0xff]  ;;  %v260_v28 = vld [vmem:[%s12132_s0 + $0x7b0] sm:$0xff] }
 0x1f1   :  { %12359 = vst [vmem:[#allocation226_spill] sm:$0xff] %v10732_v62  ;;  %12360 = vst [vmem:[#allocation227_spill] sm:$0xff] %v10735_v63  ;;  %7680 = vmatprep.mubr.msk.f32.mxu0 %vm594_vm1, %v258_v30  ;;  %8112 = vmatprep.mubr.msk.f32.mxu1 %vm594_vm1, %v546_v31  ;;  %v548_v29 = vld [vmem:[%s12132_s0 + $0x10b0] sm:$0xff]  ;;  %v261_v60 = vld [vmem:[%s12132_s0 + $0x7b8] sm:$0xff] }
 0x1f3   :  { %v10752_v63 = vpop.f32.mrb[138].mxu0  ;;  %v10754_v30 = vpop.f32.mrb[138].mxu1 }
 0x1f4   :  { %12361 = vst [vmem:[#allocation228_spill] sm:$0xff] %v10752_v63  ;;  %12362 = vst [vmem:[#allocation229_spill] sm:$0xff] %v10754_v30  ;;  %v10756_v31 = vpop.f32.mrb[139].mxu0  ;;  %7681 = vmatmul.mubr.msk.f32.gmra.mrb[244].mxu0 %vm594_vm1, %v259_v15  ;;  %v10759_v62 = vpop.f32.mrb[139].mxu1  ;;  %8113 = vmatmul.mubr.msk.f32.gmra.mrb[244].mxu1 %vm594_vm1, %v547_v61  ;;  %v549_v30 = vld [vmem:[%s12132_s0 + $0x10b8] sm:$0xff]  ;;  %v262_v15 = vld [vmem:[%s12132_s0 + $0x7c0] sm:$0xff] }
 0x1f5   :  { %12363 = vst [vmem:[#allocation230_spill] sm:$0xff] %v10756_v31  ;;  %12364 = vst [vmem:[#allocation231_spill] sm:$0xff] %v10759_v62  ;;  %7683 = vmatprep.mubr.msk.f32.mxu0 %vm594_vm1, %v260_v28  ;;  %8115 = vmatprep.mubr.msk.f32.mxu1 %vm594_vm1, %v548_v29  ;;  %v550_v61 = vld [vmem:[%s12132_s0 + $0x10c0] sm:$0xff]  ;;  %v263_v63 = vld [vmem:[%s12132_s0 + $0x7c8] sm:$0xff] }
 0x1f7   :  { %v10776_v62 = vpop.f32.mrb[140].mxu0  ;;  %v10778_v28 = vpop.f32.mrb[140].mxu1 }
 0x1f8   :  { %12365 = vst [vmem:[#allocation232_spill] sm:$0xff] %v10776_v62  ;;  %12366 = vst [vmem:[#allocation233_spill] sm:$0xff] %v10778_v28  ;;  %v10780_v29 = vpop.f32.mrb[141].mxu0  ;;  %7684 = vmatmul.mubr.msk.f32.gmra.mrb[246].mxu0 %vm594_vm1, %v261_v60  ;;  %v10783_v31 = vpop.f32.mrb[141].mxu1  ;;  %8116 = vmatmul.mubr.msk.f32.gmra.mrb[246].mxu1 %vm594_vm1, %v549_v30  ;;  %v551_v28 = vld [vmem:[%s12132_s0 + $0x10c8] sm:$0xff]  ;;  %v264_v60 = vld [vmem:[%s12132_s0 + $0x7d0] sm:$0xff] }
 0x1f9   :  { %12367 = vst [vmem:[#allocation234_spill] sm:$0xff] %v10780_v29  ;;  %12368 = vst [vmem:[#allocation235_spill] sm:$0xff] %v10783_v31  ;;  %7686 = vmatprep.mubr.msk.f32.mxu0 %vm594_vm1, %v262_v15  ;;  %8118 = vmatprep.mubr.msk.f32.mxu1 %vm594_vm1, %v550_v61  ;;  %v552_v30 = vld [vmem:[%s12132_s0 + $0x10d0] sm:$0xff]  ;;  %v265_v62 = vld [vmem:[%s12132_s0 + $0x7d8] sm:$0xff] }
 0x1fb   :  { %v10800_v31 = vpop.f32.mrb[142].mxu0  ;;  %v10802_v15 = vpop.f32.mrb[142].mxu1 }
 0x1fc   :  { %12369 = vst [vmem:[#allocation236_spill] sm:$0xff] %v10800_v31  ;;  %12370 = vst [vmem:[#allocation237_spill] sm:$0xff] %v10802_v15  ;;  %v10804_v61 = vpop.f32.mrb[143].mxu0  ;;  %7687 = vmatmul.mubr.msk.f32.gmra.mrb[248].mxu0 %vm594_vm1, %v263_v63  ;;  %v10807_v29 = vpop.f32.mrb[143].mxu1  ;;  %8119 = vmatmul.mubr.msk.f32.gmra.mrb[248].mxu1 %vm594_vm1, %v551_v28  ;;  %v553_v15 = vld [vmem:[%s12132_s0 + $0x10d8] sm:$0xff]  ;;  %v266_v63 = vld [vmem:[%s12132_s0 + $0x7e0] sm:$0xff] }
 0x1fd   :  { %12371 = vst [vmem:[#allocation238_spill] sm:$0xff] %v10804_v61  ;;  %12372 = vst [vmem:[#allocation239_spill] sm:$0xff] %v10807_v29  ;;  %7689 = vmatprep.mubr.msk.f32.mxu0 %vm594_vm1, %v264_v60  ;;  %8121 = vmatprep.mubr.msk.f32.mxu1 %vm594_vm1, %v552_v30  ;;  %v554_v28 = vld [vmem:[%s12132_s0 + $0x10e0] sm:$0xff] }
 0x1ff   :  { %v7532_v29 = vpop.f32.mrb[144].mxu0  ;;  %v7964_v60 = vpop.f32.mrb[144].mxu1 }
 0x200   :  { %v5273_v30 = vmax.f32 %v9096_v32, %v7532_v29  ;;  %v5417_v61 = vmax.f32 %v9098_v33, %v7964_v60  ;;  %v3113_v31 = vpop.f32.mrb[145].mxu0  ;;  %7690 = vmatmul.mubr.msk.f32.gmra.mrb[250].mxu0 %vm594_vm1, %v265_v62  ;;  %v4553_v14 = vpop.f32.mrb[145].mxu1  ;;  %8122 = vmatmul.mubr.msk.f32.gmra.mrb[250].mxu1 %vm594_vm1, %v553_v15  ;;  %v267_v32 = vld [vmem:[%s12132_s0 + $0x7e8] sm:$0xff]  ;;  %v268_v29 = vld [vmem:[%s12132_s0 + $0x7f0] sm:$0xff] }
 0x201   :  { %v5272_v12 = vmax.f32 %v9100_v34, %v3113_v31  ;;  %v5416_v47 = vmax.f32 %v9103_v35, %v4553_v14  ;;  %7692 = vmatprep.mubr.msk.f32.mxu0 %vm594_vm1, %v266_v63  ;;  %8124 = vmatprep.mubr.msk.f32.mxu1 %vm594_vm1, %v554_v28  ;;  %v555_v33 = vld [vmem:[%s12132_s0 + $0x10e8] sm:$0xff]  ;;  %v556_v34 = vld [vmem:[%s12132_s0 + $0x10f0] sm:$0xff] }
 0x202   :  { %v5561_v62 = vmax.f32 %v5273_v30, %v5417_v61 }
 0x203   :  { %v5560_v35 = vmax.f32 %v5272_v12, %v5416_v47  ;;  %v7535_v14 = vpop.f32.mrb[146].mxu0  ;;  %v7967_v31 = vpop.f32.mrb[146].mxu1 }
 0x204   :  { %v5712_v15 = vadd.f32 %v10831_v13, %v5561_v62  ;;  %v5275_v63 = vmax.f32 %v9120_v40, %v7535_v14  ;;  %v5419_v28 = vmax.f32 %v9122_v41, %v7967_v31  ;;  %v3123_v60 = vpop.f32.mrb[147].mxu0  ;;  %7693 = vmatmul.mubr.msk.f32.gmra.mrb[252].mxu0 %vm594_vm1, %v267_v32  ;;  %v4563_v61 = vpop.f32.mrb[147].mxu1  ;;  %8125 = vmatmul.mubr.msk.f32.gmra.mrb[252].mxu1 %vm594_vm1, %v555_v33  ;;  %v269_v40 = vld [vmem:[%s12132_s0 + $0x7f8] sm:$0xff] }
 0x205   :  { %v5711_v30 = vadd.f32 %v10831_v13, %v5560_v35  ;;  %v5274_v46 = vmax.f32 %v9124_v42, %v3123_v60  ;;  %v5418_v47 = vmax.f32 %v9127_v43, %v4563_v61  ;;  %7695 = vmatprep.mubr.msk.f32.mxu0 %vm594_vm1, %v268_v29  ;;  %8127 = vmatprep.mubr.msk.f32.mxu1 %vm594_vm1, %v556_v34  ;;  %v557_v41 = vld [vmem:[%s12132_s0 + $0x10f8] sm:$0xff]  ;;  %v270_v42 = vld [vmem:[%s12132_s0 + $0x800] sm:$0xff] }
 0x206   :  { %v5856_v12 = vmax.f32 %v5712_v15, 0.0  ;;  %v5563_v32 = vmax.f32 %v5275_v63, %v5419_v28  ;;  %v558_v43 = vld [vmem:[%s12132_s0 + $0x1100] sm:$0xff] }
 0x207   :  { %v5855_v33 = vmax.f32 %v5711_v30, 0.0  ;;  %v5562_v62 = vmax.f32 %v5274_v46, %v5418_v47  ;;  %v7538_v29 = vpop.f32.mrb[148].mxu0  ;;  %v7970_v34 = vpop.f32.mrb[148].mxu1 }
 0x208   :  { %6001 = vst.msk [vmem:[%s12134_s3 + $0x8] sm:$0xff] %vm5999_vm4, %v5856_v12  ;;  %v5714_v35 = vadd.f32 %v10831_v13, %v5563_v32  ;;  %v5277_v14 = vmax.f32 %v9144_v48, %v7538_v29  ;;  %v5421_v31 = vmax.f32 %v9146_v49, %v7970_v34  ;;  %v3133_v15 = vpop.f32.mrb[149].mxu0  ;;  %7696 = vmatmul.mubr.msk.f32.gmra.mrb[254].mxu0 %vm594_vm1, %v269_v40  ;;  %v4573_v63 = vpop.f32.mrb[149].mxu1  ;;  %v271_v48 = vld [vmem:[%s12132_s0 + $0x808] sm:$0xff] }
 0x209   :  { %8128 = vmatmul.mubr.msk.f32.gmra.mrb[254].mxu1 %vm594_vm1, %v557_v41  ;;  %6000 = vst.msk [vmem:[%s12134_s3] sm:$0xff] %vm5999_vm4, %v5855_v33  ;;  %v5713_v46 = vadd.f32 %v10831_v13, %v5562_v62  ;;  %v5276_v28 = vmax.f32 %v9148_v50, %v3133_v15  ;;  %v5420_v60 = vmax.f32 %v9151_v51, %v4573_v63  ;;  %v559_v49 = vld [vmem:[%s12132_s0 + $0x1108] sm:$0xff]  ;;  %v272_v50 = vld [vmem:[%s12132_s0 + $0x810] sm:$0xff] }
 0x20a   :  { %7698 = vmatprep.mubr.msk.f32.mxu0 %vm594_vm1, %v270_v42  ;;  %8130 = vmatprep.mubr.msk.f32.mxu1 %vm594_vm1, %v558_v43  ;;  %v5858_v61 = vmax.f32 %v5714_v35, 0.0  ;;  %v5565_v30 = vmax.f32 %v5277_v14, %v5421_v31  ;;  %v560_v51 = vld [vmem:[%s12132_s0 + $0x1110] sm:$0xff] }
 0x20b   :  { %v5857_v47 = vmax.f32 %v5713_v46, 0.0  ;;  %v5564_v40 = vmax.f32 %v5276_v28, %v5420_v60  ;;  %v7541_v41 = vpop.f32.mrb[150].mxu0  ;;  %v7973_v12 = vpop.f32.mrb[150].mxu1 }
 0x20c   :  { %6003 = vst.msk [vmem:[%s12134_s3 + $0x18] sm:$0xff] %vm5999_vm4, %v5858_v61  ;;  %v5716_v32 = vadd.f32 %v10831_v13, %v5565_v30  ;;  %v5279_v42 = vmax.f32 %v9168_v56, %v7541_v41  ;;  %v5423_v43 = vmax.f32 %v9170_v57, %v7973_v12  ;;  %v3143_v33 = vpop.f32.mrb[151].mxu0  ;;  %7699 = vmatmul.mubr.msk.f32.gmra.mrb[0].mxu0 %vm594_vm1, %v271_v48  ;;  %v4583_v62 = vpop.f32.mrb[151].mxu1  ;;  %v273_v56 = vld [vmem:[%s12132_s0 + $0x818] sm:$0xff] }
 0x20d   :  { %8131 = vmatmul.mubr.msk.f32.gmra.mrb[0].mxu1 %vm594_vm1, %v559_v49  ;;  %6002 = vst.msk [vmem:[%s12134_s3 + $0x10] sm:$0xff] %vm5999_vm4, %v5857_v47  ;;  %v5715_v29 = vadd.f32 %v10831_v13, %v5564_v40  ;;  %v5278_v34 = vmax.f32 %v9172_v58, %v3143_v33  ;;  %v5422_v35 = vmax.f32 %v9175_v59, %v4583_v62  ;;  %v561_v57 = vld [vmem:[%s12132_s0 + $0x1118] sm:$0xff]  ;;  %v274_v58 = vld [vmem:[%s12132_s0 + $0x820] sm:$0xff] }
 0x20e   :  { %7701 = vmatprep.mubr.msk.f32.mxu0 %vm594_vm1, %v272_v50  ;;  %8133 = vmatprep.mubr.msk.f32.mxu1 %vm594_vm1, %v560_v51  ;;  %v5860_v14 = vmax.f32 %v5716_v32, 0.0  ;;  %v5567_v31 = vmax.f32 %v5279_v42, %v5423_v43  ;;  %v562_v59 = vld [vmem:[%s12132_s0 + $0x1120] sm:$0xff] }
 0x20f   :  { %v5859_v15 = vmax.f32 %v5715_v29, 0.0  ;;  %v5566_v63 = vmax.f32 %v5278_v34, %v5422_v35  ;;  %v7544_v46 = vpop.f32.mrb[152].mxu0  ;;  %v7976_v28 = vpop.f32.mrb[152].mxu1 }
 0x210   :  { %6005 = vst.msk [vmem:[%s12134_s3 + $0x28] sm:$0xff] %vm5999_vm4, %v5860_v14  ;;  %v5718_v60 = vadd.f32 %v10831_v13, %v5567_v31  ;;  %v5281_v48 = vmax.f32 %v9192_v0, %v7544_v46  ;;  %v5425_v49 = vmax.f32 %v9194_v1, %v7976_v28  ;;  %v3153_v61 = vpop.f32.mrb[153].mxu0  ;;  %7702 = vmatmul.mubr.msk.f32.gmra.mrb[2].mxu0 %vm594_vm1, %v273_v56  ;;  %v4593_v30 = vpop.f32.mrb[153].mxu1  ;;  %v275_v0 = vld [vmem:[%s12132_s0 + $0x828] sm:$0xff] }
 0x211   :  { %8134 = vmatmul.mubr.msk.f32.gmra.mrb[2].mxu1 %vm594_vm1, %v561_v57  ;;  %6004 = vst.msk [vmem:[%s12134_s3 + $0x20] sm:$0xff] %vm5999_vm4, %v5859_v15  ;;  %v5717_v50 = vadd.f32 %v10831_v13, %v5566_v63  ;;  %v5280_v51 = vmax.f32 %v9196_v2, %v3153_v61  ;;  %v5424_v47 = vmax.f32 %v9199_v3, %v4593_v30  ;;  %v563_v1 = vld [vmem:[%s12132_s0 + $0x1128] sm:$0xff]  ;;  %v276_v2 = vld [vmem:[%s12132_s0 + $0x830] sm:$0xff] }
 0x212   :  { %7704 = vmatprep.mubr.msk.f32.mxu0 %vm594_vm1, %v274_v58  ;;  %8136 = vmatprep.mubr.msk.f32.mxu1 %vm594_vm1, %v562_v59  ;;  %v5862_v40 = vmax.f32 %v5718_v60, 0.0  ;;  %v5569_v41 = vmax.f32 %v5281_v48, %v5425_v49  ;;  %v564_v3 = vld [vmem:[%s12132_s0 + $0x1130] sm:$0xff] }
 0x213   :  { %v5861_v12 = vmax.f32 %v5717_v50, 0.0  ;;  %v5568_v32 = vmax.f32 %v5280_v51, %v5424_v47  ;;  %v7547_v42 = vpop.f32.mrb[154].mxu0  ;;  %v7979_v43 = vpop.f32.mrb[154].mxu1 }
 0x214   :  { %6007 = vst.msk [vmem:[%s12134_s3 + $0x38] sm:$0xff] %vm5999_vm4, %v5862_v40  ;;  %v5720_v33 = vadd.f32 %v10831_v13, %v5569_v41  ;;  %v5283_v62 = vmax.f32 %v9216_v8, %v7547_v42  ;;  %v5427_v29 = vmax.f32 %v9218_v9, %v7979_v43  ;;  %v3163_v34 = vpop.f32.mrb[155].mxu0  ;;  %7705 = vmatmul.mubr.msk.f32.gmra.mrb[4].mxu0 %vm594_vm1, %v275_v0  ;;  %v4603_v35 = vpop.f32.mrb[155].mxu1  ;;  %v277_v8 = vld [vmem:[%s12132_s0 + $0x838] sm:$0xff] }
 0x215   :  { %8137 = vmatmul.mubr.msk.f32.gmra.mrb[4].mxu1 %vm594_vm1, %v563_v1  ;;  %6006 = vst.msk [vmem:[%s12134_s3 + $0x30] sm:$0xff] %vm5999_vm4, %v5861_v12  ;;  %v5719_v56 = vadd.f32 %v10831_v13, %v5568_v32  ;;  %v5282_v57 = vmax.f32 %v9220_v10, %v3163_v34  ;;  %v5426_v14 = vmax.f32 %v9223_v11, %v4603_v35  ;;  %v565_v9 = vld [vmem:[%s12132_s0 + $0x1138] sm:$0xff]  ;;  %v278_v10 = vld [vmem:[%s12132_s0 + $0x840] sm:$0xff] }
 0x216   :  { %7707 = vmatprep.mubr.msk.f32.mxu0 %vm594_vm1, %v276_v2  ;;  %8139 = vmatprep.mubr.msk.f32.mxu1 %vm594_vm1, %v564_v3  ;;  %v5864_v31 = vmax.f32 %v5720_v33, 0.0  ;;  %v5571_v58 = vmax.f32 %v5283_v62, %v5427_v29  ;;  %v566_v11 = vld [vmem:[%s12132_s0 + $0x1140] sm:$0xff] }
 0x217   :  { %v5863_v59 = vmax.f32 %v5719_v56, 0.0  ;;  %v5570_v15 = vmax.f32 %v5282_v57, %v5426_v14  ;;  %v7550_v63 = vpop.f32.mrb[156].mxu0  ;;  %v7982_v46 = vpop.f32.mrb[156].mxu1 }
 0x218   :  { %6009 = vst.msk [vmem:[%s12134_s3 + $0x48] sm:$0xff] %vm5999_vm4, %v5864_v31  ;;  %v5722_v28 = vadd.f32 %v10831_v13, %v5571_v58  ;;  %v5285_v60 = vmax.f32 %v9240_v16, %v7550_v63  ;;  %v5429_v48 = vmax.f32 %v9242_v17, %v7982_v46  ;;  %v3173_v49 = vpop.f32.mrb[157].mxu0  ;;  %7708 = vmatmul.mubr.msk.f32.gmra.mrb[6].mxu0 %vm594_vm1, %v277_v8  ;;  %v4613_v61 = vpop.f32.mrb[157].mxu1  ;;  %v279_v16 = vld [vmem:[%s12132_s0 + $0x848] sm:$0xff] }
 0x219   :  { %8140 = vmatmul.mubr.msk.f32.gmra.mrb[6].mxu1 %vm594_vm1, %v565_v9  ;;  %6008 = vst.msk [vmem:[%s12134_s3 + $0x40] sm:$0xff] %vm5999_vm4, %v5863_v59  ;;  %v5721_v30 = vadd.f32 %v10831_v13, %v5570_v15  ;;  %v5284_v50 = vmax.f32 %v9244_v18, %v3173_v49  ;;  %v5428_v51 = vmax.f32 %v9247_v19, %v4613_v61  ;;  %v567_v17 = vld [vmem:[%s12132_s0 + $0x1148] sm:$0xff]  ;;  %v280_v18 = vld [vmem:[%s12132_s0 + $0x850] sm:$0xff] }
 0x21a   :  { %7710 = vmatprep.mubr.msk.f32.mxu0 %vm594_vm1, %v278_v10  ;;  %8142 = vmatprep.mubr.msk.f32.mxu1 %vm594_vm1, %v566_v11  ;;  %v5866_v47 = vmax.f32 %v5722_v28, 0.0  ;;  %v5573_v0 = vmax.f32 %v5285_v60, %v5429_v48  ;;  %v568_v19 = vld [vmem:[%s12132_s0 + $0x1150] sm:$0xff] }
 0x21b   :  { %v5865_v1 = vmax.f32 %v5721_v30, 0.0  ;;  %v5572_v40 = vmax.f32 %v5284_v50, %v5428_v51  ;;  %v7553_v41 = vpop.f32.mrb[158].mxu0  ;;  %v7985_v2 = vpop.f32.mrb[158].mxu1 }
 0x21c   :  { %6011 = vst.msk [vmem:[%s12134_s3 + $0x58] sm:$0xff] %vm5999_vm4, %v5866_v47  ;;  %v5724_v3 = vadd.f32 %v10831_v13, %v5573_v0  ;;  %v5287_v12 = vmax.f32 %v9264_v24, %v7553_v41  ;;  %v5431_v32 = vmax.f32 %v9266_v25, %v7985_v2  ;;  %v3183_v42 = vpop.f32.mrb[159].mxu0  ;;  %7711 = vmatmul.mubr.msk.f32.gmra.mrb[8].mxu0 %vm594_vm1, %v279_v16  ;;  %v4623_v43 = vpop.f32.mrb[159].mxu1  ;;  %v281_v24 = vld [vmem:[%s12132_s0 + $0x858] sm:$0xff] }
 0x21d   :  { %8143 = vmatmul.mubr.msk.f32.gmra.mrb[8].mxu1 %vm594_vm1, %v567_v17  ;;  %6010 = vst.msk [vmem:[%s12134_s3 + $0x50] sm:$0xff] %vm5999_vm4, %v5865_v1  ;;  %v5723_v33 = vadd.f32 %v10831_v13, %v5572_v40  ;;  %v5286_v62 = vmax.f32 %v9268_v26, %v3183_v42  ;;  %v5430_v29 = vmax.f32 %v9271_v27, %v4623_v43  ;;  %v569_v25 = vld [vmem:[%s12132_s0 + $0x1158] sm:$0xff]  ;;  %v282_v26 = vld [vmem:[%s12132_s0 + $0x860] sm:$0xff] }
 0x21e   :  { %7713 = vmatprep.mubr.msk.f32.mxu0 %vm594_vm1, %v280_v18  ;;  %8145 = vmatprep.mubr.msk.f32.mxu1 %vm594_vm1, %v568_v19  ;;  %v5868_v34 = vmax.f32 %v5724_v3, 0.0  ;;  %v5575_v35 = vmax.f32 %v5287_v12, %v5431_v32  ;;  %v570_v27 = vld [vmem:[%s12132_s0 + $0x1160] sm:$0xff] }
 0x21f   :  { %v5867_v56 = vmax.f32 %v5723_v33, 0.0  ;;  %v5574_v57 = vmax.f32 %v5286_v62, %v5430_v29  ;;  %v7556_v14 = vpop.f32.mrb[160].mxu0  ;;  %v7988_v8 = vpop.f32.mrb[160].mxu1 }
 0x220   :  { %6013 = vst.msk [vmem:[%s12134_s3 + $0x68] sm:$0xff] %vm5999_vm4, %v5868_v34  ;;  %v5726_v9 = vadd.f32 %v10831_v13, %v5575_v35  ;;  %v5289_v31 = vmax.f32 %v9288_v36, %v7556_v14  ;;  %v5433_v58 = vmax.f32 %v9290_v37, %v7988_v8  ;;  %v3193_v10 = vpop.f32.mrb[161].mxu0  ;;  %7714 = vmatmul.mubr.msk.f32.gmra.mrb[10].mxu0 %vm594_vm1, %v281_v24  ;;  %v4633_v11 = vpop.f32.mrb[161].mxu1  ;;  %v283_v36 = vld [vmem:[%s12132_s0 + $0x868] sm:$0xff] }
 0x221   :  { %8146 = vmatmul.mubr.msk.f32.gmra.mrb[10].mxu1 %vm594_vm1, %v569_v25  ;;  %6012 = vst.msk [vmem:[%s12134_s3 + $0x60] sm:$0xff] %vm5999_vm4, %v5867_v56  ;;  %v5725_v59 = vadd.f32 %v10831_v13, %v5574_v57  ;;  %v5288_v15 = vmax.f32 %v9292_v38, %v3193_v10  ;;  %v5432_v63 = vmax.f32 %v9295_v39, %v4633_v11  ;;  %v571_v37 = vld [vmem:[%s12132_s0 + $0x1168] sm:$0xff]  ;;  %v284_v38 = vld [vmem:[%s12132_s0 + $0x870] sm:$0xff] }
 0x222   :  { %7716 = vmatprep.mubr.msk.f32.mxu0 %vm594_vm1, %v282_v26  ;;  %8148 = vmatprep.mubr.msk.f32.mxu1 %vm594_vm1, %v570_v27  ;;  %v5870_v46 = vmax.f32 %v5726_v9, 0.0  ;;  %v5577_v28 = vmax.f32 %v5289_v31, %v5433_v58  ;;  %v572_v39 = vld [vmem:[%s12132_s0 + $0x1170] sm:$0xff] }
 0x223   :  { %v5869_v60 = vmax.f32 %v5725_v59, 0.0  ;;  %v5576_v48 = vmax.f32 %v5288_v15, %v5432_v63  ;;  %v7559_v49 = vpop.f32.mrb[162].mxu0  ;;  %v7991_v61 = vpop.f32.mrb[162].mxu1 }
 0x224   :  { %6015 = vst.msk [vmem:[%s12134_s3 + $0x78] sm:$0xff] %vm5999_vm4, %v5870_v46  ;;  %v5728_v30 = vadd.f32 %v10831_v13, %v5577_v28  ;;  %v5291_v50 = vmax.f32 %v9312_v52, %v7559_v49  ;;  %v5435_v51 = vmax.f32 %v9314_v53, %v7991_v61  ;;  %v3203_v16 = vpop.f32.mrb[163].mxu0  ;;  %7717 = vmatmul.mubr.msk.f32.gmra.mrb[12].mxu0 %vm594_vm1, %v283_v36  ;;  %v4643_v17 = vpop.f32.mrb[163].mxu1  ;;  %v285_v52 = vld [vmem:[%s12132_s0 + $0x878] sm:$0xff]  ;;  %v12373_v61 = vld [vmem:[#allocation2_spill] sm:$0xff] }
 0x225   :  { %8149 = vmatmul.mubr.msk.f32.gmra.mrb[12].mxu1 %vm594_vm1, %v571_v37  ;;  %6014 = vst.msk [vmem:[%s12134_s3 + $0x70] sm:$0xff] %vm5999_vm4, %v5869_v60  ;;  %v5727_v47 = vadd.f32 %v10831_v13, %v5576_v48  ;;  %v5290_v0 = vmax.f32 %v9316_v54, %v3203_v16  ;;  %v5434_v18 = vmax.f32 %v9319_v55, %v4643_v17  ;;  %v573_v53 = vld [vmem:[%s12132_s0 + $0x1178] sm:$0xff]  ;;  %v286_v54 = vld [vmem:[%s12132_s0 + $0x880] sm:$0xff] }
 0x226   :  { %7719 = vmatprep.mubr.msk.f32.mxu0 %vm594_vm1, %v284_v38  ;;  %8151 = vmatprep.mubr.msk.f32.mxu1 %vm594_vm1, %v572_v39  ;;  %v5872_v19 = vmax.f32 %v5728_v30, 0.0  ;;  %v5579_v1 = vmax.f32 %v5291_v50, %v5435_v51  ;;  %v574_v55 = vld [vmem:[%s12132_s0 + $0x1180] sm:$0xff]  ;;  %v12374_v50 = vld [vmem:[#allocation3_spill] sm:$0xff] }
 0x227   :  { %v5871_v40 = vmax.f32 %v5727_v47, 0.0  ;;  %v5578_v41 = vmax.f32 %v5290_v0, %v5434_v18  ;;  %v7562_v2 = vpop.f32.mrb[164].mxu0  ;;  %v7994_v3 = vpop.f32.mrb[164].mxu1  ;;  %v292_v47 = vld [vmem:[%s12132_s0 + $0x8b0] sm:$0xff] }
 0x228   :  { %6017 = vst.msk [vmem:[%s12134_s3 + $0x88] sm:$0xff] %vm5999_vm4, %v5872_v19  ;;  %v5730_v12 = vadd.f32 %v10831_v13, %v5579_v1  ;;  %v5293_v32 = vmax.f32 %v9336_v4, %v7562_v2  ;;  %v5437_v42 = vmax.f32 %v9338_v5, %v7994_v3  ;;  %v3213_v43 = vpop.f32.mrb[165].mxu0  ;;  %7720 = vmatmul.mubr.msk.f32.gmra.mrb[14].mxu0 %vm594_vm1, %v285_v52  ;;  %v4653_v33 = vpop.f32.mrb[165].mxu1  ;;  %v287_v4 = vld [vmem:[%s12132_s0 + $0x888] sm:$0xff]  ;;  %v580_v0 = vld [vmem:[%s12132_s0 + $0x11b0] sm:$0xff] }
 0x229   :  { %8152 = vmatmul.mubr.msk.f32.gmra.mrb[14].mxu1 %vm594_vm1, %v573_v53  ;;  %6016 = vst.msk [vmem:[%s12134_s3 + $0x80] sm:$0xff] %vm5999_vm4, %v5871_v40  ;;  %v5729_v62 = vadd.f32 %v10831_v13, %v5578_v41  ;;  %v5292_v29 = vmax.f32 %v9340_v6, %v3213_v43  ;;  %v5436_v24 = vmax.f32 %v9343_v7, %v4653_v33  ;;  %v575_v5 = vld [vmem:[%s12132_s0 + $0x1188] sm:$0xff]  ;;  %v288_v6 = vld [vmem:[%s12132_s0 + $0x890] sm:$0xff]  ;;  %v12376_v40 = vld [vmem:[#allocation5_spill] sm:$0xff] }
 0x22a   :  { %7722 = vmatprep.mubr.msk.f32.mxu0 %vm594_vm1, %v286_v54  ;;  %8154 = vmatprep.mubr.msk.f32.mxu1 %vm594_vm1, %v574_v55  ;;  %v5874_v25 = vmax.f32 %v5730_v12, 0.0  ;;  %v5581_v34 = vmax.f32 %v5293_v32, %v5437_v42  ;;  %v576_v7 = vld [vmem:[%s12132_s0 + $0x1190] sm:$0xff]  ;;  %v12377_v32 = vld [vmem:[#allocation6_spill] sm:$0xff]  ;;  %v12378_v43 = vld [vmem:[#allocation7_spill] sm:$0xff] }
 0x22b   :  { %v5873_v35 = vmax.f32 %v5729_v62, 0.0  ;;  %v5580_v26 = vmax.f32 %v5292_v29, %v5436_v24  ;;  %v7565_v27 = vpop.f32.mrb[166].mxu0  ;;  %v7997_v56 = vpop.f32.mrb[166].mxu1  ;;  %v12375_v54 = vld [vmem:[#allocation4_spill] sm:$0xff]  ;;  %v293_v62 = vld [vmem:[%s12132_s0 + $0x8b8] sm:$0xff] }
 0x22c   :  { %6019 = vst.msk [vmem:[%s12134_s3 + $0x98] sm:$0xff] %vm5999_vm4, %v5874_v25  ;;  %v5732_v57 = vadd.f32 %v10831_v13, %v5581_v34  ;;  %v5295_v14 = vmax.f32 %v9360_v20, %v7565_v27  ;;  %v5439_v8 = vmax.f32 %v9362_v21, %v7997_v56  ;;  %v3223_v9 = vpop.f32.mrb[167].mxu0  ;;  %7723 = vmatmul.mubr.msk.f32.gmra.mrb[16].mxu0 %vm594_vm1, %v287_v4  ;;  %v4663_v31 = vpop.f32.mrb[167].mxu1  ;;  %v289_v20 = vld [vmem:[%s12132_s0 + $0x898] sm:$0xff]  ;;  %v582_v25 = vld [vmem:[%s12132_s0 + $0x11c0] sm:$0xff]  ;;  %v12379_v27 = vld [vmem:[#allocation8_spill] sm:$0xff] }
 0x22d   :  { %8155 = vmatmul.mubr.msk.f32.gmra.mrb[16].mxu1 %vm594_vm1, %v575_v5  ;;  %6018 = vst.msk [vmem:[%s12134_s3 + $0x90] sm:$0xff] %vm5999_vm4, %v5873_v35  ;;  %v5731_v58 = vadd.f32 %v10831_v13, %v5580_v26  ;;  %v5294_v10 = vmax.f32 %v9364_v22, %v3223_v9  ;;  %v5438_v11 = vmax.f32 %v9367_v23, %v4663_v31  ;;  %v577_v21 = vld [vmem:[%s12132_s0 + $0x1198] sm:$0xff]  ;;  %v290_v22 = vld [vmem:[%s12132_s0 + $0x8a0] sm:$0xff] }
 0x22e   :  { %7725 = vmatprep.mubr.msk.f32.mxu0 %vm594_vm1, %v288_v6  ;;  %8157 = vmatprep.mubr.msk.f32.mxu1 %vm594_vm1, %v576_v7  ;;  %v5876_v59 = vmax.f32 %v5732_v57, 0.0  ;;  %v5583_v15 = vmax.f32 %v5295_v14, %v5439_v8  ;;  %v578_v23 = vld [vmem:[%s12132_s0 + $0x11a0] sm:$0xff]  ;;  %v581_v29 = vld [vmem:[%s12132_s0 + $0x11b8] sm:$0xff] }
 0x22f   :  { %v5875_v63 = vmax.f32 %v5731_v58, 0.0  ;;  %v5582_v36 = vmax.f32 %v5294_v10, %v5438_v11  ;;  %v7568_v37 = vpop.f32.mrb[168].mxu0  ;;  %v8000_v46 = vpop.f32.mrb[168].mxu1  ;;  %v294_v5 = vld [vmem:[%s12132_s0 + $0x8c0] sm:$0xff]  ;;  %v12380_v57 = vld [vmem:[#allocation9_spill] sm:$0xff]  ;;  %v12382_v11 = vld [vmem:[#allocation11_spill] sm:$0xff] }
 0x230   :  { %6021 = vst.msk [vmem:[%s12134_s3 + $0xa8] sm:$0xff] %vm5999_vm4, %v5876_v59  ;;  %v5734_v28 = vadd.f32 %v10831_v13, %v5583_v15  ;;  %v5297_v38 = vmax.f32 %v9384_v44, %v7568_v37  ;;  %v5441_v39 = vmax.f32 %v9386_v45, %v8000_v46  ;;  %v3233_v60 = vpop.f32.mrb[169].mxu0  ;;  %7726 = vmatmul.mubr.msk.f32.gmra.mrb[18].mxu0 %vm594_vm1, %v289_v20  ;;  %v4673_v48 = vpop.f32.mrb[169].mxu1  ;;  %v291_v44 = vld [vmem:[%s12132_s0 + $0x8a8] sm:$0xff]  ;;  %v12381_v58 = vld [vmem:[#allocation10_spill] sm:$0xff] }
 0x231   :  { %8158 = vmatmul.mubr.msk.f32.gmra.mrb[18].mxu1 %vm594_vm1, %v577_v21  ;;  %6020 = vst.msk [vmem:[%s12134_s3 + $0xa0] sm:$0xff] %vm5999_vm4, %v5875_v63  ;;  %v5733_v49 = vadd.f32 %v10831_v13, %v5582_v36  ;;  %v5296_v30 = vmax.f32 %v12373_v61, %v3233_v60  ;;  %v5440_v51 = vmax.f32 %v12374_v50, %v4673_v48  ;;  %v579_v45 = vld [vmem:[%s12132_s0 + $0x11a8] sm:$0xff]  ;;  %v584_v63 = vld [vmem:[%s12132_s0 + $0x11d0] sm:$0xff]  ;;  %v12384_v48 = vld [vmem:[#allocation13_spill] sm:$0xff] }
 0x232   :  { %7728 = vmatprep.mubr.msk.f32.mxu0 %vm594_vm1, %v290_v22  ;;  %8160 = vmatprep.mubr.msk.f32.mxu1 %vm594_vm1, %v578_v23  ;;  %v5878_v16 = vmax.f32 %v5734_v28, 0.0  ;;  %v5585_v17 = vmax.f32 %v5297_v38, %v5441_v39  ;;  %v295_v21 = vld [vmem:[%s12132_s0 + $0x8c8] sm:$0xff]  ;;  %v296_v23 = vld [vmem:[%s12132_s0 + $0x8d0] sm:$0xff] }
 0x233   :  { %v5877_v18 = vmax.f32 %v5733_v49, 0.0  ;;  %v5584_v52 = vmax.f32 %v5296_v30, %v5440_v51  ;;  %v7571_v53 = vpop.f32.mrb[170].mxu0  ;;  %v8003_v19 = vpop.f32.mrb[170].mxu1  ;;  %v583_v59 = vld [vmem:[%s12132_s0 + $0x11c8] sm:$0xff]  ;;  %v12383_v39 = vld [vmem:[#allocation12_spill] sm:$0xff]  ;;  %v12385_v51 = vld [vmem:[#allocation14_spill] sm:$0xff] }
 0x234   :  { %6023 = vst.msk [vmem:[%s12134_s3 + $0xb8] sm:$0xff] %vm5999_vm4, %v5878_v16  ;;  %v5736_v1 = vadd.f32 %v10831_v13, %v5585_v17  ;;  %v5299_v55 = vmax.f32 %v12375_v54, %v7571_v53  ;;  %v5443_v41 = vmax.f32 %v12376_v40, %v8003_v19  ;;  %v3243_v2 = vpop.f32.mrb[171].mxu0  ;;  %7729 = vmatmul.mubr.msk.f32.gmra.mrb[20].mxu0 %vm594_vm1, %v291_v44  ;;  %v4683_v3 = vpop.f32.mrb[171].mxu1  ;;  %v297_v17 = vld [vmem:[%s12132_s0 + $0x8d8] sm:$0xff]  ;;  %v586_v53 = vld [vmem:[%s12132_s0 + $0x11e0] sm:$0xff] }
 0x235   :  { %8161 = vmatmul.mubr.msk.f32.gmra.mrb[20].mxu1 %vm594_vm1, %v579_v45  ;;  %6022 = vst.msk [vmem:[%s12134_s3 + $0xb0] sm:$0xff] %vm5999_vm4, %v5877_v18  ;;  %v5735_v12 = vadd.f32 %v10831_v13, %v5584_v52  ;;  %v5298_v42 = vmax.f32 %v12377_v32, %v3243_v2  ;;  %v5442_v33 = vmax.f32 %v12378_v43, %v4683_v3  ;;  %v12386_v45 = vld [vmem:[#allocation15_spill] sm:$0xff]  ;;  %v298_v52 = vld [vmem:[%s12132_s0 + $0x8e0] sm:$0xff]  ;;  %v12388_v3 = vld [vmem:[#allocation17_spill] sm:$0xff] }
 0x236   :  { %7731 = vmatprep.mubr.msk.f32.mxu0 %vm594_vm1, %v292_v47  ;;  %8163 = vmatprep.mubr.msk.f32.mxu1 %vm594_vm1, %v580_v0  ;;  %v5880_v24 = vmax.f32 %v5736_v1, 0.0  ;;  %v5587_v4 = vmax.f32 %v5299_v55, %v5443_v41  ;;  %v585_v47 = vld [vmem:[%s12132_s0 + $0x11d8] sm:$0xff]  ;;  %v12387_v41 = vld [vmem:[#allocation16_spill] sm:$0xff] }
 0x237   :  { %v5879_v34 = vmax.f32 %v5735_v12, 0.0  ;;  %v5586_v6 = vmax.f32 %v5298_v42, %v5442_v33  ;;  %v7574_v7 = vpop.f32.mrb[172].mxu0  ;;  %v8006_v35 = vpop.f32.mrb[172].mxu1  ;;  %v12389_v33 = vld [vmem:[#allocation18_spill] sm:$0xff] }
 0x238   :  { %6025 = vst.msk [vmem:[%s12134_s3 + $0xc8] sm:$0xff] %vm5999_vm4, %v5880_v24  ;;  %v5738_v26 = vadd.f32 %v10831_v13, %v5587_v4  ;;  %v5301_v56 = vmax.f32 %v12379_v27, %v7574_v7  ;;  %v5445_v14 = vmax.f32 %v12380_v57, %v8006_v35  ;;  %v3253_v8 = vpop.f32.mrb[173].mxu0  ;;  %7732 = vmatmul.mubr.msk.f32.gmra.mrb[22].mxu0 %vm594_vm1, %v293_v62  ;;  %v4693_v9 = vpop.f32.mrb[173].mxu1  ;;  %v299_v4 = vld [vmem:[%s12132_s0 + $0x8e8] sm:$0xff]  ;;  %v588_v7 = vld [vmem:[%s12132_s0 + $0x11f0] sm:$0xff] }
 0x239   :  { %8164 = vmatmul.mubr.msk.f32.gmra.mrb[22].mxu1 %vm594_vm1, %v581_v29  ;;  %6024 = vst.msk [vmem:[%s12134_s3 + $0xc0] sm:$0xff] %vm5999_vm4, %v5879_v34  ;;  %v5737_v31 = vadd.f32 %v10831_v13, %v5586_v6  ;;  %v5300_v10 = vmax.f32 %v12381_v58, %v3253_v8  ;;  %v5444_v20 = vmax.f32 %v12382_v11, %v4693_v9  ;;  %v12390_v29 = vld [vmem:[#allocation19_spill] sm:$0xff]  ;;  %v300_v6 = vld [vmem:[%s12132_s0 + $0x8f0] sm:$0xff]  ;;  %v12392_v9 = vld [vmem:[#allocation21_spill] sm:$0xff] }
 0x23a   :  { %7734 = vmatprep.mubr.msk.f32.mxu0 %vm594_vm1, %v294_v5  ;;  %8166 = vmatprep.mubr.msk.f32.mxu1 %vm594_vm1, %v582_v25  ;;  %v5882_v15 = vmax.f32 %v5738_v26, 0.0  ;;  %v5589_v22 = vmax.f32 %v5301_v56, %v5445_v14  ;;  %v587_v5 = vld [vmem:[%s12132_s0 + $0x11e8] sm:$0xff]  ;;  %v12391_v14 = vld [vmem:[#allocation20_spill] sm:$0xff] }
 0x23b   :  { %v5881_v36 = vmax.f32 %v5737_v31, 0.0  ;;  %v5588_v37 = vmax.f32 %v5300_v10, %v5444_v20  ;;  %v7577_v46 = vpop.f32.mrb[174].mxu0  ;;  %v8009_v28 = vpop.f32.mrb[174].mxu1  ;;  %v12393_v20 = vld [vmem:[#allocation22_spill] sm:$0xff] }
 0x23c   :  { %6027 = vst.msk [vmem:[%s12134_s3 + $0xd8] sm:$0xff] %vm5999_vm4, %v5882_v15  ;;  %v5740_v38 = vadd.f32 %v10831_v13, %v5589_v22  ;;  %v5303_v60 = vmax.f32 %v12383_v39, %v7577_v46  ;;  %v5447_v49 = vmax.f32 %v12384_v48, %v8009_v28  ;;  %v3263_v61 = vpop.f32.mrb[175].mxu0  ;;  %7735 = vmatmul.mubr.msk.f32.gmra.mrb[24].mxu0 %vm594_vm1, %v295_v21  ;;  %v4703_v30 = vpop.f32.mrb[175].mxu1  ;;  %v301_v22 = vld [vmem:[%s12132_s0 + $0x8f8] sm:$0xff] }
 0x23d   :  { %8167 = vmatmul.mubr.msk.f32.gmra.mrb[24].mxu1 %vm594_vm1, %v583_v59  ;;  %6026 = vst.msk [vmem:[%s12134_s3 + $0xd0] sm:$0xff] %vm5999_vm4, %v5881_v36  ;;  %v5739_v50 = vadd.f32 %v10831_v13, %v5588_v37  ;;  %v5302_v44 = vmax.f32 %v12385_v51, %v3263_v61  ;;  %v5446_v16 = vmax.f32 %v12386_v45, %v4703_v30  ;;  %v12394_v59 = vld [vmem:[#allocation23_spill] sm:$0xff] }
 0x23e   :  { %7737 = vmatprep.mubr.msk.f32.mxu0 %vm594_vm1, %v296_v23  ;;  %8169 = vmatprep.mubr.msk.f32.mxu1 %vm594_vm1, %v584_v63  ;;  %v5884_v0 = vmax.f32 %v5740_v38, 0.0  ;;  %v5591_v18 = vmax.f32 %v5303_v60, %v5447_v49  ;;  %v589_v23 = vld [vmem:[%s12132_s0 + $0x11f8] sm:$0xff]  ;;  %v12395_v60 = vld [vmem:[#allocation24_spill] sm:$0xff] }
 0x23f   :  { %v5883_v19 = vmax.f32 %v5739_v50, 0.0  ;;  %v5590_v1 = vmax.f32 %v5302_v44, %v5446_v16  ;;  %v7580_v54 = vpop.f32.mrb[176].mxu0  ;;  %v8012_v55 = vpop.f32.mrb[176].mxu1  ;;  %v12396_v49 = vld [vmem:[#allocation25_spill] sm:$0xff]  ;;  %v12397_v44 = vld [vmem:[#allocation26_spill] sm:$0xff]  ;;  %v12398_v16 = vld [vmem:[#allocation27_spill] sm:$0xff] }
 0x240   :  { %6029 = vst.msk [vmem:[%s12134_s3 + $0xe8] sm:$0xff] %vm5999_vm4, %v5884_v0  ;;  %v5742_v40 = vadd.f32 %v10831_v13, %v5591_v18  ;;  %v5305_v2 = vmax.f32 %v12387_v41, %v7580_v54  ;;  %v5449_v12 = vmax.f32 %v12388_v3, %v8012_v55  ;;  %v3273_v32 = vpop.f32.mrb[177].mxu0  ;;  %7738 = vmatmul.mubr.msk.f32.gmra.mrb[26].mxu0 %vm594_vm1, %v297_v17  ;;  %v4713_v42 = vpop.f32.mrb[177].mxu1  ;;  %v12399_v54 = vld [vmem:[#allocation28_spill] sm:$0xff] }
 0x241   :  { %8170 = vmatmul.mubr.msk.f32.gmra.mrb[26].mxu1 %vm594_vm1, %v585_v47  ;;  %6028 = vst.msk [vmem:[%s12134_s3 + $0xe0] sm:$0xff] %vm5999_vm4, %v5883_v19  ;;  %v5741_v43 = vadd.f32 %v10831_v13, %v5590_v1  ;;  %v5304_v62 = vmax.f32 %v12389_v33, %v3273_v32  ;;  %v5448_v24 = vmax.f32 %v12390_v29, %v4713_v42  ;;  %v12401_v32 = vld [vmem:[#allocation30_spill] sm:$0xff] }
 0x242   :  { %7740 = vmatprep.mubr.msk.f32.mxu0 %vm594_vm1, %v298_v52  ;;  %8172 = vmatprep.mubr.msk.f32.mxu1 %vm594_vm1, %v586_v53  ;;  %v5886_v25 = vmax.f32 %v5742_v40, 0.0  ;;  %v5593_v34 = vmax.f32 %v5305_v2, %v5449_v12  ;;  %v12400_v40 = vld [vmem:[#allocation29_spill] sm:$0xff] }
 0x243   :  { %v5885_v35 = vmax.f32 %v5741_v43, 0.0  ;;  %v5592_v26 = vmax.f32 %v5304_v62, %v5448_v24  ;;  %v7583_v27 = vpop.f32.mrb[178].mxu0  ;;  %v8015_v56 = vpop.f32.mrb[178].mxu1  ;;  %v12402_v43 = vld [vmem:[#allocation31_spill] sm:$0xff] }
 0x244   :  { %6031 = vst.msk [vmem:[%s12134_s3 + $0xf8] sm:$0xff] %vm5999_vm4, %v5886_v25  ;;  %v5744_v57 = vadd.f32 %v10831_v13, %v5593_v34  ;;  %v5307_v8 = vmax.f32 %v12391_v14, %v7583_v27  ;;  %v5451_v31 = vmax.f32 %v12392_v9, %v8015_v56  ;;  %v3283_v58 = vpop.f32.mrb[179].mxu0  ;;  %7741 = vmatmul.mubr.msk.f32.gmra.mrb[28].mxu0 %vm594_vm1, %v299_v4  ;;  %v4723_v10 = vpop.f32.mrb[179].mxu1  ;;  %v12405_v14 = vld [vmem:[#allocation34_spill] sm:$0xff]  ;;  %v12406_v9 = vld [vmem:[#allocation35_spill] sm:$0xff] }
 0x245   :  { %8173 = vmatmul.mubr.msk.f32.gmra.mrb[28].mxu1 %vm594_vm1, %v587_v5  ;;  %6030 = vst.msk [vmem:[%s12134_s3 + $0xf0] sm:$0xff] %vm5999_vm4, %v5885_v35  ;;  %v5743_v11 = vadd.f32 %v10831_v13, %v5592_v26  ;;  %v5306_v21 = vmax.f32 %v12393_v20, %v3283_v58  ;;  %v5450_v15 = vmax.f32 %v12394_v59, %v4723_v10  ;;  %v12404_v35 = vld [vmem:[#allocation33_spill] sm:$0xff] }
 0x246   :  { %7743 = vmatprep.mubr.msk.f32.mxu0 %vm594_vm1, %v300_v6  ;;  %8175 = vmatprep.mubr.msk.f32.mxu1 %vm594_vm1, %v588_v7  ;;  %v5888_v63 = vmax.f32 %v5744_v57, 0.0  ;;  %v5595_v36 = vmax.f32 %v5307_v8, %v5451_v31  ;;  %v12403_v6 = vld [vmem:[#allocation32_spill] sm:$0xff] }
 0x247   :  { %v5887_v37 = vmax.f32 %v5743_v11, 0.0  ;;  %v5594_v46 = vmax.f32 %v5306_v21, %v5450_v15  ;;  %v7586_v28 = vpop.f32.mrb[180].mxu0  ;;  %v8018_v38 = vpop.f32.mrb[180].mxu1 }
 0x248   :  { %6033 = vst.msk [vmem:[%s12134_s3 + $0x108] sm:$0xff] %vm5999_vm4, %v5888_v63  ;;  %v5746_v39 = vadd.f32 %v10831_v13, %v5595_v36  ;;  %v5309_v48 = vmax.f32 %v12395_v60, %v7586_v28  ;;  %v5453_v61 = vmax.f32 %v12396_v49, %v8018_v38  ;;  %v3293_v30 = vpop.f32.mrb[181].mxu0  ;;  %7744 = vmatmul.mubr.msk.f32.gmra.mrb[30].mxu0 %vm594_vm1, %v301_v22  ;;  %v4733_v50 = vpop.f32.mrb[181].mxu1  ;;  %v12407_v22 = vld [vmem:[#allocation36_spill] sm:$0xff]  ;;  %v12408_v63 = vld [vmem:[#allocation37_spill] sm:$0xff]  ;;  %v12409_v38 = vld [vmem:[#allocation38_spill] sm:$0xff] }
 0x249   :  { %8176 = vmatmul.mubr.msk.f32.gmra.mrb[30].mxu1 %vm594_vm1, %v589_v23  ;;  %6032 = vst.msk [vmem:[%s12134_s3 + $0x100] sm:$0xff] %vm5999_vm4, %v5887_v37  ;;  %v5745_v51 = vadd.f32 %v10831_v13, %v5594_v46  ;;  %v5308_v45 = vmax.f32 %v12397_v44, %v3293_v30  ;;  %v5452_v17 = vmax.f32 %v12398_v16, %v4733_v50  ;;  %v12410_v60 = vld [vmem:[#allocation39_spill] sm:$0xff]  ;;  %v12411_v16 = vld [vmem:[#allocation40_spill] sm:$0xff] }
 0x24a   :  { %v5890_v47 = vmax.f32 %v5746_v39, 0.0  ;;  %v5597_v0 = vmax.f32 %v5309_v48, %v5453_v61 }
 0x24b   :  { %v5889_v18 = vmax.f32 %v5745_v51, 0.0  ;;  %v5596_v52 = vmax.f32 %v5308_v45, %v5452_v17  ;;  %v7589_v53 = vpop.f32.mrb[182].mxu0  ;;  %v8021_v19 = vpop.f32.mrb[182].mxu1 }
 0x24c   :  { %6035 = vst.msk [vmem:[%s12134_s3 + $0x118] sm:$0xff] %vm5999_vm4, %v5890_v47  ;;  %v5748_v1 = vadd.f32 %v10831_v13, %v5597_v0  ;;  %v5311_v55 = vmax.f32 %v12399_v54, %v7589_v53  ;;  %v5455_v41 = vmax.f32 %v12400_v40, %v8021_v19  ;;  %v3303_v2 = vpop.f32.mrb[183].mxu0  ;;  %v4743_v3 = vpop.f32.mrb[183].mxu1  ;;  %v12412_v47 = vld [vmem:[#allocation41_spill] sm:$0xff]  ;;  %v12413_v19 = vld [vmem:[#allocation42_spill] sm:$0xff]  ;;  %v12414_v54 = vld [vmem:[#allocation43_spill] sm:$0xff] }
 0x24d   :  { %6034 = vst.msk [vmem:[%s12134_s3 + $0x110] sm:$0xff] %vm5999_vm4, %v5889_v18  ;;  %v5747_v12 = vadd.f32 %v10831_v13, %v5596_v52  ;;  %v5310_v42 = vmax.f32 %v12401_v32, %v3303_v2  ;;  %v5454_v33 = vmax.f32 %v12402_v43, %v4743_v3  ;;  %v12415_v43 = vld [vmem:[#allocation44_spill] sm:$0xff] }
 0x24e   :  { %v5892_v62 = vmax.f32 %v5748_v1, 0.0  ;;  %v5599_v29 = vmax.f32 %v5311_v55, %v5455_v41 }
 0x24f   :  { %v5891_v24 = vmax.f32 %v5747_v12, 0.0  ;;  %v5598_v4 = vmax.f32 %v5310_v42, %v5454_v33  ;;  %v7592_v5 = vpop.f32.mrb[184].mxu0  ;;  %v8024_v25 = vpop.f32.mrb[184].mxu1 }
 0x250   :  { %6037 = vst.msk [vmem:[%s12134_s3 + $0x128] sm:$0xff] %vm5999_vm4, %v5892_v62  ;;  %v5750_v34 = vadd.f32 %v10831_v13, %v5599_v29  ;;  %v5313_v7 = vmax.f32 %v12403_v6, %v7592_v5  ;;  %v5457_v26 = vmax.f32 %v12404_v35, %v8024_v25  ;;  %v3313_v27 = vpop.f32.mrb[185].mxu0  ;;  %v4753_v56 = vpop.f32.mrb[185].mxu1  ;;  %v12416_v62 = vld [vmem:[#allocation45_spill] sm:$0xff]  ;;  %v12417_v25 = vld [vmem:[#allocation46_spill] sm:$0xff]  ;;  %v12418_v6 = vld [vmem:[#allocation47_spill] sm:$0xff] }
 0x251   :  { %6036 = vst.msk [vmem:[%s12134_s3 + $0x120] sm:$0xff] %vm5999_vm4, %v5891_v24  ;;  %v5749_v57 = vadd.f32 %v10831_v13, %v5598_v4  ;;  %v5312_v8 = vmax.f32 %v12405_v14, %v3313_v27  ;;  %v5456_v31 = vmax.f32 %v12406_v9, %v4753_v56  ;;  %v12419_v9 = vld [vmem:[#allocation48_spill] sm:$0xff] }
 0x252   :  { %v5894_v58 = vmax.f32 %v5750_v34, 0.0  ;;  %v5601_v10 = vmax.f32 %v5313_v7, %v5457_v26 }
 0x253   :  { %v5893_v11 = vmax.f32 %v5749_v57, 0.0  ;;  %v5600_v20 = vmax.f32 %v5312_v8, %v5456_v31  ;;  %v7595_v21 = vpop.f32.mrb[186].mxu0  ;;  %v8027_v59 = vpop.f32.mrb[186].mxu1  ;;  %v11438_v8 = vld [vmem:[%s12133_s2] ss:$0 sm:$0xff] }
 0x254   :  { %6039 = vst.msk [vmem:[%s12134_s3 + $0x138] sm:$0xff] %vm5999_vm4, %v5894_v58  ;;  %v5752_v15 = vadd.f32 %v10831_v13, %v5601_v10  ;;  %v5315_v23 = vmax.f32 %v12407_v22, %v7595_v21  ;;  %v5459_v36 = vmax.f32 %v12408_v63, %v8027_v59  ;;  %v3323_v37 = vpop.f32.mrb[187].mxu0  ;;  %v4763_v46 = vpop.f32.mrb[187].mxu1  ;;  %v12420_v58 = vld [vmem:[#allocation49_spill] sm:$0xff]  ;;  %v12421_v59 = vld [vmem:[#allocation50_spill] sm:$0xff]  ;;  %v12422_v22 = vld [vmem:[#allocation51_spill] sm:$0xff] }
 0x255   :  { %6038 = vst.msk [vmem:[%s12134_s3 + $0x130] sm:$0xff] %vm5999_vm4, %v5893_v11  ;;  %v5751_v28 = vadd.f32 %v10831_v13, %v5600_v20  ;;  %v5314_v39 = vmax.f32 %v12409_v38, %v3323_v37  ;;  %v5458_v48 = vmax.f32 %v12410_v60, %v4763_v46  ;;  %v12423_v60 = vld [vmem:[#allocation52_spill] sm:$0xff] }
 0x256   :  { %v5896_v49 = vmax.f32 %v5752_v15, 0.0  ;;  %v5603_v61 = vmax.f32 %v5315_v23, %v5459_v36 }
 0x257   :  { %v5895_v30 = vmax.f32 %v5751_v28, 0.0  ;;  %v5602_v50 = vmax.f32 %v5314_v39, %v5458_v48  ;;  %v7598_v51 = vpop.f32.mrb[188].mxu0  ;;  %v8030_v44 = vpop.f32.mrb[188].mxu1 }
 0x258   :  { %6041 = vst.msk [vmem:[%s12134_s3 + $0x148] sm:$0xff] %vm5999_vm4, %v5896_v49  ;;  %v5754_v45 = vadd.f32 %v10831_v13, %v5603_v61  ;;  %v5317_v17 = vmax.f32 %v12411_v16, %v7598_v51  ;;  %v5461_v0 = vmax.f32 %v12412_v47, %v8030_v44  ;;  %v3333_v18 = vpop.f32.mrb[189].mxu0  ;;  %v4773_v52 = vpop.f32.mrb[189].mxu1  ;;  %v12424_v49 = vld [vmem:[#allocation53_spill] sm:$0xff]  ;;  %v12425_v44 = vld [vmem:[#allocation54_spill] sm:$0xff]  ;;  %v12426_v16 = vld [vmem:[#allocation55_spill] sm:$0xff] }
 0x259   :  { %6040 = vst.msk [vmem:[%s12134_s3 + $0x140] sm:$0xff] %vm5999_vm4, %v5895_v30  ;;  %v5753_v53 = vadd.f32 %v10831_v13, %v5602_v50  ;;  %v5316_v1 = vmax.f32 %v12413_v19, %v3333_v18  ;;  %v5460_v55 = vmax.f32 %v12414_v54, %v4773_v52  ;;  %v12427_v54 = vld [vmem:[#allocation56_spill] sm:$0xff] }
 0x25a   :  { %v5898_v40 = vmax.f32 %v5754_v45, 0.0  ;;  %v5605_v41 = vmax.f32 %v5317_v17, %v5461_v0 }
 0x25b   :  { %v5897_v2 = vmax.f32 %v5753_v53, 0.0  ;;  %v5604_v3 = vmax.f32 %v5316_v1, %v5460_v55  ;;  %v7601_v12 = vpop.f32.mrb[190].mxu0  ;;  %v8033_v32 = vpop.f32.mrb[190].mxu1 }
 0x25c   :  { %6043 = vst.msk [vmem:[%s12134_s3 + $0x158] sm:$0xff] %vm5999_vm4, %v5898_v40  ;;  %v5756_v42 = vadd.f32 %v10831_v13, %v5605_v41  ;;  %v5319_v33 = vmax.f32 %v12415_v43, %v7601_v12  ;;  %v5463_v29 = vmax.f32 %v12416_v62, %v8033_v32  ;;  %v3343_v24 = vpop.f32.mrb[191].mxu0  ;;  %v4783_v4 = vpop.f32.mrb[191].mxu1  ;;  %v12428_v40 = vld [vmem:[#allocation57_spill] sm:$0xff]  ;;  %v12429_v32 = vld [vmem:[#allocation58_spill] sm:$0xff]  ;;  %v12430_v43 = vld [vmem:[#allocation59_spill] sm:$0xff] }
 0x25d   :  { %6042 = vst.msk [vmem:[%s12134_s3 + $0x150] sm:$0xff] %vm5999_vm4, %v5897_v2  ;;  %v5755_v5 = vadd.f32 %v10831_v13, %v5604_v3  ;;  %v5318_v34 = vmax.f32 %v12417_v25, %v3343_v24  ;;  %v5462_v7 = vmax.f32 %v12418_v6, %v4783_v4  ;;  %v12431_v6 = vld [vmem:[#allocation60_spill] sm:$0xff] }
 0x25e   :  { %v5900_v35 = vmax.f32 %v5756_v42, 0.0  ;;  %v5607_v26 = vmax.f32 %v5319_v33, %v5463_v29 }
 0x25f   :  { %v5899_v27 = vmax.f32 %v5755_v5, 0.0  ;;  %v5606_v56 = vmax.f32 %v5318_v34, %v5462_v7  ;;  %v7604_v57 = vpop.f32.mrb[192].mxu0  ;;  %v8036_v14 = vpop.f32.mrb[192].mxu1 }
 0x260   :  { %6045 = vst.msk [vmem:[%s12134_s3 + $0x168] sm:$0xff] %vm5999_vm4, %v5900_v35  ;;  %v5758_v13 = vadd.f32 %v11438_v8, %v5607_v26  ;;  %v5321_v31 = vmax.f32 %v12419_v9, %v7604_v57  ;;  %v5465_v10 = vmax.f32 %v12420_v58, %v8036_v14  ;;  %v3353_v11 = vpop.f32.mrb[193].mxu0  ;;  %v4793_v20 = vpop.f32.mrb[193].mxu1  ;;  %v12432_v35 = vld [vmem:[#allocation61_spill] sm:$0xff]  ;;  %v12433_v14 = vld [vmem:[#allocation62_spill] sm:$0xff]  ;;  %v12434_v9 = vld [vmem:[#allocation63_spill] sm:$0xff] }
 0x261   :  { %6044 = vst.msk [vmem:[%s12134_s3 + $0x160] sm:$0xff] %vm5999_vm4, %v5899_v27  ;;  %v5757_v21 = vadd.f32 %v11438_v8, %v5606_v56  ;;  %v5320_v15 = vmax.f32 %v12421_v59, %v3353_v11  ;;  %v5464_v23 = vmax.f32 %v12422_v22, %v4793_v20  ;;  %v12435_v22 = vld [vmem:[#allocation64_spill] sm:$0xff] }
 0x262   :  { %v5902_v63 = vmax.f32 %v5758_v13, 0.0  ;;  %v5609_v36 = vmax.f32 %v5321_v31, %v5465_v10 }
 0x263   :  { %v5901_v37 = vmax.f32 %v5757_v21, 0.0  ;;  %v5608_v46 = vmax.f32 %v5320_v15, %v5464_v23  ;;  %v7607_v28 = vpop.f32.mrb[194].mxu0  ;;  %v8039_v38 = vpop.f32.mrb[194].mxu1 }
 0x264   :  { %6047 = vst.msk [vmem:[%s12134_s3 + $0x178] sm:$0xff] %vm5999_vm4, %v5902_v63  ;;  %v5760_v39 = vadd.f32 %v11438_v8, %v5609_v36  ;;  %v5323_v48 = vmax.f32 %v12423_v60, %v7607_v28  ;;  %v5467_v61 = vmax.f32 %v12424_v49, %v8039_v38  ;;  %v3363_v30 = vpop.f32.mrb[195].mxu0  ;;  %v4803_v50 = vpop.f32.mrb[195].mxu1  ;;  %v12436_v63 = vld [vmem:[#allocation65_spill] sm:$0xff]  ;;  %v12437_v38 = vld [vmem:[#allocation66_spill] sm:$0xff]  ;;  %v12438_v60 = vld [vmem:[#allocation67_spill] sm:$0xff] }
 0x265   :  { %6046 = vst.msk [vmem:[%s12134_s3 + $0x170] sm:$0xff] %vm5999_vm4, %v5901_v37  ;;  %v5759_v51 = vadd.f32 %v11438_v8, %v5608_v46  ;;  %v5322_v45 = vmax.f32 %v12425_v44, %v3363_v30  ;;  %v5466_v17 = vmax.f32 %v12426_v16, %v4803_v50  ;;  %v12439_v16 = vld [vmem:[#allocation68_spill] sm:$0xff] }
 0x266   :  { %v5904_v47 = vmax.f32 %v5760_v39, 0.0  ;;  %v5611_v0 = vmax.f32 %v5323_v48, %v5467_v61 }
 0x267   :  { %v5903_v18 = vmax.f32 %v5759_v51, 0.0  ;;  %v5610_v52 = vmax.f32 %v5322_v45, %v5466_v17  ;;  %v7610_v53 = vpop.f32.mrb[196].mxu0  ;;  %v8042_v19 = vpop.f32.mrb[196].mxu1 }
 0x268   :  { %6049 = vst.msk [vmem:[%s12134_s3 + $0x188] sm:$0xff] %vm5999_vm4, %v5904_v47  ;;  %v5762_v1 = vadd.f32 %v11438_v8, %v5611_v0  ;;  %v5325_v55 = vmax.f32 %v12427_v54, %v7610_v53  ;;  %v5469_v41 = vmax.f32 %v12428_v40, %v8042_v19  ;;  %v3373_v2 = vpop.f32.mrb[197].mxu0  ;;  %v4813_v3 = vpop.f32.mrb[197].mxu1  ;;  %v12440_v47 = vld [vmem:[#allocation69_spill] sm:$0xff]  ;;  %v12441_v19 = vld [vmem:[#allocation70_spill] sm:$0xff]  ;;  %v12442_v54 = vld [vmem:[#allocation71_spill] sm:$0xff] }
 0x269   :  { %6048 = vst.msk [vmem:[%s12134_s3 + $0x180] sm:$0xff] %vm5999_vm4, %v5903_v18  ;;  %v5761_v12 = vadd.f32 %v11438_v8, %v5610_v52  ;;  %v5324_v42 = vmax.f32 %v12429_v32, %v3373_v2  ;;  %v5468_v33 = vmax.f32 %v12430_v43, %v4813_v3  ;;  %v12443_v43 = vld [vmem:[#allocation72_spill] sm:$0xff] }
 0x26a   :  { %v5906_v62 = vmax.f32 %v5762_v1, 0.0  ;;  %v5613_v29 = vmax.f32 %v5325_v55, %v5469_v41 }
 0x26b   :  { %v5905_v24 = vmax.f32 %v5761_v12, 0.0  ;;  %v5612_v4 = vmax.f32 %v5324_v42, %v5468_v33  ;;  %v7613_v5 = vpop.f32.mrb[198].mxu0  ;;  %v8045_v25 = vpop.f32.mrb[198].mxu1 }
 0x26c   :  { %6051 = vst.msk [vmem:[%s12134_s3 + $0x198] sm:$0xff] %vm5999_vm4, %v5906_v62  ;;  %v5764_v34 = vadd.f32 %v11438_v8, %v5613_v29  ;;  %v5327_v7 = vmax.f32 %v12431_v6, %v7613_v5  ;;  %v5471_v26 = vmax.f32 %v12432_v35, %v8045_v25  ;;  %v3383_v27 = vpop.f32.mrb[199].mxu0  ;;  %v4823_v56 = vpop.f32.mrb[199].mxu1  ;;  %v12444_v62 = vld [vmem:[#allocation73_spill] sm:$0xff]  ;;  %v12445_v25 = vld [vmem:[#allocation74_spill] sm:$0xff]  ;;  %v12446_v6 = vld [vmem:[#allocation75_spill] sm:$0xff] }
 0x26d   :  { %6050 = vst.msk [vmem:[%s12134_s3 + $0x190] sm:$0xff] %vm5999_vm4, %v5905_v24  ;;  %v5763_v57 = vadd.f32 %v11438_v8, %v5612_v4  ;;  %v5326_v13 = vmax.f32 %v12433_v14, %v3383_v27  ;;  %v5470_v31 = vmax.f32 %v12434_v9, %v4823_v56  ;;  %v12447_v9 = vld [vmem:[#allocation76_spill] sm:$0xff] }
 0x26e   :  { %v5908_v58 = vmax.f32 %v5764_v34, 0.0  ;;  %v5615_v10 = vmax.f32 %v5327_v7, %v5471_v26 }
 0x26f   :  { %v5907_v11 = vmax.f32 %v5763_v57, 0.0  ;;  %v5614_v20 = vmax.f32 %v5326_v13, %v5470_v31  ;;  %v7616_v21 = vpop.f32.mrb[200].mxu0  ;;  %v8048_v59 = vpop.f32.mrb[200].mxu1 }
 0x270   :  { %6053 = vst.msk [vmem:[%s12134_s3 + $0x1a8] sm:$0xff] %vm5999_vm4, %v5908_v58  ;;  %v5766_v15 = vadd.f32 %v11438_v8, %v5615_v10  ;;  %v5329_v23 = vmax.f32 %v12435_v22, %v7616_v21  ;;  %v5473_v36 = vmax.f32 %v12436_v63, %v8048_v59  ;;  %v3393_v37 = vpop.f32.mrb[201].mxu0  ;;  %v4833_v46 = vpop.f32.mrb[201].mxu1  ;;  %v12448_v58 = vld [vmem:[#allocation77_spill] sm:$0xff]  ;;  %v12449_v59 = vld [vmem:[#allocation78_spill] sm:$0xff]  ;;  %v12450_v22 = vld [vmem:[#allocation79_spill] sm:$0xff] }
 0x271   :  { %6052 = vst.msk [vmem:[%s12134_s3 + $0x1a0] sm:$0xff] %vm5999_vm4, %v5907_v11  ;;  %v5765_v28 = vadd.f32 %v11438_v8, %v5614_v20  ;;  %v5328_v39 = vmax.f32 %v12437_v38, %v3393_v37  ;;  %v5472_v48 = vmax.f32 %v12438_v60, %v4833_v46  ;;  %v12451_v60 = vld [vmem:[#allocation80_spill] sm:$0xff] }
 0x272   :  { %v5910_v49 = vmax.f32 %v5766_v15, 0.0  ;;  %v5617_v61 = vmax.f32 %v5329_v23, %v5473_v36 }
 0x273   :  { %v5909_v30 = vmax.f32 %v5765_v28, 0.0  ;;  %v5616_v50 = vmax.f32 %v5328_v39, %v5472_v48  ;;  %v7619_v51 = vpop.f32.mrb[202].mxu0  ;;  %v8051_v44 = vpop.f32.mrb[202].mxu1 }
 0x274   :  { %6055 = vst.msk [vmem:[%s12134_s3 + $0x1b8] sm:$0xff] %vm5999_vm4, %v5910_v49  ;;  %v5768_v45 = vadd.f32 %v11438_v8, %v5617_v61  ;;  %v5331_v17 = vmax.f32 %v12439_v16, %v7619_v51  ;;  %v5475_v0 = vmax.f32 %v12440_v47, %v8051_v44  ;;  %v3403_v18 = vpop.f32.mrb[203].mxu0  ;;  %v4843_v52 = vpop.f32.mrb[203].mxu1  ;;  %v12452_v49 = vld [vmem:[#allocation81_spill] sm:$0xff]  ;;  %v12453_v44 = vld [vmem:[#allocation82_spill] sm:$0xff]  ;;  %v12454_v16 = vld [vmem:[#allocation83_spill] sm:$0xff] }
 0x275   :  { %6054 = vst.msk [vmem:[%s12134_s3 + $0x1b0] sm:$0xff] %vm5999_vm4, %v5909_v30  ;;  %v5767_v53 = vadd.f32 %v11438_v8, %v5616_v50  ;;  %v5330_v1 = vmax.f32 %v12441_v19, %v3403_v18  ;;  %v5474_v55 = vmax.f32 %v12442_v54, %v4843_v52  ;;  %v12455_v54 = vld [vmem:[#allocation84_spill] sm:$0xff] }
 0x276   :  { %v5912_v40 = vmax.f32 %v5768_v45, 0.0  ;;  %v5619_v41 = vmax.f32 %v5331_v17, %v5475_v0 }
 0x277   :  { %v5911_v2 = vmax.f32 %v5767_v53, 0.0  ;;  %v5618_v3 = vmax.f32 %v5330_v1, %v5474_v55  ;;  %v7622_v12 = vpop.f32.mrb[204].mxu0  ;;  %v8054_v32 = vpop.f32.mrb[204].mxu1 }
 0x278   :  { %6057 = vst.msk [vmem:[%s12134_s3 + $0x1c8] sm:$0xff] %vm5999_vm4, %v5912_v40  ;;  %v5770_v42 = vadd.f32 %v11438_v8, %v5619_v41  ;;  %v5333_v33 = vmax.f32 %v12443_v43, %v7622_v12  ;;  %v5477_v29 = vmax.f32 %v12444_v62, %v8054_v32  ;;  %v3413_v24 = vpop.f32.mrb[205].mxu0  ;;  %v4853_v4 = vpop.f32.mrb[205].mxu1  ;;  %v12456_v40 = vld [vmem:[#allocation85_spill] sm:$0xff]  ;;  %v12457_v32 = vld [vmem:[#allocation86_spill] sm:$0xff]  ;;  %v12458_v43 = vld [vmem:[#allocation87_spill] sm:$0xff] }
 0x279   :  { %6056 = vst.msk [vmem:[%s12134_s3 + $0x1c0] sm:$0xff] %vm5999_vm4, %v5911_v2  ;;  %v5769_v5 = vadd.f32 %v11438_v8, %v5618_v3  ;;  %v5332_v34 = vmax.f32 %v12445_v25, %v3413_v24  ;;  %v5476_v7 = vmax.f32 %v12446_v6, %v4853_v4  ;;  %v12459_v6 = vld [vmem:[#allocation88_spill] sm:$0xff] }
 0x27a   :  { %v5914_v35 = vmax.f32 %v5770_v42, 0.0  ;;  %v5621_v26 = vmax.f32 %v5333_v33, %v5477_v29 }
 0x27b   :  { %v5913_v27 = vmax.f32 %v5769_v5, 0.0  ;;  %v5620_v56 = vmax.f32 %v5332_v34, %v5476_v7  ;;  %v7625_v57 = vpop.f32.mrb[206].mxu0  ;;  %v8057_v14 = vpop.f32.mrb[206].mxu1 }
 0x27c   :  { %6059 = vst.msk [vmem:[%s12134_s3 + $0x1d8] sm:$0xff] %vm5999_vm4, %v5914_v35  ;;  %v5772_v13 = vadd.f32 %v11438_v8, %v5621_v26  ;;  %v5335_v31 = vmax.f32 %v12447_v9, %v7625_v57  ;;  %v5479_v10 = vmax.f32 %v12448_v58, %v8057_v14  ;;  %v3423_v11 = vpop.f32.mrb[207].mxu0  ;;  %v4863_v20 = vpop.f32.mrb[207].mxu1  ;;  %v12460_v35 = vld [vmem:[#allocation89_spill] sm:$0xff]  ;;  %v12461_v14 = vld [vmem:[#allocation90_spill] sm:$0xff]  ;;  %v12462_v9 = vld [vmem:[#allocation91_spill] sm:$0xff] }
 0x27d   :  { %6058 = vst.msk [vmem:[%s12134_s3 + $0x1d0] sm:$0xff] %vm5999_vm4, %v5913_v27  ;;  %v5771_v21 = vadd.f32 %v11438_v8, %v5620_v56  ;;  %v5334_v15 = vmax.f32 %v12449_v59, %v3423_v11  ;;  %v5478_v23 = vmax.f32 %v12450_v22, %v4863_v20  ;;  %v12463_v22 = vld [vmem:[#allocation92_spill] sm:$0xff] }
 0x27e   :  { %v5916_v63 = vmax.f32 %v5772_v13, 0.0  ;;  %v5623_v36 = vmax.f32 %v5335_v31, %v5479_v10 }
 0x27f   :  { %v5915_v37 = vmax.f32 %v5771_v21, 0.0  ;;  %v5622_v46 = vmax.f32 %v5334_v15, %v5478_v23  ;;  %v7628_v28 = vpop.f32.mrb[208].mxu0  ;;  %v8060_v38 = vpop.f32.mrb[208].mxu1 }
 0x280   :  { %6061 = vst.msk [vmem:[%s12134_s3 + $0x1e8] sm:$0xff] %vm5999_vm4, %v5916_v63  ;;  %v5774_v39 = vadd.f32 %v11438_v8, %v5623_v36  ;;  %v5337_v48 = vmax.f32 %v12451_v60, %v7628_v28  ;;  %v5481_v61 = vmax.f32 %v12452_v49, %v8060_v38  ;;  %v3433_v30 = vpop.f32.mrb[209].mxu0  ;;  %v4873_v50 = vpop.f32.mrb[209].mxu1  ;;  %v12464_v63 = vld [vmem:[#allocation93_spill] sm:$0xff]  ;;  %v12465_v38 = vld [vmem:[#allocation94_spill] sm:$0xff]  ;;  %v12466_v60 = vld [vmem:[#allocation95_spill] sm:$0xff] }
 0x281   :  { %6060 = vst.msk [vmem:[%s12134_s3 + $0x1e0] sm:$0xff] %vm5999_vm4, %v5915_v37  ;;  %v5773_v51 = vadd.f32 %v11438_v8, %v5622_v46  ;;  %v5336_v45 = vmax.f32 %v12453_v44, %v3433_v30  ;;  %v5480_v17 = vmax.f32 %v12454_v16, %v4873_v50  ;;  %v12467_v16 = vld [vmem:[#allocation96_spill] sm:$0xff] }
 0x282   :  { %v5918_v47 = vmax.f32 %v5774_v39, 0.0  ;;  %v5625_v0 = vmax.f32 %v5337_v48, %v5481_v61 }
 0x283   :  { %v5917_v18 = vmax.f32 %v5773_v51, 0.0  ;;  %v5624_v52 = vmax.f32 %v5336_v45, %v5480_v17  ;;  %v7631_v53 = vpop.f32.mrb[210].mxu0  ;;  %v8063_v19 = vpop.f32.mrb[210].mxu1 }
 0x284   :  { %6063 = vst.msk [vmem:[%s12134_s3 + $0x1f8] sm:$0xff] %vm5999_vm4, %v5918_v47  ;;  %v5776_v1 = vadd.f32 %v11438_v8, %v5625_v0  ;;  %v5339_v55 = vmax.f32 %v12455_v54, %v7631_v53  ;;  %v5483_v41 = vmax.f32 %v12456_v40, %v8063_v19  ;;  %v3443_v2 = vpop.f32.mrb[211].mxu0  ;;  %v4883_v3 = vpop.f32.mrb[211].mxu1  ;;  %v12468_v47 = vld [vmem:[#allocation97_spill] sm:$0xff]  ;;  %v12469_v19 = vld [vmem:[#allocation98_spill] sm:$0xff]  ;;  %v12470_v54 = vld [vmem:[#allocation99_spill] sm:$0xff] }
 0x285   :  { %6062 = vst.msk [vmem:[%s12134_s3 + $0x1f0] sm:$0xff] %vm5999_vm4, %v5917_v18  ;;  %v5775_v12 = vadd.f32 %v11438_v8, %v5624_v52  ;;  %v5338_v42 = vmax.f32 %v12457_v32, %v3443_v2  ;;  %v5482_v33 = vmax.f32 %v12458_v43, %v4883_v3  ;;  %v12471_v43 = vld [vmem:[#allocation100_spill] sm:$0xff] }
 0x286   :  { %v5920_v62 = vmax.f32 %v5776_v1, 0.0  ;;  %v5627_v29 = vmax.f32 %v5339_v55, %v5483_v41 }
 0x287   :  { %v5919_v24 = vmax.f32 %v5775_v12, 0.0  ;;  %v5626_v4 = vmax.f32 %v5338_v42, %v5482_v33  ;;  %v7634_v5 = vpop.f32.mrb[212].mxu0  ;;  %v8066_v25 = vpop.f32.mrb[212].mxu1 }
 0x288   :  { %6065 = vst.msk [vmem:[%s12134_s3 + $0x208] sm:$0xff] %vm5999_vm4, %v5920_v62  ;;  %v5778_v34 = vadd.f32 %v11438_v8, %v5627_v29  ;;  %v5341_v7 = vmax.f32 %v12459_v6, %v7634_v5  ;;  %v5485_v26 = vmax.f32 %v12460_v35, %v8066_v25  ;;  %v3453_v27 = vpop.f32.mrb[213].mxu0  ;;  %v4893_v56 = vpop.f32.mrb[213].mxu1  ;;  %v12472_v62 = vld [vmem:[#allocation101_spill] sm:$0xff]  ;;  %v12473_v25 = vld [vmem:[#allocation102_spill] sm:$0xff]  ;;  %v12474_v6 = vld [vmem:[#allocation103_spill] sm:$0xff] }
 0x289   :  { %6064 = vst.msk [vmem:[%s12134_s3 + $0x200] sm:$0xff] %vm5999_vm4, %v5919_v24  ;;  %v5777_v57 = vadd.f32 %v11438_v8, %v5626_v4  ;;  %v5340_v13 = vmax.f32 %v12461_v14, %v3453_v27  ;;  %v5484_v31 = vmax.f32 %v12462_v9, %v4893_v56  ;;  %v12475_v9 = vld [vmem:[#allocation104_spill] sm:$0xff] }
 0x28a   :  { %v5922_v58 = vmax.f32 %v5778_v34, 0.0  ;;  %v5629_v10 = vmax.f32 %v5341_v7, %v5485_v26 }
 0x28b   :  { %v5921_v11 = vmax.f32 %v5777_v57, 0.0  ;;  %v5628_v20 = vmax.f32 %v5340_v13, %v5484_v31  ;;  %v7637_v21 = vpop.f32.mrb[214].mxu0  ;;  %v8069_v59 = vpop.f32.mrb[214].mxu1 }
 0x28c   :  { %6067 = vst.msk [vmem:[%s12134_s3 + $0x218] sm:$0xff] %vm5999_vm4, %v5922_v58  ;;  %v5780_v15 = vadd.f32 %v11438_v8, %v5629_v10  ;;  %v5343_v23 = vmax.f32 %v12463_v22, %v7637_v21  ;;  %v5487_v36 = vmax.f32 %v12464_v63, %v8069_v59  ;;  %v3463_v37 = vpop.f32.mrb[215].mxu0  ;;  %v4903_v46 = vpop.f32.mrb[215].mxu1  ;;  %v12476_v58 = vld [vmem:[#allocation105_spill] sm:$0xff]  ;;  %v12477_v59 = vld [vmem:[#allocation106_spill] sm:$0xff]  ;;  %v12478_v22 = vld [vmem:[#allocation107_spill] sm:$0xff] }
 0x28d   :  { %6066 = vst.msk [vmem:[%s12134_s3 + $0x210] sm:$0xff] %vm5999_vm4, %v5921_v11  ;;  %v5779_v28 = vadd.f32 %v11438_v8, %v5628_v20  ;;  %v5342_v39 = vmax.f32 %v12465_v38, %v3463_v37  ;;  %v5486_v48 = vmax.f32 %v12466_v60, %v4903_v46  ;;  %v12479_v60 = vld [vmem:[#allocation108_spill] sm:$0xff] }
 0x28e   :  { %v5924_v49 = vmax.f32 %v5780_v15, 0.0  ;;  %v5631_v61 = vmax.f32 %v5343_v23, %v5487_v36 }
 0x28f   :  { %v5923_v30 = vmax.f32 %v5779_v28, 0.0  ;;  %v5630_v50 = vmax.f32 %v5342_v39, %v5486_v48  ;;  %v7640_v51 = vpop.f32.mrb[216].mxu0  ;;  %v8072_v44 = vpop.f32.mrb[216].mxu1 }
 0x290   :  { %6069 = vst.msk [vmem:[%s12134_s3 + $0x228] sm:$0xff] %vm5999_vm4, %v5924_v49  ;;  %v5782_v45 = vadd.f32 %v11438_v8, %v5631_v61  ;;  %v5345_v17 = vmax.f32 %v12467_v16, %v7640_v51  ;;  %v5489_v0 = vmax.f32 %v12468_v47, %v8072_v44  ;;  %v3473_v18 = vpop.f32.mrb[217].mxu0  ;;  %v4913_v52 = vpop.f32.mrb[217].mxu1  ;;  %v12480_v49 = vld [vmem:[#allocation109_spill] sm:$0xff]  ;;  %v12481_v44 = vld [vmem:[#allocation110_spill] sm:$0xff]  ;;  %v12482_v16 = vld [vmem:[#allocation111_spill] sm:$0xff] }
 0x291   :  { %6068 = vst.msk [vmem:[%s12134_s3 + $0x220] sm:$0xff] %vm5999_vm4, %v5923_v30  ;;  %v5781_v53 = vadd.f32 %v11438_v8, %v5630_v50  ;;  %v5344_v1 = vmax.f32 %v12469_v19, %v3473_v18  ;;  %v5488_v55 = vmax.f32 %v12470_v54, %v4913_v52  ;;  %v12483_v54 = vld [vmem:[#allocation112_spill] sm:$0xff] }
 0x292   :  { %v5926_v40 = vmax.f32 %v5782_v45, 0.0  ;;  %v5633_v41 = vmax.f32 %v5345_v17, %v5489_v0 }
 0x293   :  { %v5925_v2 = vmax.f32 %v5781_v53, 0.0  ;;  %v5632_v3 = vmax.f32 %v5344_v1, %v5488_v55  ;;  %v7643_v12 = vpop.f32.mrb[218].mxu0  ;;  %v8075_v32 = vpop.f32.mrb[218].mxu1 }
 0x294   :  { %6071 = vst.msk [vmem:[%s12134_s3 + $0x238] sm:$0xff] %vm5999_vm4, %v5926_v40  ;;  %v5784_v42 = vadd.f32 %v11438_v8, %v5633_v41  ;;  %v5347_v33 = vmax.f32 %v12471_v43, %v7643_v12  ;;  %v5491_v29 = vmax.f32 %v12472_v62, %v8075_v32  ;;  %v3483_v24 = vpop.f32.mrb[219].mxu0  ;;  %v4923_v4 = vpop.f32.mrb[219].mxu1  ;;  %v12484_v40 = vld [vmem:[#allocation113_spill] sm:$0xff]  ;;  %v12485_v32 = vld [vmem:[#allocation114_spill] sm:$0xff]  ;;  %v12486_v43 = vld [vmem:[#allocation115_spill] sm:$0xff] }
 0x295   :  { %6070 = vst.msk [vmem:[%s12134_s3 + $0x230] sm:$0xff] %vm5999_vm4, %v5925_v2  ;;  %v5783_v5 = vadd.f32 %v11438_v8, %v5632_v3  ;;  %v5346_v34 = vmax.f32 %v12473_v25, %v3483_v24  ;;  %v5490_v7 = vmax.f32 %v12474_v6, %v4923_v4  ;;  %v12487_v6 = vld [vmem:[#allocation116_spill] sm:$0xff] }
 0x296   :  { %v5928_v35 = vmax.f32 %v5784_v42, 0.0  ;;  %v5635_v26 = vmax.f32 %v5347_v33, %v5491_v29 }
 0x297   :  { %v5927_v27 = vmax.f32 %v5783_v5, 0.0  ;;  %v5634_v56 = vmax.f32 %v5346_v34, %v5490_v7  ;;  %v7646_v57 = vpop.f32.mrb[220].mxu0  ;;  %v8078_v14 = vpop.f32.mrb[220].mxu1 }
 0x298   :  { %6073 = vst.msk [vmem:[%s12134_s3 + $0x248] sm:$0xff] %vm5999_vm4, %v5928_v35  ;;  %v5786_v13 = vadd.f32 %v11438_v8, %v5635_v26  ;;  %v5349_v31 = vmax.f32 %v12475_v9, %v7646_v57  ;;  %v5493_v10 = vmax.f32 %v12476_v58, %v8078_v14  ;;  %v3493_v11 = vpop.f32.mrb[221].mxu0  ;;  %v4933_v20 = vpop.f32.mrb[221].mxu1  ;;  %v12488_v35 = vld [vmem:[#allocation117_spill] sm:$0xff]  ;;  %v12489_v14 = vld [vmem:[#allocation118_spill] sm:$0xff]  ;;  %v12490_v9 = vld [vmem:[#allocation119_spill] sm:$0xff] }
 0x299   :  { %6072 = vst.msk [vmem:[%s12134_s3 + $0x240] sm:$0xff] %vm5999_vm4, %v5927_v27  ;;  %v5785_v21 = vadd.f32 %v11438_v8, %v5634_v56  ;;  %v5348_v15 = vmax.f32 %v12477_v59, %v3493_v11  ;;  %v5492_v23 = vmax.f32 %v12478_v22, %v4933_v20  ;;  %v12491_v22 = vld [vmem:[#allocation120_spill] sm:$0xff] }
 0x29a   :  { %v5930_v63 = vmax.f32 %v5786_v13, 0.0  ;;  %v5637_v36 = vmax.f32 %v5349_v31, %v5493_v10 }
 0x29b   :  { %v5929_v37 = vmax.f32 %v5785_v21, 0.0  ;;  %v5636_v46 = vmax.f32 %v5348_v15, %v5492_v23  ;;  %v7649_v28 = vpop.f32.mrb[222].mxu0  ;;  %v8081_v38 = vpop.f32.mrb[222].mxu1 }
 0x29c   :  { %6075 = vst.msk [vmem:[%s12134_s3 + $0x258] sm:$0xff] %vm5999_vm4, %v5930_v63  ;;  %v5788_v39 = vadd.f32 %v11438_v8, %v5637_v36  ;;  %v5351_v48 = vmax.f32 %v12479_v60, %v7649_v28  ;;  %v5495_v61 = vmax.f32 %v12480_v49, %v8081_v38  ;;  %v3503_v30 = vpop.f32.mrb[223].mxu0  ;;  %v4943_v50 = vpop.f32.mrb[223].mxu1  ;;  %v12492_v63 = vld [vmem:[#allocation121_spill] sm:$0xff]  ;;  %v12493_v38 = vld [vmem:[#allocation122_spill] sm:$0xff]  ;;  %v12494_v60 = vld [vmem:[#allocation123_spill] sm:$0xff] }
 0x29d   :  { %6074 = vst.msk [vmem:[%s12134_s3 + $0x250] sm:$0xff] %vm5999_vm4, %v5929_v37  ;;  %v5787_v51 = vadd.f32 %v11438_v8, %v5636_v46  ;;  %v5350_v45 = vmax.f32 %v12481_v44, %v3503_v30  ;;  %v5494_v17 = vmax.f32 %v12482_v16, %v4943_v50  ;;  %v12495_v16 = vld [vmem:[#allocation124_spill] sm:$0xff] }
 0x29e   :  { %v5932_v47 = vmax.f32 %v5788_v39, 0.0  ;;  %v5639_v0 = vmax.f32 %v5351_v48, %v5495_v61 }
 0x29f   :  { %v5931_v18 = vmax.f32 %v5787_v51, 0.0  ;;  %v5638_v52 = vmax.f32 %v5350_v45, %v5494_v17  ;;  %v7652_v53 = vpop.f32.mrb[224].mxu0  ;;  %v8084_v19 = vpop.f32.mrb[224].mxu1 }
 0x2a0   :  { %6077 = vst.msk [vmem:[%s12134_s3 + $0x268] sm:$0xff] %vm5999_vm4, %v5932_v47  ;;  %v5790_v1 = vadd.f32 %v11438_v8, %v5639_v0  ;;  %v5353_v55 = vmax.f32 %v12483_v54, %v7652_v53  ;;  %v5497_v41 = vmax.f32 %v12484_v40, %v8084_v19  ;;  %v3513_v2 = vpop.f32.mrb[225].mxu0  ;;  %v4953_v3 = vpop.f32.mrb[225].mxu1  ;;  %v12496_v47 = vld [vmem:[#allocation125_spill] sm:$0xff]  ;;  %v12497_v19 = vld [vmem:[#allocation126_spill] sm:$0xff]  ;;  %v12498_v54 = vld [vmem:[#allocation127_spill] sm:$0xff] }
 0x2a1   :  { %6076 = vst.msk [vmem:[%s12134_s3 + $0x260] sm:$0xff] %vm5999_vm4, %v5931_v18  ;;  %v5789_v12 = vadd.f32 %v11438_v8, %v5638_v52  ;;  %v5352_v42 = vmax.f32 %v12485_v32, %v3513_v2  ;;  %v5496_v33 = vmax.f32 %v12486_v43, %v4953_v3  ;;  %v12499_v43 = vld [vmem:[#allocation128_spill] sm:$0xff] }
 0x2a2   :  { %v5934_v62 = vmax.f32 %v5790_v1, 0.0  ;;  %v5641_v29 = vmax.f32 %v5353_v55, %v5497_v41 }
 0x2a3   :  { %v5933_v24 = vmax.f32 %v5789_v12, 0.0  ;;  %v5640_v4 = vmax.f32 %v5352_v42, %v5496_v33  ;;  %v7655_v5 = vpop.f32.mrb[226].mxu0  ;;  %v8087_v25 = vpop.f32.mrb[226].mxu1 }
 0x2a4   :  { %6079 = vst.msk [vmem:[%s12134_s3 + $0x278] sm:$0xff] %vm5999_vm4, %v5934_v62  ;;  %v5792_v34 = vadd.f32 %v11438_v8, %v5641_v29  ;;  %v5355_v7 = vmax.f32 %v12487_v6, %v7655_v5  ;;  %v5499_v26 = vmax.f32 %v12488_v35, %v8087_v25  ;;  %v3523_v27 = vpop.f32.mrb[227].mxu0  ;;  %v4963_v56 = vpop.f32.mrb[227].mxu1  ;;  %v12500_v62 = vld [vmem:[#allocation129_spill] sm:$0xff]  ;;  %v12501_v25 = vld [vmem:[#allocation130_spill] sm:$0xff]  ;;  %v12502_v6 = vld [vmem:[#allocation131_spill] sm:$0xff] }
 0x2a5   :  { %6078 = vst.msk [vmem:[%s12134_s3 + $0x270] sm:$0xff] %vm5999_vm4, %v5933_v24  ;;  %v5791_v57 = vadd.f32 %v11438_v8, %v5640_v4  ;;  %v5354_v13 = vmax.f32 %v12489_v14, %v3523_v27  ;;  %v5498_v31 = vmax.f32 %v12490_v9, %v4963_v56  ;;  %v12503_v9 = vld [vmem:[#allocation132_spill] sm:$0xff] }
 0x2a6   :  { %v5936_v58 = vmax.f32 %v5792_v34, 0.0  ;;  %v5643_v10 = vmax.f32 %v5355_v7, %v5499_v26 }
 0x2a7   :  { %v5935_v11 = vmax.f32 %v5791_v57, 0.0  ;;  %v5642_v20 = vmax.f32 %v5354_v13, %v5498_v31  ;;  %v7658_v21 = vpop.f32.mrb[228].mxu0  ;;  %v8090_v59 = vpop.f32.mrb[228].mxu1 }
 0x2a8   :  { %6081 = vst.msk [vmem:[%s12134_s3 + $0x288] sm:$0xff] %vm5999_vm4, %v5936_v58  ;;  %v5794_v15 = vadd.f32 %v11438_v8, %v5643_v10  ;;  %v5357_v23 = vmax.f32 %v12491_v22, %v7658_v21  ;;  %v5501_v36 = vmax.f32 %v12492_v63, %v8090_v59  ;;  %v3533_v37 = vpop.f32.mrb[229].mxu0  ;;  %v4973_v46 = vpop.f32.mrb[229].mxu1  ;;  %v12504_v58 = vld [vmem:[#allocation133_spill] sm:$0xff]  ;;  %v12505_v59 = vld [vmem:[#allocation134_spill] sm:$0xff]  ;;  %v12506_v22 = vld [vmem:[#allocation135_spill] sm:$0xff] }
 0x2a9   :  { %6080 = vst.msk [vmem:[%s12134_s3 + $0x280] sm:$0xff] %vm5999_vm4, %v5935_v11  ;;  %v5793_v28 = vadd.f32 %v11438_v8, %v5642_v20  ;;  %v5356_v39 = vmax.f32 %v12493_v38, %v3533_v37  ;;  %v5500_v48 = vmax.f32 %v12494_v60, %v4973_v46  ;;  %v12507_v60 = vld [vmem:[#allocation136_spill] sm:$0xff] }
 0x2aa   :  { %v5938_v49 = vmax.f32 %v5794_v15, 0.0  ;;  %v5645_v61 = vmax.f32 %v5357_v23, %v5501_v36 }
 0x2ab   :  { %v5937_v30 = vmax.f32 %v5793_v28, 0.0  ;;  %v5644_v50 = vmax.f32 %v5356_v39, %v5500_v48  ;;  %v7661_v51 = vpop.f32.mrb[230].mxu0  ;;  %v8093_v44 = vpop.f32.mrb[230].mxu1 }
 0x2ac   :  { %6083 = vst.msk [vmem:[%s12134_s3 + $0x298] sm:$0xff] %vm5999_vm4, %v5938_v49  ;;  %v5796_v45 = vadd.f32 %v11438_v8, %v5645_v61  ;;  %v5359_v17 = vmax.f32 %v12495_v16, %v7661_v51  ;;  %v5503_v0 = vmax.f32 %v12496_v47, %v8093_v44  ;;  %v3543_v18 = vpop.f32.mrb[231].mxu0  ;;  %v4983_v52 = vpop.f32.mrb[231].mxu1  ;;  %v12508_v49 = vld [vmem:[#allocation137_spill] sm:$0xff]  ;;  %v12509_v44 = vld [vmem:[#allocation138_spill] sm:$0xff]  ;;  %v12510_v16 = vld [vmem:[#allocation139_spill] sm:$0xff] }
 0x2ad   :  { %6082 = vst.msk [vmem:[%s12134_s3 + $0x290] sm:$0xff] %vm5999_vm4, %v5937_v30  ;;  %v5795_v53 = vadd.f32 %v11438_v8, %v5644_v50  ;;  %v5358_v1 = vmax.f32 %v12497_v19, %v3543_v18  ;;  %v5502_v55 = vmax.f32 %v12498_v54, %v4983_v52  ;;  %v12511_v54 = vld [vmem:[#allocation140_spill] sm:$0xff] }
 0x2ae   :  { %v5940_v40 = vmax.f32 %v5796_v45, 0.0  ;;  %v5647_v41 = vmax.f32 %v5359_v17, %v5503_v0 }
 0x2af   :  { %v5939_v2 = vmax.f32 %v5795_v53, 0.0  ;;  %v5646_v3 = vmax.f32 %v5358_v1, %v5502_v55  ;;  %v7664_v12 = vpop.f32.mrb[232].mxu0  ;;  %v8096_v32 = vpop.f32.mrb[232].mxu1 }
 0x2b0   :  { %6085 = vst.msk [vmem:[%s12134_s3 + $0x2a8] sm:$0xff] %vm5999_vm4, %v5940_v40  ;;  %v5798_v42 = vadd.f32 %v11438_v8, %v5647_v41  ;;  %v5361_v33 = vmax.f32 %v12499_v43, %v7664_v12  ;;  %v5505_v29 = vmax.f32 %v12500_v62, %v8096_v32  ;;  %v3553_v24 = vpop.f32.mrb[233].mxu0  ;;  %v4993_v4 = vpop.f32.mrb[233].mxu1  ;;  %v12512_v40 = vld [vmem:[#allocation141_spill] sm:$0xff]  ;;  %v12513_v32 = vld [vmem:[#allocation142_spill] sm:$0xff]  ;;  %v12514_v43 = vld [vmem:[#allocation143_spill] sm:$0xff] }
 0x2b1   :  { %6084 = vst.msk [vmem:[%s12134_s3 + $0x2a0] sm:$0xff] %vm5999_vm4, %v5939_v2  ;;  %v5797_v5 = vadd.f32 %v11438_v8, %v5646_v3  ;;  %v5360_v34 = vmax.f32 %v12501_v25, %v3553_v24  ;;  %v5504_v7 = vmax.f32 %v12502_v6, %v4993_v4  ;;  %v12515_v6 = vld [vmem:[#allocation144_spill] sm:$0xff] }
 0x2b2   :  { %v5942_v35 = vmax.f32 %v5798_v42, 0.0  ;;  %v5649_v26 = vmax.f32 %v5361_v33, %v5505_v29 }
 0x2b3   :  { %v5941_v27 = vmax.f32 %v5797_v5, 0.0  ;;  %v5648_v56 = vmax.f32 %v5360_v34, %v5504_v7  ;;  %v7667_v57 = vpop.f32.mrb[234].mxu0  ;;  %v8099_v14 = vpop.f32.mrb[234].mxu1 }
 0x2b4   :  { %6087 = vst.msk [vmem:[%s12134_s3 + $0x2b8] sm:$0xff] %vm5999_vm4, %v5942_v35  ;;  %v5800_v13 = vadd.f32 %v11438_v8, %v5649_v26  ;;  %v5363_v31 = vmax.f32 %v12503_v9, %v7667_v57  ;;  %v5507_v10 = vmax.f32 %v12504_v58, %v8099_v14  ;;  %v3563_v11 = vpop.f32.mrb[235].mxu0  ;;  %v5003_v20 = vpop.f32.mrb[235].mxu1  ;;  %v12516_v35 = vld [vmem:[#allocation145_spill] sm:$0xff]  ;;  %v12517_v14 = vld [vmem:[#allocation146_spill] sm:$0xff]  ;;  %v12518_v9 = vld [vmem:[#allocation147_spill] sm:$0xff] }
 0x2b5   :  { %6086 = vst.msk [vmem:[%s12134_s3 + $0x2b0] sm:$0xff] %vm5999_vm4, %v5941_v27  ;;  %v5799_v21 = vadd.f32 %v11438_v8, %v5648_v56  ;;  %v5362_v15 = vmax.f32 %v12505_v59, %v3563_v11  ;;  %v5506_v23 = vmax.f32 %v12506_v22, %v5003_v20  ;;  %v12519_v22 = vld [vmem:[#allocation148_spill] sm:$0xff] }
 0x2b6   :  { %v5944_v63 = vmax.f32 %v5800_v13, 0.0  ;;  %v5651_v36 = vmax.f32 %v5363_v31, %v5507_v10 }
 0x2b7   :  { %v5943_v37 = vmax.f32 %v5799_v21, 0.0  ;;  %v5650_v46 = vmax.f32 %v5362_v15, %v5506_v23  ;;  %v7670_v28 = vpop.f32.mrb[236].mxu0  ;;  %v8102_v38 = vpop.f32.mrb[236].mxu1 }
 0x2b8   :  { %6089 = vst.msk [vmem:[%s12134_s3 + $0x2c8] sm:$0xff] %vm5999_vm4, %v5944_v63  ;;  %v5802_v39 = vadd.f32 %v11438_v8, %v5651_v36  ;;  %v5365_v48 = vmax.f32 %v12507_v60, %v7670_v28  ;;  %v5509_v61 = vmax.f32 %v12508_v49, %v8102_v38  ;;  %v3573_v30 = vpop.f32.mrb[237].mxu0  ;;  %v5013_v50 = vpop.f32.mrb[237].mxu1  ;;  %v12520_v63 = vld [vmem:[#allocation149_spill] sm:$0xff]  ;;  %v12521_v38 = vld [vmem:[#allocation150_spill] sm:$0xff]  ;;  %v12522_v60 = vld [vmem:[#allocation151_spill] sm:$0xff] }
 0x2b9   :  { %6088 = vst.msk [vmem:[%s12134_s3 + $0x2c0] sm:$0xff] %vm5999_vm4, %v5943_v37  ;;  %v5801_v51 = vadd.f32 %v11438_v8, %v5650_v46  ;;  %v5364_v45 = vmax.f32 %v12509_v44, %v3573_v30  ;;  %v5508_v17 = vmax.f32 %v12510_v16, %v5013_v50  ;;  %v12523_v16 = vld [vmem:[#allocation152_spill] sm:$0xff] }
 0x2ba   :  { %v5946_v47 = vmax.f32 %v5802_v39, 0.0  ;;  %v5653_v0 = vmax.f32 %v5365_v48, %v5509_v61 }
 0x2bb   :  { %v5945_v18 = vmax.f32 %v5801_v51, 0.0  ;;  %v5652_v52 = vmax.f32 %v5364_v45, %v5508_v17  ;;  %v7673_v53 = vpop.f32.mrb[238].mxu0  ;;  %v8105_v19 = vpop.f32.mrb[238].mxu1 }
 0x2bc   :  { %6091 = vst.msk [vmem:[%s12134_s3 + $0x2d8] sm:$0xff] %vm5999_vm4, %v5946_v47  ;;  %v5804_v1 = vadd.f32 %v11438_v8, %v5653_v0  ;;  %v5367_v55 = vmax.f32 %v12511_v54, %v7673_v53  ;;  %v5511_v41 = vmax.f32 %v12512_v40, %v8105_v19  ;;  %v3583_v2 = vpop.f32.mrb[239].mxu0  ;;  %v5023_v3 = vpop.f32.mrb[239].mxu1  ;;  %v12524_v47 = vld [vmem:[#allocation153_spill] sm:$0xff]  ;;  %v12525_v19 = vld [vmem:[#allocation154_spill] sm:$0xff]  ;;  %v12526_v54 = vld [vmem:[#allocation155_spill] sm:$0xff] }
 0x2bd   :  { %6090 = vst.msk [vmem:[%s12134_s3 + $0x2d0] sm:$0xff] %vm5999_vm4, %v5945_v18  ;;  %v5803_v12 = vadd.f32 %v11438_v8, %v5652_v52  ;;  %v5366_v42 = vmax.f32 %v12513_v32, %v3583_v2  ;;  %v5510_v33 = vmax.f32 %v12514_v43, %v5023_v3  ;;  %v12527_v43 = vld [vmem:[#allocation156_spill] sm:$0xff] }
 0x2be   :  { %v5948_v62 = vmax.f32 %v5804_v1, 0.0  ;;  %v5655_v29 = vmax.f32 %v5367_v55, %v5511_v41 }
 0x2bf   :  { %v5947_v24 = vmax.f32 %v5803_v12, 0.0  ;;  %v5654_v4 = vmax.f32 %v5366_v42, %v5510_v33  ;;  %v7676_v5 = vpop.f32.mrb[240].mxu0  ;;  %v8108_v25 = vpop.f32.mrb[240].mxu1 }
 0x2c0   :  { %6093 = vst.msk [vmem:[%s12134_s3 + $0x2e8] sm:$0xff] %vm5999_vm4, %v5948_v62  ;;  %v5806_v34 = vadd.f32 %v11438_v8, %v5655_v29  ;;  %v5369_v7 = vmax.f32 %v12515_v6, %v7676_v5  ;;  %v5513_v26 = vmax.f32 %v12516_v35, %v8108_v25  ;;  %v3593_v27 = vpop.f32.mrb[241].mxu0  ;;  %v5033_v56 = vpop.f32.mrb[241].mxu1  ;;  %v12528_v62 = vld [vmem:[#allocation157_spill] sm:$0xff]  ;;  %v12529_v25 = vld [vmem:[#allocation158_spill] sm:$0xff]  ;;  %v12530_v6 = vld [vmem:[#allocation159_spill] sm:$0xff] }
 0x2c1   :  { %6092 = vst.msk [vmem:[%s12134_s3 + $0x2e0] sm:$0xff] %vm5999_vm4, %v5947_v24  ;;  %v5805_v57 = vadd.f32 %v11438_v8, %v5654_v4  ;;  %v5368_v13 = vmax.f32 %v12517_v14, %v3593_v27  ;;  %v5512_v31 = vmax.f32 %v12518_v9, %v5033_v56  ;;  %v12531_v9 = vld [vmem:[#allocation160_spill] sm:$0xff] }
 0x2c2   :  { %v5950_v58 = vmax.f32 %v5806_v34, 0.0  ;;  %v5657_v10 = vmax.f32 %v5369_v7, %v5513_v26 }
 0x2c3   :  { %v5949_v11 = vmax.f32 %v5805_v57, 0.0  ;;  %v5656_v20 = vmax.f32 %v5368_v13, %v5512_v31  ;;  %v7679_v21 = vpop.f32.mrb[242].mxu0  ;;  %v8111_v59 = vpop.f32.mrb[242].mxu1 }
 0x2c4   :  { %6095 = vst.msk [vmem:[%s12134_s3 + $0x2f8] sm:$0xff] %vm5999_vm4, %v5950_v58  ;;  %v5808_v15 = vadd.f32 %v11438_v8, %v5657_v10  ;;  %v5371_v23 = vmax.f32 %v12519_v22, %v7679_v21  ;;  %v5515_v36 = vmax.f32 %v12520_v63, %v8111_v59  ;;  %v3603_v37 = vpop.f32.mrb[243].mxu0  ;;  %v5043_v46 = vpop.f32.mrb[243].mxu1  ;;  %v12532_v58 = vld [vmem:[#allocation161_spill] sm:$0xff]  ;;  %v12533_v59 = vld [vmem:[#allocation162_spill] sm:$0xff]  ;;  %v12534_v22 = vld [vmem:[#allocation163_spill] sm:$0xff] }
 0x2c5   :  { %6094 = vst.msk [vmem:[%s12134_s3 + $0x2f0] sm:$0xff] %vm5999_vm4, %v5949_v11  ;;  %v5807_v28 = vadd.f32 %v11438_v8, %v5656_v20  ;;  %v5370_v39 = vmax.f32 %v12521_v38, %v3603_v37  ;;  %v5514_v48 = vmax.f32 %v12522_v60, %v5043_v46  ;;  %v12535_v60 = vld [vmem:[#allocation164_spill] sm:$0xff] }
 0x2c6   :  { %v5952_v49 = vmax.f32 %v5808_v15, 0.0  ;;  %v5659_v61 = vmax.f32 %v5371_v23, %v5515_v36 }
 0x2c7   :  { %v5951_v30 = vmax.f32 %v5807_v28, 0.0  ;;  %v5658_v50 = vmax.f32 %v5370_v39, %v5514_v48  ;;  %v7682_v51 = vpop.f32.mrb[244].mxu0  ;;  %v8114_v44 = vpop.f32.mrb[244].mxu1 }
 0x2c8   :  { %6097 = vst.msk [vmem:[%s12134_s3 + $0x308] sm:$0xff] %vm5999_vm4, %v5952_v49  ;;  %v5810_v45 = vadd.f32 %v11438_v8, %v5659_v61  ;;  %v5373_v17 = vmax.f32 %v12523_v16, %v7682_v51  ;;  %v5517_v0 = vmax.f32 %v12524_v47, %v8114_v44  ;;  %v3613_v18 = vpop.f32.mrb[245].mxu0  ;;  %v5053_v52 = vpop.f32.mrb[245].mxu1  ;;  %v12536_v49 = vld [vmem:[#allocation165_spill] sm:$0xff]  ;;  %v12537_v44 = vld [vmem:[#allocation166_spill] sm:$0xff]  ;;  %v12538_v16 = vld [vmem:[#allocation167_spill] sm:$0xff] }
 0x2c9   :  { %6096 = vst.msk [vmem:[%s12134_s3 + $0x300] sm:$0xff] %vm5999_vm4, %v5951_v30  ;;  %v5809_v53 = vadd.f32 %v11438_v8, %v5658_v50  ;;  %v5372_v1 = vmax.f32 %v12525_v19, %v3613_v18  ;;  %v5516_v55 = vmax.f32 %v12526_v54, %v5053_v52  ;;  %v12539_v54 = vld [vmem:[#allocation168_spill] sm:$0xff] }
 0x2ca   :  { %v5954_v40 = vmax.f32 %v5810_v45, 0.0  ;;  %v5661_v41 = vmax.f32 %v5373_v17, %v5517_v0 }
 0x2cb   :  { %v5953_v2 = vmax.f32 %v5809_v53, 0.0  ;;  %v5660_v3 = vmax.f32 %v5372_v1, %v5516_v55  ;;  %v7685_v12 = vpop.f32.mrb[246].mxu0  ;;  %v8117_v32 = vpop.f32.mrb[246].mxu1 }
 0x2cc   :  { %6099 = vst.msk [vmem:[%s12134_s3 + $0x318] sm:$0xff] %vm5999_vm4, %v5954_v40  ;;  %v5812_v42 = vadd.f32 %v11438_v8, %v5661_v41  ;;  %v5375_v33 = vmax.f32 %v12527_v43, %v7685_v12  ;;  %v5519_v29 = vmax.f32 %v12528_v62, %v8117_v32  ;;  %v3623_v24 = vpop.f32.mrb[247].mxu0  ;;  %v5063_v4 = vpop.f32.mrb[247].mxu1  ;;  %v12540_v40 = vld [vmem:[#allocation169_spill] sm:$0xff]  ;;  %v12541_v32 = vld [vmem:[#allocation170_spill] sm:$0xff]  ;;  %v12542_v43 = vld [vmem:[#allocation171_spill] sm:$0xff] }
 0x2cd   :  { %6098 = vst.msk [vmem:[%s12134_s3 + $0x310] sm:$0xff] %vm5999_vm4, %v5953_v2  ;;  %v5811_v5 = vadd.f32 %v11438_v8, %v5660_v3  ;;  %v5374_v34 = vmax.f32 %v12529_v25, %v3623_v24  ;;  %v5518_v7 = vmax.f32 %v12530_v6, %v5063_v4  ;;  %v12543_v6 = vld [vmem:[#allocation172_spill] sm:$0xff] }
 0x2ce   :  { %v5956_v35 = vmax.f32 %v5812_v42, 0.0  ;;  %v5663_v26 = vmax.f32 %v5375_v33, %v5519_v29 }
 0x2cf   :  { %v5955_v27 = vmax.f32 %v5811_v5, 0.0  ;;  %v5662_v56 = vmax.f32 %v5374_v34, %v5518_v7  ;;  %v7688_v57 = vpop.f32.mrb[248].mxu0  ;;  %v8120_v14 = vpop.f32.mrb[248].mxu1 }
 0x2d0   :  { %6101 = vst.msk [vmem:[%s12134_s3 + $0x328] sm:$0xff] %vm5999_vm4, %v5956_v35  ;;  %v5814_v13 = vadd.f32 %v11438_v8, %v5663_v26  ;;  %v5377_v31 = vmax.f32 %v12531_v9, %v7688_v57  ;;  %v5521_v10 = vmax.f32 %v12532_v58, %v8120_v14  ;;  %v3633_v11 = vpop.f32.mrb[249].mxu0  ;;  %v5073_v20 = vpop.f32.mrb[249].mxu1  ;;  %v12544_v35 = vld [vmem:[#allocation173_spill] sm:$0xff]  ;;  %v12545_v14 = vld [vmem:[#allocation174_spill] sm:$0xff]  ;;  %v12546_v9 = vld [vmem:[#allocation175_spill] sm:$0xff] }
 0x2d1   :  { %6100 = vst.msk [vmem:[%s12134_s3 + $0x320] sm:$0xff] %vm5999_vm4, %v5955_v27  ;;  %v5813_v21 = vadd.f32 %v11438_v8, %v5662_v56  ;;  %v5376_v15 = vmax.f32 %v12533_v59, %v3633_v11  ;;  %v5520_v23 = vmax.f32 %v12534_v22, %v5073_v20  ;;  %v12547_v22 = vld [vmem:[#allocation176_spill] sm:$0xff] }
 0x2d2   :  { %v5958_v63 = vmax.f32 %v5814_v13, 0.0  ;;  %v5665_v36 = vmax.f32 %v5377_v31, %v5521_v10 }
 0x2d3   :  { %v5957_v37 = vmax.f32 %v5813_v21, 0.0  ;;  %v5664_v46 = vmax.f32 %v5376_v15, %v5520_v23  ;;  %v7691_v28 = vpop.f32.mrb[250].mxu0  ;;  %v8123_v38 = vpop.f32.mrb[250].mxu1  ;;  %v11891_v15 = vld [vmem:[%s12133_s2] ss:$0 sm:$0xff] }
 0x2d4   :  { %6103 = vst.msk [vmem:[%s12134_s3 + $0x338] sm:$0xff] %vm5999_vm4, %v5958_v63  ;;  %v5816_v39 = vadd.f32 %v11438_v8, %v5665_v36  ;;  %v5379_v48 = vmax.f32 %v12535_v60, %v7691_v28  ;;  %v5523_v61 = vmax.f32 %v12536_v49, %v8123_v38  ;;  %v3643_v30 = vpop.f32.mrb[251].mxu0  ;;  %v5083_v50 = vpop.f32.mrb[251].mxu1  ;;  %v12548_v63 = vld [vmem:[#allocation177_spill] sm:$0xff]  ;;  %v12549_v38 = vld [vmem:[#allocation178_spill] sm:$0xff]  ;;  %v12550_v60 = vld [vmem:[#allocation179_spill] sm:$0xff] }
 0x2d5   :  { %6102 = vst.msk [vmem:[%s12134_s3 + $0x330] sm:$0xff] %vm5999_vm4, %v5957_v37  ;;  %v5815_v51 = vadd.f32 %v11438_v8, %v5664_v46  ;;  %v5378_v45 = vmax.f32 %v12537_v44, %v3643_v30  ;;  %v5522_v17 = vmax.f32 %v12538_v16, %v5083_v50  ;;  %v12551_v16 = vld [vmem:[#allocation180_spill] sm:$0xff] }
 0x2d6   :  { %v5960_v47 = vmax.f32 %v5816_v39, 0.0  ;;  %v5667_v0 = vmax.f32 %v5379_v48, %v5523_v61 }
 0x2d7   :  { %v5959_v18 = vmax.f32 %v5815_v51, 0.0  ;;  %v5666_v52 = vmax.f32 %v5378_v45, %v5522_v17  ;;  %v7694_v53 = vpop.f32.mrb[252].mxu0  ;;  %v8126_v19 = vpop.f32.mrb[252].mxu1 }
 0x2d8   :  { %6105 = vst.msk [vmem:[%s12134_s3 + $0x348] sm:$0xff] %vm5999_vm4, %v5960_v47  ;;  %v5818_v1 = vadd.f32 %v11438_v8, %v5667_v0  ;;  %v5381_v55 = vmax.f32 %v12539_v54, %v7694_v53  ;;  %v5525_v41 = vmax.f32 %v12540_v40, %v8126_v19  ;;  %v3653_v2 = vpop.f32.mrb[253].mxu0  ;;  %v5093_v3 = vpop.f32.mrb[253].mxu1  ;;  %v12552_v47 = vld [vmem:[#allocation181_spill] sm:$0xff]  ;;  %v12553_v19 = vld [vmem:[#allocation182_spill] sm:$0xff]  ;;  %v12554_v54 = vld [vmem:[#allocation183_spill] sm:$0xff] }
 0x2d9   :  { %6104 = vst.msk [vmem:[%s12134_s3 + $0x340] sm:$0xff] %vm5999_vm4, %v5959_v18  ;;  %v5817_v12 = vadd.f32 %v11438_v8, %v5666_v52  ;;  %v5380_v42 = vmax.f32 %v12541_v32, %v3653_v2  ;;  %v5524_v33 = vmax.f32 %v12542_v43, %v5093_v3  ;;  %v12555_v43 = vld [vmem:[#allocation184_spill] sm:$0xff] }
 0x2da   :  { %v5962_v62 = vmax.f32 %v5818_v1, 0.0  ;;  %v5669_v29 = vmax.f32 %v5381_v55, %v5525_v41 }
 0x2db   :  { %v5961_v24 = vmax.f32 %v5817_v12, 0.0  ;;  %v5668_v4 = vmax.f32 %v5380_v42, %v5524_v33  ;;  %v7697_v5 = vpop.f32.mrb[254].mxu0 }
 0x2dc   :  { %v8129_v25 = vpop.f32.mrb[254].mxu1  ;;  %6107 = vst.msk [vmem:[%s12134_s3 + $0x358] sm:$0xff] %vm5999_vm4, %v5962_v62  ;;  %v5820_v34 = vadd.f32 %v11438_v8, %v5669_v29  ;;  %v5383_v7 = vmax.f32 %v12543_v6, %v7697_v5  ;;  %v3663_v27 = vpop.f32.mrb[255].mxu0  ;;  %v12556_v62 = vld [vmem:[#allocation185_spill] sm:$0xff]  ;;  %v12558_v6 = vld [vmem:[#allocation187_spill] sm:$0xff] }
 0x2dd   :  { %v5527_v26 = vmax.f32 %v12544_v35, %v8129_v25  ;;  %v5103_v56 = vpop.f32.mrb[255].mxu1  ;;  %6106 = vst.msk [vmem:[%s12134_s3 + $0x350] sm:$0xff] %vm5999_vm4, %v5961_v24  ;;  %v5819_v57 = vadd.f32 %v11438_v8, %v5668_v4  ;;  %v5382_v13 = vmax.f32 %v12545_v14, %v3663_v27  ;;  %v12557_v25 = vld [vmem:[#allocation186_spill] sm:$0xff] }
 0x2de   :  { %v5526_v31 = vmax.f32 %v12546_v9, %v5103_v56  ;;  %v5964_v58 = vmax.f32 %v5820_v34, 0.0  ;;  %v12559_v9 = vld [vmem:[#allocation188_spill] sm:$0xff] }
 0x2df   :  { %v5671_v10 = vmax.f32 %v5383_v7, %v5527_v26  ;;  %v5963_v11 = vmax.f32 %v5819_v57, 0.0  ;;  %v7700_v21 = vpop.f32.mrb[0].mxu0 }
 0x2e0   :  { %v5670_v20 = vmax.f32 %v5382_v13, %v5526_v31  ;;  %v8132_v59 = vpop.f32.mrb[0].mxu1  ;;  %6109 = vst.msk [vmem:[%s12134_s3 + $0x368] sm:$0xff] %vm5999_vm4, %v5964_v58  ;;  %v5385_v23 = vmax.f32 %v12547_v22, %v7700_v21  ;;  %v3673_v37 = vpop.f32.mrb[1].mxu0  ;;  %v12560_v58 = vld [vmem:[#allocation189_spill] sm:$0xff]  ;;  %v12562_v22 = vld [vmem:[#allocation191_spill] sm:$0xff] }
 0x2e1   :  { %v5822_v8 = vadd.f32 %v11891_v15, %v5671_v10  ;;  %v5529_v36 = vmax.f32 %v12548_v63, %v8132_v59  ;;  %v5113_v46 = vpop.f32.mrb[1].mxu1  ;;  %6108 = vst.msk [vmem:[%s12134_s3 + $0x360] sm:$0xff] %vm5999_vm4, %v5963_v11  ;;  %v5384_v39 = vmax.f32 %v12549_v38, %v3673_v37  ;;  %v12561_v59 = vld [vmem:[#allocation190_spill] sm:$0xff] }
 0x2e2   :  { %v5821_v28 = vadd.f32 %v11891_v15, %v5670_v20  ;;  %v5528_v48 = vmax.f32 %v12550_v60, %v5113_v46  ;;  %v12563_v60 = vld [vmem:[#allocation192_spill] sm:$0xff] }
 0x2e3   :  { %v5966_v49 = vmax.f32 %v5822_v8, 0.0  ;;  %v5673_v61 = vmax.f32 %v5385_v23, %v5529_v36  ;;  %v7703_v51 = vpop.f32.mrb[2].mxu0 }
 0x2e4   :  { %v5965_v30 = vmax.f32 %v5821_v28, 0.0  ;;  %v5672_v50 = vmax.f32 %v5384_v39, %v5528_v48  ;;  %v8135_v44 = vpop.f32.mrb[2].mxu1  ;;  %v5387_v17 = vmax.f32 %v12551_v16, %v7703_v51  ;;  %v3683_v18 = vpop.f32.mrb[3].mxu0  ;;  %v12566_v16 = vld [vmem:[#allocation195_spill] sm:$0xff] }
 0x2e5   :  { %6111 = vst.msk [vmem:[%s12134_s3 + $0x378] sm:$0xff] %vm5999_vm4, %v5966_v49  ;;  %v5824_v45 = vadd.f32 %v11891_v15, %v5673_v61  ;;  %v5531_v0 = vmax.f32 %v12552_v47, %v8135_v44  ;;  %v5123_v52 = vpop.f32.mrb[3].mxu1  ;;  %v5386_v1 = vmax.f32 %v12553_v19, %v3683_v18  ;;  %v12564_v49 = vld [vmem:[#allocation193_spill] sm:$0xff]  ;;  %v12565_v44 = vld [vmem:[#allocation194_spill] sm:$0xff] }
 0x2e6   :  { %6110 = vst.msk [vmem:[%s12134_s3 + $0x370] sm:$0xff] %vm5999_vm4, %v5965_v30  ;;  %v5823_v53 = vadd.f32 %v11891_v15, %v5672_v50  ;;  %v5530_v55 = vmax.f32 %v12554_v54, %v5123_v52  ;;  %v12567_v54 = vld [vmem:[#allocation196_spill] sm:$0xff] }
 0x2e7   :  { %v5968_v40 = vmax.f32 %v5824_v45, 0.0  ;;  %v5675_v41 = vmax.f32 %v5387_v17, %v5531_v0  ;;  %v7706_v12 = vpop.f32.mrb[4].mxu0 }
 0x2e8   :  { %v5967_v2 = vmax.f32 %v5823_v53, 0.0  ;;  %v5674_v3 = vmax.f32 %v5386_v1, %v5530_v55  ;;  %v8138_v32 = vpop.f32.mrb[4].mxu1  ;;  %v5389_v33 = vmax.f32 %v12555_v43, %v7706_v12  ;;  %v3693_v24 = vpop.f32.mrb[5].mxu0  ;;  %v12570_v43 = vld [vmem:[#allocation199_spill] sm:$0xff] }
 0x2e9   :  { %6113 = vst.msk [vmem:[%s12134_s3 + $0x388] sm:$0xff] %vm5999_vm4, %v5968_v40  ;;  %v5826_v42 = vadd.f32 %v11891_v15, %v5675_v41  ;;  %v5533_v29 = vmax.f32 %v12556_v62, %v8138_v32  ;;  %v5133_v4 = vpop.f32.mrb[5].mxu1  ;;  %v5388_v34 = vmax.f32 %v12557_v25, %v3693_v24  ;;  %v12568_v40 = vld [vmem:[#allocation197_spill] sm:$0xff]  ;;  %v12569_v32 = vld [vmem:[#allocation198_spill] sm:$0xff] }
 0x2ea   :  { %6112 = vst.msk [vmem:[%s12134_s3 + $0x380] sm:$0xff] %vm5999_vm4, %v5967_v2  ;;  %v5825_v5 = vadd.f32 %v11891_v15, %v5674_v3  ;;  %v5532_v7 = vmax.f32 %v12558_v6, %v5133_v4  ;;  %v12571_v6 = vld [vmem:[#allocation200_spill] sm:$0xff] }
 0x2eb   :  { %v5970_v35 = vmax.f32 %v5826_v42, 0.0  ;;  %v5677_v26 = vmax.f32 %v5389_v33, %v5533_v29  ;;  %v7709_v57 = vpop.f32.mrb[6].mxu0 }
 0x2ec   :  { %v5969_v27 = vmax.f32 %v5825_v5, 0.0  ;;  %v5676_v56 = vmax.f32 %v5388_v34, %v5532_v7  ;;  %v8141_v14 = vpop.f32.mrb[6].mxu1  ;;  %v5391_v31 = vmax.f32 %v12559_v9, %v7709_v57  ;;  %v3703_v11 = vpop.f32.mrb[7].mxu0  ;;  %v12574_v9 = vld [vmem:[#allocation203_spill] sm:$0xff] }
 0x2ed   :  { %6115 = vst.msk [vmem:[%s12134_s3 + $0x398] sm:$0xff] %vm5999_vm4, %v5970_v35  ;;  %v5828_v13 = vadd.f32 %v11891_v15, %v5677_v26  ;;  %v5535_v10 = vmax.f32 %v12560_v58, %v8141_v14  ;;  %v5143_v20 = vpop.f32.mrb[7].mxu1  ;;  %v5390_v8 = vmax.f32 %v12561_v59, %v3703_v11  ;;  %v12572_v35 = vld [vmem:[#allocation201_spill] sm:$0xff]  ;;  %v12573_v14 = vld [vmem:[#allocation202_spill] sm:$0xff] }
 0x2ee   :  { %6114 = vst.msk [vmem:[%s12134_s3 + $0x390] sm:$0xff] %vm5999_vm4, %v5969_v27  ;;  %v5827_v21 = vadd.f32 %v11891_v15, %v5676_v56  ;;  %v5534_v23 = vmax.f32 %v12562_v22, %v5143_v20  ;;  %v12575_v22 = vld [vmem:[#allocation204_spill] sm:$0xff] }
 0x2ef   :  { %v5972_v63 = vmax.f32 %v5828_v13, 0.0  ;;  %v5679_v36 = vmax.f32 %v5391_v31, %v5535_v10  ;;  %v7712_v28 = vpop.f32.mrb[8].mxu0 }
 0x2f0   :  { %v5971_v37 = vmax.f32 %v5827_v21, 0.0  ;;  %v5678_v46 = vmax.f32 %v5390_v8, %v5534_v23  ;;  %v8144_v38 = vpop.f32.mrb[8].mxu1  ;;  %v5393_v48 = vmax.f32 %v12563_v60, %v7712_v28  ;;  %v3713_v30 = vpop.f32.mrb[9].mxu0  ;;  %v12578_v60 = vld [vmem:[#allocation207_spill] sm:$0xff] }
 0x2f1   :  { %6117 = vst.msk [vmem:[%s12134_s3 + $0x3a8] sm:$0xff] %vm5999_vm4, %v5972_v63  ;;  %v5830_v39 = vadd.f32 %v11891_v15, %v5679_v36  ;;  %v5537_v61 = vmax.f32 %v12564_v49, %v8144_v38  ;;  %v5153_v50 = vpop.f32.mrb[9].mxu1  ;;  %v5392_v45 = vmax.f32 %v12565_v44, %v3713_v30  ;;  %v12576_v63 = vld [vmem:[#allocation205_spill] sm:$0xff]  ;;  %v12577_v38 = vld [vmem:[#allocation206_spill] sm:$0xff] }
 0x2f2   :  { %6116 = vst.msk [vmem:[%s12134_s3 + $0x3a0] sm:$0xff] %vm5999_vm4, %v5971_v37  ;;  %v5829_v51 = vadd.f32 %v11891_v15, %v5678_v46  ;;  %v5536_v17 = vmax.f32 %v12566_v16, %v5153_v50  ;;  %v12579_v16 = vld [vmem:[#allocation208_spill] sm:$0xff] }
 0x2f3   :  { %v5974_v47 = vmax.f32 %v5830_v39, 0.0  ;;  %v5681_v0 = vmax.f32 %v5393_v48, %v5537_v61  ;;  %v7715_v53 = vpop.f32.mrb[10].mxu0 }
 0x2f4   :  { %v5973_v18 = vmax.f32 %v5829_v51, 0.0  ;;  %v5680_v52 = vmax.f32 %v5392_v45, %v5536_v17  ;;  %v8147_v19 = vpop.f32.mrb[10].mxu1  ;;  %v5395_v55 = vmax.f32 %v12567_v54, %v7715_v53  ;;  %v3723_v2 = vpop.f32.mrb[11].mxu0  ;;  %v12582_v54 = vld [vmem:[#allocation211_spill] sm:$0xff] }
 0x2f5   :  { %6119 = vst.msk [vmem:[%s12134_s3 + $0x3b8] sm:$0xff] %vm5999_vm4, %v5974_v47  ;;  %v5832_v1 = vadd.f32 %v11891_v15, %v5681_v0  ;;  %v5539_v41 = vmax.f32 %v12568_v40, %v8147_v19  ;;  %v5163_v3 = vpop.f32.mrb[11].mxu1  ;;  %v5394_v42 = vmax.f32 %v12569_v32, %v3723_v2  ;;  %v12580_v47 = vld [vmem:[#allocation209_spill] sm:$0xff]  ;;  %v12581_v19 = vld [vmem:[#allocation210_spill] sm:$0xff] }
 0x2f6   :  { %6118 = vst.msk [vmem:[%s12134_s3 + $0x3b0] sm:$0xff] %vm5999_vm4, %v5973_v18  ;;  %v5831_v12 = vadd.f32 %v11891_v15, %v5680_v52  ;;  %v5538_v33 = vmax.f32 %v12570_v43, %v5163_v3  ;;  %v12583_v43 = vld [vmem:[#allocation212_spill] sm:$0xff] }
 0x2f7   :  { %v5976_v62 = vmax.f32 %v5832_v1, 0.0  ;;  %v5683_v29 = vmax.f32 %v5395_v55, %v5539_v41  ;;  %v7718_v5 = vpop.f32.mrb[12].mxu0 }
 0x2f8   :  { %v5975_v24 = vmax.f32 %v5831_v12, 0.0  ;;  %v5682_v4 = vmax.f32 %v5394_v42, %v5538_v33  ;;  %v8150_v25 = vpop.f32.mrb[12].mxu1  ;;  %v5397_v7 = vmax.f32 %v12571_v6, %v7718_v5  ;;  %v3733_v27 = vpop.f32.mrb[13].mxu0  ;;  %v12586_v6 = vld [vmem:[#allocation215_spill] sm:$0xff] }
 0x2f9   :  { %6121 = vst.msk [vmem:[%s12134_s3 + $0x3c8] sm:$0xff] %vm5999_vm4, %v5976_v62  ;;  %v5834_v34 = vadd.f32 %v11891_v15, %v5683_v29  ;;  %v5541_v26 = vmax.f32 %v12572_v35, %v8150_v25  ;;  %v5173_v56 = vpop.f32.mrb[13].mxu1  ;;  %v5396_v13 = vmax.f32 %v12573_v14, %v3733_v27  ;;  %v12584_v62 = vld [vmem:[#allocation213_spill] sm:$0xff]  ;;  %v12585_v25 = vld [vmem:[#allocation214_spill] sm:$0xff] }
 0x2fa   :  { %6120 = vst.msk [vmem:[%s12134_s3 + $0x3c0] sm:$0xff] %vm5999_vm4, %v5975_v24  ;;  %v5833_v57 = vadd.f32 %v11891_v15, %v5682_v4  ;;  %v5540_v31 = vmax.f32 %v12574_v9, %v5173_v56  ;;  %v12587_v9 = vld [vmem:[#allocation216_spill] sm:$0xff] }
 0x2fb   :  { %v5978_v58 = vmax.f32 %v5834_v34, 0.0  ;;  %v5685_v10 = vmax.f32 %v5397_v7, %v5541_v26  ;;  %v7721_v21 = vpop.f32.mrb[14].mxu0 }
 0x2fc   :  { %v5977_v11 = vmax.f32 %v5833_v57, 0.0  ;;  %v5684_v20 = vmax.f32 %v5396_v13, %v5540_v31  ;;  %v8153_v59 = vpop.f32.mrb[14].mxu1  ;;  %v5399_v23 = vmax.f32 %v12575_v22, %v7721_v21  ;;  %v3743_v37 = vpop.f32.mrb[15].mxu0  ;;  %v12590_v22 = vld [vmem:[#allocation219_spill] sm:$0xff] }
 0x2fd   :  { %6123 = vst.msk [vmem:[%s12134_s3 + $0x3d8] sm:$0xff] %vm5999_vm4, %v5978_v58  ;;  %v5836_v8 = vadd.f32 %v11891_v15, %v5685_v10  ;;  %v5543_v36 = vmax.f32 %v12576_v63, %v8153_v59  ;;  %v5183_v46 = vpop.f32.mrb[15].mxu1  ;;  %v5398_v39 = vmax.f32 %v12577_v38, %v3743_v37  ;;  %v12588_v58 = vld [vmem:[#allocation217_spill] sm:$0xff]  ;;  %v12589_v59 = vld [vmem:[#allocation218_spill] sm:$0xff] }
 0x2fe   :  { %6122 = vst.msk [vmem:[%s12134_s3 + $0x3d0] sm:$0xff] %vm5999_vm4, %v5977_v11  ;;  %v5835_v28 = vadd.f32 %v11891_v15, %v5684_v20  ;;  %v5542_v48 = vmax.f32 %v12578_v60, %v5183_v46  ;;  %v12591_v60 = vld [vmem:[#allocation220_spill] sm:$0xff] }
 0x2ff   :  { %v5980_v49 = vmax.f32 %v5836_v8, 0.0  ;;  %v5687_v61 = vmax.f32 %v5399_v23, %v5543_v36  ;;  %v7724_v51 = vpop.f32.mrb[16].mxu0 }
 0x300   :  { %v5979_v30 = vmax.f32 %v5835_v28, 0.0  ;;  %v5686_v50 = vmax.f32 %v5398_v39, %v5542_v48  ;;  %v8156_v44 = vpop.f32.mrb[16].mxu1  ;;  %v5401_v17 = vmax.f32 %v12579_v16, %v7724_v51  ;;  %v3753_v18 = vpop.f32.mrb[17].mxu0  ;;  %v12594_v16 = vld [vmem:[#allocation223_spill] sm:$0xff] }
 0x301   :  { %6125 = vst.msk [vmem:[%s12134_s3 + $0x3e8] sm:$0xff] %vm5999_vm4, %v5980_v49  ;;  %v5838_v45 = vadd.f32 %v11891_v15, %v5687_v61  ;;  %v5545_v0 = vmax.f32 %v12580_v47, %v8156_v44  ;;  %v5193_v52 = vpop.f32.mrb[17].mxu1  ;;  %v5400_v1 = vmax.f32 %v12581_v19, %v3753_v18  ;;  %v12592_v49 = vld [vmem:[#allocation221_spill] sm:$0xff]  ;;  %v12593_v44 = vld [vmem:[#allocation222_spill] sm:$0xff] }
 0x302   :  { %6124 = vst.msk [vmem:[%s12134_s3 + $0x3e0] sm:$0xff] %vm5999_vm4, %v5979_v30  ;;  %v5837_v53 = vadd.f32 %v11891_v15, %v5686_v50  ;;  %v5544_v55 = vmax.f32 %v12582_v54, %v5193_v52  ;;  %v12595_v54 = vld [vmem:[#allocation224_spill] sm:$0xff] }
 0x303   :  { %v5982_v40 = vmax.f32 %v5838_v45, 0.0  ;;  %v5689_v41 = vmax.f32 %v5401_v17, %v5545_v0  ;;  %v7727_v12 = vpop.f32.mrb[18].mxu0 }
 0x304   :  { %v5981_v2 = vmax.f32 %v5837_v53, 0.0  ;;  %v5688_v3 = vmax.f32 %v5400_v1, %v5544_v55  ;;  %v8159_v32 = vpop.f32.mrb[18].mxu1  ;;  %v5403_v33 = vmax.f32 %v12583_v43, %v7727_v12  ;;  %v3763_v24 = vpop.f32.mrb[19].mxu0  ;;  %v12598_v43 = vld [vmem:[#allocation227_spill] sm:$0xff] }
 0x305   :  { %6127 = vst.msk [vmem:[%s12134_s3 + $0x3f8] sm:$0xff] %vm5999_vm4, %v5982_v40  ;;  %v5840_v42 = vadd.f32 %v11891_v15, %v5689_v41  ;;  %v5547_v29 = vmax.f32 %v12584_v62, %v8159_v32  ;;  %v5203_v4 = vpop.f32.mrb[19].mxu1  ;;  %v5402_v34 = vmax.f32 %v12585_v25, %v3763_v24  ;;  %v12596_v40 = vld [vmem:[#allocation225_spill] sm:$0xff]  ;;  %v12597_v32 = vld [vmem:[#allocation226_spill] sm:$0xff] }
 0x306   :  { %6126 = vst.msk [vmem:[%s12134_s3 + $0x3f0] sm:$0xff] %vm5999_vm4, %v5981_v2  ;;  %v5839_v5 = vadd.f32 %v11891_v15, %v5688_v3  ;;  %v5546_v7 = vmax.f32 %v12586_v6, %v5203_v4  ;;  %v12599_v6 = vld [vmem:[#allocation228_spill] sm:$0xff] }
 0x307   :  { %v5984_v35 = vmax.f32 %v5840_v42, 0.0  ;;  %v5691_v26 = vmax.f32 %v5403_v33, %v5547_v29  ;;  %v7730_v57 = vpop.f32.mrb[20].mxu0 }
 0x308   :  { %v5983_v27 = vmax.f32 %v5839_v5, 0.0  ;;  %v5690_v56 = vmax.f32 %v5402_v34, %v5546_v7  ;;  %v8162_v14 = vpop.f32.mrb[20].mxu1  ;;  %v5405_v31 = vmax.f32 %v12587_v9, %v7730_v57  ;;  %v3773_v11 = vpop.f32.mrb[21].mxu0  ;;  %v12602_v9 = vld [vmem:[#allocation231_spill] sm:$0xff] }
 0x309   :  { %6129 = vst.msk [vmem:[%s12134_s3 + $0x408] sm:$0xff] %vm5999_vm4, %v5984_v35  ;;  %v5842_v13 = vadd.f32 %v11891_v15, %v5691_v26  ;;  %v5549_v10 = vmax.f32 %v12588_v58, %v8162_v14  ;;  %v5213_v20 = vpop.f32.mrb[21].mxu1  ;;  %v5404_v8 = vmax.f32 %v12589_v59, %v3773_v11  ;;  %v12600_v35 = vld [vmem:[#allocation229_spill] sm:$0xff]  ;;  %v12601_v14 = vld [vmem:[#allocation230_spill] sm:$0xff] }
 0x30a   :  { %6128 = vst.msk [vmem:[%s12134_s3 + $0x400] sm:$0xff] %vm5999_vm4, %v5983_v27  ;;  %v5841_v21 = vadd.f32 %v11891_v15, %v5690_v56  ;;  %v5548_v23 = vmax.f32 %v12590_v22, %v5213_v20  ;;  %v12603_v22 = vld [vmem:[#allocation232_spill] sm:$0xff] }
 0x30b   :  { %v5986_v63 = vmax.f32 %v5842_v13, 0.0  ;;  %v5693_v36 = vmax.f32 %v5405_v31, %v5549_v10  ;;  %v7733_v28 = vpop.f32.mrb[22].mxu0 }
 0x30c   :  { %v5985_v37 = vmax.f32 %v5841_v21, 0.0  ;;  %v5692_v46 = vmax.f32 %v5404_v8, %v5548_v23  ;;  %v8165_v38 = vpop.f32.mrb[22].mxu1  ;;  %v5407_v48 = vmax.f32 %v12591_v60, %v7733_v28  ;;  %v3783_v30 = vpop.f32.mrb[23].mxu0  ;;  %v12606_v60 = vld [vmem:[#allocation235_spill] sm:$0xff] }
 0x30d   :  { %6131 = vst.msk [vmem:[%s12134_s3 + $0x418] sm:$0xff] %vm5999_vm4, %v5986_v63  ;;  %v5844_v39 = vadd.f32 %v11891_v15, %v5693_v36  ;;  %v5551_v61 = vmax.f32 %v12592_v49, %v8165_v38  ;;  %v5223_v50 = vpop.f32.mrb[23].mxu1  ;;  %v5406_v45 = vmax.f32 %v12593_v44, %v3783_v30  ;;  %v12604_v63 = vld [vmem:[#allocation233_spill] sm:$0xff]  ;;  %v12605_v38 = vld [vmem:[#allocation234_spill] sm:$0xff] }
 0x30e   :  { %6130 = vst.msk [vmem:[%s12134_s3 + $0x410] sm:$0xff] %vm5999_vm4, %v5985_v37  ;;  %v5843_v51 = vadd.f32 %v11891_v15, %v5692_v46  ;;  %v5550_v17 = vmax.f32 %v12594_v16, %v5223_v50  ;;  %v12607_v16 = vld [vmem:[#allocation236_spill] sm:$0xff] }
 0x30f   :  { %v5988_v47 = vmax.f32 %v5844_v39, 0.0  ;;  %v5695_v0 = vmax.f32 %v5407_v48, %v5551_v61  ;;  %v7736_v53 = vpop.f32.mrb[24].mxu0 }
 0x310   :  { %v5987_v18 = vmax.f32 %v5843_v51, 0.0  ;;  %v5694_v52 = vmax.f32 %v5406_v45, %v5550_v17  ;;  %v8168_v19 = vpop.f32.mrb[24].mxu1  ;;  %v5409_v55 = vmax.f32 %v12595_v54, %v7736_v53  ;;  %v3793_v2 = vpop.f32.mrb[25].mxu0  ;;  %v12610_v54 = vld [vmem:[#allocation239_spill] sm:$0xff] }
 0x311   :  { %6133 = vst.msk [vmem:[%s12134_s3 + $0x428] sm:$0xff] %vm5999_vm4, %v5988_v47  ;;  %v5846_v1 = vadd.f32 %v11891_v15, %v5695_v0  ;;  %v5553_v41 = vmax.f32 %v12596_v40, %v8168_v19  ;;  %v5233_v3 = vpop.f32.mrb[25].mxu1  ;;  %v5408_v42 = vmax.f32 %v12597_v32, %v3793_v2  ;;  %v12608_v47 = vld [vmem:[#allocation237_spill] sm:$0xff]  ;;  %v12609_v19 = vld [vmem:[#allocation238_spill] sm:$0xff] }
 0x312   :  { %6132 = vst.msk [vmem:[%s12134_s3 + $0x420] sm:$0xff] %vm5999_vm4, %v5987_v18  ;;  %v5845_v12 = vadd.f32 %v11891_v15, %v5694_v52  ;;  %v5552_v33 = vmax.f32 %v12598_v43, %v5233_v3 }
 0x313   :  { %v5990_v62 = vmax.f32 %v5846_v1, 0.0  ;;  %v5697_v29 = vmax.f32 %v5409_v55, %v5553_v41  ;;  %v7739_v5 = vpop.f32.mrb[26].mxu0 }
 0x314   :  { %v5989_v24 = vmax.f32 %v5845_v12, 0.0  ;;  %v5696_v4 = vmax.f32 %v5408_v42, %v5552_v33  ;;  %v8171_v25 = vpop.f32.mrb[26].mxu1  ;;  %v5411_v7 = vmax.f32 %v12599_v6, %v7739_v5  ;;  %v3803_v27 = vpop.f32.mrb[27].mxu0 }
 0x315   :  { %6135 = vst.msk [vmem:[%s12134_s3 + $0x438] sm:$0xff] %vm5999_vm4, %v5990_v62  ;;  %v5848_v34 = vadd.f32 %v11891_v15, %v5697_v29  ;;  %v5555_v26 = vmax.f32 %v12600_v35, %v8171_v25  ;;  %v5243_v56 = vpop.f32.mrb[27].mxu1  ;;  %v5410_v13 = vmax.f32 %v12601_v14, %v3803_v27 }
 0x316   :  { %6134 = vst.msk [vmem:[%s12134_s3 + $0x430] sm:$0xff] %vm5999_vm4, %v5989_v24  ;;  %v5847_v57 = vadd.f32 %v11891_v15, %v5696_v4  ;;  %v5554_v31 = vmax.f32 %v12602_v9, %v5243_v56 }
 0x317   :  { %v5992_v58 = vmax.f32 %v5848_v34, 0.0  ;;  %v5699_v10 = vmax.f32 %v5411_v7, %v5555_v26  ;;  %v7742_v21 = vpop.f32.mrb[28].mxu0 }
 0x318   :  { %v5991_v11 = vmax.f32 %v5847_v57, 0.0  ;;  %v5698_v20 = vmax.f32 %v5410_v13, %v5554_v31  ;;  %v8174_v59 = vpop.f32.mrb[28].mxu1  ;;  %v5413_v23 = vmax.f32 %v12603_v22, %v7742_v21  ;;  %v3813_v37 = vpop.f32.mrb[29].mxu0 }
 0x319   :  { %6137 = vst.msk [vmem:[%s12134_s3 + $0x448] sm:$0xff] %vm5999_vm4, %v5992_v58  ;;  %v5850_v8 = vadd.f32 %v11891_v15, %v5699_v10  ;;  %v5557_v36 = vmax.f32 %v12604_v63, %v8174_v59  ;;  %v5253_v46 = vpop.f32.mrb[29].mxu1  ;;  %v5412_v39 = vmax.f32 %v12605_v38, %v3813_v37 }
 0x31a   :  { %6136 = vst.msk [vmem:[%s12134_s3 + $0x440] sm:$0xff] %vm5999_vm4, %v5991_v11  ;;  %v5849_v28 = vadd.f32 %v11891_v15, %v5698_v20  ;;  %v5556_v48 = vmax.f32 %v12606_v60, %v5253_v46 }
 0x31b   :  { %v5994_v49 = vmax.f32 %v5850_v8, 0.0  ;;  %v5701_v61 = vmax.f32 %v5413_v23, %v5557_v36  ;;  %v7745_v51 = vpop.f32.mrb[30].mxu0 }
 0x31c   :  { %v5993_v30 = vmax.f32 %v5849_v28, 0.0  ;;  %v5700_v50 = vmax.f32 %v5412_v39, %v5556_v48  ;;  %v8177_v44 = vpop.f32.mrb[30].mxu1  ;;  %v5415_v17 = vmax.f32 %v12607_v16, %v7745_v51  ;;  %v3823_v18 = vpop.f32.mrb[31].mxu0 }
 0x31d   :  { %6139 = vst.msk [vmem:[%s12134_s3 + $0x458] sm:$0xff] %vm5999_vm4, %v5994_v49  ;;  %v5852_v45 = vadd.f32 %v11891_v15, %v5701_v61  ;;  %v5559_v0 = vmax.f32 %v12608_v47, %v8177_v44  ;;  %v5263_v52 = vpop.f32.mrb[31].mxu1  ;;  %v5414_v1 = vmax.f32 %v12609_v19, %v3823_v18 }
 0x31e   :  { %6138 = vst.msk [vmem:[%s12134_s3 + $0x450] sm:$0xff] %vm5999_vm4, %v5993_v30  ;;  %v5851_v53 = vadd.f32 %v11891_v15, %v5700_v50  ;;  %v5558_v55 = vmax.f32 %v12610_v54, %v5263_v52 }
 0x31f   :  { %v5996_v40 = vmax.f32 %v5852_v45, 0.0  ;;  %v5703_v41 = vmax.f32 %v5415_v17, %v5559_v0 }
 0x320   :  { %v5995_v2 = vmax.f32 %v5851_v53, 0.0  ;;  %v5702_v3 = vmax.f32 %v5414_v1, %v5558_v55 }
 0x321   :  { %6141 = vst.msk [vmem:[%s12134_s3 + $0x468] sm:$0xff] %vm5999_vm4, %v5996_v40  ;;  %v5854_v12 = vadd.f32 %v11891_v15, %v5703_v41 }
 0x322   :  { %6140 = vst.msk [vmem:[%s12134_s3 + $0x460] sm:$0xff] %vm5999_vm4, %v5995_v2  ;;  %v5853_v32 = vadd.f32 %v11891_v15, %v5702_v3 }
 0x323   :  { %v5998_v42 = vmax.f32 %v5854_v12, 0.0 }
 0x324   :  { %v5997_v43 = vmax.f32 %v5853_v32, 0.0 }
 0x325   :  { %6143 = vst.msk [vmem:[%s12134_s3 + $0x478] sm:$0xff] %vm5999_vm4, %v5998_v42 }
 0x326   :  { %6142 = vst.msk [vmem:[%s12134_s3 + $0x470] sm:$0xff] %vm5999_vm4, %v5997_v43 }

// kernel: net_forward.3
= control target key start
LH: loop header
LB: loop body
LE: loop exit
PB: predicated region body
PF: predicated region fallthrough
CT: control target
= control target key end

     0   :  { %s5158_s0 = inlined_call_operand.vmem [shape: f32[32,2400], index: 0, kind: input, shape index: {}]   ;;  %s5159_s1 = inlined_call_operand.vmem [shape: f32[2400,256], index: 1, kind: input, shape index: {}]   ;;  %s5160_s2 = inlined_call_operand.vmem [shape: f32[1,256], index: 2, kind: input, shape index: {}]   ;;  %s5161_s3 = inlined_call_operand.vmem [shape: f32[256,120], index: 3, kind: input, shape index: {}]   ;;  %s5162_s4 = inlined_call_operand.vmem [shape: f32[1,120], index: 4, kind: input, shape index: {}]   ;;  %s5163_s5 = inlined_call_operand.vmem [shape: f32[120,84], index: 5, kind: input, shape index: {}]   ;;  %s5164_s6 = inlined_call_operand.vmem [shape: f32[1,84], index: 6, kind: input, shape index: {}]   ;;  %s5165_s7 = inlined_call_operand.vmem [shape: f32[84,10], index: 7, kind: input, shape index: {}]   ;;  %s5166_s8 = inlined_call_operand.vmem [shape: f32[1,10], index: 8, kind: input, shape index: {}]   ;;  %s5167_s9 = inlined_call_operand.hbm [shape: f32[8,10], index: 9, kind: output, shape index: {}]  }
   0x1   :  { %v110_v0 = vld [vmem:[%s5159_s1 + $0x8] sm:$0xff]  ;;  %v112_v1 = vld [vmem:[%s5159_s1 + $0x18] sm:$0xff]  ;;  %v109_v5 = vld [vmem:[%s5159_s1] sm:$0xff] }
   0x2   :  { %v366_v2 = vld [vmem:[%s5159_s1 + $0x808] sm:$0xff]  ;;  %v2084_v3 = vpack.c.bf16 %v112_v1, %v110_v0  ;;  %v368_v4 = vld [vmem:[%s5159_s1 + $0x818] sm:$0xff]  ;;  %v111_v6 = vld [vmem:[%s5159_s1 + $0x10] sm:$0xff] }
   0x3   :  { %v2340_v7 = vpack.c.bf16 %v368_v4, %v366_v2  ;;  %v2086_v8 = vpack.c.bf16 %v111_v6, %v109_v5  ;;  %v365_v9 = vld [vmem:[%s5159_s1 + $0x800] sm:$0xff]  ;;  %v367_v10 = vld [vmem:[%s5159_s1 + $0x810] sm:$0xff]  ;;  %v114_v11 = vld [vmem:[%s5159_s1 + $0x28] sm:$0xff] }
   0x4   :  { %2085 = vmatprep.subr.bf16.mxu1 %v2084_v3  ;;  %v2342_v12 = vpack.c.bf16 %v367_v10, %v365_v9  ;;  %v116_v13 = vld [vmem:[%s5159_s1 + $0x38] sm:$0xff]  ;;  %v370_v14 = vld [vmem:[%s5159_s1 + $0x828] sm:$0xff]  ;;  %v113_v18 = vld [vmem:[%s5159_s1 + $0x20] sm:$0xff] }
   0x5   :  { %v372_v15 = vld [vmem:[%s5159_s1 + $0x838] sm:$0xff]  ;;  %2341 = vmatprep.subr.bf16.mxu0 %v2340_v7  ;;  %2087 = vmatpush1.bf16.msra.mxu1 %v2086_v8  ;;  %v2088_v16 = vpack.c.bf16 %v116_v13, %v114_v11  ;;  %v115_v19 = vld [vmem:[%s5159_s1 + $0x30] sm:$0xff]  ;;  %v369_v20 = vld [vmem:[%s5159_s1 + $0x820] sm:$0xff] }
   0x6   :  { %v2344_v17 = vpack.c.bf16 %v372_v15, %v370_v14  ;;  %2343 = vmatpush1.bf16.msra.mxu0 %v2342_v12  ;;  %v2090_v21 = vpack.c.bf16 %v115_v19, %v113_v18  ;;  %v371_v22 = vld [vmem:[%s5159_s1 + $0x830] sm:$0xff]  ;;  %v118_v23 = vld [vmem:[%s5159_s1 + $0x48] sm:$0xff]  ;;  %v120_v24 = vld [vmem:[%s5159_s1 + $0x58] sm:$0xff] }
   0x7   :  { %2089 = vmatprep.subr.bf16.mxu1 %v2088_v16  ;;  %v2346_v25 = vpack.c.bf16 %v371_v22, %v369_v20  ;;  %v2092_v26 = vpack.c.bf16 %v120_v24, %v118_v23  ;;  %v374_v27 = vld [vmem:[%s5159_s1 + $0x848] sm:$0xff]  ;;  %v376_v28 = vld [vmem:[%s5159_s1 + $0x858] sm:$0xff]  ;;  %v117_v29 = vld [vmem:[%s5159_s1 + $0x40] sm:$0xff] }
   0x8   :  { %2345 = vmatprep.subr.bf16.mxu0 %v2344_v17  ;;  %v2348_v30 = vpack.c.bf16 %v376_v28, %v374_v27  ;;  %v119_v31 = vld [vmem:[%s5159_s1 + $0x50] sm:$0xff]  ;;  %v373_v32 = vld [vmem:[%s5159_s1 + $0x840] sm:$0xff]  ;;  %v122_v35 = vld [vmem:[%s5159_s1 + $0x68] sm:$0xff] }
   0x9   :  { %v375_v33 = vld [vmem:[%s5159_s1 + $0x850] sm:$0xff]  ;;  %2091 = vmatpush1.bf16.msra.mxu1 %v2090_v21  ;;  %v2094_v34 = vpack.c.bf16 %v119_v31, %v117_v29  ;;  %v124_v36 = vld [vmem:[%s5159_s1 + $0x78] sm:$0xff]  ;;  %v378_v37 = vld [vmem:[%s5159_s1 + $0x868] sm:$0xff] }
   0xa   :  { %2347 = vmatpush1.bf16.msra.mxu0 %v2346_v25  ;;  %2093 = vmatprep.subr.bf16.mxu1 %v2092_v26  ;;  %v2350_v38 = vpack.c.bf16 %v375_v33, %v373_v32  ;;  %v2096_v39 = vpack.c.bf16 %v124_v36, %v122_v35  ;;  %v380_v40 = vld [vmem:[%s5159_s1 + $0x878] sm:$0xff]  ;;  %v121_v41 = vld [vmem:[%s5159_s1 + $0x60] sm:$0xff]  ;;  %v123_v42 = vld [vmem:[%s5159_s1 + $0x70] sm:$0xff] }
   0xb   :  { %2349 = vmatprep.subr.bf16.mxu0 %v2348_v30  ;;  %v2352_v43 = vpack.c.bf16 %v380_v40, %v378_v37  ;;  %v377_v44 = vld [vmem:[%s5159_s1 + $0x860] sm:$0xff]  ;;  %v379_v45 = vld [vmem:[%s5159_s1 + $0x870] sm:$0xff]  ;;  %v126_v46 = vld [vmem:[%s5159_s1 + $0x88] sm:$0xff]  ;;  %v2098_v50 = vpack.c.bf16 %v123_v42, %v121_v41 }
   0xc   :  { %v128_v47 = vld [vmem:[%s5159_s1 + $0x98] sm:$0xff]  ;;  %v382_v48 = vld [vmem:[%s5159_s1 + $0x888] sm:$0xff]  ;;  %v2354_v51 = vpack.c.bf16 %v379_v45, %v377_v44  ;;  %v125_v53 = vld [vmem:[%s5159_s1 + $0x80] sm:$0xff] }
   0xd   :  { %v384_v49 = vld [vmem:[%s5159_s1 + $0x898] sm:$0xff]  ;;  %2095 = vmatpush1.bf16.msra.mxu1 %v2094_v34  ;;  %v2100_v52 = vpack.c.bf16 %v128_v47, %v126_v46  ;;  %v127_v54 = vld [vmem:[%s5159_s1 + $0x90] sm:$0xff]  ;;  %v381_v55 = vld [vmem:[%s5159_s1 + $0x880] sm:$0xff] }
   0xe   :  { %2351 = vmatpush1.bf16.msra.mxu0 %v2350_v38  ;;  %2097 = vmatprep.subr.bf16.mxu1 %v2096_v39  ;;  %v2356_v56 = vpack.c.bf16 %v384_v49, %v382_v48  ;;  %v383_v57 = vld [vmem:[%s5159_s1 + $0x890] sm:$0xff]  ;;  %v130_v58 = vld [vmem:[%s5159_s1 + $0xa8] sm:$0xff]  ;;  %v132_v59 = vld [vmem:[%s5159_s1 + $0xb8] sm:$0xff]  ;;  %v2102_v62 = vpack.c.bf16 %v127_v54, %v125_v53 }
   0xf   :  { %2353 = vmatprep.subr.bf16.mxu0 %v2352_v43  ;;  %v386_v60 = vld [vmem:[%s5159_s1 + $0x8a8] sm:$0xff]  ;;  %v388_v61 = vld [vmem:[%s5159_s1 + $0x8b8] sm:$0xff]  ;;  %v2358_v63 = vpack.c.bf16 %v383_v57, %v381_v55  ;;  %v2104_v0 = vpack.c.bf16 %v132_v59, %v130_v58  ;;  %v129_v1 = vld [vmem:[%s5159_s1 + $0xa0] sm:$0xff] }
  0x10   :  { %v131_v2 = vld [vmem:[%s5159_s1 + $0xb0] sm:$0xff]  ;;  %v385_v3 = vld [vmem:[%s5159_s1 + $0x8a0] sm:$0xff]  ;;  %v2360_v4 = vpack.c.bf16 %v388_v61, %v386_v60  ;;  %v134_v6 = vld [vmem:[%s5159_s1 + $0xc8] sm:$0xff] }
  0x11   :  { %2099 = vmatpush1.bf16.msra.mxu1 %v2098_v50  ;;  %v387_v5 = vld [vmem:[%s5159_s1 + $0x8b0] sm:$0xff]  ;;  %v136_v7 = vld [vmem:[%s5159_s1 + $0xd8] sm:$0xff]  ;;  %v390_v8 = vld [vmem:[%s5159_s1 + $0x8c8] sm:$0xff]  ;;  %v2106_v10 = vpack.c.bf16 %v131_v2, %v129_v1 }
  0x12   :  { %2355 = vmatpush1.bf16.msra.mxu0 %v2354_v51  ;;  %2101 = vmatprep.subr.bf16.mxu1 %v2100_v52  ;;  %v392_v9 = vld [vmem:[%s5159_s1 + $0x8d8] sm:$0xff]  ;;  %v2362_v11 = vpack.c.bf16 %v387_v5, %v385_v3  ;;  %v2108_v12 = vpack.c.bf16 %v136_v7, %v134_v6  ;;  %v133_v13 = vld [vmem:[%s5159_s1 + $0xc0] sm:$0xff]  ;;  %v135_v14 = vld [vmem:[%s5159_s1 + $0xd0] sm:$0xff] }
  0x13   :  { %2357 = vmatprep.subr.bf16.mxu0 %v2356_v56  ;;  %v389_v15 = vld [vmem:[%s5159_s1 + $0x8c0] sm:$0xff]  ;;  %v2364_v16 = vpack.c.bf16 %v392_v9, %v390_v8  ;;  %v391_v17 = vld [vmem:[%s5159_s1 + $0x8d0] sm:$0xff]  ;;  %v138_v18 = vld [vmem:[%s5159_s1 + $0xe8] sm:$0xff]  ;;  %v2110_v22 = vpack.c.bf16 %v135_v14, %v133_v13 }
  0x14   :  { %v140_v19 = vld [vmem:[%s5159_s1 + $0xf8] sm:$0xff]  ;;  %v394_v20 = vld [vmem:[%s5159_s1 + $0x8e8] sm:$0xff]  ;;  %v2366_v23 = vpack.c.bf16 %v391_v17, %v389_v15  ;;  %v137_v25 = vld [vmem:[%s5159_s1 + $0xe0] sm:$0xff] }
  0x15   :  { %2103 = vmatpush1.bf16.msra.mxu1 %v2102_v62  ;;  %v396_v21 = vld [vmem:[%s5159_s1 + $0x8f8] sm:$0xff]  ;;  %v2112_v24 = vpack.c.bf16 %v140_v19, %v138_v18  ;;  %v139_v26 = vld [vmem:[%s5159_s1 + $0xf0] sm:$0xff]  ;;  %v393_v27 = vld [vmem:[%s5159_s1 + $0x8e0] sm:$0xff] }
  0x16   :  { %2359 = vmatpush1.bf16.msra.mxu0 %v2358_v63  ;;  %2105 = vmatprep.subr.bf16.mxu1 %v2104_v0  ;;  %v2368_v28 = vpack.c.bf16 %v396_v21, %v394_v20  ;;  %v395_v29 = vld [vmem:[%s5159_s1 + $0x8f0] sm:$0xff]  ;;  %v142_v30 = vld [vmem:[%s5159_s1 + $0x108] sm:$0xff]  ;;  %v144_v31 = vld [vmem:[%s5159_s1 + $0x118] sm:$0xff]  ;;  %v2114_v34 = vpack.c.bf16 %v139_v26, %v137_v25 }
  0x17   :  { %2361 = vmatprep.subr.bf16.mxu0 %v2360_v4  ;;  %v398_v32 = vld [vmem:[%s5159_s1 + $0x908] sm:$0xff]  ;;  %v400_v33 = vld [vmem:[%s5159_s1 + $0x918] sm:$0xff]  ;;  %v2370_v35 = vpack.c.bf16 %v395_v29, %v393_v27  ;;  %v2116_v36 = vpack.c.bf16 %v144_v31, %v142_v30  ;;  %v141_v37 = vld [vmem:[%s5159_s1 + $0x100] sm:$0xff] }
  0x18   :  { %v143_v38 = vld [vmem:[%s5159_s1 + $0x110] sm:$0xff]  ;;  %v397_v39 = vld [vmem:[%s5159_s1 + $0x900] sm:$0xff]  ;;  %v2372_v40 = vpack.c.bf16 %v400_v33, %v398_v32  ;;  %v146_v42 = vld [vmem:[%s5159_s1 + $0x128] sm:$0xff] }
  0x19   :  { %2107 = vmatpush1.bf16.msra.mxu1 %v2106_v10  ;;  %v399_v41 = vld [vmem:[%s5159_s1 + $0x910] sm:$0xff]  ;;  %v148_v43 = vld [vmem:[%s5159_s1 + $0x138] sm:$0xff]  ;;  %v402_v44 = vld [vmem:[%s5159_s1 + $0x928] sm:$0xff]  ;;  %v2118_v46 = vpack.c.bf16 %v143_v38, %v141_v37 }
  0x1a   :  { %2363 = vmatpush1.bf16.msra.mxu0 %v2362_v11  ;;  %2109 = vmatprep.subr.bf16.mxu1 %v2108_v12  ;;  %v404_v45 = vld [vmem:[%s5159_s1 + $0x938] sm:$0xff]  ;;  %v2374_v47 = vpack.c.bf16 %v399_v41, %v397_v39  ;;  %v2120_v48 = vpack.c.bf16 %v148_v43, %v146_v42  ;;  %v145_v49 = vld [vmem:[%s5159_s1 + $0x120] sm:$0xff]  ;;  %v147_v50 = vld [vmem:[%s5159_s1 + $0x130] sm:$0xff] }
  0x1b   :  { %2365 = vmatprep.subr.bf16.mxu0 %v2364_v16  ;;  %v401_v51 = vld [vmem:[%s5159_s1 + $0x920] sm:$0xff]  ;;  %v2376_v52 = vpack.c.bf16 %v404_v45, %v402_v44  ;;  %v403_v53 = vld [vmem:[%s5159_s1 + $0x930] sm:$0xff]  ;;  %v150_v54 = vld [vmem:[%s5159_s1 + $0x148] sm:$0xff]  ;;  %v2122_v58 = vpack.c.bf16 %v147_v50, %v145_v49 }
  0x1c   :  { %v152_v55 = vld [vmem:[%s5159_s1 + $0x158] sm:$0xff]  ;;  %v406_v56 = vld [vmem:[%s5159_s1 + $0x948] sm:$0xff]  ;;  %v2378_v59 = vpack.c.bf16 %v403_v53, %v401_v51  ;;  %v149_v61 = vld [vmem:[%s5159_s1 + $0x140] sm:$0xff] }
  0x1d   :  { %2111 = vmatpush1.bf16.msra.mxu1 %v2110_v22  ;;  %v408_v57 = vld [vmem:[%s5159_s1 + $0x958] sm:$0xff]  ;;  %v2124_v60 = vpack.c.bf16 %v152_v55, %v150_v54  ;;  %v151_v62 = vld [vmem:[%s5159_s1 + $0x150] sm:$0xff]  ;;  %v405_v63 = vld [vmem:[%s5159_s1 + $0x940] sm:$0xff] }
  0x1e   :  { %2367 = vmatpush1.bf16.msra.mxu0 %v2366_v23  ;;  %2113 = vmatprep.subr.bf16.mxu1 %v2112_v24  ;;  %v2380_v0 = vpack.c.bf16 %v408_v57, %v406_v56  ;;  %v407_v1 = vld [vmem:[%s5159_s1 + $0x950] sm:$0xff]  ;;  %v154_v2 = vld [vmem:[%s5159_s1 + $0x168] sm:$0xff]  ;;  %v156_v3 = vld [vmem:[%s5159_s1 + $0x178] sm:$0xff]  ;;  %v2126_v6 = vpack.c.bf16 %v151_v62, %v149_v61 }
  0x1f   :  { %2369 = vmatprep.subr.bf16.mxu0 %v2368_v28  ;;  %v410_v4 = vld [vmem:[%s5159_s1 + $0x968] sm:$0xff]  ;;  %v412_v5 = vld [vmem:[%s5159_s1 + $0x978] sm:$0xff]  ;;  %v153_v7 = vld [vmem:[%s5159_s1 + $0x160] sm:$0xff]  ;;  %v2382_v8 = vpack.c.bf16 %v407_v1, %v405_v63  ;;  %v2128_v9 = vpack.c.bf16 %v156_v3, %v154_v2 }
  0x20   :  { %v155_v10 = vld [vmem:[%s5159_s1 + $0x170] sm:$0xff]  ;;  %v409_v11 = vld [vmem:[%s5159_s1 + $0x960] sm:$0xff]  ;;  %v2384_v13 = vpack.c.bf16 %v412_v5, %v410_v4  ;;  %v158_v14 = vld [vmem:[%s5159_s1 + $0x188] sm:$0xff] }
  0x21   :  { %2115 = vmatpush1.bf16.msra.mxu1 %v2114_v34  ;;  %v411_v12 = vld [vmem:[%s5159_s1 + $0x970] sm:$0xff]  ;;  %v160_v15 = vld [vmem:[%s5159_s1 + $0x198] sm:$0xff]  ;;  %v34_v16 = vld [vmem:[%s5158_s0 + $0x8] sm:$0xff]  ;;  %v2130_v20 = vpack.c.bf16 %v155_v10, %v153_v7 }
  0x22   :  { %2371 = vmatpush1.bf16.msra.mxu0 %v2370_v35  ;;  %2117 = vmatprep.subr.bf16.mxu1 %v2116_v36  ;;  %v414_v17 = vld [vmem:[%s5159_s1 + $0x988] sm:$0xff]  ;;  %v416_v18 = vld [vmem:[%s5159_s1 + $0x998] sm:$0xff]  ;;  %v2386_v21 = vpack.c.bf16 %v411_v12, %v409_v11  ;;  %v2132_v22 = vpack.c.bf16 %v160_v15, %v158_v14  ;;  %v157_v23 = vld [vmem:[%s5159_s1 + $0x180] sm:$0xff] }
  0x23   :  { %2373 = vmatprep.subr.bf16.mxu0 %v2372_v40  ;;  %786 = vmatprep.mubr.f32.mxu1 %v34_v16  ;;  %v42_v19 = vld [vmem:[%s5158_s0 + $0x48] sm:$0xff]  ;;  %v159_v24 = vld [vmem:[%s5159_s1 + $0x190] sm:$0xff]  ;;  %v413_v25 = vld [vmem:[%s5159_s1 + $0x980] sm:$0xff]  ;;  %v2388_v26 = vpack.c.bf16 %v416_v18, %v414_v17 }
  0x24   :  { %1142 = vmatprep.mubr.f32.mxu0 %v42_v19  ;;  %v415_v27 = vld [vmem:[%s5159_s1 + $0x990] sm:$0xff]  ;;  %v162_v28 = vld [vmem:[%s5159_s1 + $0x1a8] sm:$0xff]  ;;  %v164_v29 = vld [vmem:[%s5159_s1 + $0x1b8] sm:$0xff]  ;;  %v2134_v32 = vpack.c.bf16 %v159_v24, %v157_v23 }
  0x25   :  { %2119 = vmatpush1.bf16.msra.mxu1 %v2118_v46  ;;  %v418_v30 = vld [vmem:[%s5159_s1 + $0x9a8] sm:$0xff]  ;;  %v420_v31 = vld [vmem:[%s5159_s1 + $0x9b8] sm:$0xff]  ;;  %v2390_v33 = vpack.c.bf16 %v415_v27, %v413_v25  ;;  %v2136_v34 = vpack.c.bf16 %v164_v29, %v162_v28  ;;  %v161_v35 = vld [vmem:[%s5159_s1 + $0x1a0] sm:$0xff] }
  0x26   :  { %2375 = vmatpush1.bf16.msra.mxu0 %v2374_v47  ;;  %2121 = vmatprep.subr.bf16.mxu1 %v2120_v48  ;;  %v163_v36 = vld [vmem:[%s5159_s1 + $0x1b0] sm:$0xff]  ;;  %v417_v37 = vld [vmem:[%s5159_s1 + $0x9a0] sm:$0xff]  ;;  %v2392_v38 = vpack.c.bf16 %v420_v31, %v418_v30  ;;  %v166_v40 = vld [vmem:[%s5159_s1 + $0x1c8] sm:$0xff] }
  0x27   :  { %2377 = vmatprep.subr.bf16.mxu0 %v2376_v52  ;;  %v419_v39 = vld [vmem:[%s5159_s1 + $0x9b0] sm:$0xff]  ;;  %v168_v41 = vld [vmem:[%s5159_s1 + $0x1d8] sm:$0xff]  ;;  %v422_v42 = vld [vmem:[%s5159_s1 + $0x9c8] sm:$0xff]  ;;  %v2138_v44 = vpack.c.bf16 %v163_v36, %v161_v35 }
  0x28   :  { %v424_v43 = vld [vmem:[%s5159_s1 + $0x9d8] sm:$0xff]  ;;  %v2394_v45 = vpack.c.bf16 %v419_v39, %v417_v37  ;;  %v2140_v46 = vpack.c.bf16 %v168_v41, %v166_v40  ;;  %v165_v47 = vld [vmem:[%s5159_s1 + $0x1c0] sm:$0xff]  ;;  %v167_v48 = vld [vmem:[%s5159_s1 + $0x1d0] sm:$0xff] }
  0x29   :  { %2123 = vmatpush1.bf16.msra.mxu1 %v2122_v58  ;;  %v421_v49 = vld [vmem:[%s5159_s1 + $0x9c0] sm:$0xff]  ;;  %v2396_v50 = vpack.c.bf16 %v424_v43, %v422_v42  ;;  %v423_v51 = vld [vmem:[%s5159_s1 + $0x9d0] sm:$0xff]  ;;  %v170_v52 = vld [vmem:[%s5159_s1 + $0x1e8] sm:$0xff]  ;;  %v2142_v56 = vpack.c.bf16 %v167_v48, %v165_v47 }
  0x2a   :  { %2379 = vmatpush1.bf16.msra.mxu0 %v2378_v59  ;;  %2125 = vmatprep.subr.bf16.mxu1 %v2124_v60  ;;  %v172_v53 = vld [vmem:[%s5159_s1 + $0x1f8] sm:$0xff]  ;;  %v426_v54 = vld [vmem:[%s5159_s1 + $0x9e8] sm:$0xff]  ;;  %v2398_v57 = vpack.c.bf16 %v423_v51, %v421_v49  ;;  %v169_v59 = vld [vmem:[%s5159_s1 + $0x1e0] sm:$0xff] }
  0x2b   :  { %2381 = vmatprep.subr.bf16.mxu0 %v2380_v0  ;;  %v428_v55 = vld [vmem:[%s5159_s1 + $0x9f8] sm:$0xff]  ;;  %v2144_v58 = vpack.c.bf16 %v172_v53, %v170_v52  ;;  %v171_v60 = vld [vmem:[%s5159_s1 + $0x1f0] sm:$0xff]  ;;  %v425_v61 = vld [vmem:[%s5159_s1 + $0x9e0] sm:$0xff] }
  0x2c   :  { %v2400_v62 = vpack.c.bf16 %v428_v55, %v426_v54  ;;  %v427_v63 = vld [vmem:[%s5159_s1 + $0x9f0] sm:$0xff]  ;;  %v174_v0 = vld [vmem:[%s5159_s1 + $0x208] sm:$0xff]  ;;  %v176_v1 = vld [vmem:[%s5159_s1 + $0x218] sm:$0xff]  ;;  %v2146_v4 = vpack.c.bf16 %v171_v60, %v169_v59 }
  0x2d   :  { %2127 = vmatpush1.bf16.msra.mxu1 %v2126_v6  ;;  %v430_v2 = vld [vmem:[%s5159_s1 + $0xa08] sm:$0xff]  ;;  %v432_v3 = vld [vmem:[%s5159_s1 + $0xa18] sm:$0xff]  ;;  %v2402_v5 = vpack.c.bf16 %v427_v63, %v425_v61  ;;  %v2148_v6 = vpack.c.bf16 %v176_v1, %v174_v0  ;;  %v173_v7 = vld [vmem:[%s5159_s1 + $0x200] sm:$0xff] }
  0x2e   :  { %2383 = vmatpush1.bf16.msra.mxu0 %v2382_v8  ;;  %2129 = vmatprep.subr.bf16.mxu1 %v2128_v9  ;;  %v175_v8 = vld [vmem:[%s5159_s1 + $0x210] sm:$0xff]  ;;  %v429_v9 = vld [vmem:[%s5159_s1 + $0xa00] sm:$0xff]  ;;  %v2404_v10 = vpack.c.bf16 %v432_v3, %v430_v2  ;;  %v178_v12 = vld [vmem:[%s5159_s1 + $0x228] sm:$0xff] }
  0x2f   :  { %2385 = vmatprep.subr.bf16.mxu0 %v2384_v13  ;;  %v431_v11 = vld [vmem:[%s5159_s1 + $0xa10] sm:$0xff]  ;;  %v180_v13 = vld [vmem:[%s5159_s1 + $0x238] sm:$0xff]  ;;  %v434_v14 = vld [vmem:[%s5159_s1 + $0xa28] sm:$0xff]  ;;  %v2150_v17 = vpack.c.bf16 %v175_v8, %v173_v7 }
  0x30   :  { %v436_v15 = vld [vmem:[%s5159_s1 + $0xa38] sm:$0xff]  ;;  %v33_v16 = vld [vmem:[%s5158_s0] sm:$0xff]  ;;  %v2406_v19 = vpack.c.bf16 %v431_v11, %v429_v9  ;;  %v435_v25 = vld [vmem:[%s5159_s1 + $0xa30] sm:$0xff] }
  0x31   :  { %2131 = vmatpush1.bf16.msra.mxu1 %v2130_v20  ;;  %v41_v18 = vld [vmem:[%s5158_s0 + $0x40] sm:$0xff]  ;;  %v2152_v20 = vpack.c.bf16 %v180_v13, %v178_v12  ;;  %v2408_v24 = vpack.c.bf16 %v436_v15, %v434_v14  ;;  %v184_v27 = vld [vmem:[%s5159_s1 + $0x258] sm:$0xff]  ;;  %v438_v28 = vld [vmem:[%s5159_s1 + $0xa48] sm:$0xff] }
  0x32   :  { %2387 = vmatpush1.bf16.msra.mxu0 %v2386_v21  ;;  %2133 = vmatprep.subr.bf16.mxu1 %v2132_v22  ;;  %v177_v21 = vld [vmem:[%s5159_s1 + $0x220] sm:$0xff]  ;;  %v179_v22 = vld [vmem:[%s5159_s1 + $0x230] sm:$0xff]  ;;  %v440_v29 = vld [vmem:[%s5159_s1 + $0xa58] sm:$0xff] }
  0x33   :  { %2389 = vmatprep.subr.bf16.mxu0 %v2388_v26  ;;  %v433_v23 = vld [vmem:[%s5159_s1 + $0xa20] sm:$0xff]  ;;  %v182_v26 = vld [vmem:[%s5159_s1 + $0x248] sm:$0xff]  ;;  %v2154_v30 = vpack.c.bf16 %v179_v22, %v177_v21  ;;  %v2412_v36 = vpack.c.bf16 %v440_v29, %v438_v28  ;;  %v439_v37 = vld [vmem:[%s5159_s1 + $0xa50] sm:$0xff] }
  0x34   :  { %v2410_v31 = vpack.c.bf16 %v435_v25, %v433_v23  ;;  %v437_v35 = vld [vmem:[%s5159_s1 + $0xa40] sm:$0xff]  ;;  %v188_v39 = vld [vmem:[%s5159_s1 + $0x278] sm:$0xff]  ;;  %v442_v40 = vld [vmem:[%s5159_s1 + $0xa68] sm:$0xff] }
  0x35   :  { %2135 = vmatpush1.bf16.msra.mxu1 %v2134_v32  ;;  %v2156_v32 = vpack.c.bf16 %v184_v27, %v182_v26  ;;  %v444_v41 = vld [vmem:[%s5159_s1 + $0xa78] sm:$0xff]  ;;  %v2414_v43 = vpack.c.bf16 %v439_v37, %v437_v35  ;;  %v441_v47 = vld [vmem:[%s5159_s1 + $0xa60] sm:$0xff]  ;;  %v443_v49 = vld [vmem:[%s5159_s1 + $0xa70] sm:$0xff] }
  0x36   :  { %2391 = vmatpush1.bf16.msra.mxu0 %v2390_v33  ;;  %2137 = vmatprep.subr.bf16.mxu1 %v2136_v34  ;;  %v181_v33 = vld [vmem:[%s5159_s1 + $0x240] sm:$0xff]  ;;  %v183_v34 = vld [vmem:[%s5159_s1 + $0x250] sm:$0xff]  ;;  %v2416_v48 = vpack.c.bf16 %v444_v41, %v442_v40  ;;  %v192_v51 = vld [vmem:[%s5159_s1 + $0x298] sm:$0xff] }
  0x37   :  { %2393 = vmatprep.subr.bf16.mxu0 %v2392_v38  ;;  %v186_v38 = vld [vmem:[%s5159_s1 + $0x268] sm:$0xff]  ;;  %v2158_v42 = vpack.c.bf16 %v183_v34, %v181_v33  ;;  %v448_v53 = vld [vmem:[%s5159_s1 + $0xa98] sm:$0xff]  ;;  %v189_v55 = vld [vmem:[%s5159_s1 + $0x280] sm:$0xff] }
  0x38   :  { %v446_v52 = vld [vmem:[%s5159_s1 + $0xa88] sm:$0xff]  ;;  %v445_v59 = vld [vmem:[%s5159_s1 + $0xa80] sm:$0xff]  ;;  %v447_v60 = vld [vmem:[%s5159_s1 + $0xa90] sm:$0xff] }
  0x39   :  { %2139 = vmatpush1.bf16.msra.mxu1 %v2138_v44  ;;  %v2160_v44 = vpack.c.bf16 %v188_v39, %v186_v38  ;;  %v2420_v61 = vpack.c.bf16 %v448_v53, %v446_v52  ;;  %v196_v63 = vld [vmem:[%s5159_s1 + $0x2b8] sm:$0xff]  ;;  %v53_v0 = vld [vmem:[%s5158_s0 + $0xa0] sm:$0xff]  ;;  %v450_v1 = vld [vmem:[%s5159_s1 + $0xaa8] sm:$0xff]  ;;  %v2422_v8 = vpack.c.bf16 %v447_v60, %v445_v59 }
  0x3a   :  { %2395 = vmatpush1.bf16.msra.mxu0 %v2394_v45  ;;  %2141 = vmatprep.subr.bf16.mxu1 %v2140_v46  ;;  %v185_v45 = vld [vmem:[%s5159_s1 + $0x260] sm:$0xff]  ;;  %v187_v46 = vld [vmem:[%s5159_s1 + $0x270] sm:$0xff]  ;;  %v452_v2 = vld [vmem:[%s5159_s1 + $0xab8] sm:$0xff] }
  0x3b   :  { %2397 = vmatprep.subr.bf16.mxu0 %v2396_v50  ;;  %v190_v50 = vld [vmem:[%s5159_s1 + $0x288] sm:$0xff]  ;;  %v2162_v54 = vpack.c.bf16 %v187_v46, %v185_v45  ;;  %v61_v3 = vld [vmem:[%s5158_s0 + $0xe0] sm:$0xff]  ;;  %v52_v7 = vld [vmem:[%s5158_s0 + $0x98] sm:$0xff]  ;;  %v2424_v13 = vpack.c.bf16 %v452_v2, %v450_v1 }
  0x3c   :  { %v451_v11 = vld [vmem:[%s5159_s1 + $0xab0] sm:$0xff]  ;;  %v60_v12 = vld [vmem:[%s5158_s0 + $0xd8] sm:$0xff]  ;;  %v198_v14 = vld [vmem:[%s5159_s1 + $0x2c8] sm:$0xff] }
  0x3d   :  { %2143 = vmatpush1.bf16.msra.mxu1 %v2142_v56  ;;  %v2418_v56 = vpack.c.bf16 %v443_v49, %v441_v47  ;;  %v200_v15 = vld [vmem:[%s5159_s1 + $0x2d8] sm:$0xff]  ;;  %v197_v21 = vld [vmem:[%s5159_s1 + $0x2c0] sm:$0xff]  ;;  %v199_v22 = vld [vmem:[%s5159_s1 + $0x2d0] sm:$0xff] }
  0x3e   :  { %2399 = vmatpush1.bf16.msra.mxu0 %v2398_v57  ;;  %2145 = vmatprep.subr.bf16.mxu1 %v2144_v58  ;;  %v2164_v57 = vpack.c.bf16 %v192_v51, %v190_v50  ;;  %v191_v58 = vld [vmem:[%s5159_s1 + $0x290] sm:$0xff]  ;;  %v2172_v25 = vpack.c.bf16 %v200_v15, %v198_v14  ;;  %v453_v26 = vld [vmem:[%s5159_s1 + $0xac0] sm:$0xff]  ;;  %v458_v33 = vld [vmem:[%s5159_s1 + $0xae8] sm:$0xff] }
  0x3f   :  { %2401 = vmatprep.subr.bf16.mxu0 %v2400_v62  ;;  %v194_v62 = vld [vmem:[%s5159_s1 + $0x2a8] sm:$0xff]  ;;  %v71_v23 = vld [vmem:[%s5158_s0 + $0x130] sm:$0xff]  ;;  %v460_v34 = vld [vmem:[%s5159_s1 + $0xaf8] sm:$0xff] }
  0x40   :  { %v2168_v9 = vpack.c.bf16 %v196_v63, %v194_v62  ;;  %v455_v27 = vld [vmem:[%s5159_s1 + $0xad0] sm:$0xff]  ;;  %v201_v37 = vld [vmem:[%s5159_s1 + $0x2e0] sm:$0xff]  ;;  %v90_v39 = vld [vmem:[%s5158_s0 + $0x1c8] sm:$0xff]  ;;  %v2432_v45 = vpack.c.bf16 %v460_v34, %v458_v33 }
  0x41   :  { %2147 = vmatpush1.bf16.msra.mxu1 %v2146_v4  ;;  %v2166_v4 = vpack.c.bf16 %v191_v58, %v189_v55  ;;  %v79_v28 = vld [vmem:[%s5158_s0 + $0x170] sm:$0xff]  ;;  %v2430_v40 = vpack.c.bf16 %v455_v27, %v453_v26  ;;  %v206_v46 = vld [vmem:[%s5159_s1 + $0x308] sm:$0xff]  ;;  %v208_v47 = vld [vmem:[%s5159_s1 + $0x318] sm:$0xff] }
  0x42   :  { %2403 = vmatpush1.bf16.msra.mxu0 %v2402_v5  ;;  %2149 = vmatprep.subr.bf16.mxu1 %v2148_v6  ;;  %v193_v5 = vld [vmem:[%s5159_s1 + $0x2a0] sm:$0xff]  ;;  %v195_v6 = vld [vmem:[%s5159_s1 + $0x2b0] sm:$0xff]  ;;  %v462_v49 = vld [vmem:[%s5159_s1 + $0xb08] sm:$0xff] }
  0x43   :  { %2405 = vmatprep.subr.bf16.mxu0 %v2404_v10  ;;  %v449_v10 = vld [vmem:[%s5159_s1 + $0xaa0] sm:$0xff]  ;;  %v99_v35 = vld [vmem:[%s5158_s0 + $0x210] sm:$0xff]  ;;  %v464_v50 = vld [vmem:[%s5159_s1 + $0xb18] sm:$0xff] }
  0x44   :  { %787 = vmatmul.mubr.f32.vlgmr.msra.gmra.mrb[0].mxu1 %v33_v16  ;;  %v72_v16 = vld [vmem:[%s5158_s0 + $0x138] sm:$0xff]  ;;  %v203_v38 = vld [vmem:[%s5159_s1 + $0x2f0] sm:$0xff]  ;;  %v205_v55 = vld [vmem:[%s5159_s1 + $0x300] sm:$0xff]  ;;  %v2436_v58 = vpack.c.bf16 %v464_v50, %v462_v49 }
  0x45   :  { %2151 = vmatpush1.bf16.msra.mxu1 %v2150_v17  ;;  %1143 = vmatmul.mubr.f32.vlgmr.msra.gmra.mrb[0].mxu0 %v41_v18  ;;  %v454_v17 = vld [vmem:[%s5159_s1 + $0xac8] sm:$0xff]  ;;  %v456_v18 = vld [vmem:[%s5159_s1 + $0xad8] sm:$0xff]  ;;  %v2178_v52 = vpack.c.bf16 %v203_v38, %v201_v37  ;;  %v463_v59 = vld [vmem:[%s5159_s1 + $0xb10] sm:$0xff] }
  0x46   :  { %2407 = vmatpush1.bf16.msra.mxu0 %v2406_v19  ;;  %2153 = vmatprep.subr.bf16.mxu1 %v2152_v20  ;;  %v80_v19 = vld [vmem:[%s5158_s0 + $0x178] sm:$0xff]  ;;  %v2170_v20 = vpack.c.bf16 %v195_v6, %v193_v5  ;;  %v2428_v29 = vpack.c.bf16 %v456_v18, %v454_v17  ;;  %v210_v60 = vld [vmem:[%s5159_s1 + $0x328] sm:$0xff]  ;;  %v465_v5 = vld [vmem:[%s5159_s1 + $0xb20] sm:$0xff] }
  0x47   :  { %2409 = vmatprep.subr.bf16.mxu0 %v2408_v24  ;;  %792 = vmatprep.mubr.f32.mxu1 %v53_v0  ;;  %v2426_v24 = vpack.c.bf16 %v451_v11, %v449_v10  ;;  %v44_v51 = vld [vmem:[%s5158_s0 + $0x58] sm:$0xff]  ;;  %v466_v62 = vld [vmem:[%s5159_s1 + $0xb28] sm:$0xff]  ;;  %v213_v15 = vld [vmem:[%s5159_s1 + $0x340] sm:$0xff] }
  0x48   :  { %1148 = vmatprep.mubr.f32.mxu0 %v61_v3  ;;  %793 = vmatmul.mubr.f32.gmra.mrb[2].mxu1 %v52_v7  ;;  %v468_v63 = vld [vmem:[%s5159_s1 + $0xb38] sm:$0xff]  ;;  %v209_v3 = vld [vmem:[%s5159_s1 + $0x320] sm:$0xff]  ;;  %v467_v7 = vld [vmem:[%s5159_s1 + $0xb30] sm:$0xff] }
  0x49   :  { %2155 = vmatpush1.bf16.msra.mxu1 %v2154_v30  ;;  %1149 = vmatmul.mubr.f32.gmra.mrb[2].mxu0 %v60_v12  ;;  %v202_v30 = vld [vmem:[%s5159_s1 + $0x2e8] sm:$0xff]  ;;  %v2440_v6 = vpack.c.bf16 %v468_v63, %v466_v62  ;;  %v472_v11 = vld [vmem:[%s5159_s1 + $0xb58] sm:$0xff]  ;;  %v469_v17 = vld [vmem:[%s5159_s1 + $0xb40] sm:$0xff] }
  0x4a   :  { %2411 = vmatpush1.bf16.msra.mxu0 %v2410_v31  ;;  %2157 = vmatprep.subr.bf16.mxu1 %v2156_v32  ;;  %v204_v31 = vld [vmem:[%s5159_s1 + $0x2f8] sm:$0xff]  ;;  %v91_v32 = vld [vmem:[%s5158_s0 + $0x1d0] sm:$0xff]  ;;  %v470_v10 = vld [vmem:[%s5159_s1 + $0xb48] sm:$0xff] }
  0x4b   :  { %2413 = vmatprep.subr.bf16.mxu0 %v2412_v36  ;;  %798 = vmatprep.mubr.f32.mxu1 %v72_v16  ;;  %v2174_v36 = vpack.c.bf16 %v199_v22, %v197_v21  ;;  %v2176_v41 = vpack.c.bf16 %v204_v31, %v202_v30  ;;  %v215_v16 = vld [vmem:[%s5159_s1 + $0x350] sm:$0xff]  ;;  %v2444_v18 = vpack.c.bf16 %v472_v11, %v470_v10  ;;  %v220_v21 = vld [vmem:[%s5159_s1 + $0x378] sm:$0xff]  ;;  %v474_v22 = vld [vmem:[%s5159_s1 + $0xb68] sm:$0xff] }
  0x4c   :  { %1154 = vmatprep.mubr.f32.mxu0 %v80_v19  ;;  %799 = vmatmul.mubr.f32.gmra.mrb[4].mxu1 %v71_v23  ;;  %v471_v19 = vld [vmem:[%s5159_s1 + $0xb50] sm:$0xff]  ;;  %v476_v23 = vld [vmem:[%s5159_s1 + $0xb78] sm:$0xff]  ;;  %v217_v27 = vld [vmem:[%s5159_s1 + $0x360] sm:$0xff] }
  0x4d   :  { %2159 = vmatpush1.bf16.msra.mxu1 %v2158_v42  ;;  %1155 = vmatmul.mubr.f32.gmra.mrb[4].mxu0 %v79_v28  ;;  %v457_v42 = vld [vmem:[%s5159_s1 + $0xae0] sm:$0xff]  ;;  %v219_v28 = vld [vmem:[%s5159_s1 + $0x370] sm:$0xff]  ;;  %v2448_v30 = vpack.c.bf16 %v476_v23, %v474_v22  ;;  %v224_v33 = vld [vmem:[%s5159_s1 + $0x398] sm:$0xff] }
  0x4e   :  { %2415 = vmatpush1.bf16.msra.mxu0 %v2414_v43  ;;  %2161 = vmatprep.subr.bf16.mxu1 %v2160_v44  ;;  %v459_v43 = vld [vmem:[%s5159_s1 + $0xaf0] sm:$0xff]  ;;  %v98_v44 = vld [vmem:[%s5158_s0 + $0x208] sm:$0xff]  ;;  %v229_v63 = vld [vmem:[%s5159_s1 + $0x3c0] sm:$0xff] }
  0x4f   :  { %2417 = vmatprep.subr.bf16.mxu0 %v2416_v48  ;;  %804 = vmatprep.mubr.f32.mxu1 %v91_v32  ;;  %v36_v48 = vld [vmem:[%s5158_s0 + $0x18] sm:$0xff]  ;;  %v2434_v53 = vpack.c.bf16 %v459_v43, %v457_v42  ;;  %v475_v31 = vld [vmem:[%s5159_s1 + $0xb70] sm:$0xff]  ;;  %v222_v32 = vld [vmem:[%s5159_s1 + $0x388] sm:$0xff] }
  0x50   :  { %1160 = vmatprep.mubr.f32.mxu0 %v99_v35  ;;  %805 = vmatmul.mubr.f32.gmra.mrb[6].mxu1 %v90_v39  ;;  %v478_v34 = vld [vmem:[%s5159_s1 + $0xb88] sm:$0xff]  ;;  %v480_v35 = vld [vmem:[%s5159_s1 + $0xb98] sm:$0xff]  ;;  %v2196_v38 = vpack.c.bf16 %v224_v33, %v222_v32  ;;  %v221_v39 = vld [vmem:[%s5159_s1 + $0x380] sm:$0xff] }
  0x51   :  { %2163 = vmatpush1.bf16.msra.mxu1 %v2162_v54  ;;  %1161 = vmatmul.mubr.f32.gmra.mrb[6].mxu0 %v98_v44  ;;  %v2180_v54 = vpack.c.bf16 %v208_v47, %v206_v46  ;;  %v2452_v42 = vpack.c.bf16 %v480_v35, %v478_v34  ;;  %v479_v43 = vld [vmem:[%s5159_s1 + $0xb90] sm:$0xff]  ;;  %v226_v44 = vld [vmem:[%s5159_s1 + $0x3a8] sm:$0xff]  ;;  %v484_v47 = vld [vmem:[%s5159_s1 + $0xbb8] sm:$0xff] }
  0x52   :  { %2419 = vmatpush1.bf16.msra.mxu0 %v2418_v56  ;;  %2165 = vmatprep.subr.bf16.mxu1 %v2164_v57  ;;  %v207_v56 = vld [vmem:[%s5159_s1 + $0x310] sm:$0xff]  ;;  %v461_v57 = vld [vmem:[%s5159_s1 + $0xb00] sm:$0xff]  ;;  %v482_v46 = vld [vmem:[%s5159_s1 + $0xba8] sm:$0xff] }
  0x53   :  { %2421 = vmatprep.subr.bf16.mxu0 %v2420_v61  ;;  %875 = vmatprep.mubr.f32.mxu1 %v36_v48  ;;  %v212_v61 = vld [vmem:[%s5159_s1 + $0x338] sm:$0xff]  ;;  %v2182_v0 = vpack.c.bf16 %v207_v56, %v205_v55  ;;  %v2438_v1 = vpack.c.bf16 %v463_v59, %v461_v57  ;;  %v483_v55 = vld [vmem:[%s5159_s1 + $0xbb0] sm:$0xff]  ;;  %v230_v56 = vld [vmem:[%s5159_s1 + $0x3c8] sm:$0xff] }
  0x54   :  { %1231 = vmatprep.mubr.f32.mxu0 %v44_v51  ;;  %v2184_v2 = vpack.c.bf16 %v212_v61, %v210_v60  ;;  %v225_v51 = vld [vmem:[%s5159_s1 + $0x3a0] sm:$0xff]  ;;  %v232_v57 = vld [vmem:[%s5159_s1 + $0x3d8] sm:$0xff]  ;;  %v35_v32 = vld [vmem:[%s5158_s0 + $0x10] sm:$0xff] }
  0x55   :  { %2167 = vmatpush1.bf16.msra.mxu1 %v2166_v4  ;;  %v211_v4 = vld [vmem:[%s5159_s1 + $0x330] sm:$0xff]  ;;  %v488_v59 = vld [vmem:[%s5159_s1 + $0xbd8] sm:$0xff]  ;;  %v2204_v62 = vpack.c.bf16 %v232_v57, %v230_v56  ;;  %v233_v11 = vld [vmem:[%s5159_s1 + $0x3e0] sm:$0xff] }
  0x56   :  { %2423 = vmatpush1.bf16.msra.mxu0 %v2422_v8  ;;  %2169 = vmatprep.subr.bf16.mxu1 %v2168_v9  ;;  %v214_v8 = vld [vmem:[%s5159_s1 + $0x348] sm:$0xff]  ;;  %v216_v9 = vld [vmem:[%s5159_s1 + $0x358] sm:$0xff]  ;;  %v2186_v12 = vpack.c.bf16 %v211_v4, %v209_v3  ;;  %v487_v3 = vld [vmem:[%s5159_s1 + $0xbd0] sm:$0xff] }
  0x57   :  { %2425 = vmatprep.subr.bf16.mxu0 %v2424_v13  ;;  %v2442_v13 = vpack.c.bf16 %v467_v7, %v465_v5  ;;  %v2188_v14 = vpack.c.bf16 %v216_v9, %v214_v8  ;;  %v234_v4 = vld [vmem:[%s5159_s1 + $0x3e8] sm:$0xff]  ;;  %v236_v5 = vld [vmem:[%s5159_s1 + $0x3f8] sm:$0xff]  ;;  %v237_v23 = vld [vmem:[%s5159_s1 + $0x400] sm:$0xff] }
  0x58   :  { %v492_v7 = vld [vmem:[%s5159_s1 + $0xbf8] sm:$0xff]  ;;  %v2208_v10 = vpack.c.bf16 %v236_v5, %v234_v4  ;;  %v43_v34 = vld [vmem:[%s5158_s0 + $0x50] sm:$0xff] }
  0x59   :  { %2171 = vmatpush1.bf16.msra.mxu1 %v2170_v20  ;;  %v218_v20 = vld [vmem:[%s5159_s1 + $0x368] sm:$0xff]  ;;  %v503_v57 = vld [vmem:[%s5159_s1 + $0xc50] sm:$0xff] }
  0x5a   :  { %2427 = vmatpush1.bf16.msra.mxu0 %v2426_v24  ;;  %2173 = vmatprep.subr.bf16.mxu1 %v2172_v25  ;;  %v2190_v24 = vpack.c.bf16 %v215_v16, %v213_v15  ;;  %v2446_v25 = vpack.c.bf16 %v471_v19, %v469_v17  ;;  %v2192_v26 = vpack.c.bf16 %v220_v21, %v218_v20  ;;  %v491_v15 = vld [vmem:[%s5159_s1 + $0xbf0] sm:$0xff]  ;;  %v238_v16 = vld [vmem:[%s5159_s1 + $0x408] sm:$0xff]  ;;  %v240_v17 = vld [vmem:[%s5159_s1 + $0x418] sm:$0xff] }
  0x5b   :  { %2429 = vmatprep.subr.bf16.mxu0 %v2428_v29  ;;  %v473_v29 = vld [vmem:[%s5159_s1 + $0xb60] sm:$0xff]  ;;  %v496_v19 = vld [vmem:[%s5159_s1 + $0xc18] sm:$0xff]  ;;  %v2212_v22 = vpack.c.bf16 %v240_v17, %v238_v16  ;;  %v251_v5 = vld [vmem:[%s5159_s1 + $0x470] sm:$0xff] }
  0x5c   :  { %v2450_v37 = vpack.c.bf16 %v475_v31, %v473_v29  ;;  %v244_v29 = vld [vmem:[%s5159_s1 + $0x438] sm:$0xff]  ;;  %v253_v16 = vld [vmem:[%s5159_s1 + $0x480] sm:$0xff] }
  0x5d   :  { %2175 = vmatpush1.bf16.msra.mxu1 %v2174_v36  ;;  %v2194_v36 = vpack.c.bf16 %v219_v28, %v217_v27  ;;  %v495_v27 = vld [vmem:[%s5159_s1 + $0xc10] sm:$0xff]  ;;  %v242_v28 = vld [vmem:[%s5159_s1 + $0x428] sm:$0xff]  ;;  %v500_v31 = vld [vmem:[%s5159_s1 + $0xc38] sm:$0xff] }
  0x5e   :  { %2431 = vmatpush1.bf16.msra.mxu0 %v2430_v40  ;;  %2177 = vmatprep.subr.bf16.mxu1 %v2176_v41  ;;  %v223_v40 = vld [vmem:[%s5159_s1 + $0x390] sm:$0xff]  ;;  %v477_v41 = vld [vmem:[%s5159_s1 + $0xb80] sm:$0xff] }
  0x5f   :  { %2433 = vmatprep.subr.bf16.mxu0 %v2432_v45  ;;  %v228_v45 = vld [vmem:[%s5159_s1 + $0x3b8] sm:$0xff]  ;;  %v2198_v48 = vpack.c.bf16 %v223_v40, %v221_v39  ;;  %v2454_v49 = vpack.c.bf16 %v479_v43, %v477_v41  ;;  %v497_v39 = vld [vmem:[%s5159_s1 + $0xc20] sm:$0xff]  ;;  %v499_v41 = vld [vmem:[%s5159_s1 + $0xc30] sm:$0xff] }
  0x60   :  { %v2200_v50 = vpack.c.bf16 %v228_v45, %v226_v44  ;;  %v248_v43 = vld [vmem:[%s5159_s1 + $0x458] sm:$0xff]  ;;  %v502_v44 = vld [vmem:[%s5159_s1 + $0xc48] sm:$0xff]  ;;  %v101_v17 = vld [vmem:[%s5158_s0 + $0x220] sm:$0xff] }
  0x61   :  { %2179 = vmatpush1.bf16.msra.mxu1 %v2178_v52  ;;  %v227_v52 = vld [vmem:[%s5159_s1 + $0x3b0] sm:$0xff]  ;;  %v504_v45 = vld [vmem:[%s5159_s1 + $0xc58] sm:$0xff] }
  0x62   :  { %2435 = vmatpush1.bf16.msra.mxu0 %v2434_v53  ;;  %2181 = vmatprep.subr.bf16.mxu1 %v2180_v54  ;;  %v481_v53 = vld [vmem:[%s5159_s1 + $0xba0] sm:$0xff]  ;;  %v2456_v54 = vpack.c.bf16 %v484_v47, %v482_v46  ;;  %v2202_v60 = vpack.c.bf16 %v227_v52, %v225_v51  ;;  %v55_v46 = vld [vmem:[%s5158_s0 + $0xb0] sm:$0xff]  ;;  %v2474_v51 = vpack.c.bf16 %v499_v41, %v497_v39  ;;  %v264_v41 = vld [vmem:[%s5159_s1 + $0x4d8] sm:$0xff] }
  0x63   :  { %2437 = vmatprep.subr.bf16.mxu0 %v2436_v58  ;;  %v486_v58 = vld [vmem:[%s5159_s1 + $0xbc8] sm:$0xff]  ;;  %v2458_v61 = vpack.c.bf16 %v483_v55, %v481_v53  ;;  %v247_v53 = vld [vmem:[%s5159_s1 + $0x450] sm:$0xff]  ;;  %v2476_v56 = vpack.c.bf16 %v504_v45, %v502_v44 }
  0x64   :  { %v62_v55 = vld [vmem:[%s5158_s0 + $0xe8] sm:$0xff]  ;;  %v515_v39 = vld [vmem:[%s5159_s1 + $0xcb0] sm:$0xff] }
  0x65   :  { %2183 = vmatpush1.bf16.msra.mxu1 %v2182_v0  ;;  %v231_v0 = vld [vmem:[%s5159_s1 + $0x3d0] sm:$0xff] }
  0x66   :  { %2439 = vmatpush1.bf16.msra.mxu0 %v2438_v1  ;;  %2185 = vmatprep.subr.bf16.mxu1 %v2184_v2  ;;  %v485_v1 = vld [vmem:[%s5159_s1 + $0xbc0] sm:$0xff]  ;;  %v2460_v2 = vpack.c.bf16 %v488_v59, %v486_v58  ;;  %v2206_v8 = vpack.c.bf16 %v231_v0, %v229_v63  ;;  %v250_v58 = vld [vmem:[%s5159_s1 + $0x468] sm:$0xff]  ;;  %v252_v59 = vld [vmem:[%s5159_s1 + $0x478] sm:$0xff] }
  0x67   :  { %2441 = vmatprep.subr.bf16.mxu0 %v2440_v6  ;;  %v490_v6 = vld [vmem:[%s5159_s1 + $0xbe8] sm:$0xff]  ;;  %v2462_v9 = vpack.c.bf16 %v487_v3, %v485_v1  ;;  %v249_v0 = vld [vmem:[%s5159_s1 + $0x460] sm:$0xff]  ;;  %v2224_v4 = vpack.c.bf16 %v252_v59, %v250_v58 }
  0x68   :  { %v82_v1 = vld [vmem:[%s5158_s0 + $0x188] sm:$0xff]  ;;  %v265_v59 = vld [vmem:[%s5159_s1 + $0x4e0] sm:$0xff] }
  0x69   :  { %2187 = vmatpush1.bf16.msra.mxu1 %v2186_v12  ;;  %v235_v12 = vld [vmem:[%s5159_s1 + $0x3f0] sm:$0xff] }
  0x6a   :  { %2443 = vmatpush1.bf16.msra.mxu0 %v2442_v13  ;;  %2189 = vmatprep.subr.bf16.mxu1 %v2188_v14  ;;  %v489_v13 = vld [vmem:[%s5159_s1 + $0xbe0] sm:$0xff]  ;;  %v2464_v14 = vpack.c.bf16 %v492_v7, %v490_v6  ;;  %v2210_v20 = vpack.c.bf16 %v235_v12, %v233_v11  ;;  %v256_v11 = vld [vmem:[%s5159_s1 + $0x498] sm:$0xff]  ;;  %v510_v12 = vld [vmem:[%s5159_s1 + $0xc88] sm:$0xff] }
  0x6b   :  { %2445 = vmatprep.subr.bf16.mxu0 %v2444_v18  ;;  %v494_v18 = vld [vmem:[%s5159_s1 + $0xc08] sm:$0xff]  ;;  %v2466_v21 = vpack.c.bf16 %v491_v15, %v489_v13  ;;  %v505_v6 = vld [vmem:[%s5159_s1 + $0xc60] sm:$0xff]  ;;  %v512_v13 = vld [vmem:[%s5159_s1 + $0xc98] sm:$0xff]  ;;  %v2226_v15 = vpack.c.bf16 %v251_v5, %v249_v0 }
  0x6c   :  { %v81_v7 = vld [vmem:[%s5158_s0 + $0x180] sm:$0xff]  ;;  %v270_v0 = vld [vmem:[%s5159_s1 + $0x508] sm:$0xff] }
  0x6d   :  { %2191 = vmatpush1.bf16.msra.mxu1 %v2190_v24  ;;  %v239_v24 = vld [vmem:[%s5159_s1 + $0x410] sm:$0xff] }
  0x6e   :  { %2447 = vmatpush1.bf16.msra.mxu0 %v2446_v25  ;;  %2193 = vmatprep.subr.bf16.mxu1 %v2192_v26  ;;  %v493_v25 = vld [vmem:[%s5159_s1 + $0xc00] sm:$0xff]  ;;  %v2468_v26 = vpack.c.bf16 %v496_v19, %v494_v18  ;;  %v2214_v33 = vpack.c.bf16 %v239_v24, %v237_v23  ;;  %v92_v18 = vld [vmem:[%s5158_s0 + $0x1d8] sm:$0xff]  ;;  %v2484_v24 = vpack.c.bf16 %v512_v13, %v510_v12  ;;  %v274_v12 = vld [vmem:[%s5159_s1 + $0x528] sm:$0xff] }
  0x6f   :  { %2449 = vmatprep.subr.bf16.mxu0 %v2448_v30  ;;  %v498_v30 = vld [vmem:[%s5159_s1 + $0xc28] sm:$0xff]  ;;  %v2470_v35 = vpack.c.bf16 %v495_v27, %v493_v25  ;;  %v100_v23 = vld [vmem:[%s5158_s0 + $0x218] sm:$0xff]  ;;  %v511_v25 = vld [vmem:[%s5159_s1 + $0xc90] sm:$0xff] }
  0x70   :  { %v2472_v40 = vpack.c.bf16 %v500_v31, %v498_v30  ;;  %v260_v27 = vld [vmem:[%s5159_s1 + $0x4b8] sm:$0xff]  ;;  %v38_v30 = vld [vmem:[%s5158_s0 + $0x28] sm:$0xff] }
  0x71   :  { %2195 = vmatpush1.bf16.msra.mxu1 %v2194_v36  ;;  %v2216_v36 = vpack.c.bf16 %v244_v29, %v242_v28  ;;  %v514_v28 = vld [vmem:[%s5159_s1 + $0xca8] sm:$0xff]  ;;  %v516_v29 = vld [vmem:[%s5159_s1 + $0xcb8] sm:$0xff] }
  0x72   :  { %2451 = vmatpush1.bf16.msra.mxu0 %v2450_v37  ;;  %2197 = vmatprep.subr.bf16.mxu1 %v2196_v38  ;;  %v241_v37 = vld [vmem:[%s5159_s1 + $0x420] sm:$0xff]  ;;  %v243_v38 = vld [vmem:[%s5159_s1 + $0x430] sm:$0xff]  ;;  %v276_v13 = vld [vmem:[%s5159_s1 + $0x538] sm:$0xff] }
  0x73   :  { %2453 = vmatprep.subr.bf16.mxu0 %v2452_v42  ;;  %v246_v42 = vld [vmem:[%s5159_s1 + $0x448] sm:$0xff]  ;;  %v2218_v47 = vpack.c.bf16 %v243_v38, %v241_v37  ;;  %v513_v37 = vld [vmem:[%s5159_s1 + $0xca0] sm:$0xff]  ;;  %v2488_v38 = vpack.c.bf16 %v516_v29, %v514_v28 }
  0x74   :  { %v2220_v52 = vpack.c.bf16 %v248_v43, %v246_v42  ;;  %v518_v42 = vld [vmem:[%s5159_s1 + $0xcc8] sm:$0xff]  ;;  %v520_v43 = vld [vmem:[%s5159_s1 + $0xcd8] sm:$0xff]  ;;  %v2490_v45 = vpack.c.bf16 %v515_v39, %v513_v37 }
  0x75   :  { %2199 = vmatpush1.bf16.msra.mxu1 %v2198_v48  ;;  %v245_v48 = vld [vmem:[%s5159_s1 + $0x440] sm:$0xff]  ;;  %v284_v37 = vld [vmem:[%s5159_s1 + $0x578] sm:$0xff] }
  0x76   :  { %2455 = vmatpush1.bf16.msra.mxu0 %v2454_v49  ;;  %2201 = vmatprep.subr.bf16.mxu1 %v2200_v50  ;;  %v63_v49 = vld [vmem:[%s5158_s0 + $0xf0] sm:$0xff]  ;;  %v54_v50 = vld [vmem:[%s5158_s0 + $0xa8] sm:$0xff]  ;;  %v2222_v63 = vpack.c.bf16 %v247_v53, %v245_v48  ;;  %v268_v53 = vld [vmem:[%s5159_s1 + $0x4f8] sm:$0xff] }
  0x77   :  { %2457 = vmatprep.subr.bf16.mxu0 %v2456_v54  ;;  %v501_v54 = vld [vmem:[%s5159_s1 + $0xc40] sm:$0xff]  ;;  %v263_v48 = vld [vmem:[%s5159_s1 + $0x4d0] sm:$0xff]  ;;  %v540_v39 = vld [vmem:[%s5159_s1 + $0xd78] sm:$0xff] }
  0x78   :  { %v2478_v3 = vpack.c.bf16 %v503_v57, %v501_v54  ;;  %v522_v54 = vld [vmem:[%s5159_s1 + $0xce8] sm:$0xff] }
  0x79   :  { %2203 = vmatpush1.bf16.msra.mxu1 %v2202_v60  ;;  %v506_v60 = vld [vmem:[%s5159_s1 + $0xc68] sm:$0xff] }
  0x7a   :  { %2459 = vmatpush1.bf16.msra.mxu0 %v2458_v61  ;;  %2205 = vmatprep.subr.bf16.mxu1 %v2204_v62  ;;  %v508_v61 = vld [vmem:[%s5159_s1 + $0xc78] sm:$0xff]  ;;  %v74_v62 = vld [vmem:[%s5158_s0 + $0x148] sm:$0xff] }
  0x7b   :  { %2461 = vmatprep.subr.bf16.mxu0 %v2460_v2  ;;  %v73_v2 = vld [vmem:[%s5158_s0 + $0x140] sm:$0xff] }
  0x7d   :  { %2207 = vmatpush1.bf16.msra.mxu1 %v2206_v8  ;;  %v2480_v8 = vpack.c.bf16 %v508_v61, %v506_v60  ;;  %v267_v60 = vld [vmem:[%s5159_s1 + $0x4f0] sm:$0xff]  ;;  %v521_v61 = vld [vmem:[%s5159_s1 + $0xce0] sm:$0xff] }
  0x7e   :  { %2463 = vmatpush1.bf16.msra.mxu0 %v2462_v9  ;;  %2209 = vmatprep.subr.bf16.mxu1 %v2208_v10  ;;  %v507_v9 = vld [vmem:[%s5159_s1 + $0xc70] sm:$0xff]  ;;  %v254_v10 = vld [vmem:[%s5159_s1 + $0x488] sm:$0xff] }
  0x7f   :  { %2465 = vmatprep.subr.bf16.mxu0 %v2464_v14  ;;  %v93_v14 = vld [vmem:[%s5158_s0 + $0x1e0] sm:$0xff]  ;;  %v2482_v19 = vpack.c.bf16 %v507_v9, %v505_v6 }
  0x80   :  { %v525_v9 = vld [vmem:[%s5159_s1 + $0xd00] sm:$0xff] }
  0x81   :  { %2211 = vmatpush1.bf16.msra.mxu1 %v2210_v20  ;;  %v2228_v20 = vpack.c.bf16 %v256_v11, %v254_v10  ;;  %v527_v11 = vld [vmem:[%s5159_s1 + $0xd10] sm:$0xff] }
  0x82   :  { %2467 = vmatpush1.bf16.msra.mxu0 %v2466_v21  ;;  %2213 = vmatprep.subr.bf16.mxu1 %v2212_v22  ;;  %v255_v21 = vld [vmem:[%s5159_s1 + $0x490] sm:$0xff]  ;;  %v509_v22 = vld [vmem:[%s5159_s1 + $0xc80] sm:$0xff] }
  0x83   :  { %2469 = vmatprep.subr.bf16.mxu0 %v2468_v26  ;;  %v258_v26 = vld [vmem:[%s5159_s1 + $0x4a8] sm:$0xff]  ;;  %v2230_v31 = vpack.c.bf16 %v255_v21, %v253_v16  ;;  %v529_v21 = vld [vmem:[%s5159_s1 + $0xd20] sm:$0xff] }
  0x84   :  { %876 = vmatmul.mubr.f32.vlgmr.msra.gmra.mrb[0].mxu1 %v35_v32  ;;  %v46_v32 = vld [vmem:[%s5158_s0 + $0x68] sm:$0xff] }
  0x85   :  { %2215 = vmatpush1.bf16.msra.mxu1 %v2214_v33  ;;  %1232 = vmatmul.mubr.f32.vlgmr.msra.gmra.mrb[0].mxu0 %v43_v34  ;;  %v2486_v33 = vpack.c.bf16 %v511_v25, %v509_v22  ;;  %v2232_v34 = vpack.c.bf16 %v260_v27, %v258_v26  ;;  %v280_v25 = vld [vmem:[%s5159_s1 + $0x558] sm:$0xff]  ;;  %v534_v26 = vld [vmem:[%s5159_s1 + $0xd48] sm:$0xff] }
  0x86   :  { %2471 = vmatpush1.bf16.msra.mxu0 %v2470_v35  ;;  %2217 = vmatprep.subr.bf16.mxu1 %v2216_v36  ;;  %v257_v35 = vld [vmem:[%s5159_s1 + $0x4a0] sm:$0xff]  ;;  %v259_v36 = vld [vmem:[%s5159_s1 + $0x4b0] sm:$0xff]  ;;  %v536_v27 = vld [vmem:[%s5159_s1 + $0xd58] sm:$0xff] }
  0x87   :  { %2473 = vmatprep.subr.bf16.mxu0 %v2472_v40  ;;  %881 = vmatprep.mubr.f32.mxu1 %v55_v46  ;;  %v262_v40 = vld [vmem:[%s5159_s1 + $0x4c8] sm:$0xff]  ;;  %v2234_v44 = vpack.c.bf16 %v259_v36, %v257_v35  ;;  %v535_v35 = vld [vmem:[%s5159_s1 + $0xd50] sm:$0xff] }
  0x88   :  { %1237 = vmatprep.mubr.f32.mxu0 %v63_v49  ;;  %882 = vmatmul.mubr.f32.gmra.mrb[2].mxu1 %v54_v50  ;;  %v2236_v46 = vpack.c.bf16 %v264_v41, %v262_v40  ;;  %v517_v49 = vld [vmem:[%s5159_s1 + $0xcc0] sm:$0xff]  ;;  %v2492_v50 = vpack.c.bf16 %v520_v43, %v518_v42  ;;  %v282_v36 = vld [vmem:[%s5159_s1 + $0x568] sm:$0xff] }
  0x89   :  { %2219 = vmatpush1.bf16.msra.mxu1 %v2218_v47  ;;  %1238 = vmatmul.mubr.f32.gmra.mrb[2].mxu0 %v62_v55  ;;  %v261_v47 = vld [vmem:[%s5159_s1 + $0x4c0] sm:$0xff]  ;;  %v524_v55 = vld [vmem:[%s5159_s1 + $0xcf8] sm:$0xff]  ;;  %v2256_v42 = vpack.c.bf16 %v284_v37, %v282_v36 }
  0x8a   :  { %2475 = vmatpush1.bf16.msra.mxu0 %v2474_v51  ;;  %2221 = vmatprep.subr.bf16.mxu1 %v2220_v52  ;;  %v519_v51 = vld [vmem:[%s5159_s1 + $0xcd0] sm:$0xff]  ;;  %v266_v52 = vld [vmem:[%s5159_s1 + $0x4e8] sm:$0xff]  ;;  %v281_v43 = vld [vmem:[%s5159_s1 + $0x560] sm:$0xff] }
  0x8b   :  { %2477 = vmatprep.subr.bf16.mxu0 %v2476_v56  ;;  %887 = vmatprep.mubr.f32.mxu1 %v74_v62  ;;  %v2238_v56 = vpack.c.bf16 %v263_v48, %v261_v47  ;;  %v2494_v57 = vpack.c.bf16 %v519_v51, %v517_v49  ;;  %v2240_v58 = vpack.c.bf16 %v268_v53, %v266_v52  ;;  %v539_v47 = vld [vmem:[%s5159_s1 + $0xd70] sm:$0xff]  ;;  %v286_v48 = vld [vmem:[%s5159_s1 + $0x588] sm:$0xff]  ;;  %v288_v49 = vld [vmem:[%s5159_s1 + $0x598] sm:$0xff] }
  0x8c   :  { %1243 = vmatprep.mubr.f32.mxu0 %v82_v1  ;;  %888 = vmatmul.mubr.f32.gmra.mrb[4].mxu1 %v73_v2  ;;  %v2496_v62 = vpack.c.bf16 %v524_v55, %v522_v54  ;;  %v272_v1 = vld [vmem:[%s5159_s1 + $0x518] sm:$0xff]  ;;  %v526_v2 = vld [vmem:[%s5159_s1 + $0xd08] sm:$0xff]  ;;  %v2260_v54 = vpack.c.bf16 %v288_v49, %v286_v48  ;;  %v285_v55 = vld [vmem:[%s5159_s1 + $0x580] sm:$0xff] }
  0x8d   :  { %2223 = vmatpush1.bf16.msra.mxu1 %v2222_v63  ;;  %1244 = vmatmul.mubr.f32.gmra.mrb[4].mxu0 %v81_v7  ;;  %v523_v63 = vld [vmem:[%s5159_s1 + $0xcf0] sm:$0xff]  ;;  %v2244_v6 = vpack.c.bf16 %v272_v1, %v270_v0  ;;  %v269_v7 = vld [vmem:[%s5159_s1 + $0x500] sm:$0xff]  ;;  %v544_v51 = vld [vmem:[%s5159_s1 + $0xd98] sm:$0xff] }
  0x8e   :  { %2479 = vmatpush1.bf16.msra.mxu0 %v2478_v3  ;;  %2225 = vmatprep.subr.bf16.mxu1 %v2224_v4  ;;  %v528_v3 = vld [vmem:[%s5159_s1 + $0xd18] sm:$0xff]  ;;  %v2242_v4 = vpack.c.bf16 %v267_v60, %v265_v59  ;;  %v2498_v5 = vpack.c.bf16 %v523_v63, %v521_v61  ;;  %v543_v59 = vld [vmem:[%s5159_s1 + $0xd90] sm:$0xff]  ;;  %v290_v60 = vld [vmem:[%s5159_s1 + $0x5a8] sm:$0xff] }
  0x8f   :  { %2481 = vmatprep.subr.bf16.mxu0 %v2480_v8  ;;  %893 = vmatprep.mubr.f32.mxu1 %v93_v14  ;;  %v271_v8 = vld [vmem:[%s5159_s1 + $0x510] sm:$0xff]  ;;  %v2500_v10 = vpack.c.bf16 %v528_v3, %v526_v2  ;;  %v530_v14 = vld [vmem:[%s5159_s1 + $0xd28] sm:$0xff]  ;;  %v292_v61 = vld [vmem:[%s5159_s1 + $0x5b8] sm:$0xff] }
  0x90   :  { %1249 = vmatprep.mubr.f32.mxu0 %v101_v17  ;;  %894 = vmatmul.mubr.f32.gmra.mrb[6].mxu1 %v92_v18  ;;  %v2246_v16 = vpack.c.bf16 %v271_v8, %v269_v7  ;;  %v2502_v17 = vpack.c.bf16 %v527_v11, %v525_v9  ;;  %v2248_v18 = vpack.c.bf16 %v276_v13, %v274_v12  ;;  %v548_v63 = vld [vmem:[%s5159_s1 + $0xdb8] sm:$0xff]  ;;  %v289_v3 = vld [vmem:[%s5159_s1 + $0x5a0] sm:$0xff]  ;;  %v547_v7 = vld [vmem:[%s5159_s1 + $0xdb0] sm:$0xff] }
  0x91   :  { %2227 = vmatpush1.bf16.msra.mxu1 %v2226_v15  ;;  %1250 = vmatmul.mubr.f32.gmra.mrb[6].mxu0 %v100_v23  ;;  %v532_v15 = vld [vmem:[%s5159_s1 + $0xd38] sm:$0xff]  ;;  %v531_v23 = vld [vmem:[%s5159_s1 + $0xd30] sm:$0xff]  ;;  %v2264_v2 = vpack.c.bf16 %v292_v61, %v290_v60  ;;  %v294_v8 = vld [vmem:[%s5159_s1 + $0x5c8] sm:$0xff] }
  0x92   :  { %2483 = vmatpush1.bf16.msra.mxu0 %v2482_v19  ;;  %2229 = vmatprep.subr.bf16.mxu1 %v2228_v20  ;;  %v273_v19 = vld [vmem:[%s5159_s1 + $0x520] sm:$0xff]  ;;  %v275_v20 = vld [vmem:[%s5159_s1 + $0x530] sm:$0xff]  ;;  %v2504_v22 = vpack.c.bf16 %v532_v15, %v530_v14  ;;  %v2506_v29 = vpack.c.bf16 %v531_v23, %v529_v21  ;;  %v296_v9 = vld [vmem:[%s5159_s1 + $0x5d8] sm:$0xff] }
  0x93   :  { %2485 = vmatprep.subr.bf16.mxu0 %v2484_v24  ;;  %964 = vmatprep.mubr.f32.mxu1 %v38_v30  ;;  %v278_v24 = vld [vmem:[%s5159_s1 + $0x548] sm:$0xff]  ;;  %v2250_v28 = vpack.c.bf16 %v275_v20, %v273_v19  ;;  %v552_v11 = vld [vmem:[%s5159_s1 + $0xdd8] sm:$0xff]  ;;  %v2268_v14 = vpack.c.bf16 %v296_v9, %v294_v8  ;;  %v293_v15 = vld [vmem:[%s5159_s1 + $0x5c0] sm:$0xff] }
  0x94   :  { %1320 = vmatprep.mubr.f32.mxu0 %v46_v32  ;;  %v2252_v30 = vpack.c.bf16 %v280_v25, %v278_v24  ;;  %v279_v32 = vld [vmem:[%s5159_s1 + $0x550] sm:$0xff]  ;;  %v298_v20 = vld [vmem:[%s5159_s1 + $0x5e8] sm:$0xff]  ;;  %v300_v21 = vld [vmem:[%s5159_s1 + $0x5f8] sm:$0xff] }
  0x95   :  { %2231 = vmatpush1.bf16.msra.mxu1 %v2230_v31  ;;  %v277_v31 = vld [vmem:[%s5159_s1 + $0x540] sm:$0xff]  ;;  %v551_v19 = vld [vmem:[%s5159_s1 + $0xdd0] sm:$0xff]  ;;  %v556_v23 = vld [vmem:[%s5159_s1 + $0xdf8] sm:$0xff] }
  0x96   :  { %2487 = vmatpush1.bf16.msra.mxu0 %v2486_v33  ;;  %2233 = vmatprep.subr.bf16.mxu1 %v2232_v34  ;;  %v533_v33 = vld [vmem:[%s5159_s1 + $0xd40] sm:$0xff]  ;;  %v2508_v34 = vpack.c.bf16 %v536_v27, %v534_v26  ;;  %v2254_v40 = vpack.c.bf16 %v279_v32, %v277_v31  ;;  %v2272_v26 = vpack.c.bf16 %v300_v21, %v298_v20  ;;  %v555_v31 = vld [vmem:[%s5159_s1 + $0xdf0] sm:$0xff]  ;;  %v302_v32 = vld [vmem:[%s5159_s1 + $0x608] sm:$0xff] }
  0x97   :  { %2489 = vmatprep.subr.bf16.mxu0 %v2488_v38  ;;  %v538_v38 = vld [vmem:[%s5159_s1 + $0xd68] sm:$0xff]  ;;  %v2510_v41 = vpack.c.bf16 %v535_v35, %v533_v33  ;;  %v297_v27 = vld [vmem:[%s5159_s1 + $0x5e0] sm:$0xff]  ;;  %v304_v33 = vld [vmem:[%s5159_s1 + $0x618] sm:$0xff] }
  0x98   :  { %v560_v35 = vld [vmem:[%s5159_s1 + $0xe18] sm:$0xff]  ;;  %v37_v48 = vld [vmem:[%s5158_s0 + $0x20] sm:$0xff]  ;;  %v566_v60 = vld [vmem:[%s5159_s1 + $0xe48] sm:$0xff] }
  0x99   :  { %2235 = vmatpush1.bf16.msra.mxu1 %v2234_v44  ;;  %v283_v44 = vld [vmem:[%s5159_s1 + $0x570] sm:$0xff]  ;;  %v568_v61 = vld [vmem:[%s5159_s1 + $0xe58] sm:$0xff] }
  0x9a   :  { %2491 = vmatpush1.bf16.msra.mxu0 %v2490_v45  ;;  %2237 = vmatprep.subr.bf16.mxu1 %v2236_v46  ;;  %v537_v45 = vld [vmem:[%s5159_s1 + $0xd60] sm:$0xff]  ;;  %v2512_v46 = vpack.c.bf16 %v540_v39, %v538_v38  ;;  %v2258_v52 = vpack.c.bf16 %v283_v44, %v281_v43  ;;  %v2276_v38 = vpack.c.bf16 %v304_v33, %v302_v32  ;;  %v559_v43 = vld [vmem:[%s5159_s1 + $0xe10] sm:$0xff]  ;;  %v306_v44 = vld [vmem:[%s5159_s1 + $0x628] sm:$0xff] }
  0x9b   :  { %2493 = vmatprep.subr.bf16.mxu0 %v2492_v50  ;;  %v542_v50 = vld [vmem:[%s5159_s1 + $0xd88] sm:$0xff]  ;;  %v2514_v53 = vpack.c.bf16 %v539_v47, %v537_v45  ;;  %v301_v39 = vld [vmem:[%s5159_s1 + $0x600] sm:$0xff]  ;;  %v308_v45 = vld [vmem:[%s5159_s1 + $0x638] sm:$0xff]  ;;  %v2540_v8 = vpack.c.bf16 %v568_v61, %v566_v60 }
  0x9c   :  { %v564_v47 = vld [vmem:[%s5159_s1 + $0xe38] sm:$0xff]  ;;  %v567_v9 = vld [vmem:[%s5159_s1 + $0xe50] sm:$0xff]  ;;  %v317_v32 = vld [vmem:[%s5159_s1 + $0x680] sm:$0xff] }
  0x9d   :  { %2239 = vmatpush1.bf16.msra.mxu1 %v2238_v56  ;;  %v287_v56 = vld [vmem:[%s5159_s1 + $0x590] sm:$0xff]  ;;  %v94_v33 = vld [vmem:[%s5158_s0 + $0x1e8] sm:$0xff] }
  0x9e   :  { %2495 = vmatpush1.bf16.msra.mxu0 %v2494_v57  ;;  %2241 = vmatprep.subr.bf16.mxu1 %v2240_v58  ;;  %v541_v57 = vld [vmem:[%s5159_s1 + $0xd80] sm:$0xff]  ;;  %v2516_v58 = vpack.c.bf16 %v544_v51, %v542_v50  ;;  %v2262_v0 = vpack.c.bf16 %v287_v56, %v285_v55  ;;  %v315_v21 = vld [vmem:[%s5159_s1 + $0x670] sm:$0xff] }
  0x9f   :  { %2497 = vmatprep.subr.bf16.mxu0 %v2496_v62  ;;  %v546_v62 = vld [vmem:[%s5159_s1 + $0xda8] sm:$0xff]  ;;  %v2518_v1 = vpack.c.bf16 %v543_v59, %v541_v57  ;;  %v45_v50 = vld [vmem:[%s5158_s0 + $0x60] sm:$0xff]  ;;  %v563_v57 = vld [vmem:[%s5159_s1 + $0xe30] sm:$0xff] }
  0xa0   :  { %v561_v55 = vld [vmem:[%s5159_s1 + $0xe20] sm:$0xff]  ;;  %v312_v59 = vld [vmem:[%s5159_s1 + $0x658] sm:$0xff] }
  0xa1   :  { %2243 = vmatpush1.bf16.msra.mxu1 %v2242_v4  ;;  %v291_v4 = vld [vmem:[%s5159_s1 + $0x5b0] sm:$0xff] }
  0xa2   :  { %2499 = vmatpush1.bf16.msra.mxu0 %v2498_v5  ;;  %2245 = vmatprep.subr.bf16.mxu1 %v2244_v6  ;;  %v545_v5 = vld [vmem:[%s5159_s1 + $0xda0] sm:$0xff]  ;;  %v2520_v6 = vpack.c.bf16 %v548_v63, %v546_v62  ;;  %v2266_v12 = vpack.c.bf16 %v291_v4, %v289_v3  ;;  %v2538_v3 = vpack.c.bf16 %v563_v57, %v561_v55  ;;  %v579_v55 = vld [vmem:[%s5159_s1 + $0xeb0] sm:$0xff]  ;;  %v328_v57 = vld [vmem:[%s5159_s1 + $0x6d8] sm:$0xff] }
  0xa3   :  { %2501 = vmatprep.subr.bf16.mxu0 %v2500_v10  ;;  %v550_v10 = vld [vmem:[%s5159_s1 + $0xdc8] sm:$0xff]  ;;  %v2522_v13 = vpack.c.bf16 %v547_v7, %v545_v5  ;;  %v57_v62 = vld [vmem:[%s5158_s0 + $0xc0] sm:$0xff]  ;;  %v311_v5 = vld [vmem:[%s5159_s1 + $0x650] sm:$0xff] }
  0xa4   :  { %v64_v7 = vld [vmem:[%s5158_s0 + $0xf8] sm:$0xff] }
  0xa5   :  { %2247 = vmatpush1.bf16.msra.mxu1 %v2246_v16  ;;  %v295_v16 = vld [vmem:[%s5159_s1 + $0x5d0] sm:$0xff] }
  0xa6   :  { %2503 = vmatpush1.bf16.msra.mxu0 %v2502_v17  ;;  %2249 = vmatprep.subr.bf16.mxu1 %v2248_v18  ;;  %v549_v17 = vld [vmem:[%s5159_s1 + $0xdc0] sm:$0xff]  ;;  %v2524_v18 = vpack.c.bf16 %v552_v11, %v550_v10  ;;  %v2270_v24 = vpack.c.bf16 %v295_v16, %v293_v15  ;;  %v314_v10 = vld [vmem:[%s5159_s1 + $0x668] sm:$0xff]  ;;  %v316_v11 = vld [vmem:[%s5159_s1 + $0x678] sm:$0xff] }
  0xa7   :  { %2505 = vmatprep.subr.bf16.mxu0 %v2504_v22  ;;  %v554_v22 = vld [vmem:[%s5159_s1 + $0xde8] sm:$0xff]  ;;  %v2526_v25 = vpack.c.bf16 %v551_v19, %v549_v17  ;;  %v313_v16 = vld [vmem:[%s5159_s1 + $0x660] sm:$0xff]  ;;  %v75_v17 = vld [vmem:[%s5158_s0 + $0x150] sm:$0xff]  ;;  %v2288_v20 = vpack.c.bf16 %v316_v11, %v314_v10 }
  0xa8   :  { %v329_v11 = vld [vmem:[%s5159_s1 + $0x6e0] sm:$0xff] }
  0xa9   :  { %2251 = vmatpush1.bf16.msra.mxu1 %v2250_v28  ;;  %v299_v28 = vld [vmem:[%s5159_s1 + $0x5f0] sm:$0xff] }
  0xaa   :  { %2507 = vmatpush1.bf16.msra.mxu0 %v2506_v29  ;;  %2253 = vmatprep.subr.bf16.mxu1 %v2252_v30  ;;  %v553_v29 = vld [vmem:[%s5159_s1 + $0xde0] sm:$0xff]  ;;  %v2528_v30 = vpack.c.bf16 %v556_v23, %v554_v22  ;;  %v2274_v36 = vpack.c.bf16 %v299_v28, %v297_v27  ;;  %v83_v23 = vld [vmem:[%s5158_s0 + $0x190] sm:$0xff]  ;;  %v320_v27 = vld [vmem:[%s5159_s1 + $0x698] sm:$0xff] }
  0xab   :  { %2509 = vmatprep.subr.bf16.mxu0 %v2508_v34  ;;  %v558_v34 = vld [vmem:[%s5159_s1 + $0xe08] sm:$0xff]  ;;  %v2530_v37 = vpack.c.bf16 %v555_v31, %v553_v29  ;;  %v569_v22 = vld [vmem:[%s5159_s1 + $0xe60] sm:$0xff]  ;;  %v576_v29 = vld [vmem:[%s5159_s1 + $0xe98] sm:$0xff]  ;;  %v2290_v31 = vpack.c.bf16 %v315_v21, %v313_v16 }
  0xac   :  { %v574_v28 = vld [vmem:[%s5159_s1 + $0xe88] sm:$0xff] }
  0xad   :  { %2255 = vmatpush1.bf16.msra.mxu1 %v2254_v40  ;;  %v303_v40 = vld [vmem:[%s5159_s1 + $0x610] sm:$0xff]  ;;  %v334_v16 = vld [vmem:[%s5159_s1 + $0x708] sm:$0xff] }
  0xae   :  { %2511 = vmatpush1.bf16.msra.mxu0 %v2510_v41  ;;  %2257 = vmatprep.subr.bf16.mxu1 %v2256_v42  ;;  %v557_v41 = vld [vmem:[%s5159_s1 + $0xe00] sm:$0xff]  ;;  %v2532_v42 = vpack.c.bf16 %v560_v35, %v558_v34  ;;  %v2278_v49 = vpack.c.bf16 %v303_v40, %v301_v39  ;;  %v103_v34 = vld [vmem:[%s5158_s0 + $0x230] sm:$0xff]  ;;  %v102_v39 = vld [vmem:[%s5158_s0 + $0x228] sm:$0xff]  ;;  %v2548_v40 = vpack.c.bf16 %v576_v29, %v574_v28 }
  0xaf   :  { %2513 = vmatprep.subr.bf16.mxu0 %v2512_v46  ;;  %v562_v46 = vld [vmem:[%s5159_s1 + $0xe28] sm:$0xff]  ;;  %v2534_v51 = vpack.c.bf16 %v559_v43, %v557_v41  ;;  %v575_v41 = vld [vmem:[%s5159_s1 + $0xe90] sm:$0xff]  ;;  %v324_v43 = vld [vmem:[%s5159_s1 + $0x6b8] sm:$0xff] }
  0xb0   :  { %v2536_v56 = vpack.c.bf16 %v564_v47, %v562_v46  ;;  %v40_v46 = vld [vmem:[%s5158_s0 + $0x38] sm:$0xff]  ;;  %v338_v28 = vld [vmem:[%s5159_s1 + $0x728] sm:$0xff] }
  0xb1   :  { %2259 = vmatpush1.bf16.msra.mxu1 %v2258_v52  ;;  %v2280_v52 = vpack.c.bf16 %v308_v45, %v306_v44  ;;  %v578_v44 = vld [vmem:[%s5159_s1 + $0xea8] sm:$0xff]  ;;  %v580_v45 = vld [vmem:[%s5159_s1 + $0xeb8] sm:$0xff] }
  0xb2   :  { %2515 = vmatpush1.bf16.msra.mxu0 %v2514_v53  ;;  %2261 = vmatprep.subr.bf16.mxu1 %v2260_v54  ;;  %v305_v53 = vld [vmem:[%s5159_s1 + $0x620] sm:$0xff]  ;;  %v307_v54 = vld [vmem:[%s5159_s1 + $0x630] sm:$0xff]  ;;  %v340_v29 = vld [vmem:[%s5159_s1 + $0x738] sm:$0xff] }
  0xb3   :  { %2517 = vmatprep.subr.bf16.mxu0 %v2516_v58  ;;  %v310_v58 = vld [vmem:[%s5159_s1 + $0x648] sm:$0xff]  ;;  %v2282_v63 = vpack.c.bf16 %v307_v54, %v305_v53  ;;  %v577_v53 = vld [vmem:[%s5159_s1 + $0xea0] sm:$0xff]  ;;  %v2552_v54 = vpack.c.bf16 %v580_v45, %v578_v44 }
  0xb4   :  { %v2284_v4 = vpack.c.bf16 %v312_v59, %v310_v58  ;;  %v582_v58 = vld [vmem:[%s5159_s1 + $0xec8] sm:$0xff]  ;;  %v584_v59 = vld [vmem:[%s5159_s1 + $0xed8] sm:$0xff]  ;;  %v2554_v61 = vpack.c.bf16 %v579_v55, %v577_v53 }
  0xb5   :  { %2263 = vmatpush1.bf16.msra.mxu1 %v2262_v0  ;;  %v309_v0 = vld [vmem:[%s5159_s1 + $0x640] sm:$0xff] }
  0xb6   :  { %2519 = vmatpush1.bf16.msra.mxu0 %v2518_v1  ;;  %2265 = vmatprep.subr.bf16.mxu1 %v2264_v2  ;;  %v56_v1 = vld [vmem:[%s5158_s0 + $0xb8] sm:$0xff]  ;;  %v65_v2 = vld [vmem:[%s5158_s0 + $0x100] sm:$0xff]  ;;  %v2286_v15 = vpack.c.bf16 %v311_v5, %v309_v0  ;;  %v327_v0 = vld [vmem:[%s5159_s1 + $0x6d0] sm:$0xff] }
  0xb7   :  { %2521 = vmatprep.subr.bf16.mxu0 %v2520_v6  ;;  %v565_v6 = vld [vmem:[%s5159_s1 + $0xe40] sm:$0xff]  ;;  %v332_v5 = vld [vmem:[%s5159_s1 + $0x6f8] sm:$0xff] }
  0xb8   :  { %v2542_v19 = vpack.c.bf16 %v567_v9, %v565_v6  ;;  %v586_v6 = vld [vmem:[%s5159_s1 + $0xee8] sm:$0xff] }
  0xb9   :  { %2267 = vmatpush1.bf16.msra.mxu1 %v2266_v12  ;;  %v570_v12 = vld [vmem:[%s5159_s1 + $0xe68] sm:$0xff] }
  0xba   :  { %2523 = vmatpush1.bf16.msra.mxu0 %v2522_v13  ;;  %2269 = vmatprep.subr.bf16.mxu1 %v2268_v14  ;;  %v572_v13 = vld [vmem:[%s5159_s1 + $0xe78] sm:$0xff] }
  0xbb   :  { %2525 = vmatprep.subr.bf16.mxu0 %v2524_v18  ;;  %v76_v14 = vld [vmem:[%s5158_s0 + $0x158] sm:$0xff] }
  0xbc   :  { %v84_v18 = vld [vmem:[%s5158_s0 + $0x198] sm:$0xff] }
  0xbd   :  { %2271 = vmatpush1.bf16.msra.mxu1 %v2270_v24  ;;  %v2544_v24 = vpack.c.bf16 %v572_v13, %v570_v12  ;;  %v331_v12 = vld [vmem:[%s5159_s1 + $0x6f0] sm:$0xff]  ;;  %v585_v13 = vld [vmem:[%s5159_s1 + $0xee0] sm:$0xff] }
  0xbe   :  { %2527 = vmatpush1.bf16.msra.mxu0 %v2526_v25  ;;  %2273 = vmatprep.subr.bf16.mxu1 %v2272_v26  ;;  %v571_v25 = vld [vmem:[%s5159_s1 + $0xe70] sm:$0xff]  ;;  %v318_v26 = vld [vmem:[%s5159_s1 + $0x688] sm:$0xff] }
  0xbf   :  { %2529 = vmatprep.subr.bf16.mxu0 %v2528_v30  ;;  %v95_v30 = vld [vmem:[%s5158_s0 + $0x1f0] sm:$0xff]  ;;  %v2546_v35 = vpack.c.bf16 %v571_v25, %v569_v22  ;;  %v589_v25 = vld [vmem:[%s5159_s1 + $0xf00] sm:$0xff] }
  0xc1   :  { %2275 = vmatpush1.bf16.msra.mxu1 %v2274_v36  ;;  %v2292_v36 = vpack.c.bf16 %v320_v27, %v318_v26  ;;  %v591_v27 = vld [vmem:[%s5159_s1 + $0xf10] sm:$0xff] }
  0xc2   :  { %2531 = vmatpush1.bf16.msra.mxu0 %v2530_v37  ;;  %2277 = vmatprep.subr.bf16.mxu1 %v2276_v38  ;;  %v319_v37 = vld [vmem:[%s5159_s1 + $0x690] sm:$0xff]  ;;  %v573_v38 = vld [vmem:[%s5159_s1 + $0xe80] sm:$0xff] }
  0xc3   :  { %2533 = vmatprep.subr.bf16.mxu0 %v2532_v42  ;;  %v322_v42 = vld [vmem:[%s5159_s1 + $0x6a8] sm:$0xff]  ;;  %v2294_v47 = vpack.c.bf16 %v319_v37, %v317_v32 }
  0xc4   :  { %965 = vmatmul.mubr.f32.vlgmr.msra.gmra.mrb[0].mxu1 %v37_v48  ;;  %v48_v48 = vld [vmem:[%s5158_s0 + $0x78] sm:$0xff] }
  0xc5   :  { %2279 = vmatpush1.bf16.msra.mxu1 %v2278_v49  ;;  %1321 = vmatmul.mubr.f32.vlgmr.msra.gmra.mrb[0].mxu0 %v45_v50  ;;  %v2550_v49 = vpack.c.bf16 %v575_v41, %v573_v38  ;;  %v2296_v50 = vpack.c.bf16 %v324_v43, %v322_v42 }
  0xc6   :  { %2535 = vmatpush1.bf16.msra.mxu0 %v2534_v51  ;;  %2281 = vmatprep.subr.bf16.mxu1 %v2280_v52  ;;  %v321_v51 = vld [vmem:[%s5159_s1 + $0x6a0] sm:$0xff]  ;;  %v323_v52 = vld [vmem:[%s5159_s1 + $0x6b0] sm:$0xff] }
  0xc7   :  { %2537 = vmatprep.subr.bf16.mxu0 %v2536_v56  ;;  %970 = vmatprep.mubr.f32.mxu1 %v57_v62  ;;  %v326_v56 = vld [vmem:[%s5159_s1 + $0x6c8] sm:$0xff]  ;;  %v2298_v60 = vpack.c.bf16 %v323_v52, %v321_v51 }
  0xc8   :  { %971 = vmatmul.mubr.f32.gmra.mrb[2].mxu1 %v56_v1  ;;  %1326 = vmatprep.mubr.f32.mxu0 %v65_v2  ;;  %v2300_v62 = vpack.c.bf16 %v328_v57, %v326_v56  ;;  %v581_v1 = vld [vmem:[%s5159_s1 + $0xec0] sm:$0xff]  ;;  %v2556_v2 = vpack.c.bf16 %v584_v59, %v582_v58 }
  0xc9   :  { %2283 = vmatpush1.bf16.msra.mxu1 %v2282_v63  ;;  %1327 = vmatmul.mubr.f32.gmra.mrb[2].mxu0 %v64_v7  ;;  %v325_v63 = vld [vmem:[%s5159_s1 + $0x6c0] sm:$0xff]  ;;  %v588_v7 = vld [vmem:[%s5159_s1 + $0xef8] sm:$0xff] }
  0xca   :  { %2539 = vmatpush1.bf16.msra.mxu0 %v2538_v3  ;;  %2285 = vmatprep.subr.bf16.mxu1 %v2284_v4  ;;  %v583_v3 = vld [vmem:[%s5159_s1 + $0xed0] sm:$0xff]  ;;  %v330_v4 = vld [vmem:[%s5159_s1 + $0x6e8] sm:$0xff] }
  0xcb   :  { %2541 = vmatprep.subr.bf16.mxu0 %v2540_v8  ;;  %976 = vmatprep.mubr.f32.mxu1 %v76_v14  ;;  %v2302_v8 = vpack.c.bf16 %v327_v0, %v325_v63  ;;  %v2558_v9 = vpack.c.bf16 %v583_v3, %v581_v1  ;;  %v2304_v10 = vpack.c.bf16 %v332_v5, %v330_v4 }
  0xcc   :  { %977 = vmatmul.mubr.f32.gmra.mrb[4].mxu1 %v75_v17  ;;  %1332 = vmatprep.mubr.f32.mxu0 %v84_v18  ;;  %v2560_v14 = vpack.c.bf16 %v588_v7, %v586_v6  ;;  %v336_v17 = vld [vmem:[%s5159_s1 + $0x718] sm:$0xff]  ;;  %v590_v18 = vld [vmem:[%s5159_s1 + $0xf08] sm:$0xff] }
  0xcd   :  { %2287 = vmatpush1.bf16.msra.mxu1 %v2286_v15  ;;  %1333 = vmatmul.mubr.f32.gmra.mrb[4].mxu0 %v83_v23  ;;  %v587_v15 = vld [vmem:[%s5159_s1 + $0xef0] sm:$0xff]  ;;  %v2308_v22 = vpack.c.bf16 %v336_v17, %v334_v16  ;;  %v333_v23 = vld [vmem:[%s5159_s1 + $0x700] sm:$0xff] }
  0xce   :  { %2543 = vmatpush1.bf16.msra.mxu0 %v2542_v19  ;;  %2289 = vmatprep.subr.bf16.mxu1 %v2288_v20  ;;  %v592_v19 = vld [vmem:[%s5159_s1 + $0xf18] sm:$0xff]  ;;  %v2306_v20 = vpack.c.bf16 %v331_v12, %v329_v11  ;;  %v2562_v21 = vpack.c.bf16 %v587_v15, %v585_v13 }
  0xcf   :  { %2545 = vmatprep.subr.bf16.mxu0 %v2544_v24  ;;  %982 = vmatprep.mubr.f32.mxu1 %v95_v30  ;;  %v335_v24 = vld [vmem:[%s5159_s1 + $0x710] sm:$0xff]  ;;  %v2564_v26 = vpack.c.bf16 %v592_v19, %v590_v18  ;;  %v594_v30 = vld [vmem:[%s5159_s1 + $0xf28] sm:$0xff] }
  0xd0   :  { %983 = vmatmul.mubr.f32.gmra.mrb[6].mxu1 %v94_v33  ;;  %1338 = vmatprep.mubr.f32.mxu0 %v103_v34  ;;  %v2310_v32 = vpack.c.bf16 %v335_v24, %v333_v23 }
  0xd1   :  { %2291 = vmatpush1.bf16.msra.mxu1 %v2290_v31  ;;  %1339 = vmatmul.mubr.f32.gmra.mrb[6].mxu0 %v102_v39  ;;  %v596_v31 = vld [vmem:[%s5159_s1 + $0xf38] sm:$0xff] }
  0xd2   :  { %2547 = vmatpush1.bf16.msra.mxu0 %v2546_v35  ;;  %2293 = vmatprep.subr.bf16.mxu1 %v2292_v36 }
  0xd3   :  { %2549 = vmatprep.subr.bf16.mxu0 %v2548_v40  ;;  %1053 = vmatprep.mubr.f32.mxu1 %v40_v46 }
  0xd4   :  { %1409 = vmatprep.mubr.f32.mxu0 %v48_v48 }
  0xd5   :  { %2295 = vmatpush1.bf16.msra.mxu1 %v2294_v47 }
  0xd6   :  { %2551 = vmatpush1.bf16.msra.mxu0 %v2550_v49  ;;  %2297 = vmatprep.subr.bf16.mxu1 %v2296_v50 }
  0xd7   :  { %2553 = vmatprep.subr.bf16.mxu0 %v2552_v54 }
  0xd9   :  { %2299 = vmatpush1.bf16.msra.mxu1 %v2298_v60 }
  0xda   :  { %2555 = vmatpush1.bf16.msra.mxu0 %v2554_v61  ;;  %2301 = vmatprep.subr.bf16.mxu1 %v2300_v62 }
  0xdb   :  { %2557 = vmatprep.subr.bf16.mxu0 %v2556_v2 }
  0xdd   :  { %2303 = vmatpush1.bf16.msra.mxu1 %v2302_v8 }
  0xde   :  { %2559 = vmatpush1.bf16.msra.mxu0 %v2558_v9  ;;  %2305 = vmatprep.subr.bf16.mxu1 %v2304_v10 }
  0xdf   :  { %2561 = vmatprep.subr.bf16.mxu0 %v2560_v14 }
  0xe1   :  { %2307 = vmatpush1.bf16.msra.mxu1 %v2306_v20 }
  0xe2   :  { %14 = vsyncpa [#allocation3], 0  ;;  %2563 = vmatpush1.bf16.msra.mxu0 %v2562_v21  ;;  %2309 = vmatprep.subr.bf16.mxu1 %v2308_v22  ;;  %v2566_v33 = vpack.c.bf16 %v591_v27, %v589_v25  ;;  %v2312_v34 = vpack.c.bf16 %v340_v29, %v338_v28  ;;  %v337_v35 = vld [vmem:[%s5159_s1 + $0x720] sm:$0xff]  ;;  %v339_v36 = vld [vmem:[%s5159_s1 + $0x730] sm:$0xff]  ;;  %v2568_v38 = vpack.c.bf16 %v596_v31, %v594_v30  ;;  %vm709_vm0 = vcmask 785408   ;;  %s2855_s17 = smov [#allocation2]  }
  0xe3   :  { %v593_v37 = vld [vmem:[%s5159_s1 + $0xf20] sm:$0xff]  ;;  %2565 = vmatprep.subr.bf16.mxu0 %v2564_v26  ;;  %v595_v39 = vld [vmem:[%s5159_s1 + $0xf30] sm:$0xff]  ;;  %v342_v40 = vld [vmem:[%s5159_s1 + $0x748] sm:$0xff]  ;;  %v2314_v44 = vpack.c.bf16 %v339_v36, %v337_v35  ;;  %vm2854_vm1 = vmmov 0   ;;  %vm1766_vm2 = vcmask 982016   ;;  %vm1863_vm3 = vcmask 1043456  }
  0xe4   :  { %v344_v41 = vld [vmem:[%s5159_s1 + $0x758] sm:$0xff]  ;;  %v598_v42 = vld [vmem:[%s5159_s1 + $0xf48] sm:$0xff]  ;;  %v2570_v45 = vpack.c.bf16 %v595_v39, %v593_v37  ;;  %v341_v47 = vld [vmem:[%s5159_s1 + $0x740] sm:$0xff]  ;;  %vm1859_vm4 = vcmask 687104   ;;  %s1945_s18 = sshll.u32 %s2855_s17, 4  ;;  %vm1937_vm5 = vcmask 80896   ;;  %s1946_s18 = int_to_ptr.vmem [resolvable:$true] %s1945_s18 }
  0xe5   :  { %v600_v43 = vld [vmem:[%s5159_s1 + $0xf58] sm:$0xff]  ;;  %2311 = vmatpush1.bf16.msra.mxu1 %v2310_v32  ;;  %v2316_v46 = vpack.c.bf16 %v344_v41, %v342_v40  ;;  %v343_v48 = vld [vmem:[%s5159_s1 + $0x750] sm:$0xff]  ;;  %v597_v49 = vld [vmem:[%s5159_s1 + $0xf40] sm:$0xff]  ;;  %p2833_p1 = scmp.lt.s32.totalorder %s1946_s18, %s1946_s18 }
  0xe6   :  { %2567 = vmatpush1.bf16.msra.mxu0 %v2566_v33  ;;  %2313 = vmatprep.subr.bf16.mxu1 %v2312_v34  ;;  %v2572_v50 = vpack.c.bf16 %v600_v43, %v598_v42  ;;  %v599_v51 = vld [vmem:[%s5159_s1 + $0xf50] sm:$0xff]  ;;  %v346_v52 = vld [vmem:[%s5159_s1 + $0x768] sm:$0xff]  ;;  %v348_v53 = vld [vmem:[%s5159_s1 + $0x778] sm:$0xff]  ;;  %v2318_v56 = vpack.c.bf16 %v343_v48, %v341_v47 }
  0xe7   :  { %2569 = vmatprep.subr.bf16.mxu0 %v2568_v38  ;;  %v602_v54 = vld [vmem:[%s5159_s1 + $0xf68] sm:$0xff]  ;;  %v604_v55 = vld [vmem:[%s5159_s1 + $0xf78] sm:$0xff]  ;;  %v2574_v57 = vpack.c.bf16 %v599_v51, %v597_v49  ;;  %v2320_v58 = vpack.c.bf16 %v348_v53, %v346_v52  ;;  %v345_v59 = vld [vmem:[%s5159_s1 + $0x760] sm:$0xff] }
  0xe8   :  { %v347_v60 = vld [vmem:[%s5159_s1 + $0x770] sm:$0xff]  ;;  %v601_v61 = vld [vmem:[%s5159_s1 + $0xf60] sm:$0xff]  ;;  %v2576_v62 = vpack.c.bf16 %v604_v55, %v602_v54  ;;  %v350_v0 = vld [vmem:[%s5159_s1 + $0x788] sm:$0xff] }
  0xe9   :  { %2315 = vmatpush1.bf16.msra.mxu1 %v2314_v44  ;;  %v603_v63 = vld [vmem:[%s5159_s1 + $0xf70] sm:$0xff]  ;;  %v352_v1 = vld [vmem:[%s5159_s1 + $0x798] sm:$0xff]  ;;  %v606_v2 = vld [vmem:[%s5159_s1 + $0xf88] sm:$0xff]  ;;  %v2322_v4 = vpack.c.bf16 %v347_v60, %v345_v59 }
  0xea   :  { %2571 = vmatpush1.bf16.msra.mxu0 %v2570_v45  ;;  %2317 = vmatprep.subr.bf16.mxu1 %v2316_v46  ;;  %v608_v3 = vld [vmem:[%s5159_s1 + $0xf98] sm:$0xff]  ;;  %v2578_v5 = vpack.c.bf16 %v603_v63, %v601_v61  ;;  %v2324_v6 = vpack.c.bf16 %v352_v1, %v350_v0  ;;  %v349_v7 = vld [vmem:[%s5159_s1 + $0x780] sm:$0xff]  ;;  %v351_v8 = vld [vmem:[%s5159_s1 + $0x790] sm:$0xff] }
  0xeb   :  { %2573 = vmatprep.subr.bf16.mxu0 %v2572_v50  ;;  %v605_v9 = vld [vmem:[%s5159_s1 + $0xf80] sm:$0xff]  ;;  %v2580_v10 = vpack.c.bf16 %v608_v3, %v606_v2  ;;  %v607_v11 = vld [vmem:[%s5159_s1 + $0xf90] sm:$0xff]  ;;  %v354_v12 = vld [vmem:[%s5159_s1 + $0x7a8] sm:$0xff]  ;;  %v2326_v16 = vpack.c.bf16 %v351_v8, %v349_v7 }
  0xec   :  { %v356_v13 = vld [vmem:[%s5159_s1 + $0x7b8] sm:$0xff]  ;;  %v610_v14 = vld [vmem:[%s5159_s1 + $0xfa8] sm:$0xff]  ;;  %v2582_v17 = vpack.c.bf16 %v607_v11, %v605_v9  ;;  %v353_v19 = vld [vmem:[%s5159_s1 + $0x7a0] sm:$0xff] }
  0xed   :  { %2319 = vmatpush1.bf16.msra.mxu1 %v2318_v56  ;;  %v612_v15 = vld [vmem:[%s5159_s1 + $0xfb8] sm:$0xff]  ;;  %v2328_v18 = vpack.c.bf16 %v356_v13, %v354_v12  ;;  %v355_v20 = vld [vmem:[%s5159_s1 + $0x7b0] sm:$0xff]  ;;  %v609_v21 = vld [vmem:[%s5159_s1 + $0xfa0] sm:$0xff] }
  0xee   :  { %2575 = vmatpush1.bf16.msra.mxu0 %v2574_v57  ;;  %2321 = vmatprep.subr.bf16.mxu1 %v2320_v58  ;;  %v2584_v22 = vpack.c.bf16 %v612_v15, %v610_v14  ;;  %v611_v23 = vld [vmem:[%s5159_s1 + $0xfb0] sm:$0xff]  ;;  %v358_v24 = vld [vmem:[%s5159_s1 + $0x7c8] sm:$0xff]  ;;  %v360_v25 = vld [vmem:[%s5159_s1 + $0x7d8] sm:$0xff]  ;;  %v2330_v28 = vpack.c.bf16 %v355_v20, %v353_v19 }
  0xef   :  { %2577 = vmatprep.subr.bf16.mxu0 %v2576_v62  ;;  %v614_v26 = vld [vmem:[%s5159_s1 + $0xfc8] sm:$0xff]  ;;  %v616_v27 = vld [vmem:[%s5159_s1 + $0xfd8] sm:$0xff]  ;;  %v2586_v29 = vpack.c.bf16 %v611_v23, %v609_v21  ;;  %v2332_v30 = vpack.c.bf16 %v360_v25, %v358_v24  ;;  %v357_v31 = vld [vmem:[%s5159_s1 + $0x7c0] sm:$0xff] }
  0xf0   :  { %v359_v32 = vld [vmem:[%s5159_s1 + $0x7d0] sm:$0xff]  ;;  %v613_v33 = vld [vmem:[%s5159_s1 + $0xfc0] sm:$0xff]  ;;  %v2588_v34 = vpack.c.bf16 %v616_v27, %v614_v26  ;;  %v362_v36 = vld [vmem:[%s5159_s1 + $0x7e8] sm:$0xff] }
  0xf1   :  { %2323 = vmatpush1.bf16.msra.mxu1 %v2322_v4  ;;  %v615_v35 = vld [vmem:[%s5159_s1 + $0xfd0] sm:$0xff]  ;;  %v364_v37 = vld [vmem:[%s5159_s1 + $0x7f8] sm:$0xff]  ;;  %v618_v38 = vld [vmem:[%s5159_s1 + $0xfe8] sm:$0xff]  ;;  %v2334_v40 = vpack.c.bf16 %v359_v32, %v357_v31 }
  0xf2   :  { %2579 = vmatpush1.bf16.msra.mxu0 %v2578_v5  ;;  %2325 = vmatprep.subr.bf16.mxu1 %v2324_v6  ;;  %v620_v39 = vld [vmem:[%s5159_s1 + $0xff8] sm:$0xff]  ;;  %v2590_v41 = vpack.c.bf16 %v615_v35, %v613_v33  ;;  %v2336_v42 = vpack.c.bf16 %v364_v37, %v362_v36  ;;  %v361_v43 = vld [vmem:[%s5159_s1 + $0x7e0] sm:$0xff]  ;;  %v363_v44 = vld [vmem:[%s5159_s1 + $0x7f0] sm:$0xff] }
  0xf3   :  { %2581 = vmatprep.subr.bf16.mxu0 %v2580_v10  ;;  %v2592_v45 = vpack.c.bf16 %v620_v39, %v618_v38  ;;  %v617_v46 = vld [vmem:[%s5159_s1 + $0xfe0] sm:$0xff]  ;;  %v619_v47 = vld [vmem:[%s5159_s1 + $0xff0] sm:$0xff]  ;;  %v622_v48 = vld [vmem:[%s5159_s1 + $0x1008] sm:$0xff]  ;;  %v2338_v50 = vpack.c.bf16 %v363_v44, %v361_v43 }
  0xf4   :  { %v624_v49 = vld [vmem:[%s5159_s1 + $0x1018] sm:$0xff]  ;;  %v2594_v51 = vpack.c.bf16 %v619_v47, %v617_v46  ;;  %v621_v53 = vld [vmem:[%s5159_s1 + $0x1000] sm:$0xff]  ;;  %v623_v54 = vld [vmem:[%s5159_s1 + $0x1010] sm:$0xff] }
  0xf5   :  { %2327 = vmatpush1.bf16.msra.mxu1 %v2326_v16  ;;  %v2596_v52 = vpack.c.bf16 %v624_v49, %v622_v48  ;;  %v626_v55 = vld [vmem:[%s5159_s1 + $0x1028] sm:$0xff]  ;;  %v628_v56 = vld [vmem:[%s5159_s1 + $0x1038] sm:$0xff]  ;;  %v39_v57 = vld [vmem:[%s5158_s0 + $0x30] sm:$0xff]  ;;  %v2598_v59 = vpack.c.bf16 %v623_v54, %v621_v53 }
  0xf6   :  { %2583 = vmatpush1.bf16.msra.mxu0 %v2582_v17  ;;  %2329 = vmatprep.subr.bf16.mxu1 %v2328_v18  ;;  %v47_v58 = vld [vmem:[%s5158_s0 + $0x70] sm:$0xff]  ;;  %v2600_v61 = vpack.c.bf16 %v628_v56, %v626_v55  ;;  %v625_v62 = vld [vmem:[%s5159_s1 + $0x1020] sm:$0xff]  ;;  %v630_v1 = vld [vmem:[%s5159_s1 + $0x1048] sm:$0xff] }
  0xf7   :  { %2585 = vmatprep.subr.bf16.mxu0 %v2584_v22  ;;  %v59_v60 = vld [vmem:[%s5158_s0 + $0xd0] sm:$0xff]  ;;  %v632_v2 = vld [vmem:[%s5159_s1 + $0x1058] sm:$0xff]  ;;  %v58_v3 = vld [vmem:[%s5158_s0 + $0xc8] sm:$0xff] }
  0xf8   :  { %v627_v63 = vld [vmem:[%s5159_s1 + $0x1030] sm:$0xff]  ;;  %v78_v5 = vld [vmem:[%s5158_s0 + $0x168] sm:$0xff]  ;;  %v2604_v7 = vpack.c.bf16 %v632_v2, %v630_v1  ;;  %v629_v8 = vld [vmem:[%s5159_s1 + $0x1040] sm:$0xff] }
  0xf9   :  { %2331 = vmatpush1.bf16.msra.mxu1 %v2330_v28  ;;  %v67_v0 = vld [vmem:[%s5158_s0 + $0x110] sm:$0xff]  ;;  %v2602_v4 = vpack.c.bf16 %v627_v63, %v625_v62  ;;  %v66_v6 = vld [vmem:[%s5158_s0 + $0x108] sm:$0xff]  ;;  %v636_v12 = vld [vmem:[%s5159_s1 + $0x1078] sm:$0xff] }
  0xfa   :  { %2587 = vmatpush1.bf16.msra.mxu0 %v2586_v29  ;;  %2333 = vmatprep.subr.bf16.mxu1 %v2332_v30  ;;  %v631_v9 = vld [vmem:[%s5159_s1 + $0x1050] sm:$0xff]  ;;  %v86_v10 = vld [vmem:[%s5158_s0 + $0x1a8] sm:$0xff]  ;;  %v77_v13 = vld [vmem:[%s5158_s0 + $0x160] sm:$0xff] }
  0xfb   :  { %2589 = vmatprep.subr.bf16.mxu0 %v2588_v34  ;;  %v634_v11 = vld [vmem:[%s5159_s1 + $0x1068] sm:$0xff]  ;;  %v2606_v14 = vpack.c.bf16 %v631_v9, %v629_v8  ;;  %v97_v15 = vld [vmem:[%s5158_s0 + $0x200] sm:$0xff]  ;;  %v635_v19 = vld [vmem:[%s5159_s1 + $0x1070] sm:$0xff] }
  0xfc   :  { %v85_v16 = vld [vmem:[%s5158_s0 + $0x1a0] sm:$0xff]  ;;  %v2608_v17 = vpack.c.bf16 %v636_v12, %v634_v11  ;;  %v638_v21 = vld [vmem:[%s5159_s1 + $0x1088] sm:$0xff]  ;;  %v640_v22 = vld [vmem:[%s5159_s1 + $0x1098] sm:$0xff] }
  0xfd   :  { %2335 = vmatpush1.bf16.msra.mxu1 %v2334_v40  ;;  %v633_v18 = vld [vmem:[%s5159_s1 + $0x1060] sm:$0xff]  ;;  %v96_v23 = vld [vmem:[%s5158_s0 + $0x1f8] sm:$0xff]  ;;  %v2612_v26 = vpack.c.bf16 %v640_v22, %v638_v21  ;;  %v639_v28 = vld [vmem:[%s5159_s1 + $0x1090] sm:$0xff] }
  0xfe   :  { %2591 = vmatpush1.bf16.msra.mxu0 %v2590_v41  ;;  %2337 = vmatprep.subr.bf16.mxu1 %v2336_v42  ;;  %v105_v20 = vld [vmem:[%s5158_s0 + $0x240] sm:$0xff]  ;;  %v2610_v24 = vpack.c.bf16 %v635_v19, %v633_v18  ;;  %v104_v25 = vld [vmem:[%s5158_s0 + $0x238] sm:$0xff]  ;;  %v50_v29 = vld [vmem:[%s5158_s0 + $0x88] sm:$0xff] }
  0xff   :  { %2593 = vmatprep.subr.bf16.mxu0 %v2592_v45  ;;  %v637_v27 = vld [vmem:[%s5159_s1 + $0x1080] sm:$0xff]  ;;  %v642_v30 = vld [vmem:[%s5159_s1 + $0x10a8] sm:$0xff]  ;;  %v644_v31 = vld [vmem:[%s5159_s1 + $0x10b8] sm:$0xff] }
 0x100   :  { %v2614_v32 = vpack.c.bf16 %v639_v28, %v637_v27  ;;  %v2616_v33 = vpack.c.bf16 %v644_v31, %v642_v30  ;;  %v641_v34 = vld [vmem:[%s5159_s1 + $0x10a0] sm:$0xff]  ;;  %v643_v35 = vld [vmem:[%s5159_s1 + $0x10b0] sm:$0xff]  ;;  %v646_v36 = vld [vmem:[%s5159_s1 + $0x10c8] sm:$0xff] }
 0x101   :  { %2339 = vmatpush1.bf16.msra.mxu1 %v2338_v50  ;;  %v648_v37 = vld [vmem:[%s5159_s1 + $0x10d8] sm:$0xff]  ;;  %v2618_v38 = vpack.c.bf16 %v643_v35, %v641_v34  ;;  %v645_v40 = vld [vmem:[%s5159_s1 + $0x10c0] sm:$0xff]  ;;  %v647_v41 = vld [vmem:[%s5159_s1 + $0x10d0] sm:$0xff] }
 0x102   :  { %2595 = vmatpush1.bf16.msra.mxu0 %v2594_v51  ;;  %v2620_v39 = vpack.c.bf16 %v648_v37, %v646_v36  ;;  %v650_v42 = vld [vmem:[%s5159_s1 + $0x10e8] sm:$0xff]  ;;  %v652_v43 = vld [vmem:[%s5159_s1 + $0x10f8] sm:$0xff]  ;;  %v2622_v44 = vpack.c.bf16 %v647_v41, %v645_v40  ;;  %v649_v46 = vld [vmem:[%s5159_s1 + $0x10e0] sm:$0xff] }
 0x103   :  { %2597 = vmatprep.subr.bf16.mxu0 %v2596_v52  ;;  %v2624_v45 = vpack.c.bf16 %v652_v43, %v650_v42  ;;  %v651_v47 = vld [vmem:[%s5159_s1 + $0x10f0] sm:$0xff]  ;;  %v654_v48 = vld [vmem:[%s5159_s1 + $0x1108] sm:$0xff]  ;;  %v656_v49 = vld [vmem:[%s5159_s1 + $0x1118] sm:$0xff] }
 0x104   :  { %1054 = vmatmul.mubr.f32.vlgmr.msra.gmra.mrb[0].mxu1 %v39_v57  ;;  %v2626_v50 = vpack.c.bf16 %v651_v47, %v649_v46  ;;  %v2628_v51 = vpack.c.bf16 %v656_v49, %v654_v48  ;;  %v653_v52 = vld [vmem:[%s5159_s1 + $0x1100] sm:$0xff]  ;;  %v655_v53 = vld [vmem:[%s5159_s1 + $0x1110] sm:$0xff]  ;;  %v658_v54 = vld [vmem:[%s5159_s1 + $0x1128] sm:$0xff] }
 0x105   :  { %1410 = vmatmul.mubr.f32.vlgmr.msra.gmra.mrb[0].mxu0 %v47_v58  ;;  %1059 = vmatprep.mubr.f32.mxu1 %v59_v60  ;;  %v660_v55 = vld [vmem:[%s5159_s1 + $0x1138] sm:$0xff]  ;;  %v2630_v56 = vpack.c.bf16 %v655_v53, %v653_v52  ;;  %v657_v58 = vld [vmem:[%s5159_s1 + $0x1120] sm:$0xff]  ;;  %v662_v60 = vld [vmem:[%s5159_s1 + $0x1148] sm:$0xff] }
 0x106   :  { %2599 = vmatpush1.bf16.msra.mxu0 %v2598_v59  ;;  %1415 = vmatprep.mubr.f32.mxu0 %v67_v0  ;;  %v2632_v57 = vpack.c.bf16 %v660_v55, %v658_v54  ;;  %v659_v59 = vld [vmem:[%s5159_s1 + $0x1130] sm:$0xff]  ;;  %v661_v0 = vld [vmem:[%s5159_s1 + $0x1140] sm:$0xff]  ;;  %v666_v2 = vld [vmem:[%s5159_s1 + $0x1168] sm:$0xff] }
 0x107   :  { %2601 = vmatprep.subr.bf16.mxu0 %v2600_v61  ;;  %v664_v61 = vld [vmem:[%s5159_s1 + $0x1158] sm:$0xff]  ;;  %v2634_v62 = vpack.c.bf16 %v659_v59, %v657_v58  ;;  %v663_v1 = vld [vmem:[%s5159_s1 + $0x1150] sm:$0xff]  ;;  %v670_v8 = vld [vmem:[%s5159_s1 + $0x1188] sm:$0xff] }
 0x108   :  { %1060 = vmatmul.mubr.f32.gmra.mrb[2].mxu1 %v58_v3  ;;  %v2636_v63 = vpack.c.bf16 %v664_v61, %v662_v60  ;;  %v668_v3 = vld [vmem:[%s5159_s1 + $0x1178] sm:$0xff]  ;;  %v669_v12 = vld [vmem:[%s5159_s1 + $0x1180] sm:$0xff]  ;;  %v675_v19 = vld [vmem:[%s5159_s1 + $0x11b0] sm:$0xff] }
 0x109   :  { %1065 = vmatprep.mubr.f32.mxu1 %v78_v5  ;;  %1416 = vmatmul.mubr.f32.gmra.mrb[2].mxu0 %v66_v6  ;;  %v2640_v5 = vpack.c.bf16 %v668_v3, %v666_v2  ;;  %v665_v6 = vld [vmem:[%s5159_s1 + $0x1160] sm:$0xff]  ;;  %v672_v9 = vld [vmem:[%s5159_s1 + $0x1198] sm:$0xff]  ;;  %v683_v31 = vld [vmem:[%s5159_s1 + $0x11f0] sm:$0xff] }
 0x10a   :  { %2603 = vmatpush1.bf16.msra.mxu0 %v2602_v4  ;;  %1421 = vmatprep.mubr.f32.mxu0 %v86_v10  ;;  %v2638_v4 = vpack.c.bf16 %v663_v1, %v661_v0  ;;  %v2644_v11 = vpack.c.bf16 %v672_v9, %v670_v8  ;;  %v673_v18 = vld [vmem:[%s5159_s1 + $0x11a0] sm:$0xff]  ;;  %v680_v21 = vld [vmem:[%s5159_s1 + $0x11d8] sm:$0xff]  ;;  %v687_v37 = vld [vmem:[%s5159_s1 + $0x1210] sm:$0xff]  ;;  %v2852_v8 = vmov 0.0  }
 0x10b   :  { %2605 = vmatprep.subr.bf16.mxu0 %v2604_v7  ;;  %v667_v7 = vld [vmem:[%s5159_s1 + $0x1170] sm:$0xff]  ;;  %v2650_v22 = vpack.c.bf16 %v675_v19, %v673_v18  ;;  %v684_v27 = vld [vmem:[%s5159_s1 + $0x11f8] sm:$0xff]  ;;  %v681_v30 = vld [vmem:[%s5159_s1 + $0x11e0] sm:$0xff] }
 0x10c   :  { %1066 = vmatmul.mubr.f32.gmra.mrb[4].mxu1 %v77_v13  ;;  %v2642_v10 = vpack.c.bf16 %v667_v7, %v665_v6  ;;  %v671_v13 = vld [vmem:[%s5159_s1 + $0x1190] sm:$0xff]  ;;  %v2658_v34 = vpack.c.bf16 %v683_v31, %v681_v30  ;;  %v685_v36 = vld [vmem:[%s5159_s1 + $0x1200] sm:$0xff]  ;;  %v694_v46 = vld [vmem:[%s5159_s1 + $0x1248] sm:$0xff] }
 0x10d   :  { %1071 = vmatprep.mubr.f32.mxu1 %v97_v15  ;;  %1422 = vmatmul.mubr.f32.gmra.mrb[4].mxu0 %v85_v16  ;;  %v676_v15 = vld [vmem:[%s5159_s1 + $0x11b8] sm:$0xff]  ;;  %v2646_v16 = vpack.c.bf16 %v671_v13, %v669_v12  ;;  %v49_v40 = vld [vmem:[%s5158_s0 + $0x80] sm:$0xff]  ;;  %v2662_v41 = vpack.c.bf16 %v687_v37, %v685_v36  ;;  %v695_v52 = vld [vmem:[%s5159_s1 + $0x1250] sm:$0xff] }
 0x10e   :  { %2607 = vmatpush1.bf16.msra.mxu0 %v2606_v14  ;;  %1427 = vmatprep.mubr.f32.mxu0 %v105_v20  ;;  %v674_v14 = vld [vmem:[%s5159_s1 + $0x11a8] sm:$0xff]  ;;  %v689_v43 = vld [vmem:[%s5159_s1 + $0x1220] sm:$0xff]  ;;  %v696_v47 = vld [vmem:[%s5159_s1 + $0x1258] sm:$0xff] }
 0x10f   :  { %2609 = vmatprep.subr.bf16.mxu0 %v2608_v17  ;;  %v2648_v17 = vpack.c.bf16 %v676_v15, %v674_v14  ;;  %v678_v20 = vld [vmem:[%s5159_s1 + $0x11c8] sm:$0xff]  ;;  %v68_v49 = vld [vmem:[%s5158_s0 + $0x118] sm:$0xff]  ;;  %v697_v59 = vld [vmem:[%s5159_s1 + $0x1260] sm:$0xff] }
 0x110   :  { %1072 = vmatmul.mubr.f32.gmra.mrb[6].mxu1 %v96_v23  ;;  %v2652_v23 = vpack.c.bf16 %v680_v21, %v678_v20  ;;  %v88_v53 = vld [vmem:[%s5158_s0 + $0x1b8] sm:$0xff]  ;;  %v698_v54 = vld [vmem:[%s5159_s1 + $0x1268] sm:$0xff]  ;;  %v699_v60 = vld [vmem:[%s5159_s1 + $0x1270] sm:$0xff] }
 0x111   :  { %1428 = vmatmul.mubr.f32.gmra.mrb[6].mxu0 %v104_v25  ;;  %v679_v25 = vld [vmem:[%s5159_s1 + $0x11d0] sm:$0xff]  ;;  %v700_v55 = vld [vmem:[%s5159_s1 + $0x1278] sm:$0xff]  ;;  %v2674_v0 = vpack.c.bf16 %v699_v60, %v697_v59  ;;  %v106_v1 = vld [vmem:[%s5158_s0 + $0x248] sm:$0xff] }
 0x112   :  { %2611 = vmatpush1.bf16.msra.mxu0 %v2610_v24  ;;  %1498 = vmatprep.mubr.f32.mxu0 %v50_v29  ;;  %v677_v24 = vld [vmem:[%s5159_s1 + $0x11c0] sm:$0xff]  ;;  %v2672_v58 = vpack.c.bf16 %v700_v55, %v698_v54  ;;  %v107_v61 = vld [vmem:[%s5158_s0 + $0x250] sm:$0xff]  ;;  %v708_v6 = vld [vmem:[%s5159_s1 + $0x12b8] sm:$0xff] }
 0x113   :  { %2613 = vmatprep.subr.bf16.mxu0 %v2612_v26  ;;  %v682_v26 = vld [vmem:[%s5159_s1 + $0x11e8] sm:$0xff]  ;;  %v2654_v28 = vpack.c.bf16 %v679_v25, %v677_v24  ;;  %v701_v3 = vld [vmem:[%s5159_s1 + $0x1280] sm:$0xff]  ;;  %v51_v13 = vld [vmem:[%s5158_s0 + $0x90] sm:$0xff] }
 0x114   :  { %v2656_v29 = vpack.c.bf16 %v684_v27, %v682_v26  ;;  %v70_v14 = vld [vmem:[%s5158_s0 + $0x128] sm:$0xff]  ;;  %v89_v15 = vld [vmem:[%s5158_s0 + $0x1c0] sm:$0xff]  ;;  %v1652_v21 = vld [vmem:[%s5161_s3 + $0x90] sm:$0xff] }
 0x115   :  { %v1634_v18 = vld [vmem:[%s5161_s3] sm:$0xff]  ;;  %v1635_v20 = vld [vmem:[%s5161_s3 + $0x8] sm:$0xff]  ;;  %v1636_v26 = vld [vmem:[%s5161_s3 + $0x10] sm:$0xff] }
 0x116   :  { %2615 = vmatpush1.bf16.msra.mxu0 %v2614_v32  ;;  %v686_v32 = vld [vmem:[%s5159_s1 + $0x1208] sm:$0xff]  ;;  %v2686_v24 = vpack.c.bf16 %v1635_v20, %v1634_v18  ;;  %v1637_v27 = vld [vmem:[%s5161_s3 + $0x18] sm:$0xff]  ;;  %v1664_v59 = vld [vmem:[%s5161_s3 + $0xf0] sm:$0xff] }
 0x117   :  { %2617 = vmatprep.subr.bf16.mxu0 %v2616_v33  ;;  %v688_v33 = vld [vmem:[%s5159_s1 + $0x1218] sm:$0xff]  ;;  %v1655_v30 = vld [vmem:[%s5161_s3 + $0xa8] sm:$0xff] }
 0x118   :  { %v2660_v35 = vpack.c.bf16 %v688_v33, %v686_v32  ;;  %v1638_v32 = vld [vmem:[%s5161_s3 + $0x20] sm:$0xff]  ;;  %v1639_v33 = vld [vmem:[%s5161_s3 + $0x28] sm:$0xff]  ;;  %v1657_v36 = vld [vmem:[%s5161_s3 + $0xb8] sm:$0xff] }
 0x119   :  { %v1663_v54 = vld [vmem:[%s5161_s3 + $0xe8] sm:$0xff]  ;;  %v1665_v60 = vld [vmem:[%s5161_s3 + $0xf8] sm:$0xff] }
 0x11a   :  { %2619 = vmatpush1.bf16.msra.mxu0 %v2618_v38  ;;  %v690_v38 = vld [vmem:[%s5159_s1 + $0x1228] sm:$0xff] }
 0x11b   :  { %2621 = vmatprep.subr.bf16.mxu0 %v2620_v39  ;;  %v692_v39 = vld [vmem:[%s5159_s1 + $0x1238] sm:$0xff] }
 0x11c   :  { %v2664_v42 = vpack.c.bf16 %v692_v39, %v690_v38  ;;  %v1640_v38 = vld [vmem:[%s5161_s3 + $0x30] sm:$0xff]  ;;  %v1641_v39 = vld [vmem:[%s5161_s3 + $0x38] sm:$0xff] }
 0x11e   :  { %2623 = vmatpush1.bf16.msra.mxu0 %v2622_v44  ;;  %v691_v44 = vld [vmem:[%s5159_s1 + $0x1230] sm:$0xff] }
 0x11f   :  { %2625 = vmatprep.subr.bf16.mxu0 %v2624_v45  ;;  %v69_v45 = vld [vmem:[%s5158_s0 + $0x120] sm:$0xff]  ;;  %v2666_v48 = vpack.c.bf16 %v691_v44, %v689_v43 }
 0x120   :  { %v1642_v44 = vld [vmem:[%s5161_s3 + $0x40] sm:$0xff] }
 0x122   :  { %2627 = vmatpush1.bf16.msra.mxu0 %v2626_v50  ;;  %v2668_v50 = vpack.c.bf16 %v696_v47, %v694_v46  ;;  %v1660_v47 = vld [vmem:[%s5161_s3 + $0xd0] sm:$0xff] }
 0x123   :  { %2629 = vmatprep.subr.bf16.mxu0 %v2628_v51  ;;  %v693_v51 = vld [vmem:[%s5159_s1 + $0x1240] sm:$0xff] }
 0x126   :  { %2631 = vmatpush1.bf16.msra.mxu0 %v2630_v56  ;;  %v2670_v56 = vpack.c.bf16 %v695_v52, %v693_v51  ;;  %v1645_v51 = vld [vmem:[%s5161_s3 + $0x58] sm:$0xff] }
 0x127   :  { %2633 = vmatprep.subr.bf16.mxu0 %v2632_v57  ;;  %v87_v57 = vld [vmem:[%s5158_s0 + $0x1b0] sm:$0xff] }
 0x12a   :  { %2635 = vmatpush1.bf16.msra.mxu0 %v2634_v62  ;;  %v702_v62 = vld [vmem:[%s5159_s1 + $0x1288] sm:$0xff] }
 0x12b   :  { %2637 = vmatprep.subr.bf16.mxu0 %v2636_v63  ;;  %v704_v63 = vld [vmem:[%s5159_s1 + $0x1298] sm:$0xff] }
 0x12c   :  { %v2676_v2 = vpack.c.bf16 %v704_v63, %v702_v62  ;;  %v1648_v62 = vld [vmem:[%s5161_s3 + $0x70] sm:$0xff]  ;;  %v1649_v63 = vld [vmem:[%s5161_s3 + $0x78] sm:$0xff] }
 0x12e   :  { %2639 = vmatpush1.bf16.msra.mxu0 %v2638_v4  ;;  %v703_v4 = vld [vmem:[%s5159_s1 + $0x1290] sm:$0xff] }
 0x12f   :  { %2641 = vmatprep.subr.bf16.mxu0 %v2640_v5  ;;  %v706_v5 = vld [vmem:[%s5159_s1 + $0x12a8] sm:$0xff]  ;;  %v2678_v7 = vpack.c.bf16 %v703_v4, %v701_v3 }
 0x130   :  { %v2680_v9 = vpack.c.bf16 %v708_v6, %v706_v5 }
 0x132   :  { %2643 = vmatpush1.bf16.msra.mxu0 %v2642_v10  ;;  %v705_v10 = vld [vmem:[%s5159_s1 + $0x12a0] sm:$0xff] }
 0x133   :  { %2645 = vmatprep.subr.bf16.mxu0 %v2644_v11  ;;  %v707_v11 = vld [vmem:[%s5159_s1 + $0x12b0] sm:$0xff] }
 0x134   :  { %v2682_v12 = vpack.c.bf16 %v707_v11, %v705_v10 }
 0x136   :  { %2647 = vmatpush1.bf16.msra.mxu0 %v2646_v16  ;;  %v1650_v16 = vld [vmem:[%s5161_s3 + $0x80] sm:$0xff] }
 0x137   :  { %2649 = vmatprep.subr.bf16.mxu0 %v2648_v17  ;;  %v1651_v17 = vld [vmem:[%s5161_s3 + $0x88] sm:$0xff] }
 0x138   :  { %v2684_v19 = vpack.c.bf16 %v1651_v17, %v1650_v16 }
 0x13a   :  { %2651 = vmatpush1.bf16.msra.mxu0 %v2650_v22  ;;  %v1653_v22 = vld [vmem:[%s5161_s3 + $0x98] sm:$0xff]  ;;  %2685 = vmatprep.subr.bf16.mxu1 %v2684_v19 }
 0x13b   :  { %2653 = vmatprep.subr.bf16.mxu0 %v2652_v23  ;;  %v108_v23 = vld [vmem:[%s5158_s0 + $0x258] sm:$0xff]  ;;  %v2688_v25 = vpack.c.bf16 %v1653_v22, %v1652_v21  ;;  %2687 = vmatpush3.bf16.msra.mxu1 %v2686_v24 }
 0x13d   :  { %2689 = vmatprep.subr.bf16.mxu1 %v2688_v25 }
 0x13e   :  { %2655 = vmatpush1.bf16.msra.mxu0 %v2654_v28  ;;  %v2690_v28 = vpack.c.bf16 %v1637_v27, %v1636_v26 }
 0x13f   :  { %2657 = vmatprep.subr.bf16.mxu0 %v2656_v29  ;;  %v1654_v29 = vld [vmem:[%s5161_s3 + $0xa0] sm:$0xff] }
 0x140   :  { %2691 = vmatpush3.bf16.msra.mxu1 %v2690_v28  ;;  %v2692_v31 = vpack.c.bf16 %v1655_v30, %v1654_v29  ;;  %v1618_v29 = vld [vmem:[%s5160_s2] sm:$0x3] }
 0x142   :  { %2659 = vmatpush1.bf16.msra.mxu0 %v2658_v34  ;;  %v2694_v34 = vpack.c.bf16 %v1639_v33, %v1638_v32  ;;  %2693 = vmatprep.subr.bf16.mxu1 %v2692_v31 }
 0x143   :  { %2661 = vmatprep.subr.bf16.mxu0 %v2660_v35  ;;  %v1656_v35 = vld [vmem:[%s5161_s3 + $0xb0] sm:$0xff] }
 0x144   :  { %2695 = vmatpush3.bf16.msra.mxu1 %v2694_v34  ;;  %v2696_v37 = vpack.c.bf16 %v1657_v36, %v1656_v35 }
 0x145   :  { %1499 = vmatmul.mubr.f32.vlgmr.msra.gmra.mrb[0].mxu0 %v49_v40  ;;  %v2698_v40 = vpack.c.bf16 %v1641_v39, %v1640_v38 }
 0x146   :  { %2663 = vmatpush1.bf16.msra.mxu0 %v2662_v41  ;;  %1504 = vmatprep.mubr.f32.mxu0 %v69_v45  ;;  %v1658_v41 = vld [vmem:[%s5161_s3 + $0xc0] sm:$0xff]  ;;  %v1643_v45 = vld [vmem:[%s5161_s3 + $0x48] sm:$0xff] }
 0x147   :  { %2665 = vmatprep.subr.bf16.mxu0 %v2664_v42  ;;  %2697 = vmatprep.subr.bf16.mxu1 %v2696_v37  ;;  %v1659_v42 = vld [vmem:[%s5161_s3 + $0xc8] sm:$0xff]  ;;  %v2702_v46 = vpack.c.bf16 %v1643_v45, %v1642_v44 }
 0x148   :  { %2699 = vmatpush3.bf16.msra.mxu1 %v2698_v40  ;;  %v2700_v43 = vpack.c.bf16 %v1659_v42, %v1658_v41  ;;  %v1744_v41 = vld [vmem:[%s5163_s5] sm:$0xff]  ;;  %v1745_v42 = vld [vmem:[%s5163_s5 + $0x8] sm:$0xff] }
 0x149   :  { %1505 = vmatmul.mubr.f32.gmra.mrb[2].mxu0 %v68_v49  ;;  %v2717_v45 = vpack.c.bf16 %v1745_v42, %v1744_v41 }
 0x14a   :  { %2667 = vmatpush1.bf16.msra.mxu0 %v2666_v48  ;;  %1510 = vmatprep.mubr.f32.mxu0 %v88_v53  ;;  %v1661_v48 = vld [vmem:[%s5161_s3 + $0xd8] sm:$0xff]  ;;  %v1662_v53 = vld [vmem:[%s5161_s3 + $0xe0] sm:$0xff] }
 0x14b   :  { %2669 = vmatprep.subr.bf16.mxu0 %v2668_v50  ;;  %2701 = vmatprep.subr.bf16.mxu1 %v2700_v43  ;;  %v2704_v49 = vpack.c.bf16 %v1661_v48, %v1660_v47  ;;  %v1644_v50 = vld [vmem:[%s5161_s3 + $0x50] sm:$0xff]  ;;  %v2708_v55 = vpack.c.bf16 %v1663_v54, %v1662_v53  ;;  %v1747_v48 = vld [vmem:[%s5163_s5 + $0x18] sm:$0xff] }
 0x14c   :  { %2703 = vmatpush3.bf16.msra.mxu1 %v2702_v46  ;;  %v2706_v52 = vpack.c.bf16 %v1645_v51, %v1644_v50  ;;  %v1746_v47 = vld [vmem:[%s5163_s5 + $0x10] sm:$0xff]  ;;  %v1748_v50 = vld [vmem:[%s5163_s5 + $0x20] sm:$0xff]  ;;  %v1749_v51 = vld [vmem:[%s5163_s5 + $0x28] sm:$0xff] }
 0x14d   :  { %1511 = vmatmul.mubr.f32.gmra.mrb[4].mxu0 %v87_v57  ;;  %2705 = vmatprep.subr.bf16.mxu1 %v2704_v49  ;;  %v1647_v57 = vld [vmem:[%s5161_s3 + $0x68] sm:$0xff]  ;;  %v2720_v49 = vpack.c.bf16 %v1747_v48, %v1746_v47  ;;  %v1750_v53 = vld [vmem:[%s5163_s5 + $0x30] sm:$0xff]  ;;  %v1751_v54 = vld [vmem:[%s5163_s5 + $0x38] sm:$0xff] }
 0x14e   :  { %2671 = vmatpush1.bf16.msra.mxu0 %v2670_v56  ;;  %1516 = vmatprep.mubr.f32.mxu0 %v107_v61  ;;  %v1646_v56 = vld [vmem:[%s5161_s3 + $0x60] sm:$0xff]  ;;  %v2712_v61 = vpack.c.bf16 %v1665_v60, %v1664_v59  ;;  %v1754_v59 = vld [vmem:[%s5163_s5 + $0x50] sm:$0xff]  ;;  %v1755_v60 = vld [vmem:[%s5163_s5 + $0x58] sm:$0xff] }
 0x14f   :  { %2673 = vmatprep.subr.bf16.mxu0 %v2672_v58  ;;  %v2710_v58 = vpack.c.bf16 %v1647_v57, %v1646_v56  ;;  %v1752_v56 = vld [vmem:[%s5163_s5 + $0x40] sm:$0xff]  ;;  %v1753_v57 = vld [vmem:[%s5163_s5 + $0x48] sm:$0xff] }
 0x150   :  { %2707 = vmatpush3.bf16.msra.mxu1 %v2706_v52  ;;  %v2723_v52 = vpack.c.bf16 %v1749_v51, %v1748_v50 }
 0x151   :  { %1517 = vmatmul.mubr.f32.gmra.mrb[6].mxu0 %v106_v1  ;;  %2709 = vmatprep.subr.bf16.mxu1 %v2708_v55  ;;  %v2853_v1 = vmov 0.0|0.0   ;;  %v2726_v55 = vpack.c.bf16 %v1751_v54, %v1750_v53 }
 0x152   :  { %2675 = vmatpush1.bf16.msra.mxu0 %v2674_v0  ;;  %1587 = vmatprep.mubr.f32.mxu0 %v2852_v8  ;;  %v2714_v0 = vpack.c.bf16 %v1649_v63, %v1648_v62  ;;  %v1756_v62 = vld [vmem:[%s5163_s5 + $0x60] sm:$0xff]  ;;  %v1757_v63 = vld [vmem:[%s5163_s5 + $0x68] sm:$0xff] }
 0x153   :  { %2677 = vmatprep.subr.bf16.mxu0 %v2676_v2 }
 0x154   :  { %2711 = vmatpush3.bf16.msra.mxu1 %v2710_v58  ;;  %v2729_v58 = vpack.c.bf16 %v1753_v57, %v1752_v56 }
 0x155   :  { %2713 = vmatprep.subr.bf16.mxu1 %v2712_v61  ;;  %v2732_v61 = vpack.c.bf16 %v1755_v60, %v1754_v59 }
 0x156   :  { %2679 = vmatpush1.bf16.msra.mxu0 %v2678_v7 }
 0x157   :  { %2681 = vmatprep.subr.bf16.mxu0 %v2680_v9 }
 0x158   :  { %2715 = vmatpush3.bf16.msra.mxu1 %v2714_v0  ;;  %v2735_v0 = vpack.c.bf16 %v1757_v63, %v1756_v62 }
 0x159   :  { %2716 = vmatprep.subr.bf16.mxu1 %v2853_v1 }
 0x15a   :  { %2683 = vmatpush1.bf16.msra.mxu0 %v2682_v12 }
 0x15d   :  { %1953 = vmatmul.mubr.msk.f32.vlgmr.msra.gmra.mrb[0].mxu0 %vm709_vm0, %v51_v13 }
 0x15e   :  { %1593 = vmatprep.mubr.f32.mxu0 %v2852_v8 }
 0x161   :  { %1954 = vmatmul.mubr.msk.f32.gmra.mrb[2].mxu0 %vm709_vm0, %v70_v14 }
 0x162   :  { %1599 = vmatprep.mubr.f32.mxu0 %v2852_v8 }
 0x165   :  { %1955 = vmatmul.mubr.msk.f32.gmra.mrb[4].mxu0 %vm709_vm0, %v89_v15  ;;  %v1620_v15 = vlaneseq }
 0x166   :  { %1605 = vmatprep.mubr.f32.mxu0 %v2852_v8 }
 0x167   :  { %v1621_v21 = vshrl.u32 %v1620_v15, 7 }
 0x169   :  { %1956 = vmatmul.mubr.msk.f32.gmra.mrb[6].mxu0 %vm709_vm0, %v108_v23  ;;  %v1622_v27 = vsub.s32 0, %v1621_v21  ;;  %v1626_v30 = vsub.s32 1, %v1621_v21 }
 0x16b   :  { %v1623_v35 = vrot.slane %v1618_v29, %v1622_v27  ;;  %v1627_v37 = vrot.slane %v1618_v29, %v1626_v30 }
 0x1d7   :  { %v1055_v2 = vpop.f32.mrb[0].mxu1 }
 0x1d8   :  { %v1057_v3 = vpop.f32.mrb[1].mxu1 }
 0x1db   :  { %v1061_v4 = vpop.f32.mrb[2].mxu1 }
 0x1dc   :  { %v1063_v5 = vpop.f32.mrb[3].mxu1 }
 0x1df   :  { %v1067_v6 = vpop.f32.mrb[4].mxu1 }
 0x1e0   :  { %v1069_v7 = vpop.f32.mrb[5].mxu1 }
 0x1e3   :  { %v1073_v9 = vpop.f32.mrb[6].mxu1 }
 0x1e4   :  { %v1075_v10 = vpop.f32.mrb[7].mxu1 }
 0x230   :  { %v1589_v11 = vpop.f32.mrb[0].mxu0 }
 0x231   :  { %v2752_v12 = vadd.f32 %v1589_v11, %v1055_v2  ;;  %v1591_v13 = vpop.f32.mrb[1].mxu0  ;;  %v1758_v2 = vld [vmem:[%s5163_s5 + $0x70] sm:$0xff] }
 0x232   :  { %v2753_v14 = vadd.f32 %v1591_v13, %v1057_v3  ;;  %v1843_v13 = vld [vmem:[%s5165_s7 + $0x10] sm:$0xff] }
 0x234   :  { %v1595_v16 = vpop.f32.mrb[2].mxu0 }
 0x235   :  { %v2754_v17 = vadd.f32 %v1595_v16, %v1061_v4  ;;  %v1597_v18 = vpop.f32.mrb[3].mxu0  ;;  %v1957_v4 = vld [vmem:[%s5162_s4] ss:$0 sm:$0xff] }
 0x236   :  { %v2755_v19 = vadd.f32 %v1597_v18, %v1063_v5  ;;  %v1845_v16 = vld [vmem:[%s5165_s7 + $0x20] sm:$0xff] }
 0x237   :  { %v1612_v20 = vmax.f32 %v2752_v12, %v2754_v17  ;;  %v1846_v17 = vld [vmem:[%s5165_s7 + $0x28] sm:$0xff] }
 0x238   :  { %v1613_v22 = vmax.f32 %v2753_v14, %v2755_v19  ;;  %v1601_v23 = vpop.f32.mrb[4].mxu0  ;;  %v1844_v14 = vld [vmem:[%s5165_s7 + $0x18] sm:$0xff]  ;;  %v2744_v18 = vpack.c.bf16 %v1846_v17, %v1845_v16  ;;  %v1847_v19 = vld [vmem:[%s5165_s7 + $0x30] sm:$0xff] }
 0x239   :  { %v2756_v24 = vadd.f32 %v1601_v23, %v1067_v6  ;;  %v1603_v25 = vpop.f32.mrb[5].mxu0  ;;  %v2741_v15 = vpack.c.bf16 %v1844_v14, %v1843_v13  ;;  %v1850_v23 = vld [vmem:[%s5165_s7 + $0x48] sm:$0xff] }
 0x23a   :  { %v2757_v26 = vadd.f32 %v1603_v25, %v1069_v7  ;;  %v1841_v7 = vld [vmem:[%s5165_s7] sm:$0xff]  ;;  %v1851_v25 = vld [vmem:[%s5165_s7 + $0x50] sm:$0xf] }
 0x23c   :  { %v1607_v28 = vpop.f32.mrb[6].mxu0 }
 0x23d   :  { %v2758_v31 = vadd.f32 %v1607_v28, %v1073_v9  ;;  %v1609_v32 = vpop.f32.mrb[7].mxu0  ;;  %v1842_v9 = vld [vmem:[%s5165_s7 + $0x8] sm:$0xff] }
 0x23e   :  { %v2759_v33 = vadd.f32 %v1609_v32, %v1075_v10  ;;  %v2738_v11 = vpack.c.bf16 %v1842_v9, %v1841_v7 }
 0x23f   :  { %v1614_v34 = vmax.f32 %v2756_v24, %v2758_v31 }
 0x240   :  { %v1615_v36 = vmax.f32 %v2757_v26, %v2759_v33 }
 0x241   :  { %v1616_v38 = vmax.f32 %v1612_v20, %v1614_v34  ;;  %v1848_v20 = vld [vmem:[%s5165_s7 + $0x38] sm:$0xff] }
 0x242   :  { %v1617_v39 = vmax.f32 %v1613_v22, %v1615_v36  ;;  %v2747_v21 = vpack.c.bf16 %v1848_v20, %v1847_v19  ;;  %v1849_v22 = vld [vmem:[%s5165_s7 + $0x40] sm:$0xff]  ;;  %s2828_s7 = scalar_lea.vmem %s1946_s18, 128 }
 0x243   :  { %v1630_v40 = vadd.f32 %v1623_v35, %v1616_v38  ;;  %v2750_v24 = vpack.c.bf16 %v1850_v23, %v1849_v22  ;;  %p2829_p0 = scmp.ne.s32.totalorder %s1946_s18, %s2828_s7  ;;  %p2834_p2 = scmp.lt.s32.totalorder %s2828_s7, %s2828_s7 }
 0x244   :  { %v1631_v43 = vadd.f32 %v1627_v37, %v1617_v39 }
 0x245   :  { %v1632_v46 = vmax.f32 %v1630_v40, 0.0  ;;  %p2835_p3 = por %p2834_p2, %p2833_p1 }
 0x246   :  { %v1633_v44 = vmax.f32 %v1631_v43, 0.0 }
 0x247   :  { %p2836_p4 = pnand %p2835_p3, %p2829_p0 }
 0x248   :  { %1737 = vmatprep.mubr.f32.mxu1 %v1633_v44 }
 0x249   :  { %1738 = vmatmul.mubr.f32.vlgmr.msra.gmra.mrb[8].mxu1 %v1632_v46 }
 0x24a   :  { %2718 = vmatpush3.bf16.msra.mxu1 %v2717_v45  ;;  %2056 = vmatprep.mubr.msk.f32.mxu1 %vm2854_vm1, %v2852_v8 }
 0x24b   :  { %2719 = vmatprep.subr.bf16.mxu1 %v2853_v1 }
 0x24e   :  { %2721 = vmatpush3.bf16.msra.mxu1 %v2720_v49 }
 0x24f   :  { %2722 = vmatprep.subr.bf16.mxu1 %v2853_v1 }
 0x252   :  { %2724 = vmatpush3.bf16.msra.mxu1 %v2723_v52 }
 0x253   :  { %2725 = vmatprep.subr.bf16.mxu1 %v2853_v1 }
 0x256   :  { %2727 = vmatpush3.bf16.msra.mxu1 %v2726_v55 }
 0x257   :  { %2728 = vmatprep.subr.bf16.mxu1 %v2853_v1 }
 0x25a   :  { %2730 = vmatpush3.bf16.msra.mxu1 %v2729_v58 }
 0x25b   :  { %2731 = vmatprep.subr.bf16.mxu1 %v2853_v1 }
 0x25e   :  { %2733 = vmatpush3.bf16.msra.mxu1 %v2732_v61 }
 0x25f   :  { %2734 = vmatprep.subr.bf16.mxu1 %v2853_v1 }
 0x262   :  { %2736 = vmatpush3.bf16.msra.mxu1 %v2735_v0 }
 0x263   :  { %2054 = vmatprep.subr.mxu1 %v2852_v8 }
 0x266   :  { %2055 = vmatpush3.msra.mxu1 %v1758_v2 }
 0x267   :  { %2737 = vmatprep.subr.bf16.mxu1 %v2853_v1 }
 0x31c   :  { %v1995_v3 = vpop.f32.mrb[8].mxu1 }
 0x31d   :  { %v1996_v5 = vpop.f32.mrb[9].mxu1 }
 0x31e   :  { %v1997_v6 = vadd.f32 %v1996_v5, %v1995_v3 }
 0x320   :  { %v1740_v10 = vadd.f32 %v1997_v6, %v1957_v4 }
 0x322   :  { %v1743_v12 = vmax.f32 %v1740_v10, 0.0 }
 0x324   :  { %2057 = vmatmul.mubr.msk.f32.vlgmr.msra.gmra.mrb[10].mxu1 %vm1766_vm2, %v1743_v12 }
 0x325   :  { %2739 = vmatpush3.bf16.msra.mxu1 %v2738_v11  ;;  %2081 = vmatprep.mubr.msk.f32.mxu1 %vm2854_vm1, %v2852_v8 }
 0x326   :  { %2740 = vmatprep.subr.bf16.mxu1 %v2853_v1 }
 0x329   :  { %2742 = vmatpush3.bf16.msra.mxu1 %v2741_v15 }
 0x32a   :  { %2743 = vmatprep.subr.bf16.mxu1 %v2853_v1 }
 0x32d   :  { %2745 = vmatpush3.bf16.msra.mxu1 %v2744_v18 }
 0x32e   :  { %2746 = vmatprep.subr.bf16.mxu1 %v2853_v1 }
 0x331   :  { %2748 = vmatpush3.bf16.msra.mxu1 %v2747_v21 }
 0x332   :  { %2749 = vmatprep.subr.bf16.mxu1 %v2853_v1  ;;  %v1958_v1 = vld [vmem:[%s5164_s6] ss:$0 sm:$0xff] }
 0x335   :  { %2751 = vmatpush3.bf16.msra.mxu1 %v2750_v24 }
 0x336   :  { %2079 = vmatprep.subr.mxu1 %v2852_v8  ;;  %v1960_v8 = vld [vmem:[%s5166_s8] ss:$0 sm:$0xff] }
 0x339   :  { %2080 = vmatpush3.msk.msra.mxu1 %vm1863_vm3, %v1851_v25 }
 0x3f7   :  { %v1836_v26 = vpop.f32.mrb[10].mxu1 }
 0x3f8   :  { %v1837_v27 = vadd.f32 %v1958_v1, %v1836_v26  ;;  %v2058_v28 = vpop.f32.mrb[11].mxu1 }
 0x3fa   :  { %v1840_v29 = vmax.f32 %v1837_v27, 0.0 }
 0x3fc   :  { %2082 = vmatmul.mubr.msk.f32.vlgmr.msra.gmra.mrb[12].mxu1 %vm1859_vm4, %v1840_v29 }
 0x4cf   :  { %v1933_v30 = vpop.f32.mrb[12].mxu1 }
 0x4d0   :  { %v1934_v31 = vadd.f32 %v1960_v8, %v1933_v30  ;;  %v2083_v32 = vpop.f32.mrb[13].mxu1 }
 0x4d2   :  { %1938 = vst.msk [vmem:[#allocation2] sm:$0xff] %vm1937_vm5, %v1934_v31 }
 0x4d3   :  { %2839 = shalt.err (!%p2836_p4)
}
 0x4d4   :  { %s2840_s20 = scalar_lea.hbm %s5167_s9, 128 }
 0x4d5   :  { %p2841_p5 = scmp.ne.s32.totalorder %s5167_s9, %s2840_s20  ;;  %p2844_p6 = scmp.lt.u32.totalorder %s2840_s20, %s5167_s9 }
 0x4d7   :  { %p2846_p7 = pnand %p2844_p6, %p2841_p5 }
 0x4d9   :  { %2849 = shalt.err (!%p2846_p7)
}
 0x4da   :  { %1948 = dma.vmem_to_hbm [thread:$0]  %s1946_s18, 128, %s5167_s9, [#allocation3]  }
 0x4db   :  { %2850 = dma.done.wait [#allocation3], 128  }
 0x4dc   :  { %2851 = vsyncadd [#allocation3], 4294967168 }
 0x4dd   :  { %1952 = vsyncpa [#allocation3], 1 }

</bundles_post_ra>
